<compile_context>
chip_gen: v5e
topology: v5e:2x2
jax: 0.10.0
libtpu: 0.0.40
codegen_flags: <defaults>
</compile_context>

<pallas_src>
import math
from functools import partial

import jax
import jax.numpy as jnp
from jax.experimental import pallas as pl
from jax.experimental.pallas import tpu as pltpu

_BN_EPS = 1e-5
_VMEM_LIMIT = 32 * 1024 * 1024        # valid on v5e/v6e (128 MiB) and v7x (64 MiB physical)
_TILE_BUDGET = 12 * 1024 * 1024       # per-step working set target (double-buffered tiles)


def _largest_divisor(n, cap, ok=lambda d: True):
    """Largest divisor of n that is <= cap and satisfies ok(); falls back to n (full dim)."""
    cap = max(1, min(n, cap))
    for d in range(cap, 0, -1):
        if n % d == 0 and ok(d):
            return d
    return n


# ----------------------------------------------------------------------------
# Kernel A: 3x3 conv (stride 1, pad 1) + bias, accumulated over the 3 ky taps,
# emitting per-tile BatchNorm partial statistics.
# ----------------------------------------------------------------------------
def _conv3x3_tap_kernel(x_ref, w_ref, b_ref, y_ref, stats_ref, acc_ref, *, out_w):
    """grid = (num_row_tiles, 3); axis 1 (ky tap) is the reduction axis (last, arbitrary).

      x_ref    : (tr, W+2, Cin)     bf16  ky-shifted, W-padded activation rows
      w_ref    : (3, 3*Cin, Cout)   bf16  whole weight, resident across the grid
      b_ref    : (1, Cout)          f32
      y_ref    : (tr*W, Cout)       f32   conv + bias (pre-BN) output tile
      stats_ref: (8, Cout)          f32   row0 = sum(y), row1 = sum(y*y) of this tile
      acc_ref  : (tr*W, Cout)       f32   VMEM accumulator across the 3 ky taps
    """
    ky = pl.program_id(1)

    @pl.when(ky == 0)
    def _():
        acc_ref[...] = jnp.zeros_like(acc_ref)

    x = x_ref[...]                                          # (tr, W+2, Cin) bf16
    tr, _, cin = x.shape
    # In-register im2col along W only (the 3 kx taps); no HBM patch-matrix blowup.
    patches = jnp.concatenate(
        [x[:, kx:kx + out_w, :].reshape(tr * out_w, cin) for kx in range(3)],
        axis=-1)                                            # (tr*W, 3*Cin) bf16
    acc_ref[...] += jnp.dot(patches, w_ref[ky],
                            preferred_element_type=jnp.float32)

    @pl.when(ky == pl.num_programs(1) - 1)
    def _():
        y = acc_ref[...] + b_ref[...]                       # conv + bias, f32
        y_ref[...] = y
        s1 = jnp.sum(y, axis=0, keepdims=True)
        s2 = jnp.sum(y * y, axis=0, keepdims=True)
        pad = jnp.zeros((6, y.shape[1]), jnp.float32)       # pad stats block to 8 sublanes
        stats_ref[...] = jnp.concatenate([s1, s2, pad], axis=0)


# ----------------------------------------------------------------------------
# Kernel B: elementwise BatchNorm affine + ReLU:  o = max(scale * y + shift, 0)
# ----------------------------------------------------------------------------
def _bn_relu_kernel(y_ref, scale_ref, shift_ref, o_ref):
    o_ref[...] = jnp.maximum(
        y_ref[...] * scale_ref[...] + shift_ref[...], 0.0).astype(o_ref.dtype)


# ----------------------------------------------------------------------------
# Layer wrapper: 3x3 conv + bias + BatchNorm (batch statistics) + ReLU, NHWC.
# ----------------------------------------------------------------------------
def conv3x3_bn_relu(x_nhwc, p, *, out_dtype=jnp.float32):
    N, H, W, Cin = x_nhwc.shape
    Cout = p["w"].shape[-1]
    M = N * H * W
    NR = N * H
    Wp = W + 2

    # bf16 MXU operands; accumulation / bias / BN stay in f32.
    xb = x_nhwc.astype(jnp.bfloat16)
    wb = p["w"].reshape(3, 3 * Cin, Cout).astype(jnp.bfloat16)   # [ky][kx*Cin + ci, co]
    b = p["b"].reshape(1, Cout).astype(jnp.float32)

    # Pad H/W by 1 and build the 3 ky-shifted row views.  Activation HBM traffic is ~3x
    # (vs 9x for a full im2col patch matrix) and BlockSpec tiles stay rectangular.
    # TODO(synk): a halo-DMA variant (manual make_async_copy) would cut this to ~1x.
    xp = jnp.pad(xb, ((0, 0), (1, 1), (1, 1), (0, 0)))
    xs = jnp.stack([xp[:, ky:ky + H, :, :] for ky in range(3)], axis=0)
    xs = xs.reshape(3, NR, Wp, Cin)

    # Row-tile sizing: largest divisor of N*H whose double-buffered working set fits the
    # per-step VMEM budget (sized for v7x: 64 MiB physical / 32 MiB scoped VMEM).
    row_bytes = 2 * (Wp * Cin * 2) + 3 * (W * Cout * 4)   # x (2 bufs) + y (2 bufs) + acc
    tr = _largest_divisor(
        NR, max(1, _TILE_BUDGET // max(row_bytes, 1)),
        ok=lambda d: (d * W) % 8 == 0 or d * W == M)
    n_tiles = NR // tr

    grid_spec = pltpu.PrefetchScalarGridSpec(
        num_scalar_prefetch=0,
        grid=(n_tiles, 3),                                  # (row tiles, ky taps); taps last
        in_specs=[
            # ky-shifted activation rows: new tile per (row-tile, tap)
            pl.BlockSpec((None, tr, Wp, Cin), lambda i, t: (t, i, 0, 0)),
            # weights + bias: constant index map -> DMA'd once, resident in VMEM
            pl.BlockSpec((3, 3 * Cin, Cout), lambda i, t: (0, 0, 0)),
            pl.BlockSpec((1, Cout), lambda i, t: (0, 0)),
        ],
        out_specs=[
            pl.BlockSpec((tr * W, Cout), lambda i, t: (i, 0)),
            pl.BlockSpec((None, 8, Cout), lambda i, t: (i, 0, 0)),
        ],
        scratch_shapes=[pltpu.VMEM((tr * W, Cout), jnp.float32)],
    )
    y, stats = pl.pallas_call(
        partial(_conv3x3_tap_kernel, out_w=W),
        out_shape=(jax.ShapeDtypeStruct((M, Cout), jnp.float32),
                   jax.ShapeDtypeStruct((n_tiles, 8, Cout), jnp.float32)),
        grid_spec=grid_spec,
        compiler_params=pltpu.CompilerParams(
            dimension_semantics=("parallel", "arbitrary"),  # row tiles shard across TCs
            vmem_limit_bytes=_VMEM_LIMIT),
    )(xs, wb, b)

    # Global batch statistics from the per-tile partial sums (torch train-mode BN:
    # biased variance, eps=1e-5).  Tiny JAX reduce keeps numerics exact under M-tiling.
    inv_m = 1.0 / float(M)
    mean = stats[:, 0, :].sum(axis=0) * inv_m
    var = jnp.maximum(stats[:, 1, :].sum(axis=0) * inv_m - mean * mean, 0.0)
    # TODO(synk): BatchNorm running_mean/running_var buffer updates (training-mode side
    # effect) are not modeled; only the forward output is reproduced.
    scale_v = p["gamma"] * jax.lax.rsqrt(var + _BN_EPS)
    shift_v = p["beta"] - mean * scale_v
    scale = scale_v.reshape(1, Cout).astype(jnp.float32)
    shift = shift_v.reshape(1, Cout).astype(jnp.float32)

    # Phase 2: elementwise BN affine + ReLU.
    tm = _largest_divisor(M, 4096, ok=lambda d: d % 8 == 0 or d == M)
    o = pl.pallas_call(
        _bn_relu_kernel,
        out_shape=jax.ShapeDtypeStruct((M, Cout), out_dtype),
        grid_spec=pltpu.PrefetchScalarGridSpec(
            num_scalar_prefetch=0,
            grid=(M // tm,),
            in_specs=[
                pl.BlockSpec((tm, Cout), lambda i: (i, 0)),
                pl.BlockSpec((1, Cout), lambda i: (0, 0)),
                pl.BlockSpec((1, Cout), lambda i: (0, 0)),
            ],
            out_specs=pl.BlockSpec((tm, Cout), lambda i: (i, 0))),
        compiler_params=pltpu.CompilerParams(
            dimension_semantics=("parallel",),
            vmem_limit_bytes=_VMEM_LIMIT),
    )(y, scale, shift)
    # TODO(synk): for Cout < 128 the output stores are lane-masked; a transposed (Cout, M)
    # orientation would be lane-dense but needs extra layout plumbing between layers.
    return o.reshape(N, H, W, Cout)


# ----------------------------------------------------------------------------
# Parameters and the conv_blockDcIo forward pass.
# ----------------------------------------------------------------------------
def make_params(key, in_ch, out_ch):
    k1, k2 = jax.random.split(key)

    def conv_bn_p(k, cin, cout):
        kw, kb = jax.random.split(k)
        fan_in = 9 * cin
        return {
            "w": jax.random.normal(kw, (3, 3, cin, cout), jnp.float32) / math.sqrt(fan_in),
            "b": jax.random.normal(kb, (cout,), jnp.float32) * 0.01,
            "gamma": jnp.ones((cout,), jnp.float32),   # torch BatchNorm2d affine defaults
            "beta": jnp.zeros((cout,), jnp.float32),
        }

    return {"conv1": conv_bn_p(k1, in_ch, out_ch),
            "conv2": conv_bn_p(k2, out_ch, out_ch)}


def conv_block_forward(params, x_nchw):
    """conv_blockDcIo.forward: DEConvio -> BN -> ReLU -> DEConvio -> BN -> ReLU."""
    # TODO(synk): DEConvio is not defined in the provided spec; it is modeled as its
    # deploy-time re-parameterized equivalent, a plain 3x3 conv (stride 1, pad 1) + bias.
    x = jnp.transpose(x_nchw, (0, 2, 3, 1))                            # NCHW -> NHWC
    h = conv3x3_bn_relu(x, params["conv1"], out_dtype=jnp.bfloat16)    # feeds next bf16 matmul
    h = conv3x3_bn_relu(h, params["conv2"], out_dtype=jnp.float32)
    return jnp.transpose(h, (0, 3, 1, 2))                              # NHWC -> NCHW


# ----------------------------------------------------------------------------
# Pure-JAX f32 reference (for a numerical sanity check).
# ----------------------------------------------------------------------------
def _reference_forward(params, x_nchw):
    def layer(x, p):
        y = jax.lax.conv_general_dilated(
            x, p["w"], window_strides=(1, 1), padding="SAME",
            dimension_numbers=("NHWC", "HWIO", "NHWC"))
        y = y + p["b"].reshape(1, 1, 1, -1)
        mean = jnp.mean(y, axis=(0, 1, 2))
        var = jnp.var(y, axis=(0, 1, 2))
        y = (y - mean) * jax.lax.rsqrt(var + _BN_EPS) * p["gamma"] + p["beta"]
        return jnp.maximum(y, 0.0)

    x = jnp.transpose(x_nchw, (0, 2, 3, 1))
    x = layer(x, params["conv1"])
    x = layer(x, params["conv2"])
    return jnp.transpose(x, (0, 3, 1, 2))


if __name__ == "__main__":
    key = jax.random.PRNGKey(0)
    pkey, xkey = jax.random.split(key)

    in_ch, out_ch = 4, 32
    params = make_params(pkey, in_ch=in_ch, out_ch=out_ch)
    x = jax.random.normal(xkey, (2, in_ch, 16, 16), jnp.float32)   # NCHW, like PyTorch

    fwd = jax.jit(conv_block_forward)
    out = jax.block_until_ready(fwd(params, x))

    assert out.shape == (2, out_ch, 16, 16), out.shape
    assert bool(jnp.all(jnp.isfinite(out)))
    assert bool(jnp.all(out >= 0.0))                               # ReLU output

    # Cross-check against the pure-JAX f32 reference (bf16 MXU operands -> loose tolerance).
    ref = jax.jit(_reference_forward)(params, x)
    rel_err = float(jnp.linalg.norm(out - ref) / (jnp.linalg.norm(ref) + 1e-12))
    assert rel_err < 5e-2, rel_err

    print("KERNEL_OK")
</pallas_src>

<mosaic_0001>
module attributes {stable_mosaic.version = 11 : i64} {
  func.func @_conv3x3_tap_kernel(%arg0: i32, %arg1: i32, %arg2: memref<1x32x18x4xbf16, #tpu.memory_space<vmem>>, %arg3: memref<3x12x32xbf16, #tpu.memory_space<vmem>>, %arg4: memref<1x32xf32, #tpu.memory_space<vmem>>, %arg5: memref<512x32xf32, #tpu.memory_space<vmem>>, %arg6: memref<1x8x32xf32, #tpu.memory_space<vmem>>, %arg7: memref<512x32xf32, #tpu.memory_space<vmem>>) attributes {dimension_semantics = [#tpu.dimension_semantics<parallel>, #tpu.dimension_semantics<arbitrary>], iteration_bounds = array<i64: 1, 3>, scalar_prefetch = 0 : i64, scratch_operands = 1 : i64, tpu.core_type = #tpu.core_type<tc>, window_params = [{transform_indices = @transform_0, window_bounds = array<i64: 1, 32, 18, 4>}, {pipeline_mode = #tpu.pipeline_mode<synchronous>, transform_indices = @transform_1, window_bounds = array<i64: 3, 12, 32>}, {pipeline_mode = #tpu.pipeline_mode<synchronous>, transform_indices = @transform_2, window_bounds = array<i64: 1, 32>}, {transform_indices = @transform_3, window_bounds = array<i64: 512, 32>}, {transform_indices = @transform_4, window_bounds = array<i64: 1, 8, 32>}]} {
    %c0_i32 = arith.constant 0 : i32
    %0 = arith.cmpi eq, %arg1, %c0_i32 : i32
    %1 = arith.extui %0 : i1 to i32
    %c0_i32_0 = arith.constant 0 : i32
    %2 = arith.cmpi ne, %1, %c0_i32_0 : i32
    scf.if %2 {
      %cst_11 = arith.constant 0.000000e+00 : f32
      %22 = vector.broadcast %cst_11 : f32 to vector<512x32xf32>
      %c0_12 = arith.constant 0 : index
      %c0_13 = arith.constant 0 : index
      %23 = vector.load %arg7[%c0_12, %c0_13] : memref<512x32xf32, #tpu.memory_space<vmem>>, vector<512x32xf32>
      tpu.vector_store %arg7[%c0_12, %c0_13], %22 {strides = array<i32>} : memref<512x32xf32, #tpu.memory_space<vmem>>, vector<512x32xf32>,
    } else {
    }
    %c0 = arith.constant 0 : index
    %c0_1 = arith.constant 0 : index
    %c0_2 = arith.constant 0 : index
    %c0_3 = arith.constant 0 : index
    %3 = vector.load %arg2[%c0, %c0_1, %c0_2, %c0_3] : memref<1x32x18x4xbf16, #tpu.memory_space<vmem>>, vector<1x32x18x4xbf16>
    %4 = vector.shape_cast %3 : vector<1x32x18x4xbf16> to vector<32x18x4xbf16>
    %5 = vector.extract_strided_slice %4 {offsets = [0, 0, 0], sizes = [32, 16, 4], strides = [1, 1, 1]} : vector<32x18x4xbf16> to vector<32x16x4xbf16>
    %6 = vector.shape_cast %5 : vector<32x16x4xbf16> to vector<512x4xbf16>
    %7 = vector.extract_strided_slice %4 {offsets = [0, 1, 0], sizes = [32, 16, 4], strides = [1, 1, 1]} : vector<32x18x4xbf16> to vector<32x16x4xbf16>
    %8 = vector.shape_cast %7 : vector<32x16x4xbf16> to vector<512x4xbf16>
    %9 = vector.extract_strided_slice %4 {offsets = [0, 2, 0], sizes = [32, 16, 4], strides = [1, 1, 1]} : vector<32x18x4xbf16> to vector<32x16x4xbf16>
    %10 = vector.shape_cast %9 : vector<32x16x4xbf16> to vector<512x4xbf16>
    %11 = tpu.concatenate %6, %8, %10 in 1 : vector<512x4xbf16>, vector<512x4xbf16>, vector<512x4xbf16> -> vector<512x12xbf16>
    %c0_4 = arith.constant 0 : index
    %c0_5 = arith.constant 0 : index
    %12 = vector.load %arg7[%c0_4, %c0_5] : memref<512x32xf32, #tpu.memory_space<vmem>>, vector<512x32xf32>
    %13 = arith.index_cast %arg1 : i32 to index
    %c0_6 = arith.constant 0 : index
    %c0_7 = arith.constant 0 : index
    %14 = vector.load %arg3[%13, %c0_6, %c0_7] : memref<3x12x32xbf16, #tpu.memory_space<vmem>>, vector<1x12x32xbf16>
    %15 = vector.shape_cast %14 : vector<1x12x32xbf16> to vector<12x32xbf16>
    %cst = arith.constant dense<0.000000e+00> : vector<512x32xf32>
    %16 = tpu.matmul %11, %15, %cst {dimension_numbers = #tpu.dot_dimension_numbers<[1], [0], [0], [1], [0, 0, 1, 1], [], []>} : vector<512x12xbf16>, vector<12x32xbf16>, vector<512x32xf32> -> vector<512x32xf32>
    %17 = arith.addf %12, %16 : vector<512x32xf32>
    %c0_8 = arith.constant 0 : index
    %c0_9 = arith.constant 0 : index
    %18 = vector.load %arg7[%c0_8, %c0_9] : memref<512x32xf32, #tpu.memory_space<vmem>>, vector<512x32xf32>
    tpu.vector_store %arg7[%c0_8, %c0_9], %17 {strides = array<i32>} : memref<512x32xf32, #tpu.memory_space<vmem>>, vector<512x32xf32>,
    %c2_i32 = arith.constant 2 : i32
    %19 = arith.cmpi eq, %arg1, %c2_i32 : i32
    %20 = arith.extui %19 : i1 to i32
    %c0_i32_10 = arith.constant 0 : i32
    %21 = arith.cmpi ne, %20, %c0_i32_10 : i32
    scf.if %21 {
      %c0_11 = arith.constant 0 : index
      %c0_12 = arith.constant 0 : index
      %22 = vector.load %arg7[%c0_11, %c0_12] : memref<512x32xf32, #tpu.memory_space<vmem>>, vector<512x32xf32>
      %c0_13 = arith.constant 0 : index
      %c0_14 = arith.constant 0 : index
      %23 = vector.load %arg4[%c0_13, %c0_14] : memref<1x32xf32, #tpu.memory_space<vmem>>, vector<1x32xf32>
      %24 = vector.broadcast %23 : vector<1x32xf32> to vector<512x32xf32>
      %25 = arith.addf %22, %24 : vector<512x32xf32>
      %c0_15 = arith.constant 0 : index
      %c0_16 = arith.constant 0 : index
      %26 = vector.load %arg5[%c0_15, %c0_16] : memref<512x32xf32, #tpu.memory_space<vmem>>, vector<512x32xf32>
      tpu.vector_store %arg5[%c0_15, %c0_16], %25 {strides = array<i32>} : memref<512x32xf32, #tpu.memory_space<vmem>>, vector<512x32xf32>,
      %cst_17 = arith.constant dense<0.000000e+00> : vector<32xf32>
      %27 = vector.multi_reduction <add>, %25, %cst_17 [0] : vector<512x32xf32> to vector<32xf32>
      %28 = vector.shape_cast %27 : vector<32xf32> to vector<1x32xf32>
      %29 = arith.mulf %25, %25 : vector<512x32xf32>
      %cst_18 = arith.constant dense<0.000000e+00> : vector<32xf32>
      %30 = vector.multi_reduction <add>, %29, %cst_18 [0] : vector<512x32xf32> to vector<32xf32>
      %31 = vector.shape_cast %30 : vector<32xf32> to vector<1x32xf32>
      %cst_19 = arith.constant 0.000000e+00 : f32
      %32 = vector.broadcast %cst_19 : f32 to vector<6x32xf32>
      %33 = tpu.concatenate %28, %31, %32 in 0 : vector<1x32xf32>, vector<1x32xf32>, vector<6x32xf32> -> vector<8x32xf32>
      %c0_20 = arith.constant 0 : index
      %c0_21 = arith.constant 0 : index
      %c0_22 = arith.constant 0 : index
      %34 = vector.load %arg6[%c0_20, %c0_21, %c0_22] : memref<1x8x32xf32, #tpu.memory_space<vmem>>, vector<1x8x32xf32>
      %35 = vector.shape_cast %34 : vector<1x8x32xf32> to vector<8x32xf32>
      %36 = vector.shape_cast %33 : vector<8x32xf32> to vector<1x8x32xf32>
      tpu.vector_store %arg6[%c0_20, %c0_21, %c0_22], %36 {strides = array<i32>} : memref<1x8x32xf32, #tpu.memory_space<vmem>>, vector<1x8x32xf32>,
    } else {
    }
    return
  }
  func.func @transform_0(%arg0: i32, %arg1: i32) -> (i32, i32, i32, i32) {
    %c0_i32 = arith.constant 0 : i32
    %c0_i32_0 = arith.constant 0 : i32
    %c0_i32_1 = arith.constant 0 : i32
    return %arg1, %arg0, %c0_i32, %c0_i32_0 : i32, i32, i32, i32
  }
  func.func @transform_1(%arg0: i32, %arg1: i32) -> (i32, i32, i32) {
    %c0_i32 = arith.constant 0 : i32
    %c0_i32_0 = arith.constant 0 : i32
    %c0_i32_1 = arith.constant 0 : i32
    %c0_i32_2 = arith.constant 0 : i32
    return %c0_i32, %c0_i32_0, %c0_i32_1 : i32, i32, i32
  }
  func.func @transform_2(%arg0: i32, %arg1: i32) -> (i32, i32) {
    %c0_i32 = arith.constant 0 : i32
    %c0_i32_0 = arith.constant 0 : i32
    %c0_i32_1 = arith.constant 0 : i32
    return %c0_i32, %c0_i32_0 : i32, i32
  }
  func.func @transform_3(%arg0: i32, %arg1: i32) -> (i32, i32) {
    %c0_i32 = arith.constant 0 : i32
    %c0_i32_0 = arith.constant 0 : i32
    return %arg0, %c0_i32 : i32, i32
  }
  func.func @transform_4(%arg0: i32, %arg1: i32) -> (i32, i32, i32) {
    %c0_i32 = arith.constant 0 : i32
    %c0_i32_0 = arith.constant 0 : i32
    %c0_i32_1 = arith.constant 0 : i32
    return %arg0, %c0_i32, %c0_i32_0 : i32, i32, i32
  }
}

module attributes {stable_mosaic.version = 11 : i64} {
  func.func @_bn_relu_kernel(%arg0: i32, %arg1: memref<512x32xf32, #tpu.memory_space<vmem>>, %arg2: memref<1x32xf32, #tpu.memory_space<vmem>>, %arg3: memref<1x32xf32, #tpu.memory_space<vmem>>, %arg4: memref<512x32xbf16, #tpu.memory_space<vmem>>) attributes {dimension_semantics = [#tpu.dimension_semantics<parallel>], iteration_bounds = array<i64: 1>, scalar_prefetch = 0 : i64, scratch_operands = 0 : i64, tpu.core_type = #tpu.core_type<tc>, window_params = [{transform_indices = @transform_0, window_bounds = array<i64: 512, 32>}, {pipeline_mode = #tpu.pipeline_mode<synchronous>, transform_indices = @transform_1, window_bounds = array<i64: 1, 32>}, {pipeline_mode = #tpu.pipeline_mode<synchronous>, transform_indices = @transform_2, window_bounds = array<i64: 1, 32>}, {transform_indices = @transform_3, window_bounds = array<i64: 512, 32>}]} {
    %c0 = arith.constant 0 : index
    %c0_0 = arith.constant 0 : index
    %0 = vector.load %arg1[%c0, %c0_0] : memref<512x32xf32, #tpu.memory_space<vmem>>, vector<512x32xf32>
    %c0_1 = arith.constant 0 : index
    %c0_2 = arith.constant 0 : index
    %1 = vector.load %arg2[%c0_1, %c0_2] : memref<1x32xf32, #tpu.memory_space<vmem>>, vector<1x32xf32>
    %2 = vector.broadcast %1 : vector<1x32xf32> to vector<512x32xf32>
    %3 = arith.mulf %0, %2 : vector<512x32xf32>
    %c0_3 = arith.constant 0 : index
    %c0_4 = arith.constant 0 : index
    %4 = vector.load %arg3[%c0_3, %c0_4] : memref<1x32xf32, #tpu.memory_space<vmem>>, vector<1x32xf32>
    %5 = vector.broadcast %4 : vector<1x32xf32> to vector<512x32xf32>
    %6 = arith.addf %3, %5 : vector<512x32xf32>
    %cst = arith.constant 0.000000e+00 : f32
    %7 = vector.broadcast %cst : f32 to vector<512x32xf32>
    %8 = arith.maximumf %6, %7 : vector<512x32xf32>
    %9 = arith.truncf %8 : vector<512x32xf32> to vector<512x32xbf16>
    %c0_5 = arith.constant 0 : index
    %c0_6 = arith.constant 0 : index
    %10 = vector.load %arg4[%c0_5, %c0_6] : memref<512x32xbf16, #tpu.memory_space<vmem>>, vector<512x32xbf16>
    tpu.vector_store %arg4[%c0_5, %c0_6], %9 {strides = array<i32>} : memref<512x32xbf16, #tpu.memory_space<vmem>>, vector<512x32xbf16>,
    return
  }
  func.func @transform_0(%arg0: i32) -> (i32, i32) {
    %c0_i32 = arith.constant 0 : i32
    %c0_i32_0 = arith.constant 0 : i32
    return %arg0, %c0_i32 : i32, i32
  }
  func.func @transform_1(%arg0: i32) -> (i32, i32) {
    %c0_i32 = arith.constant 0 : i32
    %c0_i32_0 = arith.constant 0 : i32
    %c0_i32_1 = arith.constant 0 : i32
    return %c0_i32, %c0_i32_0 : i32, i32
  }
  func.func @transform_2(%arg0: i32) -> (i32, i32) {
    %c0_i32 = arith.constant 0 : i32
    %c0_i32_0 = arith.constant 0 : i32
    %c0_i32_1 = arith.constant 0 : i32
    return %c0_i32, %c0_i32_0 : i32, i32
  }
  func.func @transform_3(%arg0: i32) -> (i32, i32) {
    %c0_i32 = arith.constant 0 : i32
    %c0_i32_0 = arith.constant 0 : i32
    return %arg0, %c0_i32 : i32, i32
  }
}

module attributes {stable_mosaic.version = 11 : i64} {
  func.func @_conv3x3_tap_kernel(%arg0: i32, %arg1: i32, %arg2: memref<1x32x18x32xbf16, #tpu.memory_space<vmem>>, %arg3: memref<3x96x32xbf16, #tpu.memory_space<vmem>>, %arg4: memref<1x32xf32, #tpu.memory_space<vmem>>, %arg5: memref<512x32xf32, #tpu.memory_space<vmem>>, %arg6: memref<1x8x32xf32, #tpu.memory_space<vmem>>, %arg7: memref<512x32xf32, #tpu.memory_space<vmem>>) attributes {dimension_semantics = [#tpu.dimension_semantics<parallel>, #tpu.dimension_semantics<arbitrary>], iteration_bounds = array<i64: 1, 3>, scalar_prefetch = 0 : i64, scratch_operands = 1 : i64, tpu.core_type = #tpu.core_type<tc>, window_params = [{transform_indices = @transform_0, window_bounds = array<i64: 1, 32, 18, 32>}, {pipeline_mode = #tpu.pipeline_mode<synchronous>, transform_indices = @transform_1, window_bounds = array<i64: 3, 96, 32>}, {pipeline_mode = #tpu.pipeline_mode<synchronous>, transform_indices = @transform_2, window_bounds = array<i64: 1, 32>}, {transform_indices = @transform_3, window_bounds = array<i64: 512, 32>}, {transform_indices = @transform_4, window_bounds = array<i64: 1, 8, 32>}]} {
    %c0_i32 = arith.constant 0 : i32
    %0 = arith.cmpi eq, %arg1, %c0_i32 : i32
    %1 = arith.extui %0 : i1 to i32
    %c0_i32_0 = arith.constant 0 : i32
    %2 = arith.cmpi ne, %1, %c0_i32_0 : i32
    scf.if %2 {
      %cst_11 = arith.constant 0.000000e+00 : f32
      %22 = vector.broadcast %cst_11 : f32 to vector<512x32xf32>
      %c0_12 = arith.constant 0 : index
      %c0_13 = arith.constant 0 : index
      %23 = vector.load %arg7[%c0_12, %c0_13] : memref<512x32xf32, #tpu.memory_space<vmem>>, vector<512x32xf32>
      tpu.vector_store %arg7[%c0_12, %c0_13], %22 {strides = array<i32>} : memref<512x32xf32, #tpu.memory_space<vmem>>, vector<512x32xf32>,
    } else {
    }
    %c0 = arith.constant 0 : index
    %c0_1 = arith.constant 0 : index
    %c0_2 = arith.constant 0 : index
    %c0_3 = arith.constant 0 : index
    %3 = vector.load %arg2[%c0, %c0_1, %c0_2, %c0_3] : memref<1x32x18x32xbf16, #tpu.memory_space<vmem>>, vector<1x32x18x32xbf16>
    %4 = vector.shape_cast %3 : vector<1x32x18x32xbf16> to vector<32x18x32xbf16>
    %5 = vector.extract_strided_slice %4 {offsets = [0, 0, 0], sizes = [32, 16, 32], strides = [1, 1, 1]} : vector<32x18x32xbf16> to vector<32x16x32xbf16>
    %6 = vector.shape_cast %5 : vector<32x16x32xbf16> to vector<512x32xbf16>
    %7 = vector.extract_strided_slice %4 {offsets = [0, 1, 0], sizes = [32, 16, 32], strides = [1, 1, 1]} : vector<32x18x32xbf16> to vector<32x16x32xbf16>
    %8 = vector.shape_cast %7 : vector<32x16x32xbf16> to vector<512x32xbf16>
    %9 = vector.extract_strided_slice %4 {offsets = [0, 2, 0], sizes = [32, 16, 32], strides = [1, 1, 1]} : vector<32x18x32xbf16> to vector<32x16x32xbf16>
    %10 = vector.shape_cast %9 : vector<32x16x32xbf16> to vector<512x32xbf16>
    %11 = tpu.concatenate %6, %8, %10 in 1 : vector<512x32xbf16>, vector<512x32xbf16>, vector<512x32xbf16> -> vector<512x96xbf16>
    %c0_4 = arith.constant 0 : index
    %c0_5 = arith.constant 0 : index
    %12 = vector.load %arg7[%c0_4, %c0_5] : memref<512x32xf32, #tpu.memory_space<vmem>>, vector<512x32xf32>
    %13 = arith.index_cast %arg1 : i32 to index
    %c0_6 = arith.constant 0 : index
    %c0_7 = arith.constant 0 : index
    %14 = vector.load %arg3[%13, %c0_6, %c0_7] : memref<3x96x32xbf16, #tpu.memory_space<vmem>>, vector<1x96x32xbf16>
    %15 = vector.shape_cast %14 : vector<1x96x32xbf16> to vector<96x32xbf16>
    %cst = arith.constant dense<0.000000e+00> : vector<512x32xf32>
    %16 = tpu.matmul %11, %15, %cst {dimension_numbers = #tpu.dot_dimension_numbers<[1], [0], [0], [1], [0, 0, 1, 1], [], []>} : vector<512x96xbf16>, vector<96x32xbf16>, vector<512x32xf32> -> vector<512x32xf32>
    %17 = arith.addf %12, %16 : vector<512x32xf32>
    %c0_8 = arith.constant 0 : index
    %c0_9 = arith.constant 0 : index
    %18 = vector.load %arg7[%c0_8, %c0_9] : memref<512x32xf32, #tpu.memory_space<vmem>>, vector<512x32xf32>
    tpu.vector_store %arg7[%c0_8, %c0_9], %17 {strides = array<i32>} : memref<512x32xf32, #tpu.memory_space<vmem>>, vector<512x32xf32>,
    %c2_i32 = arith.constant 2 : i32
    %19 = arith.cmpi eq, %arg1, %c2_i32 : i32
    %20 = arith.extui %19 : i1 to i32
    %c0_i32_10 = arith.constant 0 : i32
    %21 = arith.cmpi ne, %20, %c0_i32_10 : i32
    scf.if %21 {
      %c0_11 = arith.constant 0 : index
      %c0_12 = arith.constant 0 : index
      %22 = vector.load %arg7[%c0_11, %c0_12] : memref<512x32xf32, #tpu.memory_space<vmem>>, vector<512x32xf32>
      %c0_13 = arith.constant 0 : index
      %c0_14 = arith.constant 0 : index
      %23 = vector.load %arg4[%c0_13, %c0_14] : memref<1x32xf32, #tpu.memory_space<vmem>>, vector<1x32xf32>
      %24 = vector.broadcast %23 : vector<1x32xf32> to vector<512x32xf32>
      %25 = arith.addf %22, %24 : vector<512x32xf32>
      %c0_15 = arith.constant 0 : index
      %c0_16 = arith.constant 0 : index
      %26 = vector.load %arg5[%c0_15, %c0_16] : memref<512x32xf32, #tpu.memory_space<vmem>>, vector<512x32xf32>
      tpu.vector_store %arg5[%c0_15, %c0_16], %25 {strides = array<i32>} : memref<512x32xf32, #tpu.memory_space<vmem>>, vector<512x32xf32>,
      %cst_17 = arith.constant dense<0.000000e+00> : vector<32xf32>
      %27 = vector.multi_reduction <add>, %25, %cst_17 [0] : vector<512x32xf32> to vector<32xf32>
      %28 = vector.shape_cast %27 : vector<32xf32> to vector<1x32xf32>
      %29 = arith.mulf %25, %25 : vector<512x32xf32>
      %cst_18 = arith.constant dense<0.000000e+00> : vector<32xf32>
      %30 = vector.multi_reduction <add>, %29, %cst_18 [0] : vector<512x32xf32> to vector<32xf32>
      %31 = vector.shape_cast %30 : vector<32xf32> to vector<1x32xf32>
      %cst_19 = arith.constant 0.000000e+00 : f32
      %32 = vector.broadcast %cst_19 : f32 to vector<6x32xf32>
      %33 = tpu.concatenate %28, %31, %32 in 0 : vector<1x32xf32>, vector<1x32xf32>, vector<6x32xf32> -> vector<8x32xf32>
      %c0_20 = arith.constant 0 : index
      %c0_21 = arith.constant 0 : index
      %c0_22 = arith.constant 0 : index
      %34 = vector.load %arg6[%c0_20, %c0_21, %c0_22] : memref<1x8x32xf32, #tpu.memory_space<vmem>>, vector<1x8x32xf32>
      %35 = vector.shape_cast %34 : vector<1x8x32xf32> to vector<8x32xf32>
      %36 = vector.shape_cast %33 : vector<8x32xf32> to vector<1x8x32xf32>
      tpu.vector_store %arg6[%c0_20, %c0_21, %c0_22], %36 {strides = array<i32>} : memref<1x8x32xf32, #tpu.memory_space<vmem>>, vector<1x8x32xf32>,
    } else {
    }
    return
  }
  func.func @transform_0(%arg0: i32, %arg1: i32) -> (i32, i32, i32, i32) {
    %c0_i32 = arith.constant 0 : i32
    %c0_i32_0 = arith.constant 0 : i32
    %c0_i32_1 = arith.constant 0 : i32
    return %arg1, %arg0, %c0_i32, %c0_i32_0 : i32, i32, i32, i32
  }
  func.func @transform_1(%arg0: i32, %arg1: i32) -> (i32, i32, i32) {
    %c0_i32 = arith.constant 0 : i32
    %c0_i32_0 = arith.constant 0 : i32
    %c0_i32_1 = arith.constant 0 : i32
    %c0_i32_2 = arith.constant 0 : i32
    return %c0_i32, %c0_i32_0, %c0_i32_1 : i32, i32, i32
  }
  func.func @transform_2(%arg0: i32, %arg1: i32) -> (i32, i32) {
    %c0_i32 = arith.constant 0 : i32
    %c0_i32_0 = arith.constant 0 : i32
    %c0_i32_1 = arith.constant 0 : i32
    return %c0_i32, %c0_i32_0 : i32, i32
  }
  func.func @transform_3(%arg0: i32, %arg1: i32) -> (i32, i32) {
    %c0_i32 = arith.constant 0 : i32
    %c0_i32_0 = arith.constant 0 : i32
    return %arg0, %c0_i32 : i32, i32
  }
  func.func @transform_4(%arg0: i32, %arg1: i32) -> (i32, i32, i32) {
    %c0_i32 = arith.constant 0 : i32
    %c0_i32_0 = arith.constant 0 : i32
    %c0_i32_1 = arith.constant 0 : i32
    return %arg0, %c0_i32, %c0_i32_0 : i32, i32, i32
  }
}

module attributes {stable_mosaic.version = 11 : i64} {
  func.func @_bn_relu_kernel(%arg0: i32, %arg1: memref<512x32xf32, #tpu.memory_space<vmem>>, %arg2: memref<1x32xf32, #tpu.memory_space<vmem>>, %arg3: memref<1x32xf32, #tpu.memory_space<vmem>>, %arg4: memref<512x32xf32, #tpu.memory_space<vmem>>) attributes {dimension_semantics = [#tpu.dimension_semantics<parallel>], iteration_bounds = array<i64: 1>, scalar_prefetch = 0 : i64, scratch_operands = 0 : i64, tpu.core_type = #tpu.core_type<tc>, window_params = [{transform_indices = @transform_0, window_bounds = array<i64: 512, 32>}, {pipeline_mode = #tpu.pipeline_mode<synchronous>, transform_indices = @transform_1, window_bounds = array<i64: 1, 32>}, {pipeline_mode = #tpu.pipeline_mode<synchronous>, transform_indices = @transform_2, window_bounds = array<i64: 1, 32>}, {transform_indices = @transform_3, window_bounds = array<i64: 512, 32>}]} {
    %c0 = arith.constant 0 : index
    %c0_0 = arith.constant 0 : index
    %0 = vector.load %arg1[%c0, %c0_0] : memref<512x32xf32, #tpu.memory_space<vmem>>, vector<512x32xf32>
    %c0_1 = arith.constant 0 : index
    %c0_2 = arith.constant 0 : index
    %1 = vector.load %arg2[%c0_1, %c0_2] : memref<1x32xf32, #tpu.memory_space<vmem>>, vector<1x32xf32>
    %2 = vector.broadcast %1 : vector<1x32xf32> to vector<512x32xf32>
    %3 = arith.mulf %0, %2 : vector<512x32xf32>
    %c0_3 = arith.constant 0 : index
    %c0_4 = arith.constant 0 : index
    %4 = vector.load %arg3[%c0_3, %c0_4] : memref<1x32xf32, #tpu.memory_space<vmem>>, vector<1x32xf32>
    %5 = vector.broadcast %4 : vector<1x32xf32> to vector<512x32xf32>
    %6 = arith.addf %3, %5 : vector<512x32xf32>
    %cst = arith.constant 0.000000e+00 : f32
    %7 = vector.broadcast %cst : f32 to vector<512x32xf32>
    %8 = arith.maximumf %6, %7 : vector<512x32xf32>
    %c0_5 = arith.constant 0 : index
    %c0_6 = arith.constant 0 : index
    %9 = vector.load %arg4[%c0_5, %c0_6] : memref<512x32xf32, #tpu.memory_space<vmem>>, vector<512x32xf32>
    tpu.vector_store %arg4[%c0_5, %c0_6], %8 {strides = array<i32>} : memref<512x32xf32, #tpu.memory_space<vmem>>, vector<512x32xf32>,
    return
  }
  func.func @transform_0(%arg0: i32) -> (i32, i32) {
    %c0_i32 = arith.constant 0 : i32
    %c0_i32_0 = arith.constant 0 : i32
    return %arg0, %c0_i32 : i32, i32
  }
  func.func @transform_1(%arg0: i32) -> (i32, i32) {
    %c0_i32 = arith.constant 0 : i32
    %c0_i32_0 = arith.constant 0 : i32
    %c0_i32_1 = arith.constant 0 : i32
    return %c0_i32, %c0_i32_0 : i32, i32
  }
  func.func @transform_2(%arg0: i32) -> (i32, i32) {
    %c0_i32 = arith.constant 0 : i32
    %c0_i32_0 = arith.constant 0 : i32
    %c0_i32_1 = arith.constant 0 : i32
    return %c0_i32, %c0_i32_0 : i32, i32
  }
  func.func @transform_3(%arg0: i32) -> (i32, i32) {
    %c0_i32 = arith.constant 0 : i32
    %c0_i32_0 = arith.constant 0 : i32
    return %arg0, %c0_i32 : i32, i32
  }
}

</mosaic_0001>

<bundles_post_ra>
// kernel: conv_block_forward.5
= control target key start
LH: loop header
LB: loop body
LE: loop exit
PB: predicated region body
PF: predicated region fallthrough
CT: control target
= control target key end

     0   :  { %vm342_vm0 = vcmask 257024   ;;  %s1019_s0 = inlined_call_operand.vmem [shape: f32[512,32], index: 0, kind: input, shape index: {}]   ;;  %s1020_s1 = inlined_call_operand.vmem [shape: f32[1,32], index: 1, kind: input, shape index: {}]   ;;  %s1021_s2 = inlined_call_operand.vmem [shape: f32[1,32], index: 2, kind: input, shape index: {}]   ;;  %s1022_s3 = inlined_call_operand.vmem [shape: bf16[512,32], index: 3, kind: output, shape index: {}]  }
   0x1   :  { %v14_v0 = vld [vmem:[%s1019_s0] sm:$0xff]  ;;  %v15_v3 = vld [vmem:[%s1019_s0 + $0x8] sm:$0xff]  ;;  %v16_v6 = vld [vmem:[%s1019_s0 + $0x10] sm:$0xff] }
   0x2   :  { %v439_v1 = vld [vmem:[%s1020_s1] ss:$0 sm:$0xff]  ;;  %v17_v7 = vld [vmem:[%s1019_s0 + $0x18] sm:$0xff]  ;;  %v19_v12 = vld [vmem:[%s1019_s0 + $0x28] sm:$0xff] }
   0x3   :  { %v444_v2 = vld [vmem:[%s1021_s2] ss:$0 sm:$0xff]  ;;  %v82_v4 = vmul.f32 %v439_v1, %v14_v0  ;;  %v83_v5 = vmul.f32 %v439_v1, %v15_v3  ;;  %v84_v9 = vmul.f32 %v439_v1, %v16_v6  ;;  %v85_v10 = vmul.f32 %v439_v1, %v17_v7  ;;  %v20_v13 = vld [vmem:[%s1019_s0 + $0x30] sm:$0xff]  ;;  %v21_v14 = vld [vmem:[%s1019_s0 + $0x38] sm:$0xff] }
   0x4   :  { %v18_v8 = vld [vmem:[%s1019_s0 + $0x20] sm:$0xff]  ;;  %v87_v17 = vmul.f32 %v439_v1, %v19_v12  ;;  %v88_v18 = vmul.f32 %v439_v1, %v20_v13  ;;  %v89_v22 = vmul.f32 %v439_v1, %v21_v14  ;;  %v23_v32 = vld [vmem:[%s1019_s0 + $0x48] sm:$0xff]  ;;  %v24_v37 = vld [vmem:[%s1019_s0 + $0x50] sm:$0xff] }
   0x5   :  { %v86_v11 = vmul.f32 %v439_v1, %v18_v8  ;;  %v150_v15 = vadd.f32 %v444_v2, %v82_v4  ;;  %v151_v16 = vadd.f32 %v444_v2, %v83_v5  ;;  %v152_v19 = vadd.f32 %v444_v2, %v84_v9  ;;  %v22_v31 = vld [vmem:[%s1019_s0 + $0x40] sm:$0xff]  ;;  %v25_v38 = vld [vmem:[%s1019_s0 + $0x58] sm:$0xff]  ;;  %v27_v44 = vld [vmem:[%s1019_s0 + $0x68] sm:$0xff] }
   0x6   :  { %v153_v20 = vadd.f32 %v444_v2, %v85_v10  ;;  %v155_v25 = vadd.f32 %v444_v2, %v87_v17  ;;  %v156_v26 = vadd.f32 %v444_v2, %v88_v18  ;;  %v157_v30 = vadd.f32 %v444_v2, %v89_v22  ;;  %v26_v39 = vld [vmem:[%s1019_s0 + $0x60] sm:$0xff]  ;;  %v28_v45 = vld [vmem:[%s1019_s0 + $0x70] sm:$0xff]  ;;  %v29_v50 = vld [vmem:[%s1019_s0 + $0x78] sm:$0xff] }
   0x7   :  { %v154_v21 = vadd.f32 %v444_v2, %v86_v11  ;;  %v214_v23 = vmax.f32 %v150_v15, 0.0  ;;  %v215_v24 = vmax.f32 %v151_v16, 0.0  ;;  %v216_v27 = vmax.f32 %v152_v19, 0.0  ;;  %v30_v5 = vld [vmem:[%s1019_s0 + $0x80] sm:$0xff]  ;;  %v31_v6 = vld [vmem:[%s1019_s0 + $0x88] sm:$0xff]  ;;  %v32_v11 = vld [vmem:[%s1019_s0 + $0x90] sm:$0xff] }
   0x8   :  { %v217_v28 = vmax.f32 %v153_v20, 0.0  ;;  %v219_v35 = vmax.f32 %v155_v25, 0.0  ;;  %v220_v36 = vmax.f32 %v156_v26, 0.0  ;;  %v221_v43 = vmax.f32 %v157_v30, 0.0  ;;  %v33_v16 = vld [vmem:[%s1019_s0 + $0x98] sm:$0xff]  ;;  %v34_v17 = vld [vmem:[%s1019_s0 + $0xa0] sm:$0xff] }
   0x9   :  { %v218_v29 = vmax.f32 %v154_v21, 0.0  ;;  %v278_v33 = vpack.c.bf16 %v214_v23, %v214_v23  ;;  %v279_v34 = vpack.c.bf16 %v215_v24, %v215_v24  ;;  %v280_v40 = vpack.c.bf16 %v216_v27, %v216_v27  ;;  %v35_v22 = vld [vmem:[%s1019_s0 + $0xa8] sm:$0xff]  ;;  %v36_v23 = vld [vmem:[%s1019_s0 + $0xb0] sm:$0xff] }
   0xa   :  { %v281_v41 = vpack.c.bf16 %v217_v28, %v217_v28  ;;  %v283_v46 = vpack.c.bf16 %v219_v35, %v219_v35  ;;  %v284_v47 = vpack.c.bf16 %v220_v36, %v220_v36  ;;  %v90_v48 = vmul.f32 %v439_v1, %v22_v31  ;;  %v37_v28 = vld [vmem:[%s1019_s0 + $0xb8] sm:$0xff] }
   0xb   :  { %v282_v42 = vpack.c.bf16 %v218_v29, %v218_v29  ;;  %343 = vst.msk [vmem:[%s1022_s3] sm:$0xf] %vm342_vm0, %v278_v33  ;;  %v91_v49 = vmul.f32 %v439_v1, %v23_v32  ;;  %v285_v51 = vpack.c.bf16 %v221_v43, %v221_v43  ;;  %v92_v52 = vmul.f32 %v439_v1, %v24_v37 }
   0xc   :  { %344 = vst.msk [vmem:[%s1022_s3 + $0x4] sm:$0xf] %vm342_vm0, %v279_v34  ;;  %v93_v53 = vmul.f32 %v439_v1, %v25_v38  ;;  %v94_v54 = vmul.f32 %v439_v1, %v26_v39  ;;  %v158_v55 = vadd.f32 %v444_v2, %v90_v48  ;;  %v95_v57 = vmul.f32 %v439_v1, %v27_v44 }
   0xd   :  { %345 = vst.msk [vmem:[%s1022_s3 + $0x8] sm:$0xf] %vm342_vm0, %v280_v40  ;;  %v159_v56 = vadd.f32 %v444_v2, %v91_v49  ;;  %v96_v58 = vmul.f32 %v439_v1, %v28_v45  ;;  %v160_v59 = vadd.f32 %v444_v2, %v92_v52  ;;  %v97_v62 = vmul.f32 %v439_v1, %v29_v50  ;;  %v38_v45 = vld [vmem:[%s1019_s0 + $0xc0] sm:$0xff] }
   0xe   :  { %346 = vst.msk [vmem:[%s1022_s3 + $0xc] sm:$0xf] %vm342_vm0, %v281_v41  ;;  %v161_v60 = vadd.f32 %v444_v2, %v93_v53  ;;  %v162_v61 = vadd.f32 %v444_v2, %v94_v54  ;;  %v222_v63 = vmax.f32 %v158_v55, 0.0  ;;  %v163_v3 = vadd.f32 %v444_v2, %v95_v57  ;;  %v42_v57 = vld [vmem:[%s1019_s0 + $0xe0] sm:$0xff] }
   0xf   :  { %347 = vst.msk [vmem:[%s1022_s3 + $0x10] sm:$0xf] %vm342_vm0, %v282_v42  ;;  %v223_v0 = vmax.f32 %v159_v56, 0.0  ;;  %v164_v4 = vadd.f32 %v444_v2, %v96_v58  ;;  %v224_v7 = vmax.f32 %v160_v59, 0.0  ;;  %v165_v10 = vadd.f32 %v444_v2, %v97_v62  ;;  %v41_v56 = vld [vmem:[%s1019_s0 + $0xd8] sm:$0xff]  ;;  %v43_v62 = vld [vmem:[%s1019_s0 + $0xe8] sm:$0xff] }
  0x10   :  { %348 = vst.msk [vmem:[%s1022_s3 + $0x14] sm:$0xf] %vm342_vm0, %v283_v46  ;;  %v225_v8 = vmax.f32 %v161_v60, 0.0  ;;  %v226_v9 = vmax.f32 %v162_v61, 0.0  ;;  %v286_v12 = vpack.c.bf16 %v222_v63, %v222_v63  ;;  %v227_v14 = vmax.f32 %v163_v3, 0.0  ;;  %v39_v46 = vld [vmem:[%s1019_s0 + $0xc8] sm:$0xff] }
  0x11   :  { %349 = vst.msk [vmem:[%s1022_s3 + $0x18] sm:$0xf] %vm342_vm0, %v284_v47  ;;  %v287_v13 = vpack.c.bf16 %v223_v0, %v223_v0  ;;  %v228_v15 = vmax.f32 %v164_v4, 0.0  ;;  %v288_v18 = vpack.c.bf16 %v224_v7, %v224_v7  ;;  %v229_v21 = vmax.f32 %v165_v10, 0.0  ;;  %v44_v63 = vld [vmem:[%s1019_s0 + $0xf0] sm:$0xff] }
  0x12   :  { %350 = vst.msk [vmem:[%s1022_s3 + $0x1c] sm:$0xf] %vm342_vm0, %v285_v51  ;;  %v289_v19 = vpack.c.bf16 %v225_v8, %v225_v8  ;;  %v290_v20 = vpack.c.bf16 %v226_v9, %v226_v9  ;;  %v291_v24 = vpack.c.bf16 %v227_v14, %v227_v14  ;;  %v98_v26 = vmul.f32 %v439_v1, %v30_v5  ;;  %v40_v51 = vld [vmem:[%s1019_s0 + $0xd0] sm:$0xff] }
  0x13   :  { %351 = vst.msk [vmem:[%s1022_s3 + $0x20] sm:$0xf] %vm342_vm0, %v286_v12  ;;  %v292_v25 = vpack.c.bf16 %v228_v15, %v228_v15  ;;  %v99_v27 = vmul.f32 %v439_v1, %v31_v6  ;;  %v293_v29 = vpack.c.bf16 %v229_v21, %v229_v21  ;;  %v100_v30 = vmul.f32 %v439_v1, %v32_v11  ;;  %v45_v6 = vld [vmem:[%s1019_s0 + $0xf8] sm:$0xff] }
  0x14   :  { %352 = vst.msk [vmem:[%s1022_s3 + $0x24] sm:$0xf] %vm342_vm0, %v287_v13  ;;  %v101_v31 = vmul.f32 %v439_v1, %v33_v16  ;;  %v102_v32 = vmul.f32 %v439_v1, %v34_v17  ;;  %v166_v33 = vadd.f32 %v444_v2, %v98_v26  ;;  %v103_v35 = vmul.f32 %v439_v1, %v35_v22 }
  0x15   :  { %353 = vst.msk [vmem:[%s1022_s3 + $0x28] sm:$0xf] %vm342_vm0, %v288_v18  ;;  %v167_v34 = vadd.f32 %v444_v2, %v99_v27  ;;  %v104_v36 = vmul.f32 %v439_v1, %v36_v23  ;;  %v168_v37 = vadd.f32 %v444_v2, %v100_v30  ;;  %v105_v40 = vmul.f32 %v439_v1, %v37_v28  ;;  %v46_v23 = vld [vmem:[%s1019_s0 + $0x100] sm:$0xff] }
  0x16   :  { %354 = vst.msk [vmem:[%s1022_s3 + $0x2c] sm:$0xf] %vm342_vm0, %v289_v19  ;;  %v169_v38 = vadd.f32 %v444_v2, %v101_v31  ;;  %v170_v39 = vadd.f32 %v444_v2, %v102_v32  ;;  %v230_v41 = vmax.f32 %v166_v33, 0.0  ;;  %v171_v43 = vadd.f32 %v444_v2, %v103_v35  ;;  %v50_v35 = vld [vmem:[%s1019_s0 + $0x120] sm:$0xff] }
  0x17   :  { %355 = vst.msk [vmem:[%s1022_s3 + $0x30] sm:$0xf] %vm342_vm0, %v290_v20  ;;  %v231_v42 = vmax.f32 %v167_v34, 0.0  ;;  %v172_v44 = vadd.f32 %v444_v2, %v104_v36  ;;  %v232_v47 = vmax.f32 %v168_v37, 0.0  ;;  %v173_v50 = vadd.f32 %v444_v2, %v105_v40  ;;  %v49_v34 = vld [vmem:[%s1019_s0 + $0x118] sm:$0xff]  ;;  %v51_v40 = vld [vmem:[%s1019_s0 + $0x128] sm:$0xff] }
  0x18   :  { %356 = vst.msk [vmem:[%s1022_s3 + $0x34] sm:$0xf] %vm342_vm0, %v291_v24  ;;  %v233_v48 = vmax.f32 %v169_v38, 0.0  ;;  %v234_v49 = vmax.f32 %v170_v39, 0.0  ;;  %v294_v52 = vpack.c.bf16 %v230_v41, %v230_v41  ;;  %v235_v54 = vmax.f32 %v171_v43, 0.0  ;;  %v47_v24 = vld [vmem:[%s1019_s0 + $0x108] sm:$0xff] }
  0x19   :  { %357 = vst.msk [vmem:[%s1022_s3 + $0x38] sm:$0xf] %vm342_vm0, %v292_v25  ;;  %v295_v53 = vpack.c.bf16 %v231_v42, %v231_v42  ;;  %v236_v55 = vmax.f32 %v172_v44, 0.0  ;;  %v296_v58 = vpack.c.bf16 %v232_v47, %v232_v47  ;;  %v237_v61 = vmax.f32 %v173_v50, 0.0  ;;  %v52_v41 = vld [vmem:[%s1019_s0 + $0x130] sm:$0xff] }
  0x1a   :  { %358 = vst.msk [vmem:[%s1022_s3 + $0x3c] sm:$0xf] %vm342_vm0, %v293_v29  ;;  %v297_v59 = vpack.c.bf16 %v233_v48, %v233_v48  ;;  %v298_v60 = vpack.c.bf16 %v234_v49, %v234_v49  ;;  %v299_v0 = vpack.c.bf16 %v235_v54, %v235_v54  ;;  %v106_v4 = vmul.f32 %v439_v1, %v38_v45  ;;  %v48_v29 = vld [vmem:[%s1019_s0 + $0x110] sm:$0xff] }
  0x1b   :  { %359 = vst.msk [vmem:[%s1022_s3 + $0x40] sm:$0xf] %vm342_vm0, %v294_v52  ;;  %v300_v3 = vpack.c.bf16 %v236_v55, %v236_v55  ;;  %v107_v5 = vmul.f32 %v439_v1, %v39_v46  ;;  %v301_v7 = vpack.c.bf16 %v237_v61, %v237_v61  ;;  %v108_v8 = vmul.f32 %v439_v1, %v40_v51  ;;  %v53_v46 = vld [vmem:[%s1019_s0 + $0x138] sm:$0xff] }
  0x1c   :  { %360 = vst.msk [vmem:[%s1022_s3 + $0x44] sm:$0xf] %vm342_vm0, %v295_v53  ;;  %v109_v9 = vmul.f32 %v439_v1, %v41_v56  ;;  %v110_v10 = vmul.f32 %v439_v1, %v42_v57  ;;  %v174_v11 = vadd.f32 %v444_v2, %v106_v4  ;;  %v111_v13 = vmul.f32 %v439_v1, %v43_v62 }
  0x1d   :  { %361 = vst.msk [vmem:[%s1022_s3 + $0x48] sm:$0xf] %vm342_vm0, %v296_v58  ;;  %v175_v12 = vadd.f32 %v444_v2, %v107_v5  ;;  %v112_v14 = vmul.f32 %v439_v1, %v44_v63  ;;  %v176_v15 = vadd.f32 %v444_v2, %v108_v8  ;;  %v113_v18 = vmul.f32 %v439_v1, %v45_v6  ;;  %v54_v63 = vld [vmem:[%s1019_s0 + $0x140] sm:$0xff] }
  0x1e   :  { %362 = vst.msk [vmem:[%s1022_s3 + $0x4c] sm:$0xf] %vm342_vm0, %v297_v59  ;;  %v177_v16 = vadd.f32 %v444_v2, %v109_v9  ;;  %v178_v17 = vadd.f32 %v444_v2, %v110_v10  ;;  %v238_v19 = vmax.f32 %v174_v11, 0.0  ;;  %v179_v21 = vadd.f32 %v444_v2, %v111_v13  ;;  %v58_v13 = vld [vmem:[%s1019_s0 + $0x160] sm:$0xff] }
  0x1f   :  { %363 = vst.msk [vmem:[%s1022_s3 + $0x50] sm:$0xf] %vm342_vm0, %v298_v60  ;;  %v239_v20 = vmax.f32 %v175_v12, 0.0  ;;  %v180_v22 = vadd.f32 %v444_v2, %v112_v14  ;;  %v240_v25 = vmax.f32 %v176_v15, 0.0  ;;  %v181_v28 = vadd.f32 %v444_v2, %v113_v18  ;;  %v57_v12 = vld [vmem:[%s1019_s0 + $0x158] sm:$0xff]  ;;  %v59_v18 = vld [vmem:[%s1019_s0 + $0x168] sm:$0xff] }
  0x20   :  { %364 = vst.msk [vmem:[%s1022_s3 + $0x54] sm:$0xf] %vm342_vm0, %v299_v0  ;;  %v241_v26 = vmax.f32 %v177_v16, 0.0  ;;  %v242_v27 = vmax.f32 %v178_v17, 0.0  ;;  %v302_v30 = vpack.c.bf16 %v238_v19, %v238_v19  ;;  %v243_v32 = vmax.f32 %v179_v21, 0.0  ;;  %v55_v0 = vld [vmem:[%s1019_s0 + $0x148] sm:$0xff] }
  0x21   :  { %365 = vst.msk [vmem:[%s1022_s3 + $0x58] sm:$0xf] %vm342_vm0, %v300_v3  ;;  %v303_v31 = vpack.c.bf16 %v239_v20, %v239_v20  ;;  %v244_v33 = vmax.f32 %v180_v22, 0.0  ;;  %v304_v36 = vpack.c.bf16 %v240_v25, %v240_v25  ;;  %v245_v39 = vmax.f32 %v181_v28, 0.0  ;;  %v60_v19 = vld [vmem:[%s1019_s0 + $0x170] sm:$0xff] }
  0x22   :  { %366 = vst.msk [vmem:[%s1022_s3 + $0x5c] sm:$0xf] %vm342_vm0, %v301_v7  ;;  %v305_v37 = vpack.c.bf16 %v241_v26, %v241_v26  ;;  %v306_v38 = vpack.c.bf16 %v242_v27, %v242_v27  ;;  %v307_v42 = vpack.c.bf16 %v243_v32, %v243_v32  ;;  %v114_v44 = vmul.f32 %v439_v1, %v46_v23  ;;  %v56_v7 = vld [vmem:[%s1019_s0 + $0x150] sm:$0xff] }
  0x23   :  { %367 = vst.msk [vmem:[%s1022_s3 + $0x60] sm:$0xf] %vm342_vm0, %v302_v30  ;;  %v308_v43 = vpack.c.bf16 %v244_v33, %v244_v33  ;;  %v115_v45 = vmul.f32 %v439_v1, %v47_v24  ;;  %v309_v47 = vpack.c.bf16 %v245_v39, %v245_v39  ;;  %v116_v48 = vmul.f32 %v439_v1, %v48_v29  ;;  %v61_v24 = vld [vmem:[%s1019_s0 + $0x178] sm:$0xff] }
  0x24   :  { %368 = vst.msk [vmem:[%s1022_s3 + $0x64] sm:$0xf] %vm342_vm0, %v303_v31  ;;  %v117_v49 = vmul.f32 %v439_v1, %v49_v34  ;;  %v118_v50 = vmul.f32 %v439_v1, %v50_v35  ;;  %v182_v51 = vadd.f32 %v444_v2, %v114_v44  ;;  %v119_v53 = vmul.f32 %v439_v1, %v51_v40 }
  0x25   :  { %369 = vst.msk [vmem:[%s1022_s3 + $0x68] sm:$0xf] %vm342_vm0, %v304_v36  ;;  %v183_v52 = vadd.f32 %v444_v2, %v115_v45  ;;  %v120_v54 = vmul.f32 %v439_v1, %v52_v41  ;;  %v184_v55 = vadd.f32 %v444_v2, %v116_v48  ;;  %v121_v58 = vmul.f32 %v439_v1, %v53_v46  ;;  %v62_v41 = vld [vmem:[%s1019_s0 + $0x180] sm:$0xff] }
  0x26   :  { %370 = vst.msk [vmem:[%s1022_s3 + $0x6c] sm:$0xf] %vm342_vm0, %v305_v37  ;;  %v185_v56 = vadd.f32 %v444_v2, %v117_v49  ;;  %v186_v57 = vadd.f32 %v444_v2, %v118_v50  ;;  %v246_v59 = vmax.f32 %v182_v51, 0.0  ;;  %v187_v61 = vadd.f32 %v444_v2, %v119_v53  ;;  %v66_v53 = vld [vmem:[%s1019_s0 + $0x1a0] sm:$0xff] }
  0x27   :  { %371 = vst.msk [vmem:[%s1022_s3 + $0x70] sm:$0xf] %vm342_vm0, %v306_v38  ;;  %v247_v60 = vmax.f32 %v183_v52, 0.0  ;;  %v188_v62 = vadd.f32 %v444_v2, %v120_v54  ;;  %v248_v3 = vmax.f32 %v184_v55, 0.0  ;;  %v189_v6 = vadd.f32 %v444_v2, %v121_v58  ;;  %v65_v52 = vld [vmem:[%s1019_s0 + $0x198] sm:$0xff]  ;;  %v67_v58 = vld [vmem:[%s1019_s0 + $0x1a8] sm:$0xff] }
  0x28   :  { %372 = vst.msk [vmem:[%s1022_s3 + $0x74] sm:$0xf] %vm342_vm0, %v307_v42  ;;  %v249_v4 = vmax.f32 %v185_v56, 0.0  ;;  %v250_v5 = vmax.f32 %v186_v57, 0.0  ;;  %v310_v8 = vpack.c.bf16 %v246_v59, %v246_v59  ;;  %v251_v10 = vmax.f32 %v187_v61, 0.0  ;;  %v63_v42 = vld [vmem:[%s1019_s0 + $0x188] sm:$0xff] }
  0x29   :  { %373 = vst.msk [vmem:[%s1022_s3 + $0x78] sm:$0xf] %vm342_vm0, %v308_v43  ;;  %v311_v9 = vpack.c.bf16 %v247_v60, %v247_v60  ;;  %v252_v11 = vmax.f32 %v188_v62, 0.0  ;;  %v312_v14 = vpack.c.bf16 %v248_v3, %v248_v3  ;;  %v253_v17 = vmax.f32 %v189_v6, 0.0  ;;  %v68_v59 = vld [vmem:[%s1019_s0 + $0x1b0] sm:$0xff] }
  0x2a   :  { %374 = vst.msk [vmem:[%s1022_s3 + $0x7c] sm:$0xf] %vm342_vm0, %v309_v47  ;;  %v313_v15 = vpack.c.bf16 %v249_v4, %v249_v4  ;;  %v314_v16 = vpack.c.bf16 %v250_v5, %v250_v5  ;;  %v315_v20 = vpack.c.bf16 %v251_v10, %v251_v10  ;;  %v122_v22 = vmul.f32 %v439_v1, %v54_v63  ;;  %v64_v47 = vld [vmem:[%s1019_s0 + $0x190] sm:$0xff] }
  0x2b   :  { %375 = vst.msk [vmem:[%s1022_s3 + $0x80] sm:$0xf] %vm342_vm0, %v310_v8  ;;  %v316_v21 = vpack.c.bf16 %v252_v11, %v252_v11  ;;  %v123_v23 = vmul.f32 %v439_v1, %v55_v0  ;;  %v317_v25 = vpack.c.bf16 %v253_v17, %v253_v17  ;;  %v124_v26 = vmul.f32 %v439_v1, %v56_v7  ;;  %v69_v0 = vld [vmem:[%s1019_s0 + $0x1b8] sm:$0xff] }
  0x2c   :  { %376 = vst.msk [vmem:[%s1022_s3 + $0x84] sm:$0xf] %vm342_vm0, %v311_v9  ;;  %v125_v27 = vmul.f32 %v439_v1, %v57_v12  ;;  %v126_v28 = vmul.f32 %v439_v1, %v58_v13  ;;  %v190_v29 = vadd.f32 %v444_v2, %v122_v22  ;;  %v127_v31 = vmul.f32 %v439_v1, %v59_v18 }
  0x2d   :  { %377 = vst.msk [vmem:[%s1022_s3 + $0x88] sm:$0xf] %vm342_vm0, %v312_v14  ;;  %v191_v30 = vadd.f32 %v444_v2, %v123_v23  ;;  %v128_v32 = vmul.f32 %v439_v1, %v60_v19  ;;  %v192_v33 = vadd.f32 %v444_v2, %v124_v26  ;;  %v129_v36 = vmul.f32 %v439_v1, %v61_v24  ;;  %v70_v19 = vld [vmem:[%s1019_s0 + $0x1c0] sm:$0xff] }
  0x2e   :  { %378 = vst.msk [vmem:[%s1022_s3 + $0x8c] sm:$0xf] %vm342_vm0, %v313_v15  ;;  %v193_v34 = vadd.f32 %v444_v2, %v125_v27  ;;  %v194_v35 = vadd.f32 %v444_v2, %v126_v28  ;;  %v254_v37 = vmax.f32 %v190_v29, 0.0  ;;  %v195_v39 = vadd.f32 %v444_v2, %v127_v31  ;;  %v74_v31 = vld [vmem:[%s1019_s0 + $0x1e0] sm:$0xff] }
  0x2f   :  { %379 = vst.msk [vmem:[%s1022_s3 + $0x90] sm:$0xf] %vm342_vm0, %v314_v16  ;;  %v255_v38 = vmax.f32 %v191_v30, 0.0  ;;  %v196_v40 = vadd.f32 %v444_v2, %v128_v32  ;;  %v256_v43 = vmax.f32 %v192_v33, 0.0  ;;  %v197_v46 = vadd.f32 %v444_v2, %v129_v36  ;;  %v73_v30 = vld [vmem:[%s1019_s0 + $0x1d8] sm:$0xff]  ;;  %v75_v36 = vld [vmem:[%s1019_s0 + $0x1e8] sm:$0xff] }
  0x30   :  { %380 = vst.msk [vmem:[%s1022_s3 + $0x94] sm:$0xf] %vm342_vm0, %v315_v20  ;;  %v257_v44 = vmax.f32 %v193_v34, 0.0  ;;  %v258_v45 = vmax.f32 %v194_v35, 0.0  ;;  %v318_v48 = vpack.c.bf16 %v254_v37, %v254_v37  ;;  %v259_v50 = vmax.f32 %v195_v39, 0.0  ;;  %v71_v20 = vld [vmem:[%s1019_s0 + $0x1c8] sm:$0xff] }
  0x31   :  { %381 = vst.msk [vmem:[%s1022_s3 + $0x98] sm:$0xf] %vm342_vm0, %v316_v21  ;;  %v319_v49 = vpack.c.bf16 %v255_v38, %v255_v38  ;;  %v260_v51 = vmax.f32 %v196_v40, 0.0  ;;  %v320_v54 = vpack.c.bf16 %v256_v43, %v256_v43  ;;  %v261_v57 = vmax.f32 %v197_v46, 0.0  ;;  %v76_v37 = vld [vmem:[%s1019_s0 + $0x1f0] sm:$0xff] }
  0x32   :  { %382 = vst.msk [vmem:[%s1022_s3 + $0x9c] sm:$0xf] %vm342_vm0, %v317_v25  ;;  %v321_v55 = vpack.c.bf16 %v257_v44, %v257_v44  ;;  %v322_v56 = vpack.c.bf16 %v258_v45, %v258_v45  ;;  %v323_v60 = vpack.c.bf16 %v259_v50, %v259_v50  ;;  %v130_v62 = vmul.f32 %v439_v1, %v62_v41  ;;  %v72_v25 = vld [vmem:[%s1019_s0 + $0x1d0] sm:$0xff] }
  0x33   :  { %383 = vst.msk [vmem:[%s1022_s3 + $0xa0] sm:$0xf] %vm342_vm0, %v318_v48  ;;  %v324_v61 = vpack.c.bf16 %v260_v51, %v260_v51  ;;  %v131_v63 = vmul.f32 %v439_v1, %v63_v42  ;;  %v325_v3 = vpack.c.bf16 %v261_v57, %v261_v57  ;;  %v132_v4 = vmul.f32 %v439_v1, %v64_v47  ;;  %v77_v42 = vld [vmem:[%s1019_s0 + $0x1f8] sm:$0xff] }
  0x34   :  { %384 = vst.msk [vmem:[%s1022_s3 + $0xa4] sm:$0xf] %vm342_vm0, %v319_v49  ;;  %v133_v5 = vmul.f32 %v439_v1, %v65_v52  ;;  %v134_v6 = vmul.f32 %v439_v1, %v66_v53  ;;  %v198_v7 = vadd.f32 %v444_v2, %v130_v62  ;;  %v135_v9 = vmul.f32 %v439_v1, %v67_v58 }
  0x35   :  { %385 = vst.msk [vmem:[%s1022_s3 + $0xa8] sm:$0xf] %vm342_vm0, %v320_v54  ;;  %v199_v8 = vadd.f32 %v444_v2, %v131_v63  ;;  %v136_v10 = vmul.f32 %v439_v1, %v68_v59  ;;  %v200_v11 = vadd.f32 %v444_v2, %v132_v4  ;;  %v137_v14 = vmul.f32 %v439_v1, %v69_v0 }
  0x36   :  { %386 = vst.msk [vmem:[%s1022_s3 + $0xac] sm:$0xf] %vm342_vm0, %v321_v55  ;;  %v201_v12 = vadd.f32 %v444_v2, %v133_v5  ;;  %v202_v13 = vadd.f32 %v444_v2, %v134_v6  ;;  %v262_v15 = vmax.f32 %v198_v7, 0.0  ;;  %v203_v17 = vadd.f32 %v444_v2, %v135_v9 }
  0x37   :  { %387 = vst.msk [vmem:[%s1022_s3 + $0xb0] sm:$0xf] %vm342_vm0, %v322_v56  ;;  %v263_v16 = vmax.f32 %v199_v8, 0.0  ;;  %v204_v18 = vadd.f32 %v444_v2, %v136_v10  ;;  %v264_v21 = vmax.f32 %v200_v11, 0.0  ;;  %v205_v24 = vadd.f32 %v444_v2, %v137_v14 }
  0x38   :  { %388 = vst.msk [vmem:[%s1022_s3 + $0xb4] sm:$0xf] %vm342_vm0, %v323_v60  ;;  %v265_v22 = vmax.f32 %v201_v12, 0.0  ;;  %v266_v23 = vmax.f32 %v202_v13, 0.0  ;;  %v326_v26 = vpack.c.bf16 %v262_v15, %v262_v15  ;;  %v267_v28 = vmax.f32 %v203_v17, 0.0 }
  0x39   :  { %389 = vst.msk [vmem:[%s1022_s3 + $0xb8] sm:$0xf] %vm342_vm0, %v324_v61  ;;  %v327_v27 = vpack.c.bf16 %v263_v16, %v263_v16  ;;  %v268_v29 = vmax.f32 %v204_v18, 0.0  ;;  %v328_v32 = vpack.c.bf16 %v264_v21, %v264_v21  ;;  %v269_v35 = vmax.f32 %v205_v24, 0.0 }
  0x3a   :  { %390 = vst.msk [vmem:[%s1022_s3 + $0xbc] sm:$0xf] %vm342_vm0, %v325_v3  ;;  %v329_v33 = vpack.c.bf16 %v265_v22, %v265_v22  ;;  %v330_v34 = vpack.c.bf16 %v266_v23, %v266_v23  ;;  %v331_v38 = vpack.c.bf16 %v267_v28, %v267_v28  ;;  %v138_v40 = vmul.f32 %v439_v1, %v70_v19 }
  0x3b   :  { %391 = vst.msk [vmem:[%s1022_s3 + $0xc0] sm:$0xf] %vm342_vm0, %v326_v26  ;;  %v332_v39 = vpack.c.bf16 %v268_v29, %v268_v29  ;;  %v139_v41 = vmul.f32 %v439_v1, %v71_v20  ;;  %v333_v43 = vpack.c.bf16 %v269_v35, %v269_v35  ;;  %v140_v44 = vmul.f32 %v439_v1, %v72_v25 }
  0x3c   :  { %392 = vst.msk [vmem:[%s1022_s3 + $0xc4] sm:$0xf] %vm342_vm0, %v327_v27  ;;  %v141_v45 = vmul.f32 %v439_v1, %v73_v30  ;;  %v142_v46 = vmul.f32 %v439_v1, %v74_v31  ;;  %v206_v47 = vadd.f32 %v444_v2, %v138_v40  ;;  %v143_v49 = vmul.f32 %v439_v1, %v75_v36 }
  0x3d   :  { %393 = vst.msk [vmem:[%s1022_s3 + $0xc8] sm:$0xf] %vm342_vm0, %v328_v32  ;;  %v207_v48 = vadd.f32 %v444_v2, %v139_v41  ;;  %v144_v50 = vmul.f32 %v439_v1, %v76_v37  ;;  %v208_v51 = vadd.f32 %v444_v2, %v140_v44  ;;  %v145_v54 = vmul.f32 %v439_v1, %v77_v42 }
  0x3e   :  { %394 = vst.msk [vmem:[%s1022_s3 + $0xcc] sm:$0xf] %vm342_vm0, %v329_v33  ;;  %v209_v52 = vadd.f32 %v444_v2, %v141_v45  ;;  %v210_v53 = vadd.f32 %v444_v2, %v142_v46  ;;  %v270_v55 = vmax.f32 %v206_v47, 0.0  ;;  %v211_v57 = vadd.f32 %v444_v2, %v143_v49 }
  0x3f   :  { %395 = vst.msk [vmem:[%s1022_s3 + $0xd0] sm:$0xf] %vm342_vm0, %v330_v34  ;;  %v271_v56 = vmax.f32 %v207_v48, 0.0  ;;  %v212_v58 = vadd.f32 %v444_v2, %v144_v50  ;;  %v272_v59 = vmax.f32 %v208_v51, 0.0  ;;  %v213_v1 = vadd.f32 %v444_v2, %v145_v54 }
  0x40   :  { %396 = vst.msk [vmem:[%s1022_s3 + $0xd4] sm:$0xf] %vm342_vm0, %v331_v38  ;;  %v273_v60 = vmax.f32 %v209_v52, 0.0  ;;  %v274_v61 = vmax.f32 %v210_v53, 0.0  ;;  %v334_v62 = vpack.c.bf16 %v270_v55, %v270_v55  ;;  %v275_v0 = vmax.f32 %v211_v57, 0.0 }
  0x41   :  { %397 = vst.msk [vmem:[%s1022_s3 + $0xd8] sm:$0xf] %vm342_vm0, %v332_v39  ;;  %v335_v63 = vpack.c.bf16 %v271_v56, %v271_v56  ;;  %v276_v3 = vmax.f32 %v212_v58, 0.0  ;;  %v336_v4 = vpack.c.bf16 %v272_v59, %v272_v59  ;;  %v277_v6 = vmax.f32 %v213_v1, 0.0 }
  0x42   :  { %398 = vst.msk [vmem:[%s1022_s3 + $0xdc] sm:$0xf] %vm342_vm0, %v333_v43  ;;  %v337_v5 = vpack.c.bf16 %v273_v60, %v273_v60  ;;  %v338_v2 = vpack.c.bf16 %v274_v61, %v274_v61  ;;  %v339_v7 = vpack.c.bf16 %v275_v0, %v275_v0 }
  0x43   :  { %399 = vst.msk [vmem:[%s1022_s3 + $0xe0] sm:$0xf] %vm342_vm0, %v334_v62  ;;  %v340_v8 = vpack.c.bf16 %v276_v3, %v276_v3  ;;  %v341_v9 = vpack.c.bf16 %v277_v6, %v277_v6 }
  0x44   :  { %400 = vst.msk [vmem:[%s1022_s3 + $0xe4] sm:$0xf] %vm342_vm0, %v335_v63 }
  0x45   :  { %401 = vst.msk [vmem:[%s1022_s3 + $0xe8] sm:$0xf] %vm342_vm0, %v336_v4 }
  0x46   :  { %402 = vst.msk [vmem:[%s1022_s3 + $0xec] sm:$0xf] %vm342_vm0, %v337_v5 }
  0x47   :  { %403 = vst.msk [vmem:[%s1022_s3 + $0xf0] sm:$0xf] %vm342_vm0, %v338_v2 }
  0x48   :  { %404 = vst.msk [vmem:[%s1022_s3 + $0xf4] sm:$0xf] %vm342_vm0, %v339_v7 }
  0x49   :  { %405 = vst.msk [vmem:[%s1022_s3 + $0xf8] sm:$0xf] %vm342_vm0, %v340_v8 }
  0x4a   :  { %406 = vst.msk [vmem:[%s1022_s3 + $0xfc] sm:$0xf] %vm342_vm0, %v341_v9 }

// kernel: conv_block_forward.7
= control target key start
LH: loop header
LB: loop body
LE: loop exit
PB: predicated region body
PF: predicated region fallthrough
CT: control target
= control target key end

     0   :  { %vm279_vm0 = vcmask 261120   ;;  %s816_s0 = inlined_call_operand.vmem [shape: f32[512,32], index: 0, kind: input, shape index: {}]   ;;  %s817_s1 = inlined_call_operand.vmem [shape: f32[1,32], index: 1, kind: input, shape index: {}]   ;;  %s818_s2 = inlined_call_operand.vmem [shape: f32[1,32], index: 2, kind: input, shape index: {}]   ;;  %s819_s3 = inlined_call_operand.hbm [shape: f32[512,32], index: 3, kind: output, shape index: {}]  }
   0x1   :  { %v15_v0 = vld [vmem:[%s816_s0] sm:$0xff]  ;;  %v16_v3 = vld [vmem:[%s816_s0 + $0x8] sm:$0xff]  ;;  %v17_v6 = vld [vmem:[%s816_s0 + $0x10] sm:$0xff] }
   0x2   :  { %v422_v1 = vld [vmem:[%s817_s1] ss:$0 sm:$0xff]  ;;  %v18_v7 = vld [vmem:[%s816_s0 + $0x18] sm:$0xff]  ;;  %v20_v12 = vld [vmem:[%s816_s0 + $0x28] sm:$0xff] }
   0x3   :  { %v427_v2 = vld [vmem:[%s818_s2] ss:$0 sm:$0xff]  ;;  %v83_v4 = vmul.f32 %v422_v1, %v15_v0  ;;  %v84_v5 = vmul.f32 %v422_v1, %v16_v3  ;;  %v85_v9 = vmul.f32 %v422_v1, %v17_v6  ;;  %v86_v10 = vmul.f32 %v422_v1, %v18_v7  ;;  %v21_v13 = vld [vmem:[%s816_s0 + $0x30] sm:$0xff]  ;;  %v22_v14 = vld [vmem:[%s816_s0 + $0x38] sm:$0xff] }
   0x4   :  { %v19_v8 = vld [vmem:[%s816_s0 + $0x20] sm:$0xff]  ;;  %v88_v17 = vmul.f32 %v422_v1, %v20_v12  ;;  %v89_v18 = vmul.f32 %v422_v1, %v21_v13  ;;  %v90_v22 = vmul.f32 %v422_v1, %v22_v14  ;;  %v24_v24 = vld [vmem:[%s816_s0 + $0x48] sm:$0xff]  ;;  %v25_v29 = vld [vmem:[%s816_s0 + $0x50] sm:$0xff] }
   0x5   :  { %v87_v11 = vmul.f32 %v422_v1, %v19_v8  ;;  %v151_v15 = vadd.f32 %v427_v2, %v83_v4  ;;  %v152_v16 = vadd.f32 %v427_v2, %v84_v5  ;;  %v153_v19 = vadd.f32 %v427_v2, %v85_v9  ;;  %v23_v23 = vld [vmem:[%s816_s0 + $0x40] sm:$0xff]  ;;  %v26_v30 = vld [vmem:[%s816_s0 + $0x58] sm:$0xff]  ;;  %v28_v35 = vld [vmem:[%s816_s0 + $0x68] sm:$0xff] }
   0x6   :  { %v154_v20 = vadd.f32 %v427_v2, %v86_v10  ;;  %v156_v27 = vadd.f32 %v427_v2, %v88_v17  ;;  %v157_v28 = vadd.f32 %v427_v2, %v89_v18  ;;  %v27_v31 = vld [vmem:[%s816_s0 + $0x60] sm:$0xff]  ;;  %v158_v34 = vadd.f32 %v427_v2, %v90_v22  ;;  %v29_v36 = vld [vmem:[%s816_s0 + $0x70] sm:$0xff]  ;;  %v30_v41 = vld [vmem:[%s816_s0 + $0x78] sm:$0xff] }
   0x7   :  { %v155_v21 = vadd.f32 %v427_v2, %v87_v11  ;;  %v215_v25 = vmax.f32 %v151_v15, 0.0  ;;  %v216_v26 = vmax.f32 %v152_v16, 0.0  ;;  %v217_v32 = vmax.f32 %v153_v19, 0.0  ;;  %v31_v54 = vld [vmem:[%s816_s0 + $0x80] sm:$0xff]  ;;  %v32_v55 = vld [vmem:[%s816_s0 + $0x88] sm:$0xff]  ;;  %v33_v58 = vld [vmem:[%s816_s0 + $0x90] sm:$0xff] }
   0x8   :  { %v218_v33 = vmax.f32 %v154_v20, 0.0  ;;  %v220_v38 = vmax.f32 %v156_v27, 0.0  ;;  %v91_v39 = vmul.f32 %v422_v1, %v23_v23  ;;  %v92_v40 = vmul.f32 %v422_v1, %v24_v24  ;;  %v34_v59 = vld [vmem:[%s816_s0 + $0x98] sm:$0xff]  ;;  %v35_v62 = vld [vmem:[%s816_s0 + $0xa0] sm:$0xff]  ;;  %v36_v5 = vld [vmem:[%s816_s0 + $0xa8] sm:$0xff] }
   0x9   :  { %280 = vst.msk [vmem:[#allocation2] sm:$0xff] %vm279_vm0, %v215_v25  ;;  %v219_v37 = vmax.f32 %v155_v21, 0.0  ;;  %v221_v42 = vmax.f32 %v157_v28, 0.0  ;;  %v93_v43 = vmul.f32 %v422_v1, %v25_v29  ;;  %v94_v44 = vmul.f32 %v422_v1, %v26_v30  ;;  %v37_v10 = vld [vmem:[%s816_s0 + $0xb0] sm:$0xff]  ;;  %v38_v14 = vld [vmem:[%s816_s0 + $0xb8] sm:$0xff]  ;;  %v39_v18 = vld [vmem:[%s816_s0 + $0xc0] sm:$0xff] }
   0xa   :  { %281 = vst.msk [vmem:[#allocation2 + $0x8] sm:$0xff] %vm279_vm0, %v216_v26  ;;  %v95_v45 = vmul.f32 %v422_v1, %v27_v31  ;;  %v159_v46 = vadd.f32 %v427_v2, %v91_v39  ;;  %v160_v47 = vadd.f32 %v427_v2, %v92_v40  ;;  %v96_v48 = vmul.f32 %v422_v1, %v28_v35  ;;  %v40_v22 = vld [vmem:[%s816_s0 + $0xc8] sm:$0xff]  ;;  %v41_v26 = vld [vmem:[%s816_s0 + $0xd0] sm:$0xff]  ;;  %v42_v30 = vld [vmem:[%s816_s0 + $0xd8] sm:$0xff] }
   0xb   :  { %282 = vst.msk [vmem:[#allocation2 + $0x10] sm:$0xff] %vm279_vm0, %v217_v32  ;;  %v97_v49 = vmul.f32 %v422_v1, %v29_v36  ;;  %v222_v50 = vmax.f32 %v158_v34, 0.0  ;;  %v161_v51 = vadd.f32 %v427_v2, %v93_v43  ;;  %v162_v52 = vadd.f32 %v427_v2, %v94_v44 }
   0xc   :  { %283 = vst.msk [vmem:[#allocation2 + $0x18] sm:$0xff] %vm279_vm0, %v218_v33  ;;  %v98_v53 = vmul.f32 %v422_v1, %v30_v41  ;;  %v223_v56 = vmax.f32 %v159_v46, 0.0  ;;  %v163_v57 = vadd.f32 %v427_v2, %v95_v45  ;;  %v224_v60 = vmax.f32 %v160_v47, 0.0 }
   0xd   :  { %284 = vst.msk [vmem:[#allocation2 + $0x20] sm:$0xff] %vm279_vm0, %v219_v37  ;;  %v164_v61 = vadd.f32 %v427_v2, %v96_v48  ;;  %v225_v63 = vmax.f32 %v161_v51, 0.0  ;;  %v165_v0 = vadd.f32 %v427_v2, %v97_v49  ;;  %v99_v3 = vmul.f32 %v422_v1, %v31_v54 }
   0xe   :  { %285 = vst.msk [vmem:[#allocation2 + $0x28] sm:$0xff] %vm279_vm0, %v220_v38  ;;  %v100_v4 = vmul.f32 %v422_v1, %v32_v55  ;;  %v226_v6 = vmax.f32 %v162_v52, 0.0  ;;  %v166_v7 = vadd.f32 %v427_v2, %v98_v53  ;;  %v101_v8 = vmul.f32 %v422_v1, %v33_v58 }
   0xf   :  { %286 = vst.msk [vmem:[#allocation2 + $0x30] sm:$0xff] %vm279_vm0, %v221_v42  ;;  %v102_v9 = vmul.f32 %v422_v1, %v34_v59  ;;  %v227_v11 = vmax.f32 %v163_v57, 0.0  ;;  %v167_v12 = vadd.f32 %v427_v2, %v99_v3  ;;  %v103_v13 = vmul.f32 %v422_v1, %v35_v62 }
  0x10   :  { %287 = vst.msk [vmem:[#allocation2 + $0x38] sm:$0xff] %vm279_vm0, %v222_v50  ;;  %v228_v15 = vmax.f32 %v164_v61, 0.0  ;;  %v168_v16 = vadd.f32 %v427_v2, %v100_v4  ;;  %v104_v17 = vmul.f32 %v422_v1, %v36_v5  ;;  %v229_v19 = vmax.f32 %v165_v0, 0.0 }
  0x11   :  { %288 = vst.msk [vmem:[#allocation2 + $0x40] sm:$0xff] %vm279_vm0, %v223_v56  ;;  %v169_v20 = vadd.f32 %v427_v2, %v101_v8  ;;  %v105_v21 = vmul.f32 %v422_v1, %v37_v10  ;;  %v230_v23 = vmax.f32 %v166_v7, 0.0  ;;  %v170_v24 = vadd.f32 %v427_v2, %v102_v9 }
  0x12   :  { %289 = vst.msk [vmem:[#allocation2 + $0x48] sm:$0xff] %vm279_vm0, %v224_v60  ;;  %v106_v25 = vmul.f32 %v422_v1, %v38_v14  ;;  %v231_v27 = vmax.f32 %v167_v12, 0.0  ;;  %v171_v28 = vadd.f32 %v427_v2, %v103_v13  ;;  %v107_v29 = vmul.f32 %v422_v1, %v39_v18 }
  0x13   :  { %290 = vst.msk [vmem:[#allocation2 + $0x50] sm:$0xff] %vm279_vm0, %v225_v63 }
  0x14   :  { %291 = vst.msk [vmem:[#allocation2 + $0x58] sm:$0xff] %vm279_vm0, %v226_v6 }
  0x15   :  { %292 = vst.msk [vmem:[#allocation2 + $0x60] sm:$0xff] %vm279_vm0, %v227_v11 }
  0x16   :  { %8 = vsyncpa [#allocation3], 0  ;;  %293 = vst.msk [vmem:[#allocation2 + $0x68] sm:$0xff] %vm279_vm0, %v228_v15  ;;  %v232_v31 = vmax.f32 %v168_v16, 0.0  ;;  %v172_v32 = vadd.f32 %v427_v2, %v104_v17  ;;  %v108_v33 = vmul.f32 %v422_v1, %v40_v22  ;;  %v43_v34 = vld [vmem:[%s816_s0 + $0xe0] sm:$0xff]  ;;  %v233_v35 = vmax.f32 %v169_v20, 0.0 }
  0x17   :  { %294 = vst.msk [vmem:[#allocation2 + $0x70] sm:$0xff] %vm279_vm0, %v229_v19  ;;  %v173_v36 = vadd.f32 %v427_v2, %v105_v21  ;;  %v109_v37 = vmul.f32 %v422_v1, %v41_v26  ;;  %v44_v38 = vld [vmem:[%s816_s0 + $0xe8] sm:$0xff]  ;;  %v234_v39 = vmax.f32 %v170_v24, 0.0  ;;  %v174_v40 = vadd.f32 %v427_v2, %v106_v25  ;;  %v45_v42 = vld [vmem:[%s816_s0 + $0xf0] sm:$0xff]  ;;  %v46_v46 = vld [vmem:[%s816_s0 + $0xf8] sm:$0xff]  ;;  %s350_s29 = sshll.u32 %s819_s3, 4  ;;  %s351_s29 = int_to_ptr.hbm [resolvable:$true] %s350_s29 }
  0x18   :  { %295 = vst.msk [vmem:[#allocation2 + $0x78] sm:$0xff] %vm279_vm0, %v230_v23  ;;  %v110_v41 = vmul.f32 %v422_v1, %v42_v30  ;;  %v235_v43 = vmax.f32 %v171_v28, 0.0  ;;  %v175_v44 = vadd.f32 %v427_v2, %v107_v29  ;;  %v111_v45 = vmul.f32 %v422_v1, %v43_v34  ;;  %v47_v50 = vld [vmem:[%s816_s0 + $0x100] sm:$0xff]  ;;  %v48_v54 = vld [vmem:[%s816_s0 + $0x108] sm:$0xff]  ;;  %v49_v58 = vld [vmem:[%s816_s0 + $0x110] sm:$0xff]  ;;  %s394_s30 = smov 128  }
  0x19   :  { %296 = vst.msk [vmem:[#allocation2 + $0x80] sm:$0xff] %vm279_vm0, %v231_v27  ;;  %v236_v47 = vmax.f32 %v172_v32, 0.0  ;;  %v176_v48 = vadd.f32 %v427_v2, %v108_v33  ;;  %v112_v49 = vmul.f32 %v422_v1, %v44_v38  ;;  %v237_v51 = vmax.f32 %v173_v36, 0.0  ;;  %v50_v62 = vld [vmem:[%s816_s0 + $0x118] sm:$0xff]  ;;  %v51_v4 = vld [vmem:[%s816_s0 + $0x120] sm:$0xff]  ;;  %v52_v8 = vld [vmem:[%s816_s0 + $0x128] sm:$0xff] }
  0x1a   :  { %297 = vst.msk [vmem:[#allocation2 + $0x88] sm:$0xff] %vm279_vm0, %v232_v31  ;;  %v177_v52 = vadd.f32 %v427_v2, %v109_v37  ;;  %v113_v53 = vmul.f32 %v422_v1, %v45_v42  ;;  %v238_v55 = vmax.f32 %v174_v40, 0.0  ;;  %v178_v56 = vadd.f32 %v427_v2, %v110_v41  ;;  %v53_v12 = vld [vmem:[%s816_s0 + $0x130] sm:$0xff]  ;;  %v54_v16 = vld [vmem:[%s816_s0 + $0x138] sm:$0xff]  ;;  %v55_v20 = vld [vmem:[%s816_s0 + $0x140] sm:$0xff]  ;;  %s395_s4 = smov 8  }
  0x1b   :  { %298 = vst.msk [vmem:[#allocation2 + $0x90] sm:$0xff] %vm279_vm0, %v233_v35  ;;  %v114_v57 = vmul.f32 %v422_v1, %v46_v46  ;;  %v239_v59 = vmax.f32 %v175_v44, 0.0  ;;  %v179_v60 = vadd.f32 %v427_v2, %v111_v45  ;;  %v115_v61 = vmul.f32 %v422_v1, %v47_v50  ;;  %v56_v24 = vld [vmem:[%s816_s0 + $0x148] sm:$0xff]  ;;  %v57_v28 = vld [vmem:[%s816_s0 + $0x150] sm:$0xff]  ;;  %v58_v32 = vld [vmem:[%s816_s0 + $0x158] sm:$0xff] }
  0x1c   :  { %299 = vst.msk [vmem:[#allocation2 + $0x98] sm:$0xff] %vm279_vm0, %v234_v39  ;;  %v240_v63 = vmax.f32 %v176_v48, 0.0  ;;  %v180_v0 = vadd.f32 %v427_v2, %v112_v49  ;;  %v116_v3 = vmul.f32 %v422_v1, %v48_v54  ;;  %v241_v5 = vmax.f32 %v177_v52, 0.0  ;;  %v59_v36 = vld [vmem:[%s816_s0 + $0x160] sm:$0xff]  ;;  %v60_v40 = vld [vmem:[%s816_s0 + $0x168] sm:$0xff]  ;;  %v61_v44 = vld [vmem:[%s816_s0 + $0x170] sm:$0xff] }
  0x1d   :  { %300 = vst.msk [vmem:[#allocation2 + $0xa0] sm:$0xff] %vm279_vm0, %v235_v43  ;;  %v181_v6 = vadd.f32 %v427_v2, %v113_v53  ;;  %v117_v7 = vmul.f32 %v422_v1, %v49_v58  ;;  %v242_v9 = vmax.f32 %v178_v56, 0.0  ;;  %v182_v10 = vadd.f32 %v427_v2, %v114_v57  ;;  %v62_v48 = vld [vmem:[%s816_s0 + $0x178] sm:$0xff]  ;;  %v63_v52 = vld [vmem:[%s816_s0 + $0x180] sm:$0xff]  ;;  %v64_v56 = vld [vmem:[%s816_s0 + $0x188] sm:$0xff] }
  0x1e   :  { %301 = vst.msk [vmem:[#allocation2 + $0xa8] sm:$0xff] %vm279_vm0, %v236_v47  ;;  %v118_v11 = vmul.f32 %v422_v1, %v50_v62  ;;  %v243_v13 = vmax.f32 %v179_v60, 0.0  ;;  %v183_v14 = vadd.f32 %v427_v2, %v115_v61  ;;  %v119_v15 = vmul.f32 %v422_v1, %v51_v4  ;;  %v65_v60 = vld [vmem:[%s816_s0 + $0x190] sm:$0xff] }
  0x1f   :  { %302 = vst.msk [vmem:[#allocation2 + $0xb0] sm:$0xff] %vm279_vm0, %v237_v51  ;;  %v244_v17 = vmax.f32 %v180_v0, 0.0  ;;  %v184_v18 = vadd.f32 %v427_v2, %v116_v3  ;;  %v120_v19 = vmul.f32 %v422_v1, %v52_v8  ;;  %v245_v21 = vmax.f32 %v181_v6, 0.0  ;;  %v66_v0 = vld [vmem:[%s816_s0 + $0x198] sm:$0xff] }
  0x20   :  { %303 = vst.msk [vmem:[#allocation2 + $0xb8] sm:$0xff] %vm279_vm0, %v238_v55  ;;  %v185_v22 = vadd.f32 %v427_v2, %v117_v7  ;;  %v121_v23 = vmul.f32 %v422_v1, %v53_v12  ;;  %v246_v25 = vmax.f32 %v182_v10, 0.0  ;;  %v186_v26 = vadd.f32 %v427_v2, %v118_v11  ;;  %v78_v3 = vld [vmem:[%s816_s0 + $0x1f8] sm:$0xff]  ;;  %v67_v7 = vld [vmem:[%s816_s0 + $0x1a0] sm:$0xff]  ;;  %v68_v11 = vld [vmem:[%s816_s0 + $0x1a8] sm:$0xff] }
  0x21   :  { %304 = vst.msk [vmem:[#allocation2 + $0xc0] sm:$0xff] %vm279_vm0, %v239_v59  ;;  %v122_v27 = vmul.f32 %v422_v1, %v54_v16  ;;  %v247_v29 = vmax.f32 %v183_v14, 0.0  ;;  %v187_v30 = vadd.f32 %v427_v2, %v119_v15  ;;  %v123_v31 = vmul.f32 %v422_v1, %v55_v20  ;;  %v69_v15 = vld [vmem:[%s816_s0 + $0x1b0] sm:$0xff]  ;;  %v70_v20 = vld [vmem:[%s816_s0 + $0x1b8] sm:$0xff] }
  0x22   :  { %305 = vst.msk [vmem:[#allocation2 + $0xc8] sm:$0xff] %vm279_vm0, %v240_v63  ;;  %v248_v33 = vmax.f32 %v184_v18, 0.0  ;;  %v188_v34 = vadd.f32 %v427_v2, %v120_v19  ;;  %v124_v35 = vmul.f32 %v422_v1, %v56_v24  ;;  %v249_v37 = vmax.f32 %v185_v22, 0.0  ;;  %v71_v24 = vld [vmem:[%s816_s0 + $0x1c0] sm:$0xff] }
  0x23   :  { %306 = vst.msk [vmem:[#allocation2 + $0xd0] sm:$0xff] %vm279_vm0, %v241_v5  ;;  %v189_v38 = vadd.f32 %v427_v2, %v121_v23  ;;  %v125_v39 = vmul.f32 %v422_v1, %v57_v28  ;;  %v250_v41 = vmax.f32 %v186_v26, 0.0  ;;  %v190_v42 = vadd.f32 %v427_v2, %v122_v27 }
  0x24   :  { %307 = vst.msk [vmem:[#allocation2 + $0xd8] sm:$0xff] %vm279_vm0, %v242_v9  ;;  %v126_v43 = vmul.f32 %v422_v1, %v58_v32  ;;  %v251_v45 = vmax.f32 %v187_v30, 0.0  ;;  %v191_v46 = vadd.f32 %v427_v2, %v123_v31  ;;  %v127_v47 = vmul.f32 %v422_v1, %v59_v36 }
  0x25   :  { %308 = vst.msk [vmem:[#allocation2 + $0xe0] sm:$0xff] %vm279_vm0, %v243_v13  ;;  %v252_v49 = vmax.f32 %v188_v34, 0.0  ;;  %v192_v50 = vadd.f32 %v427_v2, %v124_v35  ;;  %v128_v51 = vmul.f32 %v422_v1, %v60_v40  ;;  %v253_v53 = vmax.f32 %v189_v38, 0.0 }
  0x26   :  { %309 = vst.msk [vmem:[#allocation2 + $0xe8] sm:$0xff] %vm279_vm0, %v244_v17  ;;  %v193_v54 = vadd.f32 %v427_v2, %v125_v39  ;;  %v129_v55 = vmul.f32 %v422_v1, %v61_v44  ;;  %v254_v57 = vmax.f32 %v190_v42, 0.0  ;;  %v194_v58 = vadd.f32 %v427_v2, %v126_v43 }
  0x27   :  { %310 = vst.msk [vmem:[#allocation2 + $0xf0] sm:$0xff] %vm279_vm0, %v245_v21  ;;  %v130_v59 = vmul.f32 %v422_v1, %v62_v48  ;;  %v255_v61 = vmax.f32 %v191_v46, 0.0  ;;  %v195_v62 = vadd.f32 %v427_v2, %v127_v47  ;;  %v131_v63 = vmul.f32 %v422_v1, %v63_v52 }
  0x28   :  { %311 = vst.msk [vmem:[#allocation2 + $0xf8] sm:$0xff] %vm279_vm0, %v246_v25  ;;  %v256_v4 = vmax.f32 %v192_v50, 0.0  ;;  %v196_v5 = vadd.f32 %v427_v2, %v128_v51  ;;  %v132_v6 = vmul.f32 %v422_v1, %v64_v56  ;;  %v257_v8 = vmax.f32 %v193_v54, 0.0 }
  0x29   :  { %312 = vst.msk [vmem:[#allocation2 + $0x100] sm:$0xff] %vm279_vm0, %v247_v29  ;;  %v197_v9 = vadd.f32 %v427_v2, %v129_v55  ;;  %v133_v10 = vmul.f32 %v422_v1, %v65_v60  ;;  %v258_v12 = vmax.f32 %v194_v58, 0.0  ;;  %v198_v13 = vadd.f32 %v427_v2, %v130_v59  ;;  %v72_v29 = vld [vmem:[%s816_s0 + $0x1c8] sm:$0xff] }
  0x2a   :  { %313 = vst.msk [vmem:[#allocation2 + $0x108] sm:$0xff] %vm279_vm0, %v248_v33  ;;  %v134_v14 = vmul.f32 %v422_v1, %v66_v0  ;;  %v146_v16 = vmul.f32 %v422_v1, %v78_v3  ;;  %v259_v17 = vmax.f32 %v195_v62, 0.0  ;;  %v199_v18 = vadd.f32 %v427_v2, %v131_v63  ;;  %v73_v33 = vld [vmem:[%s816_s0 + $0x1d0] sm:$0xff] }
  0x2b   :  { %314 = vst.msk [vmem:[#allocation2 + $0x110] sm:$0xff] %vm279_vm0, %v249_v37  ;;  %v135_v19 = vmul.f32 %v422_v1, %v67_v7  ;;  %v260_v21 = vmax.f32 %v196_v5, 0.0  ;;  %v200_v22 = vadd.f32 %v427_v2, %v132_v6  ;;  %v136_v23 = vmul.f32 %v422_v1, %v68_v11  ;;  %v74_v37 = vld [vmem:[%s816_s0 + $0x1d8] sm:$0xff] }
  0x2c   :  { %315 = vst.msk [vmem:[#allocation2 + $0x118] sm:$0xff] %vm279_vm0, %v250_v41  ;;  %v748_v25 = vadd.f32 %v427_v2, %v146_v16  ;;  %v261_v26 = vmax.f32 %v197_v9, 0.0  ;;  %v201_v27 = vadd.f32 %v427_v2, %v133_v10  ;;  %v137_v28 = vmul.f32 %v422_v1, %v69_v15  ;;  %v75_v41 = vld [vmem:[%s816_s0 + $0x1e0] sm:$0xff] }
  0x2d   :  { %316 = vst.msk [vmem:[#allocation2 + $0x120] sm:$0xff] %vm279_vm0, %v251_v45  ;;  %v262_v30 = vmax.f32 %v198_v13, 0.0  ;;  %v202_v31 = vadd.f32 %v427_v2, %v134_v14  ;;  %v138_v32 = vmul.f32 %v422_v1, %v70_v20  ;;  %v263_v34 = vmax.f32 %v199_v18, 0.0  ;;  %v76_v45 = vld [vmem:[%s816_s0 + $0x1e8] sm:$0xff] }
  0x2e   :  { %317 = vst.msk [vmem:[#allocation2 + $0x128] sm:$0xff] %vm279_vm0, %v252_v49  ;;  %v203_v35 = vadd.f32 %v427_v2, %v135_v19  ;;  %v139_v36 = vmul.f32 %v422_v1, %v71_v24  ;;  %v264_v38 = vmax.f32 %v200_v22, 0.0  ;;  %v204_v39 = vadd.f32 %v427_v2, %v136_v23  ;;  %v77_v49 = vld [vmem:[%s816_s0 + $0x1f0] sm:$0xff]  ;;  %s393_s0 = smov [#allocation2]  }
  0x2f   :  { %318 = vst.msk [vmem:[#allocation2 + $0x130] sm:$0xff] %vm279_vm0, %v253_v53  ;;  %v140_v40 = vmul.f32 %v422_v1, %v72_v29  ;;  %v265_v42 = vmax.f32 %v201_v27, 0.0  ;;  %v205_v43 = vadd.f32 %v427_v2, %v137_v28  ;;  %v141_v44 = vmul.f32 %v422_v1, %v73_v33  ;;  %s348_s26 = sshll.u32 %s393_s0, 4  ;;  %s349_s26 = int_to_ptr.vmem [resolvable:$true] %s348_s26 }
  0x30   :  { %319 = vst.msk [vmem:[#allocation2 + $0x138] sm:$0xff] %vm279_vm0, %v254_v57  ;;  %v266_v46 = vmax.f32 %v202_v31, 0.0  ;;  %v206_v47 = vadd.f32 %v427_v2, %v138_v32  ;;  %v142_v48 = vmul.f32 %v422_v1, %v74_v37  ;;  %v267_v50 = vmax.f32 %v203_v35, 0.0 }
  0x31   :  { %320 = vst.msk [vmem:[#allocation2 + $0x140] sm:$0xff] %vm279_vm0, %v255_v61  ;;  %v207_v51 = vadd.f32 %v427_v2, %v139_v36  ;;  %v143_v52 = vmul.f32 %v422_v1, %v75_v41  ;;  %v268_v53 = vmax.f32 %v204_v39, 0.0  ;;  %v208_v54 = vadd.f32 %v427_v2, %v140_v40 }
  0x32   :  { %321 = vst.msk [vmem:[#allocation2 + $0x148] sm:$0xff] %vm279_vm0, %v256_v4  ;;  %v144_v55 = vmul.f32 %v422_v1, %v76_v45  ;;  %v269_v56 = vmax.f32 %v205_v43, 0.0  ;;  %v209_v57 = vadd.f32 %v427_v2, %v141_v44  ;;  %v145_v58 = vmul.f32 %v422_v1, %v77_v49 }
  0x33   :  { %322 = vst.msk [vmem:[#allocation2 + $0x150] sm:$0xff] %vm279_vm0, %v257_v8  ;;  %v270_v59 = vmax.f32 %v206_v47, 0.0  ;;  %v210_v60 = vadd.f32 %v427_v2, %v142_v48  ;;  %v271_v61 = vmax.f32 %v207_v51, 0.0  ;;  %v211_v62 = vadd.f32 %v427_v2, %v143_v52 }
  0x34   :  { %323 = vst.msk [vmem:[#allocation2 + $0x158] sm:$0xff] %vm279_vm0, %v258_v12  ;;  %v272_v63 = vmax.f32 %v208_v54, 0.0  ;;  %v212_v0 = vadd.f32 %v427_v2, %v144_v55  ;;  %v273_v3 = vmax.f32 %v209_v57, 0.0  ;;  %v213_v1 = vadd.f32 %v427_v2, %v145_v58 }
  0x35   :  { %324 = vst.msk [vmem:[#allocation2 + $0x160] sm:$0xff] %vm279_vm0, %v259_v17  ;;  %v274_v4 = vmax.f32 %v210_v60, 0.0  ;;  %v275_v5 = vmax.f32 %v211_v62, 0.0  ;;  %v278_v2 = vmax.f32 %v748_v25, 0.0 }
  0x36   :  { %325 = vst.msk [vmem:[#allocation2 + $0x168] sm:$0xff] %vm279_vm0, %v260_v21  ;;  %v276_v6 = vmax.f32 %v212_v0, 0.0  ;;  %v277_v7 = vmax.f32 %v213_v1, 0.0 }
  0x37   :  { %326 = vst.msk [vmem:[#allocation2 + $0x170] sm:$0xff] %vm279_vm0, %v261_v26 }
  0x38   :  { %327 = vst.msk [vmem:[#allocation2 + $0x178] sm:$0xff] %vm279_vm0, %v262_v30 }
  0x39   :  { %328 = vst.msk [vmem:[#allocation2 + $0x180] sm:$0xff] %vm279_vm0, %v263_v34 }
  0x3a   :  { %329 = vst.msk [vmem:[#allocation2 + $0x188] sm:$0xff] %vm279_vm0, %v264_v38 }
  0x3b   :  { %330 = vst.msk [vmem:[#allocation2 + $0x190] sm:$0xff] %vm279_vm0, %v265_v42 }
  0x3c   :  { %331 = vst.msk [vmem:[#allocation2 + $0x198] sm:$0xff] %vm279_vm0, %v266_v46 }
  0x3d   :  { %332 = vst.msk [vmem:[#allocation2 + $0x1a0] sm:$0xff] %vm279_vm0, %v267_v50 }
  0x3e   :  { %333 = vst.msk [vmem:[#allocation2 + $0x1a8] sm:$0xff] %vm279_vm0, %v268_v53 }
  0x3f   :  { %334 = vst.msk [vmem:[#allocation2 + $0x1b0] sm:$0xff] %vm279_vm0, %v269_v56 }
  0x40   :  { %335 = vst.msk [vmem:[#allocation2 + $0x1b8] sm:$0xff] %vm279_vm0, %v270_v59 }
  0x41   :  { %336 = vst.msk [vmem:[#allocation2 + $0x1c0] sm:$0xff] %vm279_vm0, %v271_v61 }
  0x42   :  { %337 = vst.msk [vmem:[#allocation2 + $0x1c8] sm:$0xff] %vm279_vm0, %v272_v63 }
  0x43   :  { %338 = vst.msk [vmem:[#allocation2 + $0x1d0] sm:$0xff] %vm279_vm0, %v273_v3 }
  0x44   :  { %339 = vst.msk [vmem:[#allocation2 + $0x1d8] sm:$0xff] %vm279_vm0, %v274_v4 }
  0x45   :  { %340 = vst.msk [vmem:[#allocation2 + $0x1e0] sm:$0xff] %vm279_vm0, %v275_v5 }
  0x46   :  { %341 = vst.msk [vmem:[#allocation2 + $0x1e8] sm:$0xff] %vm279_vm0, %v276_v6 }
  0x47   :  { %342 = vst.msk [vmem:[#allocation2 + $0x1f0] sm:$0xff] %vm279_vm0, %v277_v7 }
  0x48   :  { %343 = vst.msk [vmem:[#allocation2 + $0x1f8] sm:$0xff] %vm279_vm0, %v278_v2 }
  0x49   :  { %356 = dma.vmem_to_hbm [thread:$0]  %s349_s26, 8192, %s351_s29, [#allocation3], %s394_s30, %s394_s30, %s395_s4  }
  0x4a   :  { %391 = dma.done.wait [#allocation3], 8192  }
  0x4b   :  { %392 = vsyncadd [#allocation3], 4294959104 }
  0x4c   :  { %361 = vsyncpa [#allocation3], 1 }

// kernel: conv_block_forward.4
= control target key start
LH: loop header
LB: loop body
LE: loop exit
PB: predicated region body
PF: predicated region fallthrough
CT: control target
= control target key end

     0   :  { %s3484_s15 = smov 0   ;;  %s3486_s16 = smov 0   ;;  %s5468_s0 = inlined_call_operand.vmem [shape: bf16[3,32,18,4], index: 0, kind: input, shape index: {}]   ;;  %s5469_s1 = inlined_call_operand.vmem [shape: bf16[3,12,32], index: 1, kind: input, shape index: {}]   ;;  %s5470_s2 = inlined_call_operand.vmem [shape: f32[1,32], index: 2, kind: input, shape index: {}]   ;;  %s5471_s3 = inlined_call_operand.vmem [shape: f32[512,32], index: 3, kind: output, shape index: {0}]   ;;  %s5472_s4 = inlined_call_operand.vmem [shape: f32[1,8,32], index: 4, kind: output, shape index: {1}]  }
   0x1   :  { %s3488_s17 = smov 0  }
   0x2 LB: > { %s24_s18 = sadd.s32 1, %s3450_s16  ;;  %p3159_p0 = scmp.ge.s32.totalorder %s3454_s17, 1  ;;  %s3454_s17 = sphi %s3488_s17, %s15_s17   ;;  %s3450_s16 = sphi %s3486_s16, %s5478_s16   ;;  %s3446_s15 = sphi %s3484_s15, %s5477_s15  }
   0x3   : > { %p25_p1 = scmp.ge.s32.totalorder %s24_s18, 3  ;;  %p185_p2 = scmp.lt.s32.totalorder %s3454_s17, 4 }
   0x5   : > { %s5480_s18 = smov (%p25_p1, %s24_s18), 0  ;;  %p186_p3 = pnand %p3159_p0, %p185_p2 }
   0x6   : > { %p221_p4 = scmp.lt.s32.totalorder (!%p186_p3), %s3446_s15, 2  ;;  %p3161_p5 = scmp.ne.s32.totalorder (!%p186_p3), %s3446_s15, 0 }
   0x7   : > { %189 = sbr.rel (%p186_p3) target bundleno = 714 (0x2ca), region = 32 }
   0xc   : > { %s222_s19 = scalar_select %p221_p4, %s3446_s15, 2 }
   0xd   : > { %245 = sbr.rel (%p3161_p5) target bundleno = 83 (0x53), region = 36 }
   0xe   : > { %s3403_s20 = smul.u32 384, %s222_s19 }
  0x10   : > { %s3509_s23 = scalar_lea.vmem %s5468_s0, %s3403_s20 }
  0x12   : > { %vm246_vm0 = vcmask 261120   ;;  %v3456_v0 = vmov 0.0  }
  0x13   : > { %247 = vst.msk [vmem:[#allocation2] sm:$0xff] %vm246_vm0, %v3456_v0 }
  0x14   : > { %248 = vst.msk [vmem:[#allocation2 + $0x8] sm:$0xff] %vm246_vm0, %v3456_v0 }
  0x15   : > { %249 = vst.msk [vmem:[#allocation2 + $0x10] sm:$0xff] %vm246_vm0, %v3456_v0 }
  0x16   : > { %250 = vst.msk [vmem:[#allocation2 + $0x18] sm:$0xff] %vm246_vm0, %v3456_v0 }
  0x17   : > { %251 = vst.msk [vmem:[#allocation2 + $0x20] sm:$0xff] %vm246_vm0, %v3456_v0 }
  0x18   : > { %252 = vst.msk [vmem:[#allocation2 + $0x28] sm:$0xff] %vm246_vm0, %v3456_v0 }
  0x19   : > { %253 = vst.msk [vmem:[#allocation2 + $0x30] sm:$0xff] %vm246_vm0, %v3456_v0 }
  0x1a   : > { %254 = vst.msk [vmem:[#allocation2 + $0x38] sm:$0xff] %vm246_vm0, %v3456_v0 }
  0x1b   : > { %255 = vst.msk [vmem:[#allocation2 + $0x40] sm:$0xff] %vm246_vm0, %v3456_v0 }
  0x1c   : > { %256 = vst.msk [vmem:[#allocation2 + $0x48] sm:$0xff] %vm246_vm0, %v3456_v0 }
  0x1d   : > { %257 = vst.msk [vmem:[#allocation2 + $0x50] sm:$0xff] %vm246_vm0, %v3456_v0 }
  0x1e   : > { %258 = vst.msk [vmem:[#allocation2 + $0x58] sm:$0xff] %vm246_vm0, %v3456_v0 }
  0x1f   : > { %259 = vst.msk [vmem:[#allocation2 + $0x60] sm:$0xff] %vm246_vm0, %v3456_v0 }
  0x20   : > { %260 = vst.msk [vmem:[#allocation2 + $0x68] sm:$0xff] %vm246_vm0, %v3456_v0 }
  0x21   : > { %261 = vst.msk [vmem:[#allocation2 + $0x70] sm:$0xff] %vm246_vm0, %v3456_v0 }
  0x22   : > { %262 = vst.msk [vmem:[#allocation2 + $0x78] sm:$0xff] %vm246_vm0, %v3456_v0 }
  0x23   : > { %263 = vst.msk [vmem:[#allocation2 + $0x80] sm:$0xff] %vm246_vm0, %v3456_v0 }
  0x24   : > { %264 = vst.msk [vmem:[#allocation2 + $0x88] sm:$0xff] %vm246_vm0, %v3456_v0 }
  0x25   : > { %265 = vst.msk [vmem:[#allocation2 + $0x90] sm:$0xff] %vm246_vm0, %v3456_v0 }
  0x26   : > { %266 = vst.msk [vmem:[#allocation2 + $0x98] sm:$0xff] %vm246_vm0, %v3456_v0 }
  0x27   : > { %267 = vst.msk [vmem:[#allocation2 + $0xa0] sm:$0xff] %vm246_vm0, %v3456_v0 }
  0x28   : > { %268 = vst.msk [vmem:[#allocation2 + $0xa8] sm:$0xff] %vm246_vm0, %v3456_v0 }
  0x29   : > { %269 = vst.msk [vmem:[#allocation2 + $0xb0] sm:$0xff] %vm246_vm0, %v3456_v0 }
  0x2a   : > { %270 = vst.msk [vmem:[#allocation2 + $0xb8] sm:$0xff] %vm246_vm0, %v3456_v0 }
  0x2b   : > { %271 = vst.msk [vmem:[#allocation2 + $0xc0] sm:$0xff] %vm246_vm0, %v3456_v0 }
  0x2c   : > { %272 = vst.msk [vmem:[#allocation2 + $0xc8] sm:$0xff] %vm246_vm0, %v3456_v0 }
  0x2d   : > { %273 = vst.msk [vmem:[#allocation2 + $0xd0] sm:$0xff] %vm246_vm0, %v3456_v0 }
  0x2e   : > { %274 = vst.msk [vmem:[#allocation2 + $0xd8] sm:$0xff] %vm246_vm0, %v3456_v0 }
  0x2f   : > { %275 = vst.msk [vmem:[#allocation2 + $0xe0] sm:$0xff] %vm246_vm0, %v3456_v0 }
  0x30   : > { %276 = vst.msk [vmem:[#allocation2 + $0xe8] sm:$0xff] %vm246_vm0, %v3456_v0 }
  0x31   : > { %277 = vst.msk [vmem:[#allocation2 + $0xf0] sm:$0xff] %vm246_vm0, %v3456_v0 }
  0x32   : > { %278 = vst.msk [vmem:[#allocation2 + $0xf8] sm:$0xff] %vm246_vm0, %v3456_v0 }
  0x33   : > { %279 = vst.msk [vmem:[#allocation2 + $0x100] sm:$0xff] %vm246_vm0, %v3456_v0 }
  0x34   : > { %280 = vst.msk [vmem:[#allocation2 + $0x108] sm:$0xff] %vm246_vm0, %v3456_v0 }
  0x35   : > { %281 = vst.msk [vmem:[#allocation2 + $0x110] sm:$0xff] %vm246_vm0, %v3456_v0 }
  0x36   : > { %282 = vst.msk [vmem:[#allocation2 + $0x118] sm:$0xff] %vm246_vm0, %v3456_v0 }
  0x37   : > { %283 = vst.msk [vmem:[#allocation2 + $0x120] sm:$0xff] %vm246_vm0, %v3456_v0 }
  0x38   : > { %284 = vst.msk [vmem:[#allocation2 + $0x128] sm:$0xff] %vm246_vm0, %v3456_v0 }
  0x39   : > { %285 = vst.msk [vmem:[#allocation2 + $0x130] sm:$0xff] %vm246_vm0, %v3456_v0 }
  0x3a   : > { %286 = vst.msk [vmem:[#allocation2 + $0x138] sm:$0xff] %vm246_vm0, %v3456_v0 }
  0x3b   : > { %287 = vst.msk [vmem:[#allocation2 + $0x140] sm:$0xff] %vm246_vm0, %v3456_v0 }
  0x3c   : > { %288 = vst.msk [vmem:[#allocation2 + $0x148] sm:$0xff] %vm246_vm0, %v3456_v0 }
  0x3d   : > { %289 = vst.msk [vmem:[#allocation2 + $0x150] sm:$0xff] %vm246_vm0, %v3456_v0 }
  0x3e   : > { %290 = vst.msk [vmem:[#allocation2 + $0x158] sm:$0xff] %vm246_vm0, %v3456_v0 }
  0x3f   : > { %291 = vst.msk [vmem:[#allocation2 + $0x160] sm:$0xff] %vm246_vm0, %v3456_v0 }
  0x40   : > { %292 = vst.msk [vmem:[#allocation2 + $0x168] sm:$0xff] %vm246_vm0, %v3456_v0 }
  0x41   : > { %293 = vst.msk [vmem:[#allocation2 + $0x170] sm:$0xff] %vm246_vm0, %v3456_v0 }
  0x42   : > { %294 = vst.msk [vmem:[#allocation2 + $0x178] sm:$0xff] %vm246_vm0, %v3456_v0 }
  0x43   : > { %295 = vst.msk [vmem:[#allocation2 + $0x180] sm:$0xff] %vm246_vm0, %v3456_v0 }
  0x44   : > { %296 = vst.msk [vmem:[#allocation2 + $0x188] sm:$0xff] %vm246_vm0, %v3456_v0 }
  0x45   : > { %297 = vst.msk [vmem:[#allocation2 + $0x190] sm:$0xff] %vm246_vm0, %v3456_v0 }
  0x46   : > { %298 = vst.msk [vmem:[#allocation2 + $0x198] sm:$0xff] %vm246_vm0, %v3456_v0 }
  0x47   : > { %299 = vst.msk [vmem:[#allocation2 + $0x1a0] sm:$0xff] %vm246_vm0, %v3456_v0 }
  0x48   : > { %300 = vst.msk [vmem:[#allocation2 + $0x1a8] sm:$0xff] %vm246_vm0, %v3456_v0 }
  0x49   : > { %301 = vst.msk [vmem:[#allocation2 + $0x1b0] sm:$0xff] %vm246_vm0, %v3456_v0 }
  0x4a   : > { %302 = vst.msk [vmem:[#allocation2 + $0x1b8] sm:$0xff] %vm246_vm0, %v3456_v0 }
  0x4b   : > { %303 = vst.msk [vmem:[#allocation2 + $0x1c0] sm:$0xff] %vm246_vm0, %v3456_v0 }
  0x4c   : > { %304 = vst.msk [vmem:[#allocation2 + $0x1c8] sm:$0xff] %vm246_vm0, %v3456_v0 }
  0x4d   : > { %305 = vst.msk [vmem:[#allocation2 + $0x1d0] sm:$0xff] %vm246_vm0, %v3456_v0 }
  0x4e   : > { %306 = vst.msk [vmem:[#allocation2 + $0x1d8] sm:$0xff] %vm246_vm0, %v3456_v0 }
  0x4f   : > { %307 = vst.msk [vmem:[#allocation2 + $0x1e0] sm:$0xff] %vm246_vm0, %v3456_v0 }
  0x50   : > { %308 = vst.msk [vmem:[#allocation2 + $0x1e8] sm:$0xff] %vm246_vm0, %v3456_v0 }
  0x51   : > { %309 = vst.msk [vmem:[#allocation2 + $0x1f0] sm:$0xff] %vm246_vm0, %v3456_v0 }
  0x52   : > { %310 = vst.msk [vmem:[#allocation2 + $0x1f8] sm:$0xff] %vm246_vm0, %v3456_v0 }
  0x53 PF: > { %v359_v1 = vld [vmem:[%s3509_s23 + $0xc0] sm:$0xf]  ;;  %v360_v2 = vld [vmem:[%s3509_s23 + $0xc4] sm:$0xf]  ;;  %v361_v3 = vld [vmem:[%s3509_s23 + $0xc8] sm:$0x1] }
  0x54   : > { %vm1274_vm1 = vcmask 1042432   ;;  %vm1275_vm2 = vcmask 1046532   ;;  %v3178_v4 = vrot.slane %v359_v1, 9  ;;  %v1391_v5 = vrot.slane %v360_v2, 5  ;;  %v383_v13 = vld [vmem:[%s3509_s23 + $0x120] sm:$0xf] }
  0x55   : > { %vm3643_vm3 = vmor %vm1274_vm1, %vm1275_vm2  ;;  %v1394_v7 = vrot.slane %v361_v3, 5  ;;  %vm407_vm4 = vsmask.f32 3328  ;;  %vm408_vm5 = vsmask.f32 7440  ;;  %v795_v8 = vshrl.u32 %v359_v1, 16 }
  0x56   : > { %v1392_v9 = vsel %vm3643_vm3, %v3178_v4, %v1391_v5  ;;  %v1393_v10 = vrot.slane %v1391_v5, 4  ;;  %v798_v11 = vshll.u32 %v359_v1, 16  ;;  %v804_v12 = vshll.u32 %v360_v2, 16  ;;  %v384_v18 = vld [vmem:[%s3509_s23 + $0x124] sm:$0xf]  ;;  %vm3656_vm6 = vmor %vm407_vm4, %vm408_vm5  ;;  %s3457_s24 = smov 8  }
  0x57   : > { %v1789_v14 = vunpack.c.l.b16 %v1392_v9  ;;  %v797_v15 = vrot.slane %v795_v8, 4  ;;  %v808_v16 = vshrl.u32 %v360_v2, 16  ;;  %v814_v17 = vshll.u32 %v361_v3, 16  ;;  %v385_v22 = vld [vmem:[%s3509_s23 + $0x128] sm:$0x1]  ;;  %s3458_s25 = smov 4  }
  0x58   : > { %v1395_v19 = vsel %vm3643_vm3, %v1393_v10, %v1394_v7  ;;  %v800_v20 = vrot.slane %v798_v11, 5  ;;  %v806_v21 = vrot.slane %v804_v12, 5  ;;  %v3186_v23 = vrot.slane %v383_v13, 9  ;;  %v3666_v45 = vld [vmem:[%s3509_s23 + $0x60] sm:$0xf]  ;;  %s3398_s26 = sshll.u32 %s3446_s15, 3 }
  0x59   : > { %v1790_v24 = vunpack.c.l.b16 %v1395_v19  ;;  %v810_v25 = vrot.slane %v808_v16, 4  ;;  %v816_v26 = vrot.slane %v814_v17, 5  ;;  %v1447_v27 = vrot.slane %v384_v18, 5  ;;  %v3671_v50 = vld [vmem:[%s3509_s23 + $0x64] sm:$0xf]  ;;  %s2145_s29 = scalar_lea.vmem %s5469_s1, %s3398_s26  ;;  %p3360_p6 = scmp.ne.s32.totalorder %s3446_s15, 2 }
  0x5a   : > { %v801_v28 = vor.u32 %v800_v20, %v797_v15  ;;  %v1450_v29 = vrot.slane %v385_v22, 5  ;;  %v987_v30 = vshrl.u32 %v383_v13, 16  ;;  %v990_v31 = vshll.u32 %v383_v13, 16  ;;  %v3674_v51 = vld [vmem:[%s3509_s23 + $0x68] sm:$0x1] }
  0x5b   : > { %v1837_v32 = vpack.c.b16 %v1790_v24, %v1789_v14  ;;  %v811_v34 = vor.u32 %v810_v25, %v806_v21  ;;  %v1448_v35 = vsel %vm3643_vm3, %v3186_v23, %v1447_v27  ;;  %v1449_v36 = vrot.slane %v1447_v27, 4  ;;  %v3679_v56 = vld [vmem:[%s3509_s23] sm:$0xf]  ;;  %v3682_v57 = vld [vmem:[%s3509_s23 + $0x4] sm:$0xf] }
  0x5c   : > { %v802_v37 = vrot.slane %v801_v28, 4  ;;  %v1805_v38 = vunpack.c.l.b16 %v1448_v35  ;;  %v989_v39 = vrot.slane %v987_v30, 4  ;;  %v992_v40 = vrot.slane %v990_v31, 5  ;;  %v3688_v2 = vld [vmem:[%s3509_s23 + $0x8] sm:$0x1] }
  0x5d   : > { %1885 = vrot.lane.b32.xlu1 %v1837_v32, %s3457_s24  ;;  %v812_v41 = vrot.slane %v811_v34, 4  ;;  %v1451_v42 = vsel %vm3643_vm3, %v1449_v36, %v1450_v29  ;;  %v996_v43 = vshll.u32 %v384_v18, 16  ;;  %v1000_v44 = vshrl.u32 %v384_v18, 16  ;;  %v3695_v8 = vld [vmem:[%s3509_s23 + $0xcc] sm:$0xf] }
  0x5e   : > { %v807_v46 = vsel %vm3656_vm6, %v802_v37, %v806_v21  ;;  %v1806_v47 = vunpack.c.l.b16 %v1451_v42  ;;  %v993_v48 = vor.u32 %v992_v40, %v989_v39  ;;  %v1006_v49 = vshll.u32 %v385_v22, 16  ;;  %v3700_v13 = vld [vmem:[%s3509_s23 + $0xd0] sm:$0xf]  ;;  %v3707_v18 = vld [vmem:[%s3509_s23 + $0xd4] sm:$0x1] }
  0x5f   : > { %v817_v52 = vsel %vm3656_vm6, %v812_v41, %v816_v26  ;;  %v1629_v53 = vunpack.c.l.b16 %v807_v46  ;;  %v998_v54 = vrot.slane %v996_v43, 5  ;;  %v1002_v55 = vrot.slane %v1000_v44, 4  ;;  %v3710_v19 = vld [vmem:[%s3509_s23 + $0x12c] sm:$0xf]  ;;  %v3722_v28 = vld [vmem:[%s3509_s23 + $0x130] sm:$0xf] }
  0x60   : > { %v1630_v58 = vunpack.c.l.b16 %v817_v52  ;;  %v1845_v59 = vpack.c.b16 %v1806_v47, %v1805_v38  ;;  %v994_v60 = vrot.slane %v993_v48, 4  ;;  %v1008_v61 = vrot.slane %v1006_v49, 5  ;;  %v3726_v31 = vld [vmem:[%s3509_s23 + $0x134] sm:$0x1] }
  0x61   : > { %v1003_v62 = vor.u32 %v1002_v55, %v998_v54  ;;  %v3170_v63 = vrot.slane %v3666_v45, 9  ;;  %v1335_v0 = vrot.slane %v3671_v50, 5  ;;  %v1338_v1 = vrot.slane %v3674_v51, 5 }
  0x62   : > { %v1677_v3 = vpack.c.b16 %v1630_v58, %v1629_v53  ;;  %v999_v4 = vsel %vm3656_vm6, %v994_v60, %v998_v54  ;;  %v3162_v5 = vrot.slane %v3679_v56, 9  ;;  %v1279_v7 = vrot.slane %v3682_v57, 5  ;;  %v3742_v60 = vld [vmem:[%s3509_s23 + $0x6c] sm:$0xf] }
  0x63   : > { %v1004_v9 = vrot.slane %v1003_v62, 4  ;;  %v1645_v10 = vunpack.c.l.b16 %v999_v4  ;;  %v1336_v11 = vsel %vm3643_vm3, %v3170_v63, %v1335_v0  ;;  %v1337_v12 = vrot.slane %v1335_v0, 4 }
  0x64   : > { %1725 = vrot.lane.b32.xlu0 %v1677_v3, %s3458_s25  ;;  %v1773_v14 = vunpack.c.l.b16 %v1336_v11  ;;  %v1280_v15 = vsel %vm3643_vm3, %v3162_v5, %v1279_v7  ;;  %v1281_v16 = vrot.slane %v1279_v7, 4  ;;  %v1282_v17 = vrot.slane %v3688_v2, 5  ;;  %v3748_v5 = vld [vmem:[%s3509_s23 + $0x70] sm:$0xf] }
  0x65   : > { %1901 = vrot.lane.b32.xlu1 %v1845_v59, %s3457_s24  ;;  %v1009_v20 = vsel %vm3656_vm6, %v1004_v9, %v1008_v61  ;;  %v1339_v21 = vsel %vm3643_vm3, %v1337_v12, %v1338_v1  ;;  %v1757_v22 = vunpack.c.l.b16 %v1280_v15  ;;  %v3179_v23 = vrot.slane %v3695_v8, 9 }
  0x66   : > { %v1646_v24 = vunpack.c.l.b16 %v1009_v20  ;;  %v1774_v25 = vunpack.c.l.b16 %v1339_v21  ;;  %v1283_v26 = vsel %vm3643_vm3, %v1281_v16, %v1282_v17  ;;  %v1398_v27 = vrot.slane %v3700_v13, 5 }
  0x67   : > { %v1758_v29 = vunpack.c.l.b16 %v1283_v26  ;;  %v1401_v30 = vrot.slane %v3707_v18, 5  ;;  %v1011_v32 = vshrl.u32 %v3710_v19, 16  ;;  %v1014_v34 = vshll.u32 %v3710_v19, 16  ;;  %v3763_v26 = vld [vmem:[%s3509_s23 + $0xc] sm:$0xf] }
  0x68   : > { %v1685_v35 = vpack.c.b16 %v1646_v24, %v1645_v10  ;;  %v1829_v36 = vpack.c.b16 %v1774_v25, %v1773_v14  ;;  %v1399_v37 = vsel %vm3643_vm3, %v3179_v23, %v1398_v27  ;;  %v1400_v38 = vrot.slane %v1398_v27, 4  ;;  %v3753_v10 = vld [vmem:[%s3509_s23 + $0x74] sm:$0x1] }
  0x69   : > { %v1821_v39 = vpack.c.b16 %v1758_v29, %v1757_v22  ;;  %v1791_v40 = vunpack.c.l.b16 %v1399_v37  ;;  %v1013_v41 = vrot.slane %v1011_v32, 4  ;;  %v1016_v42 = vrot.slane %v1014_v34, 5  ;;  %v3768_v34 = vld [vmem:[%s3509_s23 + $0x10] sm:$0xf] }
  0x6a   : > { %v1402_v43 = vsel %vm3643_vm3, %v1400_v38, %v1401_v30  ;;  %v1020_v44 = vshll.u32 %v3722_v28, 16  ;;  %v1024_v46 = vshrl.u32 %v3722_v28, 16  ;;  %v1030_v47 = vshll.u32 %v3726_v31, 16 }
  0x6b   : > { %v1792_v48 = vunpack.c.l.b16 %v1402_v43  ;;  %v1017_v49 = vor.u32 %v1016_v42, %v1013_v41  ;;  %v411_v52 = vshrl.u32 %v3679_v56, 16  ;;  %v414_v53 = vshll.u32 %v3679_v56, 16 }
  0x6c   : > { %1741 = vrot.lane.b32.xlu0 %v1685_v35, %s3458_s25  ;;  %v1022_v54 = vrot.slane %v1020_v44, 5  ;;  %v1026_v55 = vrot.slane %v1024_v46, 4  ;;  %v1032_v58 = vrot.slane %v1030_v47, 5  ;;  %v420_v59 = vshll.u32 %v3682_v57, 16  ;;  %v3777_v47 = vld [vmem:[%s3509_s23 + $0x14] sm:$0x1] }
  0x6d   : > { %1869 = vrot.lane.b32.xlu1 %v1829_v36, %s3457_s24  ;;  %v1838_v61 = vpack.c.b16 %v1792_v48, %v1791_v40  ;;  %v1018_v62 = vrot.slane %v1017_v49, 4  ;;  %v413_v63 = vrot.slane %v411_v52, 4  ;;  %v416_v0 = vrot.slane %v414_v53, 5 }
  0x6e   : > { %v1027_v1 = vor.u32 %v1026_v55, %v1022_v54  ;;  %v422_v3 = vrot.slane %v420_v59, 5  ;;  %v424_v56 = vshrl.u32 %v3682_v57, 16  ;;  %v430_v4 = vshll.u32 %v3688_v2, 16 }
  0x6f   : > { %v1023_v7 = vsel %vm3656_vm6, %v1018_v62, %v1022_v54  ;;  %v417_v9 = vor.u32 %v416_v0, %v413_v63  ;;  %v627_v11 = vshrl.u32 %v3742_v60, 16  ;;  %v630_v12 = vshll.u32 %v3742_v60, 16 }
  0x70   : > { %v1028_v14 = vrot.slane %v1027_v1, 4  ;;  %v1647_v15 = vunpack.c.l.b16 %v1023_v7  ;;  %v426_v16 = vrot.slane %v424_v56, 4  ;;  %v432_v57 = vrot.slane %v430_v4, 5 }
  0x71   : > { %v418_v17 = vrot.slane %v417_v9, 4  ;;  %v629_v2 = vrot.slane %v627_v11, 4  ;;  %v632_v20 = vrot.slane %v630_v12, 5  ;;  %v636_v21 = vshll.u32 %v3748_v5, 16  ;;  %v3790_v9 = vld [vmem:[%s3509_s23 + $0xd8] sm:$0xf] }
  0x72   : > { %v1033_v22 = vsel %vm3656_vm6, %v1028_v14, %v1032_v58  ;;  %v427_v23 = vor.u32 %v426_v16, %v422_v3  ;;  %v640_v24 = vshrl.u32 %v3748_v5, 16  ;;  %v646_v25 = vshll.u32 %v3753_v10, 16 }
  0x73   : > { %v1648_v27 = vunpack.c.l.b16 %v1033_v22  ;;  %v423_v29 = vsel %vm3656_vm6, %v418_v17, %v422_v3  ;;  %v633_v30 = vor.u32 %v632_v20, %v629_v2  ;;  %v638_v32 = vrot.slane %v636_v21, 5  ;;  %v3799_v22 = vld [vmem:[%s3509_s23 + $0xdc] sm:$0xf] }
  0x74   : > { %1853 = vrot.lane.b32.xlu0 %v1821_v39, %s3457_s24  ;;  %v428_v35 = vrot.slane %v427_v23, 4  ;;  %v1597_v36 = vunpack.c.l.b16 %v423_v29  ;;  %v642_v37 = vrot.slane %v640_v24, 4  ;;  %v648_v38 = vrot.slane %v646_v25, 5 }
  0x75   : > { %1887 = vrot.lane.b32.xlu1 %v1838_v61, %s3457_s24  ;;  %v1686_v40 = vpack.c.b16 %v1648_v27, %v1647_v15  ;;  %v634_v41 = vrot.slane %v633_v30, 4  ;;  %v435_v42 = vshrl.u32 %v3763_v26, 16  ;;  %v438_v43 = vshll.u32 %v3763_v26, 16  ;;  %v3805_v30 = vld [vmem:[%s3509_s23 + $0xe0] sm:$0x1] }
  0x76   : > { %v433_v44 = vsel %vm3656_vm6, %v428_v35, %v432_v57  ;;  %v643_v46 = vor.u32 %v642_v37, %v638_v32  ;;  %v444_v39 = vshll.u32 %v3768_v34, 16  ;;  %v448_v48 = vshrl.u32 %v3768_v34, 16 }
  0x77   : > { %v1598_v49 = vunpack.c.l.b16 %v433_v44  ;;  %v639_v52 = vsel %vm3656_vm6, %v634_v41, %v638_v32  ;;  %v437_v53 = vrot.slane %v435_v42, 4  ;;  %v440_v54 = vrot.slane %v438_v43, 5 }
  0x78   : > { %v644_v55 = vrot.slane %v643_v46, 4  ;;  %v1615_v58 = vunpack.c.l.b16 %v639_v52  ;;  %v446_v59 = vrot.slane %v444_v39, 5  ;;  %v450_v61 = vrot.slane %v448_v48, 4 }
  0x79   : > { %v1661_v62 = vpack.c.b16 %v1598_v49, %v1597_v36  ;;  %v441_v63 = vor.u32 %v440_v54, %v437_v53  ;;  %v454_v0 = vshll.u32 %v3777_v47, 16  ;;  %v603_v1 = vshrl.u32 %v3666_v45, 16 }
  0x7a   : > { %v649_v3 = vsel %vm3656_vm6, %v644_v55, %v648_v38  ;;  %v451_v56 = vor.u32 %v450_v61, %v446_v59  ;;  %v606_v4 = vshll.u32 %v3666_v45, 16  ;;  %v612_v7 = vshll.u32 %v3671_v50, 16 }
  0x7b   : > { %1693 = vrot.lane.b32.xlu2 %v1661_v62, %s3458_s25  ;;  %v1616_v11 = vunpack.c.l.b16 %v649_v3  ;;  %v442_v12 = vrot.slane %v441_v63, 4  ;;  %v456_v14 = vrot.slane %v454_v0, 5  ;;  %v605_v15 = vrot.slane %v603_v1, 4 }
  0x7c   : > { %1743 = vrot.lane.b32.xlu0 %v1686_v40, %s3458_s25  ;;  %v452_v16 = vrot.slane %v451_v56, 4  ;;  %v608_v57 = vrot.slane %v606_v4, 5  ;;  %v614_v17 = vrot.slane %v612_v7, 5  ;;  %v616_v2 = vshrl.u32 %v3671_v50, 16 }
  0x7d   : > { %v1670_v45 = vpack.c.b16 %v1616_v11, %v1615_v58  ;;  %v447_v20 = vsel %vm3656_vm6, %v442_v12, %v446_v59  ;;  %v622_v21 = vshll.u32 %v3674_v51, 16  ;;  %v843_v23 = vshrl.u32 %v3790_v9, 16 }
  0x7e   : > { %v457_v24 = vsel %vm3656_vm6, %v452_v16, %v456_v14  ;;  %v1599_v25 = vunpack.c.l.b16 %v447_v20  ;;  %v609_v27 = vor.u32 %v608_v57, %v605_v15  ;;  %v618_v29 = vrot.slane %v616_v2, 4  ;;  %v3830_v14 = vld [vmem:[%s3509_s23 + $0x138] sm:$0xf]  ;;  %v3833_v15 = vld [vmem:[%s3509_s23 + $0x13c] sm:$0xf] }
  0x7f   : > { %1711 = vrot.lane.b32.xlu1 %v1670_v45, %s3458_s25  ;;  %v1600_v50 = vunpack.c.l.b16 %v457_v24  ;;  %v624_v32 = vrot.slane %v622_v21, 5  ;;  %v845_v35 = vrot.slane %v843_v23, 4  ;;  %v846_v36 = vshll.u32 %v3790_v9, 16 }
  0x80   : > { %v610_v51 = vrot.slane %v609_v27, 4  ;;  %v619_v37 = vor.u32 %v618_v29, %v614_v17  ;;  %v852_v38 = vshll.u32 %v3799_v22, 16  ;;  %v856_v40 = vshrl.u32 %v3799_v22, 16 }
  0x81   : > { %v1662_v41 = vpack.c.b16 %v1600_v50, %v1599_v25  ;;  %v848_v42 = vrot.slane %v846_v36, 5  ;;  %v862_v43 = vshll.u32 %v3805_v30, 16  ;;  %v3171_v44 = vrot.slane %v3742_v60, 9 }
  0x82   : > { %v615_v46 = vsel %vm3656_vm6, %v610_v51, %v614_v17  ;;  %v620_v39 = vrot.slane %v619_v37, 4  ;;  %v854_v48 = vrot.slane %v852_v38, 5  ;;  %v858_v49 = vrot.slane %v856_v40, 4 }
  0x83   : > { %v1613_v52 = vunpack.c.l.b16 %v615_v46  ;;  %v849_v53 = vor.u32 %v848_v42, %v845_v35  ;;  %v864_v54 = vrot.slane %v862_v43, 5  ;;  %v1342_v55 = vrot.slane %v3748_v5, 5 }
  0x84   : > { %1695 = vrot.lane.b32.xlu0 %v1662_v41, %s3458_s25  ;;  %v625_v58 = vsel %vm3656_vm6, %v620_v39, %v624_v32  ;;  %v859_v59 = vor.u32 %v858_v49, %v854_v48  ;;  %v1345_v60 = vrot.slane %v3753_v10, 5  ;;  %v819_v61 = vshrl.u32 %v3695_v8, 16 }
  0x85   : > { %v1614_v62 = vunpack.c.l.b16 %v625_v58  ;;  %v850_v63 = vrot.slane %v849_v53, 4  ;;  %v1343_v0 = vsel %vm3643_vm3, %v3171_v44, %v1342_v55  ;;  %v1344_v1 = vrot.slane %v1342_v55, 4 }
  0x86   : > { %v860_v5 = vrot.slane %v859_v59, 4  ;;  %v1775_v3 = vunpack.c.l.b16 %v1343_v0  ;;  %v821_v56 = vrot.slane %v819_v61, 4  ;;  %v822_v4 = vshll.u32 %v3695_v8, 16  ;;  %v3838_v8 = vld [vmem:[%s3509_s23 + $0x140] sm:$0x1] }
  0x87   : > { %v1669_v7 = vpack.c.b16 %v1614_v62, %v1613_v52  ;;  %v855_v11 = vsel %vm3656_vm6, %v850_v63, %v854_v48  ;;  %v1346_v10 = vsel %vm3643_vm3, %v1344_v1, %v1345_v60  ;;  %v828_v12 = vshll.u32 %v3700_v13, 16  ;;  %v3862_v52 = vld [vmem:[%s3509_s23 + $0x18] sm:$0xf] }
  0x88   : > { %v865_v16 = vsel %vm3656_vm6, %v860_v5, %v864_v54  ;;  %v1633_v57 = vunpack.c.l.b16 %v855_v11  ;;  %v1776_v17 = vunpack.c.l.b16 %v1346_v10  ;;  %v824_v2 = vrot.slane %v822_v4, 5 }
  0x89   : > { %1709 = vrot.lane.b32.xlu2 %v1669_v7, %s3458_s25  ;;  %v1634_v45 = vunpack.c.l.b16 %v865_v16  ;;  %v830_v20 = vrot.slane %v828_v12, 5  ;;  %v832_v21 = vshrl.u32 %v3700_v13, 16  ;;  %v838_v23 = vshll.u32 %v3707_v18, 16  ;;  %v3886_v7 = vld [vmem:[%s3509_s23 + $0x7c] sm:$0xf] }
  0x8a   : > { %v1830_v24 = vpack.c.b16 %v1776_v17, %v1775_v3  ;;  %v825_v25 = vor.u32 %v824_v2, %v821_v56  ;;  %v3188_v27 = vrot.slane %v3830_v14, 9  ;;  %v1461_v29 = vrot.slane %v3833_v15, 5 }
  0x8b   : > { %v1679_v50 = vpack.c.b16 %v1634_v45, %v1633_v57  ;;  %v834_v32 = vrot.slane %v832_v21, 4  ;;  %v840_v35 = vrot.slane %v838_v23, 5  ;;  %v1464_v36 = vrot.slane %v3838_v8, 5  ;;  %v3892_v57 = vld [vmem:[%s3509_s23 + $0x80] sm:$0x1] }
  0x8c   : > { %1871 = vrot.lane.b32.xlu0 %v1830_v24, %s3457_s24  ;;  %v826_v51 = vrot.slane %v825_v25, 4  ;;  %v1462_v37 = vsel %vm3643_vm3, %v3188_v27, %v1461_v29  ;;  %v1463_v13 = vrot.slane %v1461_v29, 4  ;;  %v3180_v18 = vrot.slane %v3790_v9, 9  ;;  %v3902_v27 = vld [vmem:[%s3509_s23 + $0x144] sm:$0xf] }
  0x8d   : > { %1729 = vrot.lane.b32.xlu1 %v1679_v50, %s3458_s25  ;;  %v835_v38 = vor.u32 %v834_v32, %v830_v20  ;;  %v1809_v40 = vunpack.c.l.b16 %v1462_v37  ;;  %v1405_v41 = vrot.slane %v3799_v22, 5  ;;  %v1408_v42 = vrot.slane %v3805_v30, 5  ;;  %v3865_v30 = vld [vmem:[%s3509_s23 + $0x1c] sm:$0xf] }
  0x8e   : > { %v831_v43 = vsel %vm3656_vm6, %v826_v51, %v830_v20  ;;  %v1465_v44 = vsel %vm3643_vm3, %v1463_v13, %v1464_v36  ;;  %v3187_v46 = vrot.slane %v3710_v19, 9  ;;  %v1454_v9 = vrot.slane %v3722_v28, 5  ;;  %v3870_v19 = vld [vmem:[%s3509_s23 + $0x20] sm:$0x1]  ;;  %v3873_v28 = vld [vmem:[%s3509_s23 + $0x78] sm:$0xf] }
  0x8f   : > { %v836_v39 = vrot.slane %v835_v38, 4  ;;  %v1631_v48 = vunpack.c.l.b16 %v831_v43  ;;  %v1810_v49 = vunpack.c.l.b16 %v1465_v44  ;;  %v1406_v22 = vsel %vm3643_vm3, %v3180_v18, %v1405_v41  ;;  %v3910_v18 = vld [vmem:[%s3509_s23 + $0x148] sm:$0xf] }
  0x90   : > { %v1407_v53 = vrot.slane %v1405_v41, 4  ;;  %v1793_v54 = vunpack.c.l.b16 %v1406_v22  ;;  %v1455_v55 = vsel %vm3643_vm3, %v3187_v46, %v1454_v9  ;;  %v1456_v58 = vrot.slane %v1454_v9, 4 }
  0x91   : > { %v841_v59 = vsel %vm3656_vm6, %v836_v39, %v840_v35  ;;  %v1847_v60 = vpack.c.b16 %v1810_v49, %v1809_v40  ;;  %v1457_v61 = vrot.slane %v3726_v31, 5  ;;  %v1807_v62 = vunpack.c.l.b16 %v1455_v55  ;;  %v3924_v55 = vld [vmem:[%s3509_s23 + $0xe4] sm:$0xf] }
  0x92   : > { %v1632_v63 = vunpack.c.l.b16 %v841_v59  ;;  %v1409_v0 = vsel %vm3643_vm3, %v1407_v53, %v1408_v42  ;;  %v3164_v1 = vrot.slane %v3862_v52, 9  ;;  %v1293_v5 = vrot.slane %v3865_v30, 5 }
  0x93   : > { %v1794_v3 = vunpack.c.l.b16 %v1409_v0  ;;  %v1458_v56 = vsel %vm3643_vm3, %v1456_v58, %v1457_v61  ;;  %v1296_v4 = vrot.slane %v3870_v19, 5  ;;  %v651_v11 = vshrl.u32 %v3873_v28, 16 }
  0x94   : > { %v1678_v31 = vpack.c.b16 %v1632_v63, %v1631_v48  ;;  %v1808_v10 = vunpack.c.l.b16 %v1458_v56  ;;  %v1294_v12 = vsel %vm3643_vm3, %v3164_v1, %v1293_v5  ;;  %v1295_v16 = vrot.slane %v1293_v5, 4 }
  0x95   : > { %1905 = vrot.lane.b32.xlu1 %v1847_v60, %s3457_s24  ;;  %v1839_v17 = vpack.c.b16 %v1794_v3, %v1793_v54  ;;  %v1761_v2 = vunpack.c.l.b16 %v1294_v12  ;;  %v653_v45 = vrot.slane %v651_v11, 4  ;;  %v654_v20 = vshll.u32 %v3873_v28, 16  ;;  %v3937_v3 = vld [vmem:[%s3509_s23 + $0xec] sm:$0x1] }
  0x96   : > { %1727 = vrot.lane.b32.xlu2 %v1678_v31, %s3458_s25  ;;  %v1846_v21 = vpack.c.b16 %v1808_v10, %v1807_v62  ;;  %v1297_v23 = vsel %vm3643_vm3, %v1295_v16, %v1296_v4  ;;  %v660_v24 = vshll.u32 %v3886_v7, 16  ;;  %v664_v25 = vshrl.u32 %v3886_v7, 16  ;;  %v3931_v62 = vld [vmem:[%s3509_s23 + $0xe8] sm:$0xf] }
  0x97   : > { %1889 = vrot.lane.b32.xlu0 %v1839_v17, %s3457_s24  ;;  %v1762_v29 = vunpack.c.l.b16 %v1297_v23  ;;  %v656_v50 = vrot.slane %v654_v20, 5  ;;  %v670_v32 = vshll.u32 %v3892_v57, 16  ;;  %v3163_v35 = vrot.slane %v3763_v26, 9  ;;  %v3916_v26 = vld [vmem:[%s3509_s23 + $0x14c] sm:$0x1] }
  0x98   : > { %v662_v36 = vrot.slane %v660_v24, 5  ;;  %v666_v51 = vrot.slane %v664_v25, 4  ;;  %v1286_v37 = vrot.slane %v3768_v34, 5  ;;  %v1289_v13 = vrot.slane %v3777_v47, 5 }
  0x99   : > { %v1823_v38 = vpack.c.b16 %v1762_v29, %v1761_v2  ;;  %v657_v40 = vor.u32 %v656_v50, %v653_v45  ;;  %v672_v41 = vrot.slane %v670_v32, 5  ;;  %v1059_v42 = vshrl.u32 %v3902_v27, 16 }
  0x9a   : > { %v667_v43 = vor.u32 %v666_v51, %v662_v36  ;;  %v1287_v44 = vsel %vm3643_vm3, %v3163_v35, %v1286_v37  ;;  %v1288_v46 = vrot.slane %v1286_v37, 4  ;;  %v1062_v34 = vshll.u32 %v3902_v27, 16 }
  0x9b   : > { %v658_v9 = vrot.slane %v657_v40, 4  ;;  %v1759_v47 = vunpack.c.l.b16 %v1287_v44  ;;  %v1061_v39 = vrot.slane %v1059_v42, 4  ;;  %v1068_v48 = vshll.u32 %v3910_v18, 16  ;;  %v3953_v40 = vld [vmem:[%s3509_s23 + $0x24] sm:$0xf] }
  0x9c   : > { %v668_v49 = vrot.slane %v667_v43, 4  ;;  %v1290_v22 = vsel %vm3643_vm3, %v1288_v46, %v1289_v13  ;;  %v1064_v53 = vrot.slane %v1062_v34, 5  ;;  %v1072_v54 = vshrl.u32 %v3910_v18, 16 }
  0x9d   : > { %1857 = vrot.lane.b32.xlu1 %v1823_v38, %s3457_s24  ;;  %v663_v58 = vsel %vm3656_vm6, %v658_v9, %v662_v36  ;;  %v1760_v59 = vunpack.c.l.b16 %v1290_v22  ;;  %v1070_v60 = vrot.slane %v1068_v48, 5  ;;  %v1078_v61 = vshll.u32 %v3916_v26, 16 }
  0x9e   : > { %1903 = vrot.lane.b32.xlu2 %v1846_v21, %s3457_s24  ;;  %v673_v63 = vsel %vm3656_vm6, %v668_v49, %v672_v41  ;;  %v1617_v0 = vunpack.c.l.b16 %v663_v58  ;;  %v1065_v1 = vor.u32 %v1064_v53, %v1061_v39  ;;  %v1074_v5 = vrot.slane %v1072_v54, 4  ;;  %v3959_v49 = vld [vmem:[%s3509_s23 + $0x28] sm:$0xf] }
  0x9f   : > { %v1618_v56 = vunpack.c.l.b16 %v673_v63  ;;  %v1822_v4 = vpack.c.b16 %v1760_v59, %v1759_v47  ;;  %v1080_v11 = vrot.slane %v1078_v61, 5  ;;  %v867_v31 = vshrl.u32 %v3924_v55, 16 }
  0xa0   : > { %v1066_v10 = vrot.slane %v1065_v1, 4  ;;  %v1075_v12 = vor.u32 %v1074_v5, %v1070_v60  ;;  %v870_v16 = vshll.u32 %v3924_v55, 16  ;;  %v876_v17 = vshll.u32 %v3931_v62, 16 }
  0xa1   : > { %v1671_v2 = vpack.c.b16 %v1618_v56, %v1617_v0  ;;  %v869_v45 = vrot.slane %v867_v31, 4  ;;  %v880_v20 = vshrl.u32 %v3931_v62, 16  ;;  %v886_v21 = vshll.u32 %v3937_v3, 16 }
  0xa2   : > { %v1071_v23 = vsel %vm3656_vm6, %v1066_v10, %v1070_v60  ;;  %v1076_v24 = vrot.slane %v1075_v12, 4  ;;  %v872_v25 = vrot.slane %v870_v16, 5  ;;  %v878_v29 = vrot.slane %v876_v17, 5 }
  0xa3   : > { %1713 = vrot.lane.b32.xlu0 %v1671_v2, %s3458_s25  ;;  %v1651_v50 = vunpack.c.l.b16 %v1071_v23  ;;  %v882_v32 = vrot.slane %v880_v20, 4  ;;  %v888_v35 = vrot.slane %v886_v21, 5  ;;  %v1035_v36 = vshrl.u32 %v3830_v14, 16 }
  0xa4   : > { %v1081_v51 = vsel %vm3656_vm6, %v1076_v24, %v1080_v11  ;;  %v873_v37 = vor.u32 %v872_v25, %v869_v45  ;;  %v1038_v13 = vshll.u32 %v3830_v14, 16  ;;  %v1044_v38 = vshll.u32 %v3833_v15, 16 }
  0xa5   : > { %v1652_v41 = vunpack.c.l.b16 %v1081_v51  ;;  %v883_v42 = vor.u32 %v882_v32, %v878_v29  ;;  %v1037_v43 = vrot.slane %v1035_v36, 4  ;;  %v1048_v44 = vshrl.u32 %v3833_v15, 16  ;;  %v3965_v15 = vld [vmem:[%s3509_s23 + $0x2c] sm:$0x1] }
  0xa6   : > { %1855 = vrot.lane.b32.xlu2 %v1822_v4, %s3457_s24  ;;  %v874_v46 = vrot.slane %v873_v37, 4  ;;  %v1040_v34 = vrot.slane %v1038_v13, 5  ;;  %v1046_v9 = vrot.slane %v1044_v38, 5  ;;  %v1054_v47 = vshll.u32 %v3838_v8, 16 }
  0xa7   : > { %v1688_v39 = vpack.c.b16 %v1652_v41, %v1651_v50  ;;  %v884_v48 = vrot.slane %v883_v42, 4  ;;  %v1050_v14 = vrot.slane %v1048_v44, 4  ;;  %v483_v22 = vshrl.u32 %v3953_v40, 16  ;;  %v3990_v41 = vld [vmem:[%s3509_s23 + $0x84] sm:$0xf] }
  0xa8   : > { %v879_v53 = vsel %vm3656_vm6, %v874_v46, %v878_v29  ;;  %v1041_v54 = vor.u32 %v1040_v34, %v1037_v43  ;;  %v1056_v58 = vrot.slane %v1054_v47, 5  ;;  %v486_v59 = vshll.u32 %v3953_v40, 16  ;;  %v3993_v44 = vld [vmem:[%s3509_s23 + $0x88] sm:$0xf]  ;;  %v4000_v47 = vld [vmem:[%s3509_s23 + $0x8c] sm:$0x1] }
  0xa9   : > { %1747 = vrot.lane.b32.xlu1 %v1688_v39, %s3458_s25  ;;  %v889_v8 = vsel %vm3656_vm6, %v884_v48, %v888_v35  ;;  %v1635_v60 = vunpack.c.l.b16 %v879_v53  ;;  %v1051_v61 = vor.u32 %v1050_v14, %v1046_v9  ;;  %v485_v63 = vrot.slane %v483_v22, 4 }
  0xaa   : > { %v1636_v0 = vunpack.c.l.b16 %v889_v8  ;;  %v1042_v1 = vrot.slane %v1041_v54, 4  ;;  %v488_v5 = vrot.slane %v486_v59, 5  ;;  %v492_v56 = vshll.u32 %v3959_v49, 16 }
  0xab   : > { %v1052_v4 = vrot.slane %v1051_v61, 4  ;;  %v496_v11 = vshrl.u32 %v3959_v49, 16  ;;  %v502_v31 = vshll.u32 %v3965_v15, 16  ;;  %v3189_v10 = vrot.slane %v3902_v27, 9 }
  0xac   : > { %v1680_v12 = vpack.c.b16 %v1636_v0, %v1635_v60  ;;  %v1047_v16 = vsel %vm3656_vm6, %v1042_v1, %v1046_v9  ;;  %v489_v17 = vor.u32 %v488_v5, %v485_v63  ;;  %v494_v2 = vrot.slane %v492_v56, 5 }
  0xad   : > { %v1057_v45 = vsel %vm3656_vm6, %v1052_v4, %v1056_v58  ;;  %v1649_v20 = vunpack.c.l.b16 %v1047_v16  ;;  %v498_v21 = vrot.slane %v496_v11, 4  ;;  %v504_v23 = vrot.slane %v502_v31, 5 }
  0xae   : > { %1731 = vrot.lane.b32.xlu0 %v1680_v12, %s3458_s25  ;;  %v1650_v24 = vunpack.c.l.b16 %v1057_v45  ;;  %v490_v25 = vrot.slane %v489_v17, 4  ;;  %v1468_v27 = vrot.slane %v3910_v18, 5  ;;  %v1471_v29 = vrot.slane %v3916_v26, 5 }
  0xaf   : > { %v499_v50 = vor.u32 %v498_v21, %v494_v2  ;;  %v459_v32 = vshrl.u32 %v3862_v52, 16  ;;  %v462_v35 = vshll.u32 %v3862_v52, 16  ;;  %v468_v36 = vshll.u32 %v3865_v30, 16 }
  0xb0   : > { %v1687_v51 = vpack.c.b16 %v1650_v24, %v1649_v20  ;;  %v495_v37 = vsel %vm3656_vm6, %v490_v25, %v494_v2  ;;  %v1469_v13 = vsel %vm3643_vm3, %v3189_v10, %v1468_v27  ;;  %v1470_v38 = vrot.slane %v1468_v27, 4  ;;  %v4024_v2 = vld [vmem:[%s3509_s23 + $0xf0] sm:$0xf] }
  0xb1   : > { %v500_v18 = vrot.slane %v499_v50, 4  ;;  %v1603_v26 = vunpack.c.l.b16 %v495_v37  ;;  %v1811_v42 = vunpack.c.l.b16 %v1469_v13  ;;  %v461_v43 = vrot.slane %v459_v32, 4  ;;  %v4040_v50 = vld [vmem:[%s3509_s23 + $0x150] sm:$0xf]  ;;  %v4044_v37 = vld [vmem:[%s3509_s23 + $0x154] sm:$0xf] }
  0xb2   : > { %1745 = vrot.lane.b32.xlu2 %v1687_v51, %s3458_s25  ;;  %v1472_v52 = vsel %vm3643_vm3, %v1470_v38, %v1471_v29  ;;  %v464_v46 = vrot.slane %v462_v35, 5  ;;  %v470_v34 = vrot.slane %v468_v36, 5  ;;  %v472_v9 = vshrl.u32 %v3865_v30, 16 }
  0xb3   : > { %v505_v39 = vsel %vm3656_vm6, %v500_v18, %v504_v23  ;;  %v1812_v48 = vunpack.c.l.b16 %v1472_v52  ;;  %v478_v14 = vshll.u32 %v3870_v19, 16  ;;  %v3173_v22 = vrot.slane %v3990_v41, 9  ;;  %v4034_v23 = vld [vmem:[%s3509_s23 + $0xf8] sm:$0x1] }
  0xb4   : > { %v1604_v53 = vunpack.c.l.b16 %v505_v39  ;;  %v465_v54 = vor.u32 %v464_v46, %v461_v43  ;;  %v474_v58 = vrot.slane %v472_v9, 4  ;;  %v1356_v59 = vrot.slane %v3993_v44, 5  ;;  %v4051_v43 = vld [vmem:[%s3509_s23 + $0x158] sm:$0x1] }
  0xb5   : > { %v1848_v8 = vpack.c.b16 %v1812_v48, %v1811_v42  ;;  %v480_v60 = vrot.slane %v478_v14, 5  ;;  %v1359_v61 = vrot.slane %v4000_v47, 5  ;;  %v3165_v30 = vrot.slane %v3953_v40, 9 }
  0xb6   : > { %v1664_v63 = vpack.c.b16 %v1604_v53, %v1603_v26  ;;  %v466_v0 = vrot.slane %v465_v54, 4  ;;  %v475_v1 = vor.u32 %v474_v58, %v470_v34  ;;  %v1357_v19 = vsel %vm3643_vm3, %v3173_v22, %v1356_v59  ;;  %v4063_v58 = vld [vmem:[%s3509_s23 + $0x90] sm:$0xf] }
  0xb7   : > { %1907 = vrot.lane.b32.xlu0 %v1848_v8, %s3457_s24  ;;  %v1358_v5 = vrot.slane %v1356_v59, 4  ;;  %v1779_v56 = vunpack.c.l.b16 %v1357_v19  ;;  %v1300_v4 = vrot.slane %v3959_v49, 5  ;;  %v1303_v11 = vrot.slane %v3965_v15, 5 }
  0xb8   : > { %1699 = vrot.lane.b32.xlu1 %v1664_v63, %s3458_s25  ;;  %v471_v40 = vsel %vm3656_vm6, %v466_v0, %v470_v34  ;;  %v476_v31 = vrot.slane %v475_v1, 4  ;;  %v3172_v10 = vrot.slane %v3873_v28, 9  ;;  %v1349_v12 = vrot.slane %v3886_v7, 5  ;;  %v4031_v7 = vld [vmem:[%s3509_s23 + $0xf4] sm:$0xf] }
  0xb9   : > { %v1601_v16 = vunpack.c.l.b16 %v471_v40  ;;  %v1360_v17 = vsel %vm3643_vm3, %v1358_v5, %v1359_v61  ;;  %v1301_v49 = vsel %vm3643_vm3, %v3165_v30, %v1300_v4  ;;  %v1302_v15 = vrot.slane %v1300_v4, 4  ;;  %v4072_v4 = vld [vmem:[%s3509_s23 + $0x94] sm:$0xf] }
  0xba   : > { %v481_v45 = vsel %vm3656_vm6, %v476_v31, %v480_v60  ;;  %v1780_v20 = vunpack.c.l.b16 %v1360_v17  ;;  %v1763_v21 = vunpack.c.l.b16 %v1301_v49  ;;  %v1350_v28 = vsel %vm3643_vm3, %v3172_v10, %v1349_v12  ;;  %v4078_v17 = vld [vmem:[%s3509_s23 + $0x98] sm:$0x1] }
  0xbb   : > { %v1602_v24 = vunpack.c.l.b16 %v481_v45  ;;  %v1304_v25 = vsel %vm3643_vm3, %v1302_v15, %v1303_v11  ;;  %v1351_v27 = vrot.slane %v1349_v12, 4  ;;  %v1352_v29 = vrot.slane %v3892_v57, 5 }
  0xbc   : > { %v1832_v32 = vpack.c.b16 %v1780_v20, %v1779_v56  ;;  %v1764_v35 = vunpack.c.l.b16 %v1304_v25  ;;  %v1777_v36 = vunpack.c.l.b16 %v1350_v28  ;;  %v3182_v51 = vrot.slane %v4024_v2, 9 }
  0xbd   : > { %v1663_v13 = vpack.c.b16 %v1602_v24, %v1601_v16  ;;  %v1353_v38 = vsel %vm3643_vm3, %v1351_v27, %v1352_v29  ;;  %v1419_v18 = vrot.slane %v4031_v7, 5  ;;  %v1422_v26 = vrot.slane %v4034_v23, 5  ;;  %v4094_v29 = vld [vmem:[%s3509_s23 + $0x34] sm:$0xf] }
  0xbe   : > { %v1824_v42 = vpack.c.b16 %v1764_v35, %v1763_v21  ;;  %v1778_v57 = vunpack.c.l.b16 %v1353_v38  ;;  %v1083_v52 = vshrl.u32 %v4040_v50, 16  ;;  %v1086_v46 = vshll.u32 %v4040_v50, 16  ;;  %v4088_v21 = vld [vmem:[%s3509_s23 + $0x30] sm:$0xf] }
  0xbf   : > { %1697 = vrot.lane.b32.xlu2 %v1663_v13, %s3458_s25  ;;  %v1420_v34 = vsel %vm3643_vm3, %v3182_v51, %v1419_v18  ;;  %v1421_v9 = vrot.slane %v1419_v18, 4  ;;  %v1092_v39 = vshll.u32 %v4044_v37, 16  ;;  %v1096_v48 = vshrl.u32 %v4044_v37, 16  ;;  %v4099_v18 = vld [vmem:[%s3509_s23 + $0x38] sm:$0x1] }
  0xc0   : > { %1875 = vrot.lane.b32.xlu1 %v1832_v32, %s3457_s24  ;;  %1859 = vrot.lane.b32.xlu0 %v1824_v42, %s3457_s24  ;;  %v1831_v14 = vpack.c.b16 %v1778_v57, %v1777_v36  ;;  %v1797_v22 = vunpack.c.l.b16 %v1420_v34  ;;  %v1085_v53 = vrot.slane %v1083_v52, 4  ;;  %v1088_v54 = vrot.slane %v1086_v46, 5 }
  0xc1   : > { %v1423_v59 = vsel %vm3643_vm3, %v1421_v9, %v1422_v26  ;;  %v1094_v8 = vrot.slane %v1092_v39, 5  ;;  %v1098_v60 = vrot.slane %v1096_v48, 4  ;;  %v1102_v61 = vshll.u32 %v4051_v43, 16 }
  0xc2   : > { %v1798_v30 = vunpack.c.l.b16 %v1423_v59  ;;  %v1089_v63 = vor.u32 %v1088_v54, %v1085_v53  ;;  %v3181_v0 = vrot.slane %v3924_v55, 9  ;;  %v1412_v1 = vrot.slane %v3931_v62, 5 }
  0xc3   : > { %v1099_v19 = vor.u32 %v1098_v60, %v1094_v8  ;;  %v1104_v5 = vrot.slane %v1102_v61, 5  ;;  %v1415_v56 = vrot.slane %v3937_v3, 5  ;;  %v699_v11 = vshrl.u32 %v4063_v58, 16 }
  0xc4   : > { %v1841_v40 = vpack.c.b16 %v1798_v30, %v1797_v22  ;;  %v1090_v31 = vrot.slane %v1089_v63, 4  ;;  %v1413_v10 = vsel %vm3643_vm3, %v3181_v0, %v1412_v1  ;;  %v1414_v12 = vrot.slane %v1412_v1, 4  ;;  %v4112_v63 = vld [vmem:[%s3509_s23 + $0xfc] sm:$0xf] }
  0xc5   : > { %v1100_v16 = vrot.slane %v1099_v19, 4  ;;  %v1795_v55 = vunpack.c.l.b16 %v1413_v10  ;;  %v701_v62 = vrot.slane %v699_v11, 4  ;;  %v702_v49 = vshll.u32 %v4063_v58, 16 }
  0xc6   : > { %v1095_v3 = vsel %vm3656_vm6, %v1090_v31, %v1094_v8  ;;  %v1416_v15 = vsel %vm3643_vm3, %v1414_v12, %v1415_v56  ;;  %v708_v45 = vshll.u32 %v4072_v4, 16  ;;  %v712_v20 = vshrl.u32 %v4072_v4, 16 }
  0xc7   : > { %1873 = vrot.lane.b32.xlu2 %v1831_v14, %s3457_s24  ;;  %v1105_v28 = vsel %vm3656_vm6, %v1100_v16, %v1104_v5  ;;  %v1653_v24 = vunpack.c.l.b16 %v1095_v3  ;;  %v1796_v25 = vunpack.c.l.b16 %v1416_v15  ;;  %v704_v27 = vrot.slane %v702_v49, 5  ;;  %v4124_v15 = vld [vmem:[%s3509_s23 + $0x100] sm:$0xf] }
  0xc8   : > { %1893 = vrot.lane.b32.xlu1 %v1841_v40, %s3457_s24  ;;  %v1654_v32 = vunpack.c.l.b16 %v1105_v28  ;;  %v710_v35 = vrot.slane %v708_v45, 5  ;;  %v714_v36 = vrot.slane %v712_v20, 4  ;;  %v718_v51 = vshll.u32 %v4078_v17, 16 }
  0xc9   : > { %v1840_v13 = vpack.c.b16 %v1796_v25, %v1795_v55  ;;  %v705_v38 = vor.u32 %v704_v27, %v701_v62  ;;  %v507_v26 = vshrl.u32 %v4088_v21, 16  ;;  %v510_v42 = vshll.u32 %v4088_v21, 16  ;;  %v4127_v25 = vld [vmem:[%s3509_s23 + $0x104] sm:$0x1] }
  0xca   : > { %v1689_v57 = vpack.c.b16 %v1654_v32, %v1653_v24  ;;  %v715_v52 = vor.u32 %v714_v36, %v710_v35  ;;  %v720_v46 = vrot.slane %v718_v51, 5  ;;  %v516_v34 = vshll.u32 %v4094_v29, 16 }
  0xcb   : > { %v706_v9 = vrot.slane %v705_v38, 4  ;;  %v509_v39 = vrot.slane %v507_v26, 4  ;;  %v512_v48 = vrot.slane %v510_v42, 5  ;;  %v520_v14 = vshrl.u32 %v4094_v29, 16 }
  0xcc   : > { %1749 = vrot.lane.b32.xlu0 %v1689_v57, %s3458_s25  ;;  %v716_v22 = vrot.slane %v715_v52, 4  ;;  %v518_v53 = vrot.slane %v516_v34, 5  ;;  %v526_v54 = vshll.u32 %v4099_v18, 16  ;;  %v675_v59 = vshrl.u32 %v3990_v41, 16 }
  0xcd   : > { %v711_v8 = vsel %vm3656_vm6, %v706_v9, %v710_v35  ;;  %v513_v60 = vor.u32 %v512_v48, %v509_v39  ;;  %v522_v61 = vrot.slane %v520_v14, 4  ;;  %v678_v30 = vshll.u32 %v3990_v41, 16 }
  0xce   : > { %v721_v0 = vsel %vm3656_vm6, %v716_v22, %v720_v46  ;;  %v1621_v1 = vunpack.c.l.b16 %v711_v8  ;;  %v528_v19 = vrot.slane %v526_v54, 5  ;;  %v677_v5 = vrot.slane %v675_v59, 4 }
  0xcf   : > { %1891 = vrot.lane.b32.xlu2 %v1840_v13, %s3457_s24  ;;  %v1622_v56 = vunpack.c.l.b16 %v721_v0  ;;  %v514_v11 = vrot.slane %v513_v60, 4  ;;  %v523_v40 = vor.u32 %v522_v61, %v518_v53  ;;  %v680_v31 = vrot.slane %v678_v30, 5  ;;  %v4139_v52 = vpop.permute.xlu1 %1885 }
  0xd0   : > { %v684_v10 = vshll.u32 %v3993_v44, 16  ;;  %v688_v41 = vshrl.u32 %v3993_v44, 16  ;;  %v694_v12 = vshll.u32 %v4000_v47, 16  ;;  %v915_v16 = vshrl.u32 %v4112_v63, 16 }
  0xd1   : > { %v1673_v55 = vpack.c.b16 %v1622_v56, %v1621_v1  ;;  %v519_v62 = vsel %vm3656_vm6, %v514_v11, %v518_v53  ;;  %v524_v49 = vrot.slane %v523_v40, 4  ;;  %v681_v3 = vor.u32 %v680_v31, %v677_v5  ;;  %v4156_v31 = vld [vmem:[%s3509_s23 + $0x15c] sm:$0xf] }
  0xd2   : > { %v1605_v45 = vunpack.c.l.b16 %v519_v62  ;;  %v686_v20 = vrot.slane %v684_v10, 5  ;;  %v690_v28 = vrot.slane %v688_v41, 4  ;;  %v696_v24 = vrot.slane %v694_v12, 5  ;;  %v4165_v62 = vld [vmem:[%s3509_s23 + $0x164] sm:$0x1] }
  0xd3   : > { %1717 = vrot.lane.b32.xlu1 %v1673_v55, %s3458_s25  ;;  %v529_v44 = vsel %vm3656_vm6, %v524_v49, %v528_v19  ;;  %v682_v47 = vrot.slane %v681_v3, 4  ;;  %v917_v27 = vrot.slane %v915_v16, 4  ;;  %v918_v32 = vshll.u32 %v4112_v63, 16  ;;  %v4162_v55 = vld [vmem:[%s3509_s23 + $0x160] sm:$0xf] }
  0xd4   : > { %v1606_v35 = vunpack.c.l.b16 %v529_v44  ;;  %v691_v36 = vor.u32 %v690_v28, %v686_v20  ;;  %v924_v51 = vshll.u32 %v4124_v15, 16  ;;  %v928_v13 = vshrl.u32 %v4124_v15, 16 }
  0xd5   : > { %v687_v38 = vsel %vm3656_vm6, %v682_v47, %v686_v20  ;;  %v920_v26 = vrot.slane %v918_v32, 5  ;;  %v934_v42 = vshll.u32 %v4127_v25, 16  ;;  %v3174_v57 = vrot.slane %v4063_v58, 9 }
  0xd6   : > { %v1665_v46 = vpack.c.b16 %v1606_v35, %v1605_v45  ;;  %v692_v34 = vrot.slane %v691_v36, 4  ;;  %v1619_v9 = vunpack.c.l.b16 %v687_v38  ;;  %v926_v39 = vrot.slane %v924_v51, 5  ;;  %v4150_v56 = vpop.permute.xlu0 %1725  ;;  %v1694_v36 = vpop.permute.xlu2 %1693 }
  0xd7   : > { %v921_v48 = vor.u32 %v920_v26, %v917_v27  ;;  %v930_v14 = vrot.slane %v928_v13, 4  ;;  %v936_v22 = vrot.slane %v934_v42, 5  ;;  %v1363_v53 = vrot.slane %v4072_v4, 5  ;;  %v4175_v51 = vpop.permute.xlu1 %1901 }
  0xd8   : > { %1701 = vrot.lane.b32.xlu0 %v1665_v46, %s3458_s25  ;;  %v697_v54 = vsel %vm3656_vm6, %v692_v34, %v696_v24  ;;  %v1366_v59 = vrot.slane %v4078_v17, 5  ;;  %v891_v58 = vshrl.u32 %v4024_v2, 16  ;;  %v894_v8 = vshll.u32 %v4024_v2, 16 }
  0xd9   : > { %v1620_v60 = vunpack.c.l.b16 %v697_v54  ;;  %v922_v61 = vrot.slane %v921_v48, 4  ;;  %v931_v30 = vor.u32 %v930_v14, %v926_v39  ;;  %v1364_v0 = vsel %vm3643_vm3, %v3174_v57, %v1363_v53 }
  0xda   : > { %v1365_v4 = vrot.slane %v1363_v53, 4  ;;  %v1781_v1 = vunpack.c.l.b16 %v1364_v0  ;;  %v893_v19 = vrot.slane %v891_v58, 4  ;;  %v896_v5 = vrot.slane %v894_v8, 5 }
  0xdb   : > { %v1672_v17 = vpack.c.b16 %v1620_v60, %v1619_v9  ;;  %v927_v11 = vsel %vm3656_vm6, %v922_v61, %v926_v39  ;;  %v932_v2 = vrot.slane %v931_v30, 4  ;;  %v900_v40 = vshll.u32 %v4031_v7, 16  ;;  %v3382_v60 = vld [vmem:[%s3509_s23 + $0xc0] sm:$0xff] }
  0xdc   : > { %v1639_v10 = vunpack.c.l.b16 %v927_v11  ;;  %v1367_v41 = vsel %vm3643_vm3, %v1365_v4, %v1366_v59  ;;  %v897_v12 = vor.u32 %v896_v5, %v893_v19  ;;  %v904_v16 = vshrl.u32 %v4031_v7, 16  ;;  %v3399_v59 = vld [vmem:[%s2145_s29] sm:$0x30] }
  0xdd   : > { %1715 = vrot.lane.b32.xlu2 %v1672_v17, %s3458_s25  ;;  %v937_v49 = vsel %vm3656_vm6, %v932_v2, %v936_v22  ;;  %v1782_v3 = vunpack.c.l.b16 %v1367_v41  ;;  %v902_v45 = vrot.slane %v900_v40, 5  ;;  %v910_v20 = vshll.u32 %v4034_v23, 16  ;;  %v4207_v2 = vld [vmem:[%s3509_s23 + $0x3c] sm:$0xf]  ;;  %v4213_v40 = vld [vmem:[%s3509_s23 + $0x44] sm:$0x1] }
  0xde   : > { %v1640_v28 = vunpack.c.l.b16 %v937_v49  ;;  %v898_v24 = vrot.slane %v897_v12, 4  ;;  %v906_v44 = vrot.slane %v904_v16, 4  ;;  %v3191_v47 = vrot.slane %v4156_v31, 9  ;;  %v4199_v61 = vpop.permute.xlu0 %1741  ;;  %v4218_v12 = vld [vmem:[%s3509_s23 + $0x9c] sm:$0xf] }
  0xdf   : > { %v1833_v7 = vpack.c.b16 %v1782_v3, %v1781_v1  ;;  %v912_v27 = vrot.slane %v910_v20, 5  ;;  %v1482_v32 = vrot.slane %v4162_v55, 5  ;;  %v1485_v35 = vrot.slane %v4165_v62, 5  ;;  %v3366_v1 = vld [vmem:[%s3509_s23] sm:$0xff] }
  0xe0   : > { %v1682_v13 = vpack.c.b16 %v1640_v28, %v1639_v10  ;;  %v903_v38 = vsel %vm3656_vm6, %v898_v24, %v902_v45  ;;  %v907_v23 = vor.u32 %v906_v44, %v902_v45  ;;  %v3183_v26 = vrot.slane %v4112_v63, 9 }
  0xe1   : > { %1877 = vrot.lane.b32.xlu0 %v1833_v7, %s3457_s24  ;;  %v1637_v42 = vunpack.c.l.b16 %v903_v38  ;;  %v1483_v57 = vsel %vm3643_vm3, %v3191_v47, %v1482_v32  ;;  %v1484_v46 = vrot.slane %v1482_v32, 4  ;;  %v1426_v34 = vrot.slane %v4124_v15, 5  ;;  %v3326_v15 = vld [vmem:[%s2145_s29] sm:$0xf]  ;;  %v4237_v32 = vld [vmem:[%s3509_s23 + $0xa4] sm:$0x1] }
  0xe2   : > { %1735 = vrot.lane.b32.xlu1 %v1682_v13, %s3458_s25  ;;  %v908_v9 = vrot.slane %v907_v23, 4  ;;  %v1815_v39 = vunpack.c.l.b16 %v1483_v57  ;;  %v1429_v63 = vrot.slane %v4127_v25, 5  ;;  %v3190_v48 = vrot.slane %v4040_v50, 9  ;;  %v4230_v47 = vld [vmem:[%s3509_s23 + $0xa0] sm:$0xf] }
  0xe3   : > { %v1486_v14 = vsel %vm3643_vm3, %v1484_v46, %v1485_v35  ;;  %v1427_v22 = vsel %vm3643_vm3, %v3183_v26, %v1426_v34  ;;  %v1428_v53 = vrot.slane %v1426_v34, 4  ;;  %v1475_v54 = vrot.slane %v4044_v37, 5  ;;  %v1710_v7 = vpop.permute.xlu2 %1709  ;;  %v3390_v26 = vld [vmem:[%s3509_s23 + $0x120] sm:$0xff] }
  0xe4   : > { %v913_v58 = vsel %vm3656_vm6, %v908_v9, %v912_v27  ;;  %v1816_v25 = vunpack.c.l.b16 %v1486_v14  ;;  %v1799_v50 = vunpack.c.l.b16 %v1427_v22  ;;  %v1478_v8 = vrot.slane %v4051_v43, 5  ;;  %v4210_v43 = vld [vmem:[%s3509_s23 + $0x40] sm:$0xf]  ;;  %v4232_v27 = vpop.permute.xlu1 %1869 }
  0xe5   : > { %v1638_v30 = vunpack.c.l.b16 %v913_v58  ;;  %v1430_v37 = vsel %vm3643_vm3, %v1428_v53, %v1429_v63  ;;  %v1476_v0 = vsel %vm3643_vm3, %v3190_v48, %v1475_v54  ;;  %v1477_v4 = vrot.slane %v1475_v54, 4  ;;  %v3374_v48 = vld [vmem:[%s3509_s23 + $0x60] sm:$0xff] }
  0xe6   : > { %v1850_v19 = vpack.c.b16 %v1816_v25, %v1815_v39  ;;  %v1800_v5 = vunpack.c.l.b16 %v1430_v37  ;;  %v1813_v17 = vunpack.c.l.b16 %v1476_v0  ;;  %v3327_v11 = vor.u32 %v3399_v59, %v3326_v15  ;;  %v4256_v15 = vld [vmem:[%s3509_s23 + $0x168] sm:$0xf]  ;;  %v4258_v59 = vpop.permute.xlu0 %1853 }
  0xe7   : > { %v1681_v10 = vpack.c.b16 %v1638_v30, %v1637_v42  ;;  %v1479_v41 = vsel %vm3643_vm3, %v1477_v4, %v1478_v8  ;;  %vm2218_vm7 = vcmask 1045504   ;;  %vm1917_vm8 = vcmask 31744  }
  0xe8   : > { %v1842_v16 = vpack.c.b16 %v1800_v5, %v1799_v50  ;;  %v1814_v49 = vunpack.c.l.b16 %v1479_v41  ;;  %v2220_v3 = vsel %vm2218_vm7, %v3327_v11, 0  ;;  %v1968_v45 = vsel %vm1917_vm8, %v3382_v60, %v4150_v56  ;;  %v4264_v60 = vld [vmem:[%s3509_s23 + $0x16c] sm:$0xf]  ;;  %v4275_v5 = vld [vmem:[%s3509_s23 + $0x170] sm:$0x1] }
  0xe9   : > { %1733 = vrot.lane.b32.xlu2 %v1681_v10, %s3458_s25  ;;  %3401 = vmatpush.bf16.msra.mxu2 %v2220_v3  ;;  %v4224_v20 = vsel %vm1917_vm8, %v3366_v1, %v1694_v36  ;;  %v3167_v28 = vrot.slane %v4207_v2, 9  ;;  %v1314_v24 = vrot.slane %v4210_v43, 5  ;;  %v1317_v44 = vrot.slane %v4213_v40, 5 }
  0xea   : > { %1911 = vrot.lane.b32.xlu1 %v1850_v19, %s3457_s24  ;;  %1895 = vrot.lane.b32.xlu0 %v1842_v16, %s3457_s24  ;;  %v1849_v56 = vpack.c.b16 %v1814_v49, %v1813_v17  ;;  %vm2014_vm9 = vcmask 64512   ;;  %vm2153_vm10 = vcmask 97280   ;;  %v723_v35 = vshrl.u32 %v4218_v12, 16 }
  0xeb   : > { %v1315_v36 = vsel %vm3643_vm3, %v3167_v28, %v1314_v24  ;;  %v1316_v13 = vrot.slane %v1314_v24, 4  ;;  %v2048_v38 = vsel %vm2014_vm9, %v1968_v45, %v4139_v52  ;;  %v726_v23 = vshll.u32 %v4218_v12, 16  ;;  %3402 = vmatpush.bf16.msra.mxu3 %v2220_v3  ;;  %3400 = vmatpush.bf16.msra.mxu1 %v2220_v3 }
  0xec   : > { %v1767_v42 = vunpack.c.l.b16 %v1315_v36  ;;  %3344 = vmatmul.msk.bf16.vlgmr.msra.gmra.mxu2 %vm2153_vm10, %v2048_v38  ;;  %v725_v57 = vrot.slane %v723_v35, 4  ;;  %v732_v46 = vshll.u32 %v4230_v47, 16  ;;  %v736_v34 = vshrl.u32 %v4230_v47, 16  ;;  %2229 = vmatpush.bf16.msra.mxu0 %v2220_v3  ;;  %v4283_v3 = vld [vmem:[%s3509_s23 + $0x108] sm:$0xf]  ;;  %v4285_v28 = vpop.permute.xlu1 %1887 }
  0xed   : > { %v1318_v9 = vsel %vm3643_vm3, %v1316_v13, %v1317_v44  ;;  %v728_v52 = vrot.slane %v726_v23, 5  ;;  %v742_v39 = vshll.u32 %v4237_v32, 16  ;;  %v3166_v63 = vrot.slane %v4088_v21, 9  ;;  %v4290_v35 = vld [vmem:[%s3509_s23 + $0x10c] sm:$0xf] }
  0xee   : > { %v1768_v14 = vunpack.c.l.b16 %v1318_v9  ;;  %v734_v22 = vrot.slane %v732_v46, 5  ;;  %v738_v53 = vrot.slane %v736_v34, 4  ;;  %v1307_v54 = vrot.slane %v4094_v29, 5 }
  0xef   : > { %v729_v58 = vor.u32 %v728_v52, %v725_v57  ;;  %v744_v25 = vrot.slane %v742_v39, 5  ;;  %v1310_v50 = vrot.slane %v4099_v18, 5  ;;  %v1992_v8 = vsel %vm1917_vm8, %v3390_v26, %v4199_v61  ;;  %v4296_v57 = vld [vmem:[%s3509_s23 + $0x110] sm:$0x1] }
  0xf0   : > { %v1826_v21 = vpack.c.b16 %v1768_v14, %v1767_v42  ;;  %v739_v30 = vor.u32 %v738_v53, %v734_v22  ;;  %v1308_v37 = vsel %vm3643_vm3, %v3166_v63, %v1307_v54  ;;  %v1309_v29 = vrot.slane %v1307_v54, 4  ;;  %v1728_v45 = vpop.permute.xlu2 %1727 }
  0xf1   : > { %1909 = vrot.lane.b32.xlu2 %v1849_v56, %s3457_s24  ;;  %v730_v0 = vrot.slane %v729_v58, 4  ;;  %v1765_v4 = vunpack.c.l.b16 %v1308_v37  ;;  %v1944_v1 = vsel %vm1917_vm8, %v3374_v48, %v1710_v7  ;;  %v1131_v18 = vshrl.u32 %v4256_v15, 16 }
  0xf2   : > { %1863 = vrot.lane.b32.xlu1 %v1826_v21, %s3457_s24  ;;  %v740_v61 = vrot.slane %v739_v30, 4  ;;  %v1311_v19 = vsel %vm3643_vm3, %v1309_v29, %v1310_v50  ;;  %v1134_v17 = vshll.u32 %v4256_v15, 16  ;;  %v1140_v11 = vshll.u32 %v4264_v60, 16  ;;  %v3383_v29 = vld [vmem:[%s3509_s23 + $0xcc] sm:$0xff] }
  0xf3   : > { %v735_v10 = vsel %vm3656_vm6, %v730_v0, %v734_v22  ;;  %v1766_v41 = vunpack.c.l.b16 %v1311_v19  ;;  %v1133_v16 = vrot.slane %v1131_v18, 4  ;;  %v1144_v49 = vshrl.u32 %v4264_v60, 16 }
  0xf4   : > { %v745_v24 = vsel %vm3656_vm6, %v740_v61, %v744_v25  ;;  %v1623_v44 = vunpack.c.l.b16 %v735_v10  ;;  %v1136_v7 = vrot.slane %v1134_v17, 5  ;;  %v1142_v56 = vrot.slane %v1140_v11, 5 }
  0xf5   : > { %v1624_v36 = vunpack.c.l.b16 %v745_v24  ;;  %v1825_v13 = vpack.c.b16 %v1766_v41, %v1765_v4  ;;  %v1146_v38 = vrot.slane %v1144_v49, 4  ;;  %v1150_v23 = vshll.u32 %v4275_v5, 16  ;;  %v4322_v49 = vld [vmem:[%s3509_s23 + $0x48] sm:$0xf] }
  0xf6   : > { %v1137_v26 = vor.u32 %v1136_v7, %v1133_v16  ;;  %v2064_v42 = vsel %vm2014_vm9, %v1992_v8, %v4175_v51  ;;  %v939_v46 = vshrl.u32 %v4283_v3, 16  ;;  %v942_v34 = vshll.u32 %v4283_v3, 16  ;;  %v4303_v51 = vpop.permute.xlu0 %1743 }
  0xf7   : > { %v1674_v9 = vpack.c.b16 %v1624_v36, %v1623_v44  ;;  %v1147_v52 = vor.u32 %v1146_v38, %v1142_v56  ;;  %v1152_v39 = vrot.slane %v1150_v23, 5  ;;  %3352 = vmatmul.msk.bf16.vlgmr.msra.gmra.mxu3 %vm2153_vm10, %v2064_v42  ;;  %v948_v63 = vshll.u32 %v4290_v35, 16  ;;  %v4326_v44 = vpop.permute.xlu1 %1711 }
  0xf8   : > { %v1138_v48 = vrot.slane %v1137_v26, 4  ;;  %v941_v14 = vrot.slane %v939_v46, 4  ;;  %v944_v22 = vrot.slane %v942_v34, 5  ;;  %v952_v53 = vshrl.u32 %v4290_v35, 16  ;;  %v4324_v24 = vpop.permute.xlu2 %1903 }
  0xf9   : > { %1719 = vrot.lane.b32.xlu0 %v1674_v9, %s3458_s25  ;;  %1861 = vrot.lane.b32.xlu2 %v1825_v13, %s3457_s24  ;;  %v1148_v54 = vrot.slane %v1147_v52, 4  ;;  %v950_v58 = vrot.slane %v948_v63, 5  ;;  %v958_v25 = vshll.u32 %v4296_v57, 16  ;;  %v2032_v50 = vsel %vm2014_vm9, %v1944_v1, %v4232_v27  ;;  %v4332_v13 = vld [vmem:[%s3509_s23 + $0x4c] sm:$0xf] }
  0xfa   : > { %v1143_v8 = vsel %vm3656_vm6, %v1138_v48, %v1142_v56  ;;  %v945_v21 = vor.u32 %v944_v22, %v941_v14  ;;  %v954_v30 = vrot.slane %v952_v53, 4  ;;  %3336 = vmatmul.msk.bf16.vlgmr.msra.gmra.mxu1 %vm2153_vm10, %v2032_v50  ;;  %v1107_v37 = vshrl.u32 %v4156_v31, 16 }
  0xfb   : > { %v1153_v0 = vsel %vm3656_vm6, %v1148_v54, %v1152_v39  ;;  %v1657_v4 = vunpack.c.l.b16 %v1143_v8  ;;  %v960_v18 = vrot.slane %v958_v25, 5  ;;  %v1110_v61 = vshll.u32 %v4156_v31, 16 }
  0xfc   : > { %v1658_v27 = vunpack.c.l.b16 %v1153_v0  ;;  %v946_v1 = vrot.slane %v945_v21, 4  ;;  %v955_v19 = vor.u32 %v954_v30, %v950_v58  ;;  %v1109_v17 = vrot.slane %v1107_v37, 4 }
  0xfd   : > { %v1112_v11 = vrot.slane %v1110_v61, 5  ;;  %v1116_v10 = vshll.u32 %v4162_v55, 16  ;;  %v1120_v41 = vshrl.u32 %v4162_v55, 16  ;;  %v1126_v16 = vshll.u32 %v4165_v62, 16  ;;  %v4335_v62 = vld [vmem:[%s3509_s23 + $0x50] sm:$0x1] }
  0xfe   : > { %v1691_v31 = vpack.c.b16 %v1658_v27, %v1657_v4  ;;  %v951_v7 = vsel %vm3656_vm6, %v946_v1, %v950_v58  ;;  %v956_v56 = vrot.slane %v955_v19, 4  ;;  %v1971_v36 = vsel %vm1917_vm8, %v3383_v29, %v1728_v45  ;;  %v4345_v54 = vpop.permute.xlu0 %1695 }
  0xff   : > { %v1641_v38 = vunpack.c.l.b16 %v951_v7  ;;  %v1113_v23 = vor.u32 %v1112_v11, %v1109_v17  ;;  %v1118_v55 = vrot.slane %v1116_v10, 5  ;;  %v1122_v26 = vrot.slane %v1120_v41, 4 }
 0x100   : > { %1753 = vrot.lane.b32.xlu1 %v1691_v31, %s3458_s25  ;;  %v961_v42 = vsel %vm3656_vm6, %v956_v56, %v960_v18  ;;  %v1128_v46 = vrot.slane %v1126_v16, 5  ;;  %v555_v34 = vshrl.u32 %v4322_v49, 16  ;;  %v558_v9 = vshll.u32 %v4322_v49, 16 }
 0x101   : > { %v1642_v52 = vunpack.c.l.b16 %v961_v42  ;;  %v1114_v45 = vrot.slane %v1113_v23, 4  ;;  %v1123_v39 = vor.u32 %v1122_v26, %v1118_v55  ;;  %v564_v63 = vshll.u32 %v4332_v13, 16  ;;  %v4376_v23 = vld [vmem:[%s3509_s23 + $0xa8] sm:$0xf] }
 0x102   : > { %v557_v48 = vrot.slane %v555_v34, 4  ;;  %v560_v14 = vrot.slane %v558_v9, 5  ;;  %v568_v22 = vshrl.u32 %v4332_v13, 16  ;;  %v574_v53 = vshll.u32 %v4335_v62, 16  ;;  %v4384_v34 = vld [vmem:[%s3509_s23 + $0xac] sm:$0xf] }
 0x103   : > { %v1683_v58 = vpack.c.b16 %v1642_v52, %v1641_v38  ;;  %v1119_v25 = vsel %vm3656_vm6, %v1114_v45, %v1118_v55  ;;  %v1124_v50 = vrot.slane %v1123_v39, 4  ;;  %v566_v8 = vrot.slane %v564_v63, 5  ;;  %v3375_v9 = vld [vmem:[%s3509_s23 + $0x6c] sm:$0xff] }
 0x104   : > { %v1655_v21 = vunpack.c.l.b16 %v1119_v25  ;;  %v561_v30 = vor.u32 %v560_v14, %v557_v48  ;;  %v570_v37 = vrot.slane %v568_v22, 4  ;;  %v576_v29 = vrot.slane %v574_v53, 5  ;;  %v4391_v63 = vld [vmem:[%s3509_s23 + $0xb0] sm:$0x1] }
 0x105   : > { %1737 = vrot.lane.b32.xlu0 %v1683_v58, %s3458_s25  ;;  %v1129_v0 = vsel %vm3656_vm6, %v1124_v50, %v1128_v46  ;;  %v2016_v4 = vsel %vm2014_vm9, %v4224_v20, %v4258_v59  ;;  %v3192_v18 = vrot.slane %v4256_v15, 9  ;;  %v1489_v61 = vrot.slane %v4264_v60, 5  ;;  %v3391_v15 = vld [vmem:[%s3509_s23 + $0x12c] sm:$0xff]  ;;  %v4365_v59 = vpop.permute.xlu2 %1855  ;;  %v4367_v60 = vpop.permute.xlu1 %1729 }
 0x106   : > { %v1656_v27 = vunpack.c.l.b16 %v1129_v0  ;;  %v562_v1 = vrot.slane %v561_v30, 4  ;;  %v571_v19 = vor.u32 %v570_v37, %v566_v8  ;;  %3328 = vmatmul.msk.bf16.vlgmr.msra.gmra.mxu0 %vm2153_vm10, %v2016_v4  ;;  %v1492_v17 = vrot.slane %v4275_v5, 5  ;;  %v4394_v58 = vpop.permute.xlu0 %1871 }
 0x107   : > { %v1490_v11 = vsel %vm3643_vm3, %v3192_v18, %v1489_v61  ;;  %v1491_v10 = vrot.slane %v1489_v61, 4  ;;  %v2050_v41 = vsel %vm2014_vm9, %v1971_v36, %v4285_v28  ;;  %v531_v20 = vshrl.u32 %v4207_v2, 16 }
 0x108   : > { %v1690_v16 = vpack.c.b16 %v1656_v27, %v1655_v21  ;;  %v567_v5 = vsel %vm3656_vm6, %v562_v1, %v566_v8  ;;  %v572_v31 = vrot.slane %v571_v19, 4  ;;  %v1817_v7 = vunpack.c.l.b16 %v1490_v11  ;;  %3345 = vmatmul.msk.bf16.gmra.mxu2 %vm2153_vm10, %v2050_v41 }
 0x109   : > { %v1609_v56 = vunpack.c.l.b16 %v567_v5  ;;  %v1493_v28 = vsel %vm3643_vm3, %v1491_v10, %v1492_v17  ;;  %v533_v36 = vrot.slane %v531_v20, 4  ;;  %v534_v38 = vshll.u32 %v4207_v2, 16  ;;  %v3367_v17 = vld [vmem:[%s3509_s23 + $0xc] sm:$0xff] }
 0x10a   : > { %1751 = vrot.lane.b32.xlu2 %v1690_v16, %s3458_s25  ;;  %v577_v55 = vsel %vm3656_vm6, %v572_v31, %v576_v29  ;;  %v1818_v26 = vunpack.c.l.b16 %v1493_v28  ;;  %v540_v42 = vshll.u32 %v4210_v43, 16  ;;  %v544_v46 = vshrl.u32 %v4210_v43, 16  ;;  %v4433_v31 = vld [vmem:[%s3509_s23 + $0x118] sm:$0xf] }
 0x10b   : > { %v1610_v52 = vunpack.c.l.b16 %v577_v55  ;;  %v536_v45 = vrot.slane %v534_v38, 5  ;;  %v550_v39 = vshll.u32 %v4213_v40, 16  ;;  %v1995_v2 = vsel %vm1917_vm8, %v3391_v15, %v4303_v51  ;;  %v4428_v15 = vld [vmem:[%s3509_s23 + $0x114] sm:$0xf] }
 0x10c   : > { %v1851_v48 = vpack.c.b16 %v1818_v26, %v1817_v7  ;;  %v542_v14 = vrot.slane %v540_v42, 5  ;;  %v546_v22 = vrot.slane %v544_v46, 4  ;;  %v3176_v53 = vrot.slane %v4376_v23, 9  ;;  %v4436_v7 = vld [vmem:[%s3509_s23 + $0x11c] sm:$0x1] }
 0x10d   : > { %v1667_v43 = vpack.c.b16 %v1610_v52, %v1609_v56  ;;  %v537_v25 = vor.u32 %v536_v45, %v533_v36  ;;  %v552_v50 = vrot.slane %v550_v39, 5  ;;  %v1377_v8 = vrot.slane %v4384_v34, 5  ;;  %v4419_v11 = vpop.permute.xlu2 %1745  ;;  %v4421_v10 = vpop.permute.xlu1 %1905  ;;  %v3384_v56 = vld [vmem:[%s3509_s23 + $0xd8] sm:$0xff]  ;;  %v4441_v26 = vld [vmem:[%s3509_s23 + $0x174] sm:$0xf] }
 0x10e   : > { %1913 = vrot.lane.b32.xlu0 %v1851_v48, %s3457_s24  ;;  %v547_v40 = vor.u32 %v546_v22, %v542_v14  ;;  %v1380_v21 = vrot.slane %v4391_v63, 5  ;;  %v2066_v51 = vsel %vm2014_vm9, %v1995_v2, %v4324_v24  ;;  %v4403_v30 = vsel %vm1917_vm8, %v3375_v9, %v4326_v44  ;;  %v4453_v48 = vld [vmem:[%s3509_s23 + $0x178] sm:$0xf] }
 0x10f   : > { %1705 = vrot.lane.b32.xlu1 %v1667_v43, %s3458_s25  ;;  %v538_v37 = vrot.slane %v537_v25, 4  ;;  %v1378_v29 = vsel %vm3643_vm3, %v3176_v53, %v1377_v8  ;;  %v1379_v0 = vrot.slane %v1377_v8, 4  ;;  %3353 = vmatmul.msk.bf16.gmra.mxu3 %vm2153_vm10, %v2066_v51  ;;  %v3168_v4 = vrot.slane %v4322_v49, 9  ;;  %v4466_v43 = vld [vmem:[%s3509_s23 + $0x17c] sm:$0x1] }
 0x110   : > { %v548_v18 = vrot.slane %v547_v40, 4  ;;  %v1785_v61 = vunpack.c.l.b16 %v1378_v29  ;;  %v1321_v24 = vrot.slane %v4332_v13, 5  ;;  %v1324_v27 = vrot.slane %v4335_v62, 5  ;;  %v3392_v29 = vld [vmem:[%s3509_s23 + $0x138] sm:$0xff] }
 0x111   : > { %v543_v44 = vsel %vm3656_vm6, %v538_v37, %v542_v14  ;;  %v1381_v1 = vsel %vm3643_vm3, %v1379_v0, %v1380_v21  ;;  %v3175_v19 = vrot.slane %v4218_v12, 9  ;;  %v1370_v49 = vrot.slane %v4230_v47, 5  ;;  %v4455_v14 = vpop.permute.xlu0 %1889 }
 0x112   : > { %v553_v13 = vsel %vm3656_vm6, %v548_v18, %v552_v50  ;;  %v1607_v62 = vunpack.c.l.b16 %v543_v44  ;;  %v1786_v41 = vunpack.c.l.b16 %v1381_v1  ;;  %v1322_v20 = vsel %vm3643_vm3, %v3168_v4, %v1321_v24 }
 0x113   : > { %v1608_v12 = vunpack.c.l.b16 %v553_v13  ;;  %v1323_v16 = vrot.slane %v1321_v24, 4  ;;  %v1769_v5 = vunpack.c.l.b16 %v1322_v20  ;;  %v1371_v47 = vsel %vm3643_vm3, %v3175_v19, %v1370_v49  ;;  %v4483_v19 = vld [vmem:[%s3509_s23 + $0x54] sm:$0xf] }
 0x114   : > { %v1835_v28 = vpack.c.b16 %v1786_v41, %v1785_v61  ;;  %v1372_v36 = vrot.slane %v1370_v49, 4  ;;  %v1373_v38 = vrot.slane %v4237_v32, 5  ;;  %v1783_v55 = vunpack.c.l.b16 %v1371_v47 }
 0x115   : > { %v1666_v42 = vpack.c.b16 %v1608_v12, %v1607_v62  ;;  %v1325_v46 = vsel %vm3643_vm3, %v1323_v16, %v1324_v27  ;;  %v1923_v9 = vsel %vm1917_vm8, %v3367_v17, %v4345_v54  ;;  %v3185_v52 = vrot.slane %v4428_v15, 9  ;;  %v4485_v17 = vpop.permute.xlu1 %1857  ;;  %v4489_v12 = vld [vmem:[%s3509_s23 + $0x58] sm:$0xf] }
 0x116   : > { %v1770_v45 = vunpack.c.l.b16 %v1325_v46  ;;  %v1374_v39 = vsel %vm3643_vm3, %v1372_v36, %v1373_v38  ;;  %v1440_v2 = vrot.slane %v4433_v31, 5  ;;  %v1443_v32 = vrot.slane %v4436_v7, 5  ;;  %v4503_v38 = vld [vmem:[%s3509_s23 + $0x5c] sm:$0x1] }
 0x117   : > { %1703 = vrot.lane.b32.xlu2 %v1666_v42, %s3458_s25  ;;  %1881 = vrot.lane.b32.xlu1 %v1835_v28, %s3457_s24  ;;  %v1784_v54 = vunpack.c.l.b16 %v1374_v39  ;;  %v2018_v22 = vsel %vm2014_vm9, %v1923_v9, %v4365_v59  ;;  %v4463_v53 = vsel %vm1917_vm8, %v3384_v56, %v4367_v60  ;;  %v1155_v25 = vshrl.u32 %v4441_v26, 16 }
 0x118   : > { %v1827_v50 = vpack.c.b16 %v1770_v45, %v1769_v5  ;;  %v1441_v8 = vsel %vm3643_vm3, %v3185_v52, %v1440_v2  ;;  %v1442_v40 = vrot.slane %v1440_v2, 4  ;;  %3329 = vmatmul.msk.bf16.gmra.mxu0 %vm2153_vm10, %v2018_v22  ;;  %v1158_v21 = vshll.u32 %v4441_v26, 16 }
 0x119   : > { %v1834_v51 = vpack.c.b16 %v1784_v54, %v1783_v55  ;;  %v1803_v59 = vunpack.c.l.b16 %v1441_v8  ;;  %v1157_v37 = vrot.slane %v1155_v25, 4  ;;  %v1164_v60 = vshll.u32 %v4453_v48, 16  ;;  %v1698_v49 = vpop.permute.xlu2 %1697  ;;  %v4512_v52 = vpop.permute.xlu0 %1713 }
 0x11a   : > { %1865 = vrot.lane.b32.xlu0 %v1827_v50, %s3457_s24  ;;  %v1444_v0 = vsel %vm3643_vm3, %v1442_v40, %v1443_v32  ;;  %v1160_v4 = vrot.slane %v1158_v21, 5  ;;  %v1168_v18 = vshrl.u32 %v4453_v48, 16  ;;  %v1174_v61 = vshll.u32 %v4466_v43, 16 }
 0x11b   : > { %v1804_v24 = vunpack.c.l.b16 %v1444_v0  ;;  %v1166_v27 = vrot.slane %v1164_v60, 5  ;;  %v3184_v44 = vrot.slane %v4283_v3, 9  ;;  %v1433_v1 = vrot.slane %v4290_v35, 5 }
 0x11c   : > { %v1161_v13 = vor.u32 %v1160_v4, %v1157_v37  ;;  %v1170_v62 = vrot.slane %v1168_v18, 4  ;;  %v1176_v41 = vrot.slane %v1174_v61, 5  ;;  %v1436_v20 = vrot.slane %v4296_v57, 5 }
 0x11d   : > { %v1844_v16 = vpack.c.b16 %v1804_v24, %v1803_v59  ;;  %v1434_v5 = vsel %vm3643_vm3, %v3184_v44, %v1433_v1  ;;  %v1435_v3 = vrot.slane %v1433_v1, 4  ;;  %v1998_v35 = vsel %vm1917_vm8, %v3392_v29, %v4419_v11  ;;  %v3368_v59 = vld [vmem:[%s3509_s23 + $0x18] sm:$0xff] }
 0x11e   : > { %v1162_v47 = vrot.slane %v1161_v13, 4  ;;  %v1171_v56 = vor.u32 %v1170_v62, %v1166_v27  ;;  %v1801_v28 = vunpack.c.l.b16 %v1434_v5  ;;  %v2034_v36 = vsel %vm2014_vm9, %v4403_v30, %v4394_v58  ;;  %v357_v5 = vld [vmem:[%s3509_s23 + $0xb8] sm:$0xf] }
 0x11f   : > { %1879 = vrot.lane.b32.xlu2 %v1834_v51, %s3457_s24  ;;  %1899 = vrot.lane.b32.xlu1 %v1844_v16, %s3457_s24  ;;  %v1437_v57 = vsel %vm3643_vm3, %v1435_v3, %v1436_v20  ;;  %v579_v55 = vshrl.u32 %v4483_v19, 16  ;;  %v582_v11 = vshll.u32 %v4483_v19, 16  ;;  %v588_v42 = vshll.u32 %v4489_v12, 16  ;;  %v358_v3 = vld [vmem:[%s3509_s23 + $0xbc] sm:$0x1] }
 0x120   : > { %v1167_v46 = vsel %vm3656_vm6, %v1162_v47, %v1166_v27  ;;  %v1172_v9 = vrot.slane %v1171_v56, 4  ;;  %v1802_v58 = vunpack.c.l.b16 %v1437_v57  ;;  %3337 = vmatmul.msk.bf16.gmra.mxu1 %vm2153_vm10, %v2034_v36  ;;  %v592_v30 = vshrl.u32 %v4489_v12, 16  ;;  %v4527_v27 = vpop.permute.xlu1 %1747 }
 0x121   : > { %v1659_v45 = vunpack.c.l.b16 %v1167_v46  ;;  %v581_v39 = vrot.slane %v579_v55, 4  ;;  %v584_v2 = vrot.slane %v582_v11, 5  ;;  %v590_v32 = vrot.slane %v588_v42, 5 }
 0x122   : > { %v1177_v54 = vsel %vm3656_vm6, %v1172_v9, %v1176_v41  ;;  %v1843_v22 = vpack.c.b16 %v1802_v58, %v1801_v28  ;;  %v594_v25 = vrot.slane %v592_v30, 4  ;;  %v598_v50 = vshll.u32 %v4503_v38, 16  ;;  %v356_v41 = vld [vmem:[%s3509_s23 + $0xb4] sm:$0xf]  ;;  %v4544_v28 = vpop.permute.xlu0 %1731 }
 0x123   : > { %v1660_v8 = vunpack.c.l.b16 %v1177_v54  ;;  %v585_v40 = vor.u32 %v584_v2, %v581_v39  ;;  %v2068_v21 = vsel %vm2014_vm9, %v1998_v35, %v4421_v10  ;;  %v747_v51 = vshrl.u32 %v4376_v23, 16  ;;  %v4525_v10 = vpop.permute.xlu2 %1873 }
 0x124   : > { %v595_v37 = vor.u32 %v594_v25, %v590_v32  ;;  %v600_v60 = vrot.slane %v598_v50, 5  ;;  %3354 = vmatmul.msk.bf16.gmra.mxu3 %vm2153_vm10, %v2068_v21  ;;  %v750_v29 = vshll.u32 %v4376_v23, 16  ;;  %v756_v0 = vshll.u32 %v4384_v34, 16 }
 0x125   : > { %v1692_v4 = vpack.c.b16 %v1660_v8, %v1659_v45  ;;  %v586_v18 = vrot.slane %v585_v40, 4  ;;  %v749_v61 = vrot.slane %v747_v51, 4  ;;  %v760_v24 = vshrl.u32 %v4384_v34, 16 }
 0x126   : > { %v596_v44 = vrot.slane %v595_v37, 4  ;;  %v752_v1 = vrot.slane %v750_v29, 5  ;;  %v758_v13 = vrot.slane %v756_v0, 5  ;;  %v766_v62 = vshll.u32 %v4391_v63, 16 }
 0x127   : > { %1755 = vrot.lane.b32.xlu0 %v1692_v4, %s3458_s25  ;;  %1897 = vrot.lane.b32.xlu2 %v1843_v22, %s3457_s24  ;;  %v591_v23 = vsel %vm3656_vm6, %v586_v18, %v590_v32  ;;  %v762_v20 = vrot.slane %v760_v24, 4  ;;  %v1926_v34 = vsel %vm1917_vm8, %v3368_v59, %v1698_v49  ;;  %v2052_v16 = vsel %vm2014_vm9, %v4463_v53, %v4455_v14 }
 0x128   : > { %v601_v63 = vsel %vm3656_vm6, %v596_v44, %v600_v60  ;;  %v1611_v35 = vunpack.c.l.b16 %v591_v23  ;;  %v753_v47 = vor.u32 %v752_v1, %v749_v61  ;;  %v768_v56 = vrot.slane %v766_v62, 5  ;;  %3346 = vmatmul.msk.bf16.gmra.mxu2 %vm2153_vm10, %v2052_v16  ;;  %v3376_v1 = vld [vmem:[%s3509_s23 + $0x78] sm:$0xff] }
 0x129   : > { %v1612_v36 = vunpack.c.l.b16 %v601_v63  ;;  %v763_v57 = vor.u32 %v762_v20, %v758_v13  ;;  %v771_v55 = vshrl.u32 %v356_v41, 16  ;;  %v774_v49 = vshll.u32 %v356_v41, 16 }
 0x12a   : > { %v754_v11 = vrot.slane %v753_v47, 4  ;;  %v780_v42 = vshll.u32 %v357_v5, 16  ;;  %v784_v46 = vshrl.u32 %v357_v5, 16  ;;  %v790_v14 = vshll.u32 %v358_v3, 16  ;;  %v1700_v4 = vpop.permute.xlu1 %1699  ;;  %v3385_v47 = vld [vmem:[%s3509_s23 + $0xe4] sm:$0xff] }
 0x12b   : > { %v1668_v53 = vpack.c.b16 %v1612_v36, %v1611_v35  ;;  %v764_v9 = vrot.slane %v763_v57, 4  ;;  %v773_v58 = vrot.slane %v771_v55, 4  ;;  %v776_v30 = vrot.slane %v774_v49, 5  ;;  %v1892_v0 = vpop.permute.xlu2 %1891  ;;  %v3393_v55 = vld [vmem:[%s3509_s23 + $0x144] sm:$0xff] }
 0x12c   : > { %v759_v45 = vsel %vm3656_vm6, %v754_v11, %v758_v13  ;;  %v782_v39 = vrot.slane %v780_v42, 5  ;;  %v786_v2 = vrot.slane %v784_v46, 4  ;;  %v792_v32 = vrot.slane %v790_v14, 5  ;;  %v1908_v13 = vpop.permute.xlu0 %1907 }
 0x12d   : > { %v769_v54 = vsel %vm3656_vm6, %v764_v9, %v768_v56  ;;  %v1625_v22 = vunpack.c.l.b16 %v759_v45  ;;  %v777_v25 = vor.u32 %v776_v30, %v773_v58  ;;  %v3177_v50 = vrot.slane %v356_v41, 9  ;;  %v3369_v9 = vld [vmem:[%s3509_s23 + $0x24] sm:$0xff] }
 0x12e   : > { %v1626_v8 = vunpack.c.l.b16 %v769_v54  ;;  %v787_v40 = vor.u32 %v786_v2, %v782_v39  ;;  %v1384_v21 = vrot.slane %v357_v5, 5  ;;  %v1387_v51 = vrot.slane %v358_v3, 5 }
 0x12f   : > { %1707 = vrot.lane.b32.xlu0 %v1668_v53, %s3458_s25  ;;  %v778_v59 = vrot.slane %v777_v25, 4  ;;  %v2020_v37 = vsel %vm2014_vm9, %v1926_v34, %v4485_v17  ;;  %v963_v60 = vshrl.u32 %v4428_v15, 16  ;;  %v966_v29 = vshll.u32 %v4428_v15, 16 }
 0x130   : > { %v1675_v18 = vpack.c.b16 %v1626_v8, %v1625_v22  ;;  %v788_v61 = vrot.slane %v787_v40, 4  ;;  %v1385_v24 = vsel %vm3643_vm3, %v3177_v50, %v1384_v21  ;;  %v1386_v44 = vrot.slane %v1384_v21, 4  ;;  %3330 = vmatmul.msk.bf16.gmra.mxu0 %vm2153_vm10, %v2020_v37 }
 0x131   : > { %v783_v17 = vsel %vm3656_vm6, %v778_v59, %v782_v39  ;;  %v1787_v62 = vunpack.c.l.b16 %v1385_v24  ;;  %v965_v41 = vrot.slane %v963_v60, 4  ;;  %v968_v15 = vrot.slane %v966_v29, 5  ;;  %v3377_v59 = vld [vmem:[%s3509_s23 + $0x84] sm:$0xff]  ;;  %v3386_v60 = vld [vmem:[%s3509_s23 + $0xf0] sm:$0xff] }
 0x132   : > { %1721 = vrot.lane.b32.xlu2 %v1675_v18, %s3458_s25  ;;  %v793_v23 = vsel %vm3656_vm6, %v788_v61, %v792_v32  ;;  %v1627_v20 = vunpack.c.l.b16 %v783_v17  ;;  %v1388_v34 = vsel %vm3643_vm3, %v1386_v44, %v1387_v51  ;;  %v972_v16 = vshll.u32 %v4433_v31, 16  ;;  %v1876_v22 = vpop.permute.xlu1 %1875 }
 0x133   : > { %v1628_v5 = vunpack.c.l.b16 %v793_v23  ;;  %v1788_v3 = vunpack.c.l.b16 %v1388_v34  ;;  %v969_v63 = vor.u32 %v968_v15, %v965_v41  ;;  %v976_v35 = vshrl.u32 %v4433_v31, 16 }
 0x134   : > { %v974_v56 = vrot.slane %v972_v16, 5  ;;  %v982_v36 = vshll.u32 %v4436_v7, 16  ;;  %v1950_v57 = vsel %vm1917_vm8, %v3376_v1, %v4512_v52  ;;  %v1496_v53 = vrot.slane %v4453_v48, 5  ;;  %v1860_v30 = vpop.permute.xlu0 %1859 }
 0x135   : > { %v1676_v49 = vpack.c.b16 %v1628_v5, %v1627_v20  ;;  %v1836_v11 = vpack.c.b16 %v1788_v3, %v1787_v62  ;;  %v970_v42 = vrot.slane %v969_v63, 4  ;;  %v978_v46 = vrot.slane %v976_v35, 4  ;;  %v3394_v62 = vld [vmem:[%s3509_s23 + $0x150] sm:$0xff] }
 0x136   : > { %v2036_v14 = vsel %vm2014_vm9, %v1950_v57, %v4525_v10  ;;  %v984_v52 = vrot.slane %v982_v36, 5  ;;  %v1977_v58 = vsel %vm1917_vm8, %v3385_v47, %v4544_v28  ;;  %v2001_v10 = vsel %vm1917_vm8, %v3393_v55, %v4527_v27  ;;  %v3370_v5 = vld [vmem:[%s3509_s23 + $0x30] sm:$0xff] }
 0x137   : > { %1723 = vrot.lane.b32.xlu1 %v1676_v49, %s3458_s25  ;;  %1883 = vrot.lane.b32.xlu0 %v1836_v11, %s3457_s24  ;;  %v975_v31 = vsel %vm3656_vm6, %v970_v42, %v974_v56  ;;  %v979_v7 = vor.u32 %v978_v46, %v974_v56  ;;  %v2054_v48 = vsel %vm2014_vm9, %v1977_v58, %v1892_v0  ;;  %v3193_v39 = vrot.slane %v4441_v26, 9  ;;  %v1716_v54 = vpop.permute.xlu2 %1715  ;;  %v3378_v3 = vld [vmem:[%s3509_s23 + $0x90] sm:$0xff]  ;;  %v3387_v49 = vld [vmem:[%s3509_s23 + $0xfc] sm:$0xff] }
 0x138   : > { %3338 = vmatmul.msk.bf16.gmra.mxu1 %vm2153_vm10, %v2036_v14  ;;  %v1498_v2 = vrot.slane %v1496_v53, 4  ;;  %v1499_v32 = vrot.slane %v4466_v43, 5  ;;  %3347 = vmatmul.msk.bf16.gmra.mxu2 %vm2153_vm10, %v2054_v48  ;;  %v1643_v28 = vunpack.c.l.b16 %v975_v31  ;;  %v1929_v25 = vsel %vm1917_vm8, %v3369_v9, %v1700_v4  ;;  %v2111_v48 = vld [vmem:[#allocation2 + $0x100] sm:$0xff] }
 0x139   : > { %v980_v45 = vrot.slane %v979_v7, 4  ;;  %v2070_v50 = vsel %vm2014_vm9, %v2001_v10, %v1908_v13  ;;  %v1497_v26 = vsel %vm3643_vm3, %v3193_v39, %v1496_v53  ;;  %v1328_v40 = vrot.slane %v4489_v12, 5  ;;  %v3395_v53 = vld [vmem:[%s3509_s23 + $0x15c] sm:$0xff] }
 0x13a   : > { %3355 = vmatmul.msk.bf16.gmra.mxu3 %vm2153_vm10, %v2070_v50  ;;  %v1500_v43 = vsel %vm3643_vm3, %v1498_v2, %v1499_v32  ;;  %v2022_v21 = vsel %vm2014_vm9, %v1929_v25, %v1860_v30  ;;  %v1819_v33 = vunpack.c.l.b16 %v1497_v26  ;;  %v3169_v0 = vrot.slane %v4483_v19, 9  ;;  %v1894_v24 = vpop.permute.xlu1 %1893  ;;  %v3371_v30 = vld [vmem:[%s3509_s23 + $0x3c] sm:$0xff] }
 0x13b   : > { %v985_v27 = vsel %vm3656_vm6, %v980_v45, %v984_v52  ;;  %v1820_v37 = vunpack.c.l.b16 %v1500_v43  ;;  %v1330_v4 = vrot.slane %v1328_v40, 4  ;;  %v1331_v18 = vrot.slane %v4503_v38, 5 }
 0x13c   : > { %v1644_v8 = vunpack.c.l.b16 %v985_v27  ;;  %v1953_v12 = vsel %vm1917_vm8, %v3377_v59, %v1716_v54  ;;  %v1329_v13 = vsel %vm3643_vm3, %v3169_v0, %v1328_v40  ;;  %vm2455_vm11 = vcmask 261120   ;;  %v2112_v27 = vld [vmem:[#allocation2 + $0x108] sm:$0xff] }
 0x13d   : > { %v1852_v44 = vpack.c.b16 %v1820_v37, %v1819_v33  ;;  %v1332_v17 = vsel %vm3643_vm3, %v1330_v4, %v1331_v18  ;;  %v2038_v19 = vsel %vm2014_vm9, %v1953_v12, %v1876_v22  ;;  %v1771_v41 = vunpack.c.l.b16 %v1329_v13  ;;  %v3379_v22 = vld [vmem:[%s3509_s23 + $0x9c] sm:$0xff]  ;;  %v3396_v37 = vld [vmem:[%s3509_s23 + $0x168] sm:$0xff] }
 0x13e   : > { %v1684_v51 = vpack.c.b16 %v1644_v8, %v1643_v28  ;;  %v1750_v29 = vpop.permute.xlu0 %1749  ;;  %v1772_v15 = vunpack.c.l.b16 %v1332_v17  ;;  %v2095_v28 = vld [vmem:[#allocation2 + $0x80] sm:$0xff]  ;;  %v2096_v4 = vld [vmem:[#allocation2 + $0x88] sm:$0xff] }
 0x13f   : > { %v2004_v23 = vsel %vm1917_vm8, %v3394_v62, %v1750_v29  ;;  %v3388_v29 = vld [vmem:[%s3509_s23 + $0x108] sm:$0xff]  ;;  %v2079_v62 = vld [vmem:[#allocation2] sm:$0xff] }
 0x140   : > { %1739 = vrot.lane.b32.xlu2 %v1684_v51, %s3458_s25  ;;  %3331 = vmatmul.msk.bf16.gmra.mxu0 %vm2153_vm10, %v2022_v21  ;;  %v1828_v34 = vpack.c.b16 %v1772_v15, %v1771_v41  ;;  %v2127_v21 = vld [vmem:[#allocation2 + $0x180] sm:$0xff] }
 0x143   : > { %v1734_v61 = vpop.permute.xlu2 %1733 }
 0x144   : > { %v1980_v1 = vsel %vm1917_vm8, %v3386_v60, %v1734_v61 }
 0x145   : > { %v2056_v38 = vsel %vm2014_vm9, %v1980_v1, %v1894_v24  ;;  %v1718_v63 = vpop.permute.xlu1 %1717  ;;  %v2128_v1 = vld [vmem:[#allocation2 + $0x188] sm:$0xff] }
 0x146   : > { %v1956_v47 = vsel %vm1917_vm8, %v3378_v3, %v1718_v63 }
 0x148   : > { %1915 = vrot.lane.b32.xlu2 %v1852_v44, %s3457_s24  ;;  %3339 = vmatmul.msk.bf16.gmra.mxu1 %vm2153_vm10, %v2038_v19 }
 0x149   : > { %3348 = vmatmul.msk.bf16.gmra.mxu2 %vm2153_vm10, %v2056_v38 }
 0x14a   : > { %v1702_v20 = vpop.permute.xlu0 %1701 }
 0x14b   : > { %v1910_v6 = vpop.permute.xlu2 %1909  ;;  %v1932_v35 = vsel %vm1917_vm8, %v3370_v5, %v1702_v20  ;;  %v2113_v5 = vld [vmem:[#allocation2 + $0x110] sm:$0xff] }
 0x14c   : > { %v2072_v16 = vsel %vm2014_vm9, %v2004_v23, %v1910_v6  ;;  %v3372_v6 = vld [vmem:[%s3509_s23 + $0x48] sm:$0xff] }
 0x14d   : > { %3356 = vmatmul.msk.bf16.gmra.mxu3 %vm2153_vm10, %v2072_v16  ;;  %v2080_v16 = vld [vmem:[#allocation2 + $0x8] sm:$0xff] }
 0x150   : > { %1867 = vrot.lane.b32.xlu2 %v1828_v34, %s3457_s24  ;;  %v3380_v34 = vld [vmem:[%s3509_s23 + $0xa8] sm:$0xff] }
 0x153   : > { %v1862_v56 = vpop.permute.xlu2 %1861  ;;  %v1878_v36 = vpop.permute.xlu0 %1877 }
 0x154   : > { %v2024_v57 = vsel %vm2014_vm9, %v1932_v35, %v1862_v56  ;;  %v2040_v55 = vsel %vm2014_vm9, %v1956_v47, %v1878_v36  ;;  %v1736_v11 = vpop.permute.xlu1 %1735 }
 0x155   : > { %3332 = vmatmul.msk.bf16.gmra.mxu0 %vm2153_vm10, %v2024_v57  ;;  %v1983_v42 = vsel %vm1917_vm8, %v3387_v49, %v1736_v11 }
 0x158   : > { %3340 = vmatmul.msk.bf16.gmra.mxu1 %vm2153_vm10, %v2040_v55 }
 0x15c   : > { %v1896_v46 = vpop.permute.xlu0 %1895  ;;  %v1912_v9 = vpop.permute.xlu1 %1911 }
 0x15d   : > { %v2058_v14 = vsel %vm2014_vm9, %v1983_v42, %v1896_v46  ;;  %v2129_v46 = vld [vmem:[#allocation2 + $0x190] sm:$0xff] }
 0x15e   : > { %3349 = vmatmul.msk.bf16.gmra.mxu2 %vm2153_vm10, %v2058_v14  ;;  %v2114_v14 = vld [vmem:[#allocation2 + $0x118] sm:$0xff] }
 0x164   : > { %v1752_v31 = vpop.permute.xlu2 %1751  ;;  %v1864_v58 = vpop.permute.xlu1 %1863 }
 0x165   : > { %v2007_v7 = vsel %vm1917_vm8, %v3395_v53, %v1752_v31  ;;  %v2081_v31 = vld [vmem:[#allocation2 + $0x10] sm:$0xff] }
 0x166   : > { %v2074_v52 = vsel %vm2014_vm9, %v2007_v7, %v1912_v9 }
 0x167   : > { %3357 = vmatmul.msk.bf16.gmra.mxu3 %vm2153_vm10, %v2074_v52 }
 0x16b   : > { %v1720_v10 = vpop.permute.xlu0 %1719 }
 0x16c   : > { %v1959_v50 = vsel %vm1917_vm8, %v3379_v22, %v1720_v10 }
 0x16f   : > { %v2311_v45 = vpop.f32.mrf.mxu2 }
 0x170   : > { %v2423_v39 = vadd.f32 %v2311_v45, %v2111_v48  ;;  %v3389_v48 = vld [vmem:[%s3509_s23 + $0x114] sm:$0xff] }
 0x171   : > { %v1704_v2 = vpop.permute.xlu2 %1703 }
 0x172   : > { %v1935_v32 = vsel %vm1917_vm8, %v3371_v30, %v1704_v2  ;;  %2488 = vst.msk [vmem:[#allocation2 + $0x100] sm:$0xff] %vm2455_vm11, %v2423_v39  ;;  %v1754_v25 = vpop.permute.xlu1 %1753  ;;  %v2130_v30 = vld [vmem:[#allocation2 + $0x198] sm:$0xff] }
 0x173   : > { %v2026_v54 = vsel %vm2014_vm9, %v1935_v32, %v1864_v58  ;;  %v2010_v18 = vsel %vm1917_vm8, %v3396_v37, %v1754_v25  ;;  %v2082_v25 = vld [vmem:[#allocation2 + $0x18] sm:$0xff] }
 0x174   : > { %3333 = vmatmul.msk.bf16.gmra.mxu0 %vm2153_vm10, %v2026_v54  ;;  %v2098_v37 = vld [vmem:[#allocation2 + $0x98] sm:$0xff] }
 0x177   : > { %v1738_v8 = vpop.permute.xlu0 %1737  ;;  %v2271_v26 = vpop.f32.mrf.mxu1 }
 0x178   : > { %v2407_v43 = vadd.f32 %v2271_v26, %v2095_v28  ;;  %v2313_v40 = vpop.f32.mrf.mxu2  ;;  %v1986_v12 = vsel %vm1917_vm8, %v3388_v29, %v1738_v8  ;;  %v2097_v28 = vld [vmem:[#allocation2 + $0x90] sm:$0xff] }
 0x179   : > { %v1880_v51 = vpop.permute.xlu2 %1879  ;;  %v2424_v59 = vadd.f32 %v2313_v40, %v2112_v27 }
 0x17a   : > { %v2042_v33 = vsel %vm2014_vm9, %v1959_v50, %v1880_v51  ;;  %2472 = vst.msk [vmem:[#allocation2 + $0x80] sm:$0xff] %vm2455_vm11, %v2407_v43  ;;  %v2351_v60 = vpop.f32.mrf.mxu3  ;;  %v3397_v50 = vld [vmem:[%s3509_s23 + $0x174] sm:$0xff] }
 0x17b   : > { %3341 = vmatmul.msk.bf16.gmra.mxu1 %vm2153_vm10, %v2042_v33  ;;  %2489 = vst.msk [vmem:[#allocation2 + $0x108] sm:$0xff] %vm2455_vm11, %v2424_v59  ;;  %v2439_v0 = vadd.f32 %v2351_v60, %v2127_v21  ;;  %v3373_v60 = vld [vmem:[%s3509_s23 + $0x54] sm:$0xff] }
 0x17d   : > { %2504 = vst.msk [vmem:[#allocation2 + $0x180] sm:$0xff] %vm2455_vm11, %v2439_v0  ;;  %v2131_v0 = vld [vmem:[#allocation2 + $0x1a0] sm:$0xff] }
 0x17f   : > { %v2273_v61 = vpop.f32.mrf.mxu1 }
 0x180   : > { %v1914_v24 = vpop.permute.xlu0 %1913  ;;  %v2408_v44 = vadd.f32 %v2273_v61, %v2096_v4  ;;  %v3381_v4 = vld [vmem:[%s3509_s23 + $0xb4] sm:$0xff] }
 0x181   : > { %v1898_v13 = vpop.permute.xlu2 %1897  ;;  %v1706_v17 = vpop.permute.xlu1 %1705  ;;  %v2076_v19 = vsel %vm2014_vm9, %v2010_v18, %v1914_v24 }
 0x182   : > { %v2060_v38 = vsel %vm2014_vm9, %v1986_v12, %v1898_v13  ;;  %3358 = vmatmul.msk.bf16.gmra.mxu3 %vm2153_vm10, %v2076_v19  ;;  %2473 = vst.msk [vmem:[#allocation2 + $0x88] sm:$0xff] %vm2455_vm11, %v2408_v44  ;;  %v2353_v41 = vpop.f32.mrf.mxu3  ;;  %v1938_v3 = vsel %vm1917_vm8, %v3372_v6, %v1706_v17  ;;  %v2115_v13 = vld [vmem:[#allocation2 + $0x120] sm:$0xff]  ;;  %v2132_v6 = vld [vmem:[#allocation2 + $0x1a8] sm:$0xff] }
 0x183   : > { %3350 = vmatmul.msk.bf16.gmra.mxu2 %vm2153_vm10, %v2060_v38  ;;  %v2231_v15 = vpop.f32.mrf.mxu0  ;;  %v2440_v23 = vadd.f32 %v2353_v41, %v2128_v1  ;;  %v2083_v41 = vld [vmem:[#allocation2 + $0x20] sm:$0xff] }
 0x184   : > { %v2391_v20 = vadd.f32 %v2231_v15, %v2079_v62 }
 0x185   : > { %2505 = vst.msk [vmem:[#allocation2 + $0x188] sm:$0xff] %vm2455_vm11, %v2440_v23 }
 0x186   : > { %2456 = vst.msk [vmem:[#allocation2] sm:$0xff] %vm2455_vm11, %v2391_v20 }
 0x189   : > { %v1882_v63 = vpop.permute.xlu1 %1881 }
 0x18b   : > { %v2233_v35 = vpop.f32.mrf.mxu0  ;;  %v2316_v47 = vpop.f32.mrf.mxu2 }
 0x18c   : > { %v1722_v56 = vpop.permute.xlu2 %1721  ;;  %v1866_v36 = vpop.permute.xlu0 %1865  ;;  %v2392_v57 = vadd.f32 %v2233_v35, %v2080_v16  ;;  %v2425_v55 = vadd.f32 %v2316_v47, %v2113_v5  ;;  %v2084_v35 = vld [vmem:[#allocation2 + $0x28] sm:$0xff] }
 0x18d   : > { %v1962_v49 = vsel %vm1917_vm8, %v3380_v34, %v1722_v56  ;;  %v2028_v11 = vsel %vm2014_vm9, %v1938_v3, %v1866_v36  ;;  %v2116_v3 = vld [vmem:[#allocation2 + $0x128] sm:$0xff] }
 0x18e   : > { %v2044_v42 = vsel %vm2014_vm9, %v1962_v49, %v1882_v63  ;;  %3334 = vmatmul.msk.bf16.gmra.mxu0 %vm2153_vm10, %v2028_v11  ;;  %2457 = vst.msk [vmem:[#allocation2 + $0x8] sm:$0xff] %vm2455_vm11, %v2392_v57  ;;  %v2099_v63 = vld [vmem:[#allocation2 + $0xa0] sm:$0xff]  ;;  %v2117_v11 = vld [vmem:[#allocation2 + $0x130] sm:$0xff] }
 0x18f   : > { %3342 = vmatmul.msk.bf16.gmra.mxu1 %vm2153_vm10, %v2044_v42  ;;  %2490 = vst.msk [vmem:[#allocation2 + $0x110] sm:$0xff] %vm2455_vm11, %v2425_v55  ;;  %v2100_v42 = vld [vmem:[#allocation2 + $0xa8] sm:$0xff] }
 0x191   : > { %v1900_v45 = vpop.permute.xlu1 %1899 }
 0x192   : > { %v2356_v53 = vpop.f32.mrf.mxu3 }
 0x193   : > { %v2441_v9 = vadd.f32 %v2356_v53, %v2129_v46  ;;  %v2318_v7 = vpop.f32.mrf.mxu2  ;;  %v2085_v46 = vld [vmem:[#allocation2 + $0x30] sm:$0xff] }
 0x194   : > { %v2426_v52 = vadd.f32 %v2318_v7, %v2114_v14 }
 0x195   : > { %2506 = vst.msk [vmem:[#allocation2 + $0x190] sm:$0xff] %vm2455_vm11, %v2441_v9  ;;  %v2236_v58 = vpop.f32.mrf.mxu0 }
 0x196   : > { %v2393_v10 = vadd.f32 %v2236_v58, %v2081_v31  ;;  %2491 = vst.msk [vmem:[#allocation2 + $0x118] sm:$0xff] %vm2455_vm11, %v2426_v52  ;;  %v2133_v31 = vld [vmem:[#allocation2 + $0x1b0] sm:$0xff] }
 0x198   : > { %2458 = vst.msk [vmem:[#allocation2 + $0x10] sm:$0xff] %vm2455_vm11, %v2393_v10 }
 0x199   : > { %v1756_v39 = vpop.permute.xlu0 %1755 }
 0x19a   : > { %v1740_v2 = vpop.permute.xlu2 %1739  ;;  %v2358_v32 = vpop.f32.mrf.mxu3  ;;  %v2013_v21 = vsel %vm1917_vm8, %v3397_v50, %v1756_v39  ;;  %v2086_v39 = vld [vmem:[#allocation2 + $0x38] sm:$0xff] }
 0x19b   : > { %v1989_v54 = vsel %vm1917_vm8, %v3389_v48, %v1740_v2  ;;  %v2442_v22 = vadd.f32 %v2358_v32, %v2130_v30  ;;  %v2118_v30 = vld [vmem:[#allocation2 + $0x138] sm:$0xff] }
 0x19c   : > { %v2062_v27 = vsel %vm2014_vm9, %v1989_v54, %v1900_v45  ;;  %v2101_v45 = vld [vmem:[#allocation2 + $0xb0] sm:$0xff] }
 0x19d   : > { %3351 = vmatmul.msk.bf16.gmra.mxu2 %vm2153_vm10, %v2062_v27  ;;  %2507 = vst.msk [vmem:[#allocation2 + $0x198] sm:$0xff] %vm2455_vm11, %v2442_v22  ;;  %v2276_v8 = vpop.f32.mrf.mxu1  ;;  %v2238_v26 = vpop.f32.mrf.mxu0  ;;  %v2134_v22 = vld [vmem:[#allocation2 + $0x1b8] sm:$0xff] }
 0x19e   : > { %v2409_v43 = vadd.f32 %v2276_v8, %v2097_v28  ;;  %v2394_v40 = vadd.f32 %v2238_v26, %v2082_v25  ;;  %v2119_v26 = vld [vmem:[#allocation2 + $0x140] sm:$0xff] }
 0x1a0   : > { %2474 = vst.msk [vmem:[#allocation2 + $0x90] sm:$0xff] %vm2455_vm11, %v2409_v43  ;;  %v2102_v43 = vld [vmem:[#allocation2 + $0xb8] sm:$0xff] }
 0x1a1   : > { %v1708_v51 = vpop.permute.xlu0 %1707  ;;  %2459 = vst.msk [vmem:[#allocation2 + $0x18] sm:$0xff] %vm2455_vm11, %v2394_v40 }
 0x1a2   : > { %v1916_v59 = vpop.permute.xlu2 %1915  ;;  %v1941_v61 = vsel %vm1917_vm8, %v3373_v60, %v1708_v51  ;;  %v2087_v60 = vld [vmem:[#allocation2 + $0x40] sm:$0xff] }
 0x1a3   : > { %v2078_v33 = vsel %vm2014_vm9, %v2013_v21, %v1916_v59 }
 0x1a4   : > { %3359 = vmatmul.msk.bf16.gmra.mxu3 %vm2153_vm10, %v2078_v33  ;;  %v2135_v33 = vld [vmem:[#allocation2 + $0x1c0] sm:$0xff] }
 0x1a5   : > { %v2278_v29 = vpop.f32.mrf.mxu1 }
 0x1a6   : > { %v2410_v18 = vadd.f32 %v2278_v29, %v2098_v37 }
 0x1a7   : > { %v2361_v12 = vpop.f32.mrf.mxu3 }
 0x1a8   : > { %2475 = vst.msk [vmem:[#allocation2 + $0x98] sm:$0xff] %vm2455_vm11, %v2410_v18  ;;  %v2443_v24 = vadd.f32 %v2361_v12, %v2131_v0  ;;  %v2103_v12 = vld [vmem:[#allocation2 + $0xc0] sm:$0xff] }
 0x1a9   : > { %v1724_v44 = vpop.permute.xlu1 %1723  ;;  %v1884_v1 = vpop.permute.xlu0 %1883 }
 0x1aa   : > { %v1868_v17 = vpop.permute.xlu2 %1867  ;;  %v1965_v19 = vsel %vm1917_vm8, %v3381_v4, %v1724_v44  ;;  %2508 = vst.msk [vmem:[#allocation2 + $0x1a0] sm:$0xff] %vm2455_vm11, %v2443_v24  ;;  %v2120_v4 = vld [vmem:[#allocation2 + $0x148] sm:$0xff] }
 0x1ab   : > { %v2030_v62 = vsel %vm2014_vm9, %v1941_v61, %v1868_v17  ;;  %v2046_v38 = vsel %vm2014_vm9, %v1965_v19, %v1884_v1  ;;  %v2321_v15 = vpop.f32.mrf.mxu2  ;;  %v2136_v1 = vld [vmem:[#allocation2 + $0x1c8] sm:$0xff] }
 0x1ac   : > { %3335 = vmatmul.msk.bf16.gmra.mxu0 %vm2153_vm10, %v2030_v62  ;;  %3343 = vmatmul.msk.bf16.gmra.mxu1 %vm2153_vm10, %v2046_v38  ;;  %v2427_v23 = vadd.f32 %v2321_v15, %v2115_v13  ;;  %v2088_v19 = vld [vmem:[#allocation2 + $0x48] sm:$0xff] }
 0x1ad   : > { %v2241_v20 = vpop.f32.mrf.mxu0  ;;  %v2104_v15 = vld [vmem:[#allocation2 + $0xc8] sm:$0xff] }
 0x1ae   : > { %v2395_v34 = vadd.f32 %v2241_v20, %v2083_v41  ;;  %2492 = vst.msk [vmem:[#allocation2 + $0x120] sm:$0xff] %vm2455_vm11, %v2427_v23 }
 0x1af   : > { %v2363_v16 = vpop.f32.mrf.mxu3 }
 0x1b0   : > { %2460 = vst.msk [vmem:[#allocation2 + $0x20] sm:$0xff] %vm2455_vm11, %v2395_v34  ;;  %v2444_v5 = vadd.f32 %v2363_v16, %v2132_v6  ;;  %v2121_v6 = vld [vmem:[#allocation2 + $0x150] sm:$0xff] }
 0x1b2   : > { %2509 = vst.msk [vmem:[#allocation2 + $0x1a8] sm:$0xff] %vm2455_vm11, %v2444_v5  ;;  %v2122_v5 = vld [vmem:[#allocation2 + $0x158] sm:$0xff] }
 0x1b3   : > { %v2323_v47 = vpop.f32.mrf.mxu2 }
 0x1b4   : > { %v2428_v56 = vadd.f32 %v2323_v47, %v2116_v3  ;;  %v2137_v3 = vld [vmem:[#allocation2 + $0x1d0] sm:$0xff] }
 0x1b5   : > { %v2281_v36 = vpop.f32.mrf.mxu1  ;;  %v2243_v57 = vpop.f32.mrf.mxu0 }
 0x1b6   : > { %v2411_v55 = vadd.f32 %v2281_v36, %v2099_v63  ;;  %v2396_v49 = vadd.f32 %v2243_v57, %v2084_v35  ;;  %2493 = vst.msk [vmem:[#allocation2 + $0x128] sm:$0xff] %vm2455_vm11, %v2428_v56  ;;  %v2089_v36 = vld [vmem:[#allocation2 + $0x50] sm:$0xff]  ;;  %v2138_v57 = vld [vmem:[#allocation2 + $0x1d8] sm:$0xff] }
 0x1b8   : > { %2476 = vst.msk [vmem:[#allocation2 + $0xa0] sm:$0xff] %vm2455_vm11, %v2411_v55 }
 0x1b9   : > { %2461 = vst.msk [vmem:[#allocation2 + $0x28] sm:$0xff] %vm2455_vm11, %v2396_v49 }
 0x1bb   : > { %v2326_v14 = vpop.f32.mrf.mxu2 }
 0x1bc   : > { %v2429_v9 = vadd.f32 %v2326_v14, %v2117_v11  ;;  %v2090_v14 = vld [vmem:[#allocation2 + $0x58] sm:$0xff] }
 0x1bd   : > { %v2283_v53 = vpop.f32.mrf.mxu1  ;;  %v2246_v7 = vpop.f32.mrf.mxu0 }
 0x1be   : > { %v2412_v52 = vadd.f32 %v2283_v53, %v2100_v42  ;;  %v2397_v58 = vadd.f32 %v2246_v7, %v2085_v46  ;;  %2494 = vst.msk [vmem:[#allocation2 + $0x130] sm:$0xff] %vm2455_vm11, %v2429_v9  ;;  %v2366_v10 = vpop.f32.mrf.mxu3  ;;  %v2105_v46 = vld [vmem:[#allocation2 + $0xd0] sm:$0xff] }
 0x1bf   : > { %v2445_v48 = vadd.f32 %v2366_v10, %v2133_v31 }
 0x1c0   : > { %2477 = vst.msk [vmem:[#allocation2 + $0xa8] sm:$0xff] %vm2455_vm11, %v2412_v52  ;;  %v2106_v52 = vld [vmem:[#allocation2 + $0xd8] sm:$0xff] }
 0x1c1   : > { %2462 = vst.msk [vmem:[#allocation2 + $0x30] sm:$0xff] %vm2455_vm11, %v2397_v58 }
 0x1c2   : > { %2510 = vst.msk [vmem:[#allocation2 + $0x1b0] sm:$0xff] %vm2455_vm11, %v2445_v48  ;;  %v2139_v48 = vld [vmem:[#allocation2 + $0x1e0] sm:$0xff] }
 0x1c3   : > { %v2328_v2 = vpop.f32.mrf.mxu2 }
 0x1c4   : > { %v2430_v54 = vadd.f32 %v2328_v2, %v2118_v30  ;;  %v2123_v30 = vld [vmem:[#allocation2 + $0x160] sm:$0xff] }
 0x1c5   : > { %v2286_v32 = vpop.f32.mrf.mxu1  ;;  %v2248_v28 = vpop.f32.mrf.mxu0 }
 0x1c6   : > { %v2413_v25 = vadd.f32 %v2286_v32, %v2101_v45  ;;  %v2398_v27 = vadd.f32 %v2248_v28, %v2086_v39  ;;  %2495 = vst.msk [vmem:[#allocation2 + $0x138] sm:$0xff] %vm2455_vm11, %v2430_v54  ;;  %v2368_v50 = vpop.f32.mrf.mxu3  ;;  %v2091_v54 = vld [vmem:[#allocation2 + $0x60] sm:$0xff] }
 0x1c7   : > { %v2446_v8 = vadd.f32 %v2368_v50, %v2134_v22  ;;  %v2107_v22 = vld [vmem:[#allocation2 + $0xe0] sm:$0xff]  ;;  %v2124_v50 = vld [vmem:[#allocation2 + $0x168] sm:$0xff] }
 0x1c8   : > { %2478 = vst.msk [vmem:[#allocation2 + $0xb0] sm:$0xff] %vm2455_vm11, %v2413_v25  ;;  %v2140_v25 = vld [vmem:[#allocation2 + $0x1e8] sm:$0xff] }
 0x1c9   : > { %2463 = vst.msk [vmem:[#allocation2 + $0x38] sm:$0xff] %vm2455_vm11, %v2398_v27 }
 0x1ca   : > { %2511 = vst.msk [vmem:[#allocation2 + $0x1b8] sm:$0xff] %vm2455_vm11, %v2446_v8 }
 0x1cc   : > { %v2331_v40 = vpop.f32.mrf.mxu2 }
 0x1cd   : > { %v2288_v21 = vpop.f32.mrf.mxu1  ;;  %v2431_v51 = vadd.f32 %v2331_v40, %v2119_v26 }
 0x1ce   : > { %v2414_v59 = vadd.f32 %v2288_v21, %v2102_v43 }
 0x1cf   : > { %2496 = vst.msk [vmem:[#allocation2 + $0x140] sm:$0xff] %vm2455_vm11, %v2431_v51 }
 0x1d0   : > { %2479 = vst.msk [vmem:[#allocation2 + $0xb8] sm:$0xff] %vm2455_vm11, %v2414_v59  ;;  %v2371_v37 = vpop.f32.mrf.mxu3  ;;  %v2092_v59 = vld [vmem:[#allocation2 + $0x68] sm:$0xff] }
 0x1d1   : > { %v2447_v29 = vadd.f32 %v2371_v37, %v2135_v33  ;;  %v2108_v33 = vld [vmem:[#allocation2 + $0xe8] sm:$0xff] }
 0x1d2   : > { %v2251_v0 = vpop.f32.mrf.mxu0 }
 0x1d3   : > { %2512 = vst.msk [vmem:[#allocation2 + $0x1c0] sm:$0xff] %vm2455_vm11, %v2447_v29  ;;  %v2399_v18 = vadd.f32 %v2251_v0, %v2087_v60 }
 0x1d4   : > { %v2333_v61 = vpop.f32.mrf.mxu2 }
 0x1d5   : > { %2464 = vst.msk [vmem:[#allocation2 + $0x40] sm:$0xff] %vm2455_vm11, %v2399_v18  ;;  %v2432_v24 = vadd.f32 %v2333_v61, %v2120_v4  ;;  %v2291_v44 = vpop.f32.mrf.mxu1  ;;  %v2125_v4 = vld [vmem:[#allocation2 + $0x170] sm:$0xff] }
 0x1d6   : > { %v2415_v13 = vadd.f32 %v2291_v44, %v2103_v12  ;;  %v2141_v61 = vld [vmem:[#allocation2 + $0x1f0] sm:$0xff] }
 0x1d7   : > { %2497 = vst.msk [vmem:[#allocation2 + $0x148] sm:$0xff] %vm2455_vm11, %v2432_v24  ;;  %v2126_v24 = vld [vmem:[#allocation2 + $0x178] sm:$0xff] }
 0x1d8   : > { %v2373_v17 = vpop.f32.mrf.mxu3  ;;  %2480 = vst.msk [vmem:[#allocation2 + $0xc0] sm:$0xff] %vm2455_vm11, %v2415_v13  ;;  %v2109_v13 = vld [vmem:[#allocation2 + $0xf0] sm:$0xff] }
 0x1d9   : > { %v2448_v62 = vadd.f32 %v2373_v17, %v2136_v1  ;;  %v2093_v1 = vld [vmem:[#allocation2 + $0x70] sm:$0xff] }
 0x1da   : > { %v2253_v38 = vpop.f32.mrf.mxu0 }
 0x1db   : > { %2513 = vst.msk [vmem:[#allocation2 + $0x1c8] sm:$0xff] %vm2455_vm11, %v2448_v62  ;;  %v2400_v41 = vadd.f32 %v2253_v38, %v2088_v19 }
 0x1dd   : > { %2465 = vst.msk [vmem:[#allocation2 + $0x48] sm:$0xff] %vm2455_vm11, %v2400_v41  ;;  %v2293_v23 = vpop.f32.mrf.mxu1 }
 0x1de   : > { %v2416_v20 = vadd.f32 %v2293_v23, %v2104_v15 }
 0x1e0   : > { %2481 = vst.msk [vmem:[#allocation2 + $0xc8] sm:$0xff] %vm2455_vm11, %v2416_v20  ;;  %v2142_v20 = vld [vmem:[#allocation2 + $0x1f8] sm:$0xff] }
 0x1e1   : > { %v2336_v34 = vpop.f32.mrf.mxu2 }
 0x1e2   : > { %v2433_v16 = vadd.f32 %v2336_v34, %v2121_v6  ;;  %v2094_v34 = vld [vmem:[#allocation2 + $0x78] sm:$0xff] }
 0x1e4   : > { %2498 = vst.msk [vmem:[#allocation2 + $0x150] sm:$0xff] %vm2455_vm11, %v2433_v16  ;;  %v2110_v16 = vld [vmem:[#allocation2 + $0xf8] sm:$0xff] }
 0x1e9   : > { %v2338_v63 = vpop.f32.mrf.mxu2 }
 0x1ea   : > { %v2376_v35 = vpop.f32.mrf.mxu3  ;;  %v2434_v47 = vadd.f32 %v2338_v63, %v2122_v5 }
 0x1eb   : > { %v2449_v56 = vadd.f32 %v2376_v35, %v2137_v3 }
 0x1ec   : > { %2499 = vst.msk [vmem:[#allocation2 + $0x158] sm:$0xff] %vm2455_vm11, %v2434_v47 }
 0x1ed   : > { %2514 = vst.msk [vmem:[#allocation2 + $0x1d0] sm:$0xff] %vm2455_vm11, %v2449_v56 }
 0x1f1   : > { %v2256_v55 = vpop.f32.mrf.mxu0 }
 0x1f2   : > { %v2401_v49 = vadd.f32 %v2256_v55, %v2089_v36  ;;  %v2378_v11 = vpop.f32.mrf.mxu3 }
 0x1f3   : > { %v2450_v42 = vadd.f32 %v2378_v11, %v2138_v57 }
 0x1f4   : > { %2466 = vst.msk [vmem:[#allocation2 + $0x50] sm:$0xff] %vm2455_vm11, %v2401_v49 }
 0x1f5   : > { %2515 = vst.msk [vmem:[#allocation2 + $0x1d8] sm:$0xff] %vm2455_vm11, %v2450_v42 }
 0x1f8   : > { %v2296_v53 = vpop.f32.mrf.mxu1 }
 0x1f9   : > { %v2417_v9 = vadd.f32 %v2296_v53, %v2105_v46  ;;  %v2258_v31 = vpop.f32.mrf.mxu0 }
 0x1fa   : > { %v2402_v7 = vadd.f32 %v2258_v31, %v2090_v14 }
 0x1fb   : > { %2482 = vst.msk [vmem:[#allocation2 + $0xd0] sm:$0xff] %vm2455_vm11, %v2417_v9 }
 0x1fc   : > { %2467 = vst.msk [vmem:[#allocation2 + $0x58] sm:$0xff] %vm2455_vm11, %v2402_v7 }
 0x200   : > { %v2298_v58 = vpop.f32.mrf.mxu1 }
 0x201   : > { %v2418_v10 = vadd.f32 %v2298_v58, %v2106_v52 }
 0x203   : > { %2483 = vst.msk [vmem:[#allocation2 + $0xd8] sm:$0xff] %vm2455_vm11, %v2418_v10 }
 0x205   : > { %v2381_v45 = vpop.f32.mrf.mxu3 }
 0x206   : > { %v2341_v39 = vpop.f32.mrf.mxu2  ;;  %v2451_v2 = vadd.f32 %v2381_v45, %v2139_v48 }
 0x207   : > { %v2435_v32 = vadd.f32 %v2341_v39, %v2123_v30 }
 0x208   : > { %2516 = vst.msk [vmem:[#allocation2 + $0x1e0] sm:$0xff] %vm2455_vm11, %v2451_v2 }
 0x209   : > { %2500 = vst.msk [vmem:[#allocation2 + $0x160] sm:$0xff] %vm2455_vm11, %v2435_v32 }
 0x20b   : > { %v2261_v28 = vpop.f32.mrf.mxu0 }
 0x20c   : > { %v2301_v27 = vpop.f32.mrf.mxu1  ;;  %v2403_v8 = vadd.f32 %v2261_v28, %v2091_v54 }
 0x20d   : > { %v2419_v26 = vadd.f32 %v2301_v27, %v2107_v22  ;;  %v2383_v43 = vpop.f32.mrf.mxu3 }
 0x20e   : > { %v2343_v40 = vpop.f32.mrf.mxu2  ;;  %2468 = vst.msk [vmem:[#allocation2 + $0x60] sm:$0xff] %vm2455_vm11, %v2403_v8  ;;  %v2452_v21 = vadd.f32 %v2383_v43, %v2140_v25 }
 0x20f   : > { %2484 = vst.msk [vmem:[#allocation2 + $0xe0] sm:$0xff] %vm2455_vm11, %v2419_v26  ;;  %v2436_v51 = vadd.f32 %v2343_v40, %v2124_v50 }
 0x210   : > { %2517 = vst.msk [vmem:[#allocation2 + $0x1e8] sm:$0xff] %vm2455_vm11, %v2452_v21 }
 0x211   : > { %2501 = vst.msk [vmem:[#allocation2 + $0x168] sm:$0xff] %vm2455_vm11, %v2436_v51 }
 0x213   : > { %v2263_v37 = vpop.f32.mrf.mxu0 }
 0x214   : > { %v2303_v60 = vpop.f32.mrf.mxu1  ;;  %v2404_v29 = vadd.f32 %v2263_v37, %v2092_v59 }
 0x215   : > { %v2420_v0 = vadd.f32 %v2303_v60, %v2108_v33 }
 0x216   : > { %2469 = vst.msk [vmem:[#allocation2 + $0x68] sm:$0xff] %vm2455_vm11, %v2404_v29 }
 0x217   : > { %2485 = vst.msk [vmem:[#allocation2 + $0xe8] sm:$0xff] %vm2455_vm11, %v2420_v0 }
 0x220   : > { %v2346_v18 = vpop.f32.mrf.mxu2 }
 0x221   : > { %v2437_v12 = vadd.f32 %v2346_v18, %v2125_v4 }
 0x223   : > { %2502 = vst.msk [vmem:[#allocation2 + $0x170] sm:$0xff] %vm2455_vm11, %v2437_v12 }
 0x227   : > { %v2386_v44 = vpop.f32.mrf.mxu3 }
 0x228   : > { %v2453_v17 = vadd.f32 %v2386_v44, %v2141_v61  ;;  %v2348_v19 = vpop.f32.mrf.mxu2 }
 0x229   : > { %v2266_v62 = vpop.f32.mrf.mxu0  ;;  %v2438_v38 = vadd.f32 %v2348_v19, %v2126_v24  ;;  %v2306_v41 = vpop.f32.mrf.mxu1 }
 0x22a   : > { %2518 = vst.msk [vmem:[#allocation2 + $0x1f0] sm:$0xff] %vm2455_vm11, %v2453_v17  ;;  %v2405_v15 = vadd.f32 %v2266_v62, %v2093_v1  ;;  %v2421_v23 = vadd.f32 %v2306_v41, %v2109_v13 }
 0x22b   : > { %2503 = vst.msk [vmem:[#allocation2 + $0x178] sm:$0xff] %vm2455_vm11, %v2438_v38 }
 0x22c   : > { %2470 = vst.msk [vmem:[#allocation2 + $0x70] sm:$0xff] %vm2455_vm11, %v2405_v15 }
 0x22d   : > { %2486 = vst.msk [vmem:[#allocation2 + $0xf0] sm:$0xff] %vm2455_vm11, %v2421_v23 }
 0x22f   : > { %v2388_v6 = vpop.f32.mrf.mxu3 }
 0x230   : > { %v2454_v5 = vadd.f32 %v2388_v6, %v2142_v20 }
 0x231   : > { %v2268_v3 = vpop.f32.mrf.mxu0  ;;  %v2308_v63 = vpop.f32.mrf.mxu1  ;;  %2523 = sbr.rel (%p3360_p6) target bundleno = 714 (0x2ca), region = 40 }
 0x232   : > { %2519 = vst.msk [vmem:[#allocation2 + $0x1f8] sm:$0xff] %vm2455_vm11, %v2454_v5  ;;  %v2406_v35 = vadd.f32 %v2268_v3, %v2094_v34  ;;  %v2422_v47 = vadd.f32 %v2308_v63, %v2110_v16 }
 0x234   : > { %2471 = vst.msk [vmem:[#allocation2 + $0x78] sm:$0xff] %vm2455_vm11, %v2406_v35 }
 0x235   : > { %2487 = vst.msk [vmem:[#allocation2 + $0xf8] sm:$0xff] %vm2455_vm11, %v2422_v47 }
 0x236   : > { %v2524_v56 = vld [vmem:[#allocation2] sm:$0xff]  ;;  %v2525_v57 = vld [vmem:[#allocation2 + $0x8] sm:$0xff]  ;;  %v2526_v55 = vld [vmem:[#allocation2 + $0x10] sm:$0xff]  ;;  %vm3050_vm12 = vcmask 1040384   ;;  %vm3052_vm13 = vcmask 1041408  }
 0x237   : > { %v4747_v36 = vld [vmem:[%s5470_s2] ss:$0 sm:$0xff]  ;;  %v2527_v49 = vld [vmem:[#allocation2 + $0x18] sm:$0xff]  ;;  %v2529_v9 = vld [vmem:[#allocation2 + $0x28] sm:$0xff] }
 0x238   : > { %v2592_v11 = vadd.f32 %v4747_v36, %v2524_v56  ;;  %v2593_v42 = vadd.f32 %v4747_v36, %v2525_v57  ;;  %v2594_v46 = vadd.f32 %v4747_v36, %v2526_v55  ;;  %v2595_v14 = vadd.f32 %v4747_v36, %v2527_v49  ;;  %v2528_v53 = vld [vmem:[#allocation2 + $0x20] sm:$0xff]  ;;  %v2530_v31 = vld [vmem:[#allocation2 + $0x30] sm:$0xff]  ;;  %v2531_v43 = vld [vmem:[#allocation2 + $0x38] sm:$0xff] }
 0x239   : > { %v2596_v7 = vadd.f32 %v4747_v36, %v2528_v53  ;;  %v2597_v52 = vadd.f32 %v4747_v36, %v2529_v9  ;;  %v2598_v32 = vadd.f32 %v4747_v36, %v2530_v31  ;;  %v2532_v40 = vld [vmem:[#allocation2 + $0x40] sm:$0xff]  ;;  %v2533_v29 = vld [vmem:[#allocation2 + $0x48] sm:$0xff]  ;;  %v2599_v18 = vadd.f32 %v4747_v36, %v2531_v43  ;;  %v2534_v61 = vld [vmem:[#allocation2 + $0x50] sm:$0xff] }
 0x23a   : > { %2656 = vst.msk [vmem:[%s5471_s3] sm:$0xff] %vm2455_vm11, %v2592_v11  ;;  %v2720_v58 = vsel %vm2455_vm11, %v2592_v11, 0.0  ;;  %v2853_v10 = vmul.f32 %v2592_v11, %v2592_v11  ;;  %v2721_v48 = vsel %vm2455_vm11, %v2593_v42, 0.0  ;;  %v2854_v30 = vmul.f32 %v2593_v42, %v2593_v42  ;;  %v2535_v62 = vld [vmem:[#allocation2 + $0x58] sm:$0xff]  ;;  %v2536_v23 = vld [vmem:[#allocation2 + $0x60] sm:$0xff]  ;;  %v2537_v16 = vld [vmem:[#allocation2 + $0x68] sm:$0xff] }
 0x23b   : > { %2657 = vst.msk [vmem:[%s5471_s3 + $0x8] sm:$0xff] %vm2455_vm11, %v2593_v42  ;;  %v2722_v45 = vadd.f32 %v2721_v48, %v2720_v58  ;;  %v2723_v39 = vsel %vm2455_vm11, %v2594_v46, 0.0  ;;  %v2855_v2 = vmul.f32 %v2594_v46, %v2594_v46  ;;  %v2725_v28 = vsel %vm2455_vm11, %v2595_v14, 0.0  ;;  %v2538_v35 = vld [vmem:[#allocation2 + $0x70] sm:$0xff] }
 0x23c   : > { %v2917_v54 = vsel %vm2455_vm11, %v2853_v10, 0.0  ;;  %v2918_v22 = vsel %vm2455_vm11, %v2854_v30, 0.0  ;;  %2658 = vst.msk [vmem:[%s5471_s3 + $0x10] sm:$0xff] %vm2455_vm11, %v2594_v46  ;;  %v2856_v25 = vmul.f32 %v2595_v14, %v2595_v14  ;;  %v2857_v26 = vmul.f32 %v2596_v7, %v2596_v7  ;;  %v2539_v46 = vld [vmem:[#allocation2 + $0x78] sm:$0xff]  ;;  %v2541_v10 = vld [vmem:[#allocation2 + $0x88] sm:$0xff] }
 0x23d   : > { %v2919_v27 = vadd.f32 %v2918_v22, %v2917_v54  ;;  %v2724_v50 = vadd.f32 %v2723_v39, %v2722_v45  ;;  %v2920_v8 = vsel %vm2455_vm11, %v2855_v2, 0.0  ;;  %2659 = vst.msk [vmem:[%s5471_s3 + $0x18] sm:$0xff] %vm2455_vm11, %v2595_v14  ;;  %v2727_v51 = vsel %vm2455_vm11, %v2596_v7, 0.0  ;;  %v2542_v2 = vld [vmem:[#allocation2 + $0x90] sm:$0xff] }
 0x23e   : > { %v2922_v21 = vsel %vm2455_vm11, %v2856_v25, 0.0  ;;  %2660 = vst.msk [vmem:[%s5471_s3 + $0x20] sm:$0xff] %vm2455_vm11, %v2596_v7  ;;  %v2858_v59 = vmul.f32 %v2597_v52, %v2597_v52  ;;  %v2729_v60 = vsel %vm2455_vm11, %v2597_v52, 0.0  ;;  %v2924_v0 = vsel %vm2455_vm11, %v2857_v26, 0.0  ;;  %v2540_v7 = vld [vmem:[#allocation2 + $0x80] sm:$0xff] }
 0x23f   : > { %v2921_v33 = vadd.f32 %v2920_v8, %v2919_v27  ;;  %v2726_v37 = vadd.f32 %v2725_v28, %v2724_v50  ;;  %2661 = vst.msk [vmem:[%s5471_s3 + $0x28] sm:$0xff] %vm2455_vm11, %v2597_v52  ;;  %v2859_v4 = vmul.f32 %v2598_v32, %v2598_v32  ;;  %v2600_v12 = vadd.f32 %v4747_v36, %v2532_v40  ;;  %v2543_v40 = vld [vmem:[#allocation2 + $0x98] sm:$0xff] }
 0x240   : > { %2662 = vst.msk [vmem:[%s5471_s3 + $0x30] sm:$0xff] %vm2455_vm11, %v2598_v32  ;;  %v2926_v1 = vsel %vm2455_vm11, %v2858_v59, 0.0  ;;  %v2731_v13 = vsel %vm2455_vm11, %v2598_v32, 0.0  ;;  %v2860_v17 = vmul.f32 %v2599_v18, %v2599_v18  ;;  %v2601_v19 = vadd.f32 %v4747_v36, %v2533_v29  ;;  %v2545_v29 = vld [vmem:[#allocation2 + $0xa8] sm:$0xff] }
 0x241   : > { %v2923_v24 = vadd.f32 %v2922_v21, %v2921_v33  ;;  %v2728_v44 = vadd.f32 %v2727_v51, %v2726_v37  ;;  %2663 = vst.msk [vmem:[%s5471_s3 + $0x38] sm:$0xff] %vm2455_vm11, %v2599_v18  ;;  %v2602_v15 = vadd.f32 %v4747_v36, %v2534_v61  ;;  %v2928_v20 = vsel %vm2455_vm11, %v2859_v4, 0.0  ;;  %v2544_v33 = vld [vmem:[#allocation2 + $0xa0] sm:$0xff]  ;;  %v2546_v61 = vld [vmem:[#allocation2 + $0xb0] sm:$0xff] }
 0x242   : > { %2664 = vst.msk [vmem:[%s5471_s3 + $0x40] sm:$0xff] %vm2455_vm11, %v2600_v12  ;;  %v2733_v6 = vsel %vm2455_vm11, %v2599_v18, 0.0  ;;  %v2861_v34 = vmul.f32 %v2600_v12, %v2600_v12  ;;  %v2603_v63 = vadd.f32 %v4747_v36, %v2535_v62  ;;  %v2930_v47 = vsel %vm2455_vm11, %v2860_v17, 0.0 }
 0x243   : > { %v2925_v38 = vadd.f32 %v2924_v0, %v2923_v24  ;;  %v2730_v41 = vadd.f32 %v2729_v60, %v2728_v44  ;;  %2665 = vst.msk [vmem:[%s5471_s3 + $0x48] sm:$0xff] %vm2455_vm11, %v2601_v19  ;;  %v2735_v56 = vsel %vm2455_vm11, %v2600_v12, 0.0  ;;  %v2862_v57 = vmul.f32 %v2601_v19, %v2601_v19 }
 0x244   : > { %2666 = vst.msk [vmem:[%s5471_s3 + $0x50] sm:$0xff] %vm2455_vm11, %v2602_v15  ;;  %v2604_v55 = vadd.f32 %v4747_v36, %v2536_v23  ;;  %v2605_v42 = vadd.f32 %v4747_v36, %v2537_v16  ;;  %v2932_v14 = vsel %vm2455_vm11, %v2861_v34, 0.0  ;;  %v2737_v53 = vsel %vm2455_vm11, %v2601_v19, 0.0 }
 0x245   : > { %v2927_v5 = vadd.f32 %v2926_v1, %v2925_v38  ;;  %v2732_v3 = vadd.f32 %v2731_v13, %v2730_v41  ;;  %2667 = vst.msk [vmem:[%s5471_s3 + $0x58] sm:$0xff] %vm2455_vm11, %v2603_v63  ;;  %v2863_v9 = vmul.f32 %v2602_v15, %v2602_v15  ;;  %v2606_v31 = vadd.f32 %v4747_v36, %v2538_v35  ;;  %v2547_v38 = vld [vmem:[#allocation2 + $0xb8] sm:$0xff] }
 0x246   : > { %2668 = vst.msk [vmem:[%s5471_s3 + $0x60] sm:$0xff] %vm2455_vm11, %v2604_v55  ;;  %v2934_v48 = vsel %vm2455_vm11, %v2862_v57, 0.0  ;;  %v2739_v30 = vsel %vm2455_vm11, %v2602_v15, 0.0  ;;  %v2864_v45 = vmul.f32 %v2603_v63, %v2603_v63  ;;  %v2607_v39 = vadd.f32 %v4747_v36, %v2539_v46 }
 0x247   : > { %v2929_v49 = vadd.f32 %v2928_v20, %v2927_v5  ;;  %v2734_v11 = vadd.f32 %v2733_v6, %v2732_v3  ;;  %2669 = vst.msk [vmem:[%s5471_s3 + $0x68] sm:$0xff] %vm2455_vm11, %v2605_v42  ;;  %v2608_v22 = vadd.f32 %v4747_v36, %v2540_v7  ;;  %v2936_v28 = vsel %vm2455_vm11, %v2863_v9, 0.0  ;;  %v2548_v20 = vld [vmem:[#allocation2 + $0xc0] sm:$0xff]  ;;  %v2549_v5 = vld [vmem:[#allocation2 + $0xc8] sm:$0xff] }
 0x248   : > { %2670 = vst.msk [vmem:[%s5471_s3 + $0x70] sm:$0xff] %vm2455_vm11, %v2606_v31  ;;  %v2741_v25 = vsel %vm2455_vm11, %v2603_v63, 0.0  ;;  %v2865_v27 = vmul.f32 %v2604_v55, %v2604_v55  ;;  %v2609_v50 = vadd.f32 %v4747_v36, %v2541_v10  ;;  %v2610_v43 = vadd.f32 %v4747_v36, %v2542_v2 }
 0x249   : > { %v2931_v52 = vadd.f32 %v2930_v47, %v2929_v49  ;;  %v2736_v58 = vadd.f32 %v2735_v56, %v2734_v11  ;;  %2671 = vst.msk [vmem:[%s5471_s3 + $0x78] sm:$0xff] %vm2455_vm11, %v2607_v39  ;;  %v2938_v21 = vsel %vm2455_vm11, %v2864_v45, 0.0  ;;  %v2743_v51 = vsel %vm2455_vm11, %v2604_v55, 0.0  ;;  %v2550_v47 = vld [vmem:[#allocation2 + $0xd0] sm:$0xff] }
 0x24a   : > { %2672 = vst.msk [vmem:[%s5471_s3 + $0x80] sm:$0xff] %vm2455_vm11, %v2608_v22  ;;  %v2866_v59 = vmul.f32 %v2605_v42, %v2605_v42  ;;  %v2940_v0 = vsel %vm2455_vm11, %v2865_v27, 0.0  ;;  %v2745_v4 = vsel %vm2455_vm11, %v2605_v42, 0.0  ;;  %v2867_v18 = vmul.f32 %v2606_v31, %v2606_v31 }
 0x24b   : > { %v2933_v32 = vadd.f32 %v2932_v14, %v2931_v52  ;;  %v2738_v54 = vadd.f32 %v2737_v53, %v2736_v58  ;;  %2673 = vst.msk [vmem:[%s5471_s3 + $0x88] sm:$0xff] %vm2455_vm11, %v2609_v50  ;;  %v2611_v12 = vadd.f32 %v4747_v36, %v2543_v40  ;;  %v2612_v1 = vadd.f32 %v4747_v36, %v2544_v33  ;;  %v2551_v14 = vld [vmem:[#allocation2 + $0xd8] sm:$0xff]  ;;  %v2552_v52 = vld [vmem:[#allocation2 + $0xe0] sm:$0xff] }
 0x24c   : > { %2674 = vst.msk [vmem:[%s5471_s3 + $0x90] sm:$0xff] %vm2455_vm11, %v2610_v43  ;;  %v2942_v13 = vsel %vm2455_vm11, %v2866_v59, 0.0  ;;  %v2747_v17 = vsel %vm2455_vm11, %v2606_v31, 0.0  ;;  %v2868_v19 = vmul.f32 %v2607_v39, %v2607_v39  ;;  %v4880_v62 = vadd.f32 %v4747_v36, %v2545_v29 }
 0x24d   : > { %v2935_v8 = vadd.f32 %v2934_v48, %v2933_v32  ;;  %v2740_v26 = vadd.f32 %v2739_v30, %v2738_v54  ;;  %2675 = vst.msk [vmem:[%s5471_s3 + $0x98] sm:$0xff] %vm2455_vm11, %v2611_v12  ;;  %v4887_v23 = vadd.f32 %v4747_v36, %v2546_v61  ;;  %v2944_v6 = vsel %vm2455_vm11, %v2867_v18, 0.0  ;;  %v2553_v48 = vld [vmem:[#allocation2 + $0xe8] sm:$0xff]  ;;  %v2554_v32 = vld [vmem:[#allocation2 + $0xf0] sm:$0xff] }
 0x24e   : > { %2676 = vst.msk [vmem:[%s5471_s3 + $0xa0] sm:$0xff] %vm2455_vm11, %v2612_v1  ;;  %v2749_v34 = vsel %vm2455_vm11, %v2607_v39, 0.0  ;;  %v2869_v16 = vmul.f32 %v2608_v22, %v2608_v22  ;;  %v4902_v35 = vadd.f32 %v4747_v36, %v2547_v38  ;;  %v2946_v56 = vsel %vm2455_vm11, %v2868_v19, 0.0 }
 0x24f   : > { %v2937_v37 = vadd.f32 %v2936_v28, %v2935_v8  ;;  %v2742_v60 = vadd.f32 %v2741_v25, %v2740_v26  ;;  %2677 = vst.msk [vmem:[%s5471_s3 + $0xa8] sm:$0xff] %vm2455_vm11, %v4880_v62  ;;  %v2751_v57 = vsel %vm2455_vm11, %v2608_v22, 0.0  ;;  %v2870_v55 = vmul.f32 %v2609_v50, %v2609_v50 }
 0x250   : > { %2678 = vst.msk [vmem:[%s5471_s3 + $0xb0] sm:$0xff] %vm2455_vm11, %v4887_v23  ;;  %v4907_v49 = vadd.f32 %v4747_v36, %v2548_v20  ;;  %v4915_v46 = vadd.f32 %v4747_v36, %v2549_v5  ;;  %v2948_v53 = vsel %vm2455_vm11, %v2869_v16, 0.0  ;;  %v2753_v9 = vsel %vm2455_vm11, %v2609_v50, 0.0 }
 0x251   : > { %v2939_v24 = vadd.f32 %v2938_v21, %v2937_v37  ;;  %v2744_v44 = vadd.f32 %v2743_v51, %v2742_v60  ;;  %2679 = vst.msk [vmem:[%s5471_s3 + $0xb8] sm:$0xff] %vm2455_vm11, %v4902_v35  ;;  %v2871_v31 = vmul.f32 %v2610_v43, %v2610_v43  ;;  %v4925_v7 = vadd.f32 %v4747_v36, %v2550_v47  ;;  %v2555_v21 = vld [vmem:[#allocation2 + $0xf8] sm:$0xff]  ;;  %v2556_v37 = vld [vmem:[#allocation2 + $0x100] sm:$0xff] }
 0x252   : > { %2680 = vst.msk [vmem:[%s5471_s3 + $0xc0] sm:$0xff] %vm2455_vm11, %v4907_v49  ;;  %v2950_v30 = vsel %vm2455_vm11, %v2870_v55, 0.0  ;;  %v2755_v45 = vsel %vm2455_vm11, %v2610_v43, 0.0  ;;  %v2872_v39 = vmul.f32 %v2611_v12, %v2611_v12  ;;  %v4940_v2 = vadd.f32 %v4747_v36, %v2551_v14 }
 0x253   : > { %v2941_v41 = vadd.f32 %v2940_v0, %v2939_v24  ;;  %v2746_v15 = vadd.f32 %v2745_v4, %v2744_v44  ;;  %2681 = vst.msk [vmem:[%s5471_s3 + $0xc8] sm:$0xff] %vm2455_vm11, %v4915_v46  ;;  %v4943_v28 = vadd.f32 %v4747_v36, %v2552_v52  ;;  %v2952_v25 = vsel %vm2455_vm11, %v2871_v31, 0.0  ;;  %v2557_v0 = vld [vmem:[#allocation2 + $0x108] sm:$0xff]  ;;  %v2558_v24 = vld [vmem:[#allocation2 + $0x110] sm:$0xff]  ;;  %v2563_v31 = vld [vmem:[#allocation2 + $0x138] sm:$0xff] }
 0x254   : > { %2682 = vst.msk [vmem:[%s5471_s3 + $0xd0] sm:$0xff] %vm2455_vm11, %v4925_v7  ;;  %v2757_v27 = vsel %vm2455_vm11, %v2611_v12, 0.0  ;;  %v2873_v50 = vmul.f32 %v2612_v1, %v2612_v1  ;;  %v4953_v8 = vadd.f32 %v4747_v36, %v2553_v48  ;;  %v4961_v40 = vadd.f32 %v4747_v36, %v2554_v32  ;;  %v2564_v48 = vld [vmem:[#allocation2 + $0x140] sm:$0xff] }
 0x255   : > { %v2943_v3 = vadd.f32 %v2942_v13, %v2941_v41  ;;  %v2748_v63 = vadd.f32 %v2747_v17, %v2746_v15  ;;  %2683 = vst.msk [vmem:[%s5471_s3 + $0xd8] sm:$0xff] %vm2455_vm11, %v4940_v2  ;;  %v2954_v51 = vsel %vm2455_vm11, %v2872_v39, 0.0  ;;  %v2759_v59 = vsel %vm2455_vm11, %v2612_v1, 0.0  ;;  %v2559_v41 = vld [vmem:[#allocation2 + $0x118] sm:$0xff] }
 0x256   : > { %2684 = vst.msk [vmem:[%s5471_s3 + $0xe0] sm:$0xff] %vm2455_vm11, %v4943_v28  ;;  %v2874_v33 = vmul.f32 %v4880_v62, %v4880_v62  ;;  %v2956_v4 = vsel %vm2455_vm11, %v2873_v50, 0.0  ;;  %v2761_v18 = vsel %vm2455_vm11, %v4880_v62, 0.0  ;;  %v2875_v12 = vmul.f32 %v4887_v23, %v4887_v23 }
 0x257   : > { %v2945_v11 = vadd.f32 %v2944_v6, %v2943_v3  ;;  %v2750_v42 = vadd.f32 %v2749_v34, %v2748_v63  ;;  %2685 = vst.msk [vmem:[%s5471_s3 + $0xe8] sm:$0xff] %vm2455_vm11, %v4953_v8  ;;  %v4983_v61 = vadd.f32 %v4747_v36, %v2555_v21  ;;  %v4986_v13 = vadd.f32 %v4747_v36, %v2556_v37  ;;  %v2560_v6 = vld [vmem:[#allocation2 + $0x120] sm:$0xff]  ;;  %v2561_v3 = vld [vmem:[#allocation2 + $0x128] sm:$0xff]  ;;  %v2567_v37 = vld [vmem:[#allocation2 + $0x158] sm:$0xff] }
 0x258   : > { %2686 = vst.msk [vmem:[%s5471_s3 + $0xf0] sm:$0xff] %vm2455_vm11, %v4961_v40  ;;  %v2958_v17 = vsel %vm2455_vm11, %v2874_v33, 0.0  ;;  %v2763_v19 = vsel %vm2455_vm11, %v4887_v23, 0.0  ;;  %v2876_v62 = vmul.f32 %v4902_v35, %v4902_v35  ;;  %v4999_v38 = vadd.f32 %v4747_v36, %v2557_v0 }
 0x259   : > { %v2947_v58 = vadd.f32 %v2946_v56, %v2945_v11  ;;  %v2752_v10 = vadd.f32 %v2751_v57, %v2750_v42  ;;  %2687 = vst.msk [vmem:[%s5471_s3 + $0xf8] sm:$0xff] %vm2455_vm11, %v4983_v61  ;;  %v5007_v23 = vadd.f32 %v4747_v36, %v2558_v24  ;;  %v2960_v34 = vsel %vm2455_vm11, %v2875_v12, 0.0  ;;  %v2562_v56 = vld [vmem:[#allocation2 + $0x130] sm:$0xff]  ;;  %v2569_v24 = vld [vmem:[#allocation2 + $0x168] sm:$0xff] }
 0x25a   : > { %2688 = vst.msk [vmem:[%s5471_s3 + $0x100] sm:$0xff] %vm2455_vm11, %v4986_v13  ;;  %v2765_v16 = vsel %vm2455_vm11, %v4902_v35, 0.0  ;;  %v2877_v5 = vmul.f32 %v4907_v49, %v4907_v49  ;;  %v5025_v35 = vadd.f32 %v4747_v36, %v2559_v41  ;;  %v2962_v57 = vsel %vm2455_vm11, %v2876_v62, 0.0 }
 0x25b   : > { %v2949_v54 = vadd.f32 %v2948_v53, %v2947_v58  ;;  %v2754_v22 = vadd.f32 %v2753_v9, %v2752_v10  ;;  %2689 = vst.msk [vmem:[%s5471_s3 + $0x108] sm:$0xff] %vm2455_vm11, %v4999_v38  ;;  %v2767_v55 = vsel %vm2455_vm11, %v4907_v49, 0.0  ;;  %v2878_v11 = vmul.f32 %v4915_v46, %v4915_v46 }
 0x25c   : > { %2690 = vst.msk [vmem:[%s5471_s3 + $0x110] sm:$0xff] %vm2455_vm11, %v5007_v23  ;;  %v5033_v42 = vadd.f32 %v4747_v36, %v2560_v6  ;;  %v5041_v9 = vadd.f32 %v4747_v36, %v2561_v3  ;;  %v2964_v49 = vsel %vm2455_vm11, %v2877_v5, 0.0  ;;  %v2769_v52 = vsel %vm2455_vm11, %v4915_v46, 0.0  ;;  %v2565_v46 = vld [vmem:[#allocation2 + $0x148] sm:$0xff] }
 0x25d   : > { %v2951_v26 = vadd.f32 %v2950_v30, %v2949_v54  ;;  %v2756_v43 = vadd.f32 %v2755_v45, %v2754_v22  ;;  %2691 = vst.msk [vmem:[%s5471_s3 + $0x118] sm:$0xff] %vm2455_vm11, %v5025_v35  ;;  %v2879_v58 = vmul.f32 %v4925_v7, %v4925_v7  ;;  %v5054_v10 = vadd.f32 %v4747_v36, %v2562_v56 }
 0x25e   : > { %2692 = vst.msk [vmem:[%s5471_s3 + $0x120] sm:$0xff] %vm2455_vm11, %v5033_v42  ;;  %v2966_v39 = vsel %vm2455_vm11, %v2878_v11, 0.0  ;;  %v2771_v32 = vsel %vm2455_vm11, %v4925_v7, 0.0  ;;  %v2880_v54 = vmul.f32 %v4940_v2, %v4940_v2  ;;  %v5072_v22 = vadd.f32 %v4747_v36, %v2563_v31 }
 0x25f   : > { %v2953_v60 = vadd.f32 %v2952_v25, %v2951_v26  ;;  %v2758_v29 = vadd.f32 %v2757_v27, %v2756_v43  ;;  %2693 = vst.msk [vmem:[%s5471_s3 + $0x128] sm:$0xff] %vm2455_vm11, %v5041_v9  ;;  %v2566_v25 = vld [vmem:[#allocation2 + $0x150] sm:$0xff]  ;;  %v5075_v26 = vadd.f32 %v4747_v36, %v2564_v48  ;;  %v2968_v7 = vsel %vm2455_vm11, %v2879_v58, 0.0 }
 0x260   : > { %2694 = vst.msk [vmem:[%s5471_s3 + $0x130] sm:$0xff] %vm2455_vm11, %v5054_v10  ;;  %v2773_v43 = vsel %vm2455_vm11, %v4940_v2, 0.0  ;;  %v2881_v21 = vmul.f32 %v4943_v28, %v4943_v28  ;;  %v5096_v2 = vadd.f32 %v4747_v36, %v2566_v25  ;;  %v2882_v0 = vmul.f32 %v4953_v8, %v4953_v8 }
 0x261   : > { %v2955_v44 = vadd.f32 %v2954_v51, %v2953_v60  ;;  %v2760_v1 = vadd.f32 %v2759_v59, %v2758_v29  ;;  %2695 = vst.msk [vmem:[%s5471_s3 + $0x138] sm:$0xff] %vm2455_vm11, %v5072_v22  ;;  %v5088_v51 = vadd.f32 %v4747_v36, %v2565_v46  ;;  %v2970_v60 = vsel %vm2455_vm11, %v2880_v54, 0.0  ;;  %v2574_v54 = vld [vmem:[#allocation2 + $0x190] sm:$0xff] }
 0x262   : > { %2696 = vst.msk [vmem:[%s5471_s3 + $0x140] sm:$0xff] %vm2455_vm11, %v5075_v26  ;;  %v2775_v29 = vsel %vm2455_vm11, %v4943_v28, 0.0  ;;  %v2972_v28 = vsel %vm2455_vm11, %v2881_v21, 0.0  ;;  %v2779_v6 = vsel %vm2455_vm11, %v4961_v40, 0.0  ;;  %v2886_v31 = vmul.f32 %v4999_v38, %v4999_v38  ;;  %v2575_v21 = vld [vmem:[#allocation2 + $0x198] sm:$0xff] }
 0x263   : > { %v2957_v15 = vadd.f32 %v2956_v4, %v2955_v44  ;;  %v2762_v20 = vadd.f32 %v2761_v18, %v2760_v1  ;;  %2697 = vst.msk [vmem:[%s5471_s3 + $0x148] sm:$0xff] %vm2455_vm11, %v5088_v51  ;;  %v2568_v4 = vld [vmem:[#allocation2 + $0x160] sm:$0xff]  ;;  %v2777_v44 = vsel %vm2455_vm11, %v4953_v8, 0.0  ;;  %v2883_v1 = vmul.f32 %v4961_v40, %v4961_v40  ;;  %v2571_v40 = vld [vmem:[#allocation2 + $0x178] sm:$0xff] }
 0x264   : > { %2698 = vst.msk [vmem:[%s5471_s3 + $0x150] sm:$0xff] %vm2455_vm11, %v5096_v2  ;;  %v5122_v41 = vadd.f32 %v4747_v36, %v2568_v4  ;;  %v2884_v8 = vmul.f32 %v4983_v61, %v4983_v61  ;;  %v5156_v11 = vadd.f32 %v4747_v36, %v2571_v40  ;;  %v2982_v25 = vsel %vm2455_vm11, %v2886_v31, 0.0 }
 0x265   : > { %v2959_v63 = vadd.f32 %v2958_v17, %v2957_v15  ;;  %v2764_v47 = vadd.f32 %v2763_v19, %v2762_v20  ;;  %v5119_v17 = vadd.f32 %v4747_v36, %v2567_v37  ;;  %v2570_v15 = vld [vmem:[#allocation2 + $0x170] sm:$0xff]  ;;  %v2974_v20 = vsel %vm2455_vm11, %v2882_v0, 0.0  ;;  %v2576_v0 = vld [vmem:[#allocation2 + $0x1a0] sm:$0xff] }
 0x266   : > { %2700 = vst.msk [vmem:[%s5471_s3 + $0x160] sm:$0xff] %vm2455_vm11, %v5122_v41  ;;  %v2976_v3 = vsel %vm2455_vm11, %v2883_v1, 0.0  ;;  %v5153_v56 = vadd.f32 %v4747_v36, %v2570_v15  ;;  %v5213_v37 = vadd.f32 %v4747_v36, %v2575_v21 }
 0x267   : > { %v2961_v14 = vadd.f32 %v2960_v34, %v2959_v63  ;;  %v2766_v53 = vadd.f32 %v2765_v16, %v2764_v47  ;;  %2699 = vst.msk [vmem:[%s5471_s3 + $0x158] sm:$0xff] %vm2455_vm11, %v5119_v17  ;;  %v5135_v34 = vadd.f32 %v4747_v36, %v2569_v24  ;;  %v2781_v63 = vsel %vm2455_vm11, %v4983_v61, 0.0 }
 0x268   : > { %v2885_v47 = vmul.f32 %v4986_v13, %v4986_v13  ;;  %v2978_v61 = vsel %vm2455_vm11, %v2884_v8, 0.0  ;;  %2702 = vst.msk [vmem:[%s5471_s3 + $0x170] sm:$0xff] %vm2455_vm11, %v5153_v56 }
 0x269   : > { %v2963_v30 = vadd.f32 %v2962_v57, %v2961_v14  ;;  %v2768_v45 = vadd.f32 %v2767_v55, %v2766_v53  ;;  %2701 = vst.msk [vmem:[%s5471_s3 + $0x168] sm:$0xff] %vm2455_vm11, %v5135_v34  ;;  %v2572_v14 = vld [vmem:[#allocation2 + $0x180] sm:$0xff]  ;;  %v2783_v53 = vsel %vm2455_vm11, %v4986_v13, 0.0  ;;  %v2573_v13 = vld [vmem:[#allocation2 + $0x188] sm:$0xff] }
 0x26a   : > { %2703 = vst.msk [vmem:[%s5471_s3 + $0x178] sm:$0xff] %vm2455_vm11, %v5156_v11  ;;  %v2980_v48 = vsel %vm2455_vm11, %v2885_v47, 0.0  ;;  %v5187_v46 = vadd.f32 %v4747_v36, %v2573_v13 }
 0x26b   : > { %v2965_v27 = vadd.f32 %v2964_v49, %v2963_v30  ;;  %v2770_v50 = vadd.f32 %v2769_v52, %v2768_v45  ;;  %v5169_v49 = vadd.f32 %v4747_v36, %v2572_v14  ;;  %v2785_v30 = vsel %vm2455_vm11, %v4999_v38, 0.0  ;;  %2707 = vst.msk [vmem:[%s5471_s3 + $0x198] sm:$0xff] %vm2455_vm11, %v5213_v37 }
 0x26c   : > { %v2887_v45 = vmul.f32 %v5007_v23, %v5007_v23  ;;  %v2787_v38 = vsel %vm2455_vm11, %v5007_v23, 0.0  ;;  %2705 = vst.msk [vmem:[%s5471_s3 + $0x188] sm:$0xff] %vm2455_vm11, %v5187_v46  ;;  %v2789_v23 = vsel %vm2455_vm11, %v5025_v35, 0.0 }
 0x26d   : > { %v2967_v59 = vadd.f32 %v2966_v39, %v2965_v27  ;;  %v2772_v33 = vadd.f32 %v2771_v32, %v2770_v50  ;;  %2704 = vst.msk [vmem:[%s5471_s3 + $0x180] sm:$0xff] %vm2455_vm11, %v5169_v49  ;;  %v2888_v27 = vmul.f32 %v5025_v35, %v5025_v35  ;;  %v5200_v50 = vadd.f32 %v4747_v36, %v2574_v54 }
 0x26e   : > { %v2791_v35 = vsel %vm2455_vm11, %v5033_v42, 0.0 }
 0x26f   : > { %v2969_v18 = vadd.f32 %v2968_v7, %v2967_v59  ;;  %v2774_v12 = vadd.f32 %v2773_v43, %v2772_v33  ;;  %v2984_v59 = vsel %vm2455_vm11, %v2887_v45, 0.0  ;;  %v2889_v33 = vmul.f32 %v5033_v42, %v5033_v42  ;;  %2706 = vst.msk [vmem:[%s5471_s3 + $0x190] sm:$0xff] %vm2455_vm11, %v5200_v50 }
 0x270   : > { %v2986_v4 = vsel %vm2455_vm11, %v2888_v27, 0.0  ;;  %v2793_v42 = vsel %vm2455_vm11, %v5041_v9, 0.0 }
 0x271   : > { %v2971_v19 = vadd.f32 %v2970_v60, %v2969_v18  ;;  %v2776_v62 = vadd.f32 %v2775_v29, %v2774_v12  ;;  %v2890_v18 = vmul.f32 %v5041_v9, %v5041_v9  ;;  %v5226_v12 = vadd.f32 %v4747_v36, %v2576_v0 }
 0x272   : > { %v2988_v1 = vsel %vm2455_vm11, %v2889_v33, 0.0  ;;  %v2795_v9 = vsel %vm2455_vm11, %v5054_v10, 0.0 }
 0x273   : > { %v2973_v16 = vadd.f32 %v2972_v28, %v2971_v19  ;;  %v2778_v5 = vadd.f32 %v2777_v44, %v2776_v62  ;;  %v2577_v44 = vld [vmem:[#allocation2 + $0x1a8] sm:$0xff]  ;;  %v2891_v19 = vmul.f32 %v5054_v10, %v5054_v10  ;;  %2708 = vst.msk [vmem:[%s5471_s3 + $0x1a0] sm:$0xff] %vm2455_vm11, %v5226_v12  ;;  %v2990_v8 = vsel %vm2455_vm11, %v2890_v18, 0.0 }
 0x274   : > { %v5239_v62 = vadd.f32 %v4747_v36, %v2577_v44  ;;  %v2797_v10 = vsel %vm2455_vm11, %v5072_v22, 0.0 }
 0x275   : > { %v2975_v57 = vadd.f32 %v2974_v20, %v2973_v16  ;;  %v2780_v55 = vadd.f32 %v2779_v6, %v2778_v5  ;;  %v2578_v6 = vld [vmem:[#allocation2 + $0x1b0] sm:$0xff]  ;;  %v2892_v16 = vmul.f32 %v5072_v22, %v5072_v22  ;;  %v2992_v47 = vsel %vm2455_vm11, %v2891_v19, 0.0 }
 0x276   : > { %2709 = vst.msk [vmem:[%s5471_s3 + $0x1a8] sm:$0xff] %vm2455_vm11, %v5239_v62  ;;  %v5252_v5 = vadd.f32 %v4747_v36, %v2578_v6  ;;  %v2799_v22 = vsel %vm2455_vm11, %v5075_v26, 0.0 }
 0x277   : > { %v2977_v52 = vadd.f32 %v2976_v3, %v2975_v57  ;;  %v2782_v58 = vadd.f32 %v2781_v63, %v2780_v55  ;;  %v2579_v63 = vld [vmem:[#allocation2 + $0x1b8] sm:$0xff]  ;;  %v2893_v57 = vmul.f32 %v5075_v26, %v5075_v26  ;;  %v2994_v31 = vsel %vm2455_vm11, %v2892_v16, 0.0 }
 0x278   : > { %2710 = vst.msk [vmem:[%s5471_s3 + $0x1b0] sm:$0xff] %vm2455_vm11, %v5252_v5  ;;  %v5265_v55 = vadd.f32 %v4747_v36, %v2579_v63  ;;  %v2801_v26 = vsel %vm2455_vm11, %v5088_v51, 0.0 }
 0x279   : > { %v2979_v39 = vadd.f32 %v2978_v61, %v2977_v52  ;;  %v2784_v32 = vadd.f32 %v2783_v53, %v2782_v58  ;;  %v2580_v53 = vld [vmem:[#allocation2 + $0x1c0] sm:$0xff]  ;;  %v2894_v52 = vmul.f32 %v5088_v51, %v5088_v51  ;;  %v2996_v45 = vsel %vm2455_vm11, %v2893_v57, 0.0 }
 0x27a   : > { %2711 = vst.msk [vmem:[%s5471_s3 + $0x1b8] sm:$0xff] %vm2455_vm11, %v5265_v55  ;;  %v5278_v58 = vadd.f32 %v4747_v36, %v2580_v53  ;;  %v2803_v51 = vsel %vm2455_vm11, %v5096_v2, 0.0 }
 0x27b   : > { %v2981_v7 = vadd.f32 %v2980_v48, %v2979_v39  ;;  %v2786_v43 = vadd.f32 %v2785_v30, %v2784_v32  ;;  %v2581_v30 = vld [vmem:[#allocation2 + $0x1c8] sm:$0xff]  ;;  %v2895_v39 = vmul.f32 %v5096_v2, %v5096_v2  ;;  %v2998_v27 = vsel %vm2455_vm11, %v2894_v52, 0.0 }
 0x27c   : > { %2712 = vst.msk [vmem:[%s5471_s3 + $0x1c0] sm:$0xff] %vm2455_vm11, %v5278_v58  ;;  %v5291_v32 = vadd.f32 %v4747_v36, %v2581_v30  ;;  %v2805_v2 = vsel %vm2455_vm11, %v5119_v17, 0.0  ;;  %v2815_v52 = vsel %vm2455_vm11, %v5169_v49, 0.0  ;;  %v2817_v30 = vsel %vm2455_vm11, %v5187_v46, 0.0 }
 0x27d   : > { %v2983_v60 = vadd.f32 %v2982_v25, %v2981_v7  ;;  %v2788_v29 = vadd.f32 %v2787_v38, %v2786_v43  ;;  %v2582_v38 = vld [vmem:[#allocation2 + $0x1d0] sm:$0xff]  ;;  %v2896_v7 = vmul.f32 %v5119_v17, %v5119_v17  ;;  %v3000_v33 = vsel %vm2455_vm11, %v2895_v39, 0.0 }
 0x27e   : > { %2713 = vst.msk [vmem:[%s5471_s3 + $0x1c8] sm:$0xff] %vm2455_vm11, %v5291_v32  ;;  %v5304_v43 = vadd.f32 %v4747_v36, %v2582_v38  ;;  %v2807_v17 = vsel %vm2455_vm11, %v5122_v41, 0.0 }
 0x27f   : > { %v2985_v24 = vadd.f32 %v2984_v59, %v2983_v60  ;;  %v2790_v28 = vadd.f32 %v2789_v23, %v2788_v29  ;;  %v2583_v23 = vld [vmem:[#allocation2 + $0x1d8] sm:$0xff]  ;;  %v2897_v60 = vmul.f32 %v5122_v41, %v5122_v41  ;;  %v3002_v18 = vsel %vm2455_vm11, %v2896_v7, 0.0 }
 0x280   : > { %2714 = vst.msk [vmem:[%s5471_s3 + $0x1d0] sm:$0xff] %vm2455_vm11, %v5304_v43  ;;  %v5317_v29 = vadd.f32 %v4747_v36, %v2583_v23  ;;  %v2809_v41 = vsel %vm2455_vm11, %v5135_v34, 0.0  ;;  %v2905_v7 = vmul.f32 %v5226_v12, %v5226_v12 }
 0x281   : > { %v2987_v15 = vadd.f32 %v2986_v4, %v2985_v24  ;;  %v2792_v20 = vadd.f32 %v2791_v35, %v2790_v28  ;;  %v2584_v35 = vld [vmem:[#allocation2 + $0x1e0] sm:$0xff]  ;;  %v2898_v24 = vmul.f32 %v5135_v34, %v5135_v34  ;;  %v3004_v19 = vsel %vm2455_vm11, %v2897_v60, 0.0 }
 0x282   : > { %2715 = vst.msk [vmem:[%s5471_s3 + $0x1d8] sm:$0xff] %vm2455_vm11, %v5317_v29  ;;  %v5330_v28 = vadd.f32 %v4747_v36, %v2584_v35  ;;  %v2811_v34 = vsel %vm2455_vm11, %v5153_v56, 0.0 }
 0x283   : > { %v2989_v40 = vadd.f32 %v2988_v1, %v2987_v15  ;;  %v2794_v3 = vadd.f32 %v2793_v42, %v2792_v20  ;;  %v2585_v42 = vld [vmem:[#allocation2 + $0x1e8] sm:$0xff]  ;;  %v2899_v15 = vmul.f32 %v5153_v56, %v5153_v56  ;;  %v3006_v16 = vsel %vm2455_vm11, %v2898_v24, 0.0 }
 0x284   : > { %2716 = vst.msk [vmem:[%s5471_s3 + $0x1e0] sm:$0xff] %vm2455_vm11, %v5330_v28  ;;  %v5343_v20 = vadd.f32 %v4747_v36, %v2585_v42  ;;  %v2813_v56 = vsel %vm2455_vm11, %v5156_v11, 0.0  ;;  %v2908_v24 = vmul.f32 %v5265_v55, %v5265_v55 }
 0x285   : > { %v2991_v14 = vadd.f32 %v2990_v8, %v2989_v40  ;;  %v2796_v61 = vadd.f32 %v2795_v9, %v2794_v3  ;;  %v2586_v9 = vld [vmem:[#allocation2 + $0x1f0] sm:$0xff]  ;;  %v2900_v40 = vmul.f32 %v5156_v11, %v5156_v11  ;;  %v3008_v57 = vsel %vm2455_vm11, %v2899_v15, 0.0 }
 0x286   : > { %2717 = vst.msk [vmem:[%s5471_s3 + $0x1e8] sm:$0xff] %vm2455_vm11, %v5343_v20  ;;  %v5356_v3 = vadd.f32 %v4747_v36, %v2586_v9  ;;  %v2902_v11 = vmul.f32 %v5187_v46, %v5187_v46  ;;  %v2821_v46 = vsel %vm2455_vm11, %v5213_v37, 0.0 }
 0x287   : > { %v2993_v13 = vadd.f32 %v2992_v47, %v2991_v14  ;;  %v2798_v48 = vadd.f32 %v2797_v10, %v2796_v61  ;;  %v2587_v10 = vld [vmem:[#allocation2 + $0x1f8] sm:$0xff]  ;;  %v2901_v14 = vmul.f32 %v5169_v49, %v5169_v49 }
 0x288   : > { %2718 = vst.msk [vmem:[%s5471_s3 + $0x1f0] sm:$0xff] %vm2455_vm11, %v5356_v3  ;;  %v5369_v61 = vadd.f32 %v4747_v36, %v2587_v10  ;;  %v3014_v39 = vsel %vm2455_vm11, %v2902_v11, 0.0 }
 0x289   : > { %v2995_v54 = vadd.f32 %v2994_v31, %v2993_v13  ;;  %v2800_v25 = vadd.f32 %v2799_v22, %v2798_v48  ;;  %v3010_v22 = vsel %vm2455_vm11, %v2900_v40, 0.0  ;;  %v3012_v36 = vsel %vm2455_vm11, %v2901_v14, 0.0 }
 0x28a   : > { %2719 = vst.msk [vmem:[%s5471_s3 + $0x1f8] sm:$0xff] %vm2455_vm11, %v5369_v61  ;;  %v2911_v40 = vmul.f32 %v5304_v43, %v5304_v43 }
 0x28b   : > { %v2997_v21 = vadd.f32 %v2996_v45, %v2995_v54  ;;  %v2802_v59 = vadd.f32 %v2801_v26, %v2800_v25  ;;  %v2903_v45 = vmul.f32 %v5200_v50, %v5200_v50  ;;  %v2819_v54 = vsel %vm2455_vm11, %v5200_v50, 0.0 }
 0x28c   : > { %v2904_v25 = vmul.f32 %v5213_v37, %v5213_v37  ;;  %v2823_v50 = vsel %vm2455_vm11, %v5226_v12, 0.0  ;;  %v2825_v37 = vsel %vm2455_vm11, %v5239_v62, 0.0  ;;  %v2827_v12 = vsel %vm2455_vm11, %v5252_v5, 0.0 }
 0x28d   : > { %v2999_v0 = vadd.f32 %v2998_v27, %v2997_v21  ;;  %v2804_v4 = vadd.f32 %v2803_v51, %v2802_v59  ;;  %v3016_v51 = vsel %vm2455_vm11, %v2903_v45, 0.0  ;;  %v2915_v45 = vmul.f32 %v5356_v3, %v5356_v3 }
 0x28e   : > { %v3018_v23 = vsel %vm2455_vm11, %v2904_v25, 0.0 }
 0x28f   : > { %v3001_v44 = vadd.f32 %v3000_v33, %v2999_v0  ;;  %v2806_v1 = vadd.f32 %v2805_v2, %v2804_v4  ;;  %v2906_v33 = vmul.f32 %v5239_v62, %v5239_v62  ;;  %v3020_v0 = vsel %vm2455_vm11, %v2905_v7, 0.0 }
 0x290   : > { %v2907_v4 = vmul.f32 %v5252_v5, %v5252_v5  ;;  %v2829_v62 = vsel %vm2455_vm11, %v5265_v55, 0.0  ;;  %v2831_v5 = vsel %vm2455_vm11, %v5278_v58, 0.0  ;;  %v2833_v55 = vsel %vm2455_vm11, %v5291_v32, 0.0 }
 0x291   : > { %v3003_v6 = vadd.f32 %v3002_v18, %v3001_v44  ;;  %v2808_v8 = vadd.f32 %v2807_v17, %v2806_v1  ;;  %v3022_v17 = vsel %vm2455_vm11, %v2906_v33, 0.0 }
 0x292   : > { %v3024_v42 = vsel %vm2455_vm11, %v2907_v4, 0.0 }
 0x293   : > { %v3005_v63 = vadd.f32 %v3004_v19, %v3003_v6  ;;  %v2810_v47 = vadd.f32 %v2809_v41, %v2808_v8  ;;  %v2909_v19 = vmul.f32 %v5278_v58, %v5278_v58  ;;  %v3026_v6 = vsel %vm2455_vm11, %v2908_v24, 0.0 }
 0x294   : > { %v2910_v8 = vmul.f32 %v5291_v32, %v5291_v32  ;;  %v2835_v58 = vsel %vm2455_vm11, %v5304_v43, 0.0  ;;  %v2837_v32 = vsel %vm2455_vm11, %v5317_v29, 0.0  ;;  %v2839_v43 = vsel %vm2455_vm11, %v5330_v28, 0.0 }
 0x295   : > { %v3007_v53 = vadd.f32 %v3006_v16, %v3005_v63  ;;  %v2812_v31 = vadd.f32 %v2811_v34, %v2810_v47  ;;  %v3028_v34 = vsel %vm2455_vm11, %v2909_v19, 0.0 }
 0x296   : > { %v3030_v10 = vsel %vm2455_vm11, %v2910_v8, 0.0 }
 0x297   : > { %v3009_v13 = vadd.f32 %v3008_v57, %v3007_v53  ;;  %v2814_v48 = vadd.f32 %v2813_v56, %v2812_v31  ;;  %v2912_v57 = vmul.f32 %v5317_v29, %v5317_v29  ;;  %v3032_v53 = vsel %vm2455_vm11, %v2911_v40, 0.0 }
 0x298   : > { %v2913_v31 = vmul.f32 %v5330_v28, %v5330_v28  ;;  %v2841_v29 = vsel %vm2455_vm11, %v5343_v20, 0.0  ;;  %v2843_v28 = vsel %vm2455_vm11, %v5356_v3, 0.0 }
 0x299   : > { %v3011_v49 = vadd.f32 %v3010_v22, %v3009_v13  ;;  %v2816_v26 = vadd.f32 %v2815_v52, %v2814_v48  ;;  %v3034_v11 = vsel %vm2455_vm11, %v2912_v57, 0.0  ;;  %v2914_v13 = vmul.f32 %v5343_v20, %v5343_v20 }
 0x29a   : > { %v2845_v20 = vsel %vm2455_vm11, %v5369_v61, 0.0 }
 0x29b   : > { %v3013_v38 = vadd.f32 %v3012_v36, %v3011_v49  ;;  %v2818_v27 = vadd.f32 %v2817_v30, %v2816_v26  ;;  %v3036_v30 = vsel %vm2455_vm11, %v2913_v31, 0.0 }
 0x29d   : > { %v3015_v21 = vadd.f32 %v3014_v39, %v3013_v38  ;;  %v2820_v59 = vadd.f32 %v2819_v54, %v2818_v27  ;;  %v3038_v39 = vsel %vm2455_vm11, %v2914_v13, 0.0  ;;  %v2916_v54 = vmul.f32 %v5369_v61, %v5369_v61 }
 0x29e   : > { %v3040_v27 = vsel %vm2455_vm11, %v2915_v45, 0.0 }
 0x29f   : > { %v3017_v2 = vadd.f32 %v3016_v51, %v3015_v21  ;;  %v2822_v60 = vadd.f32 %v2821_v46, %v2820_v59  ;;  %v3042_v7 = vsel %vm2455_vm11, %v2916_v54, 0.0 }
 0x2a1   : > { %v3019_v35 = vadd.f32 %v3018_v23, %v3017_v2  ;;  %v2824_v18 = vadd.f32 %v2823_v50, %v2822_v60 }
 0x2a3   : > { %v3021_v44 = vadd.f32 %v3020_v0, %v3019_v35  ;;  %v2826_v1 = vadd.f32 %v2825_v37, %v2824_v18 }
 0x2a5   : > { %v3023_v41 = vadd.f32 %v3022_v17, %v3021_v44  ;;  %v2828_v15 = vadd.f32 %v2827_v12, %v2826_v1 }
 0x2a7   : > { %v3025_v9 = vadd.f32 %v3024_v42, %v3023_v41  ;;  %v2830_v16 = vadd.f32 %v2829_v62, %v2828_v15 }
 0x2a9   : > { %v3027_v63 = vadd.f32 %v3026_v6, %v3025_v9  ;;  %v2832_v47 = vadd.f32 %v2831_v5, %v2830_v16 }
 0x2ab   : > { %v3029_v56 = vadd.f32 %v3028_v34, %v3027_v63  ;;  %v2834_v14 = vadd.f32 %v2833_v55, %v2832_v47 }
 0x2ad   : > { %v3031_v22 = vadd.f32 %v3030_v10, %v3029_v56  ;;  %v2836_v52 = vadd.f32 %v2835_v58, %v2834_v14 }
 0x2af   : > { %v3033_v48 = vadd.f32 %v3032_v53, %v3031_v22  ;;  %v2838_v36 = vadd.f32 %v2837_v32, %v2836_v52 }
 0x2b1   : > { %v3035_v49 = vadd.f32 %v3034_v11, %v3033_v48  ;;  %v2840_v26 = vadd.f32 %v2839_v43, %v2838_v36 }
 0x2b3   : > { %v3037_v25 = vadd.f32 %v3036_v30, %v3035_v49  ;;  %v2842_v38 = vadd.f32 %v2841_v29, %v2840_v26 }
 0x2b5   : > { %v3039_v51 = vadd.f32 %v3038_v39, %v3037_v25  ;;  %v2844_v46 = vadd.f32 %v2843_v28, %v2842_v38 }
 0x2b7   : > { %v3041_v21 = vadd.f32 %v3040_v27, %v3039_v51  ;;  %v2846_v59 = vadd.f32 %v2845_v20, %v2844_v46 }
 0x2b9   : > { %v3043_v23 = vadd.f32 %v3042_v7, %v3041_v21  ;;  %v2847_v50 = vrot.slane %v2846_v59, 4 }
 0x2bb   : > { %v2848_v33 = vadd.f32 %v2847_v50, %v2846_v59  ;;  %v3044_v3 = vrot.slane %v3043_v23, 4 }
 0x2bd   : > { %v2849_v2 = vrot.slane %v2848_v33, 2  ;;  %v3045_v60 = vadd.f32 %v3044_v3, %v3043_v23 }
 0x2bf   : > { %v2850_v0 = vadd.f32 %v2849_v2, %v2848_v33  ;;  %v3046_v37 = vrot.slane %v3045_v60, 2 }
 0x2c1   : > { %v2851_v4 = vrot.slane %v2850_v0, 1  ;;  %v3047_v35 = vadd.f32 %v3046_v37, %v3045_v60 }
 0x2c3   : > { %v2852_v18 = vadd.f32 %v2851_v4, %v2850_v0  ;;  %v3048_v17 = vrot.slane %v3047_v35, 1 }
 0x2c5   : > { %v3049_v61 = vadd.f32 %v3048_v17, %v3047_v35 }
 0x2c7   : > { %v3051_v12 = vsel %vm3050_vm12, %v2852_v18, %v3049_v61 }
 0x2c8   : > { %v3053_v24 = vsel %vm3052_vm13, %v3051_v12, 0.0 }
 0x2c9   : > { %3054 = vst.msk [vmem:[%s5472_s4] sm:$0xff] %vm2455_vm11, %v3053_v24 }
 0x2ca PF: > { %s15_s17 = sadd.s32 1, %s3454_s17   ;;  %s5477_s15 = smov %s3450_s16 }
 0x2cb   : > { %p12_p7 = scmp.ge.s32.totalorder %s15_s17, 5   ;;  %s5478_s16 = smov %s5480_s18 }
 0x2cd   :  { %14 = sbr.rel (!%p12_p7) target bundleno = 2 (0x2), region = 83 }

// kernel: conv_block_forward.6
= control target key start
LH: loop header
LB: loop body
LE: loop exit
PB: predicated region body
PF: predicated region fallthrough
CT: control target
= control target key end

     0   :  { %s3559_s15 = smov 0   ;;  %s3561_s16 = smov 0   ;;  %s5545_s0 = inlined_call_operand.vmem [shape: bf16[3,32,18,32], index: 0, kind: input, shape index: {}]   ;;  %s5546_s1 = inlined_call_operand.vmem [shape: bf16[3,96,32], index: 1, kind: input, shape index: {}]   ;;  %s5547_s2 = inlined_call_operand.vmem [shape: f32[1,32], index: 2, kind: input, shape index: {}]   ;;  %s5548_s3 = inlined_call_operand.vmem [shape: f32[512,32], index: 3, kind: output, shape index: {0}]   ;;  %s5549_s4 = inlined_call_operand.vmem [shape: f32[1,8,32], index: 4, kind: output, shape index: {1}]  }
   0x1   :  { %s3563_s17 = smov 0  }
   0x2 LB: > { %s24_s18 = sadd.s32 1, %s3525_s16  ;;  %p3195_p0 = scmp.ge.s32.totalorder %s3529_s17, 1  ;;  %s3529_s17 = sphi %s3563_s17, %s15_s17   ;;  %s3525_s16 = sphi %s3561_s16, %s5555_s16   ;;  %s3521_s15 = sphi %s3559_s15, %s5554_s15  }
   0x3   : > { %p25_p1 = scmp.ge.s32.totalorder %s24_s18, 3  ;;  %p185_p2 = scmp.lt.s32.totalorder %s3529_s17, 4 }
   0x5   : > { %s5557_s18 = smov (%p25_p1, %s24_s18), 0  ;;  %p186_p3 = pnand %p3195_p0, %p185_p2 }
   0x6   : > { %p221_p4 = scmp.lt.s32.totalorder (!%p186_p3), %s3521_s15, 2  ;;  %p3197_p5 = scmp.ne.s32.totalorder (!%p186_p3), %s3521_s15, 0 }
   0x7   : > { %189 = sbr.rel (%p186_p3) target bundleno = 712 (0x2c8), region = 32 }
   0xc   : > { %s222_s19 = scalar_select %p221_p4, %s3521_s15, 2 }
   0xd   : > { %245 = sbr.rel (%p3197_p5) target bundleno = 83 (0x53), region = 36 }
   0xe   : > { %s3478_s20 = smul.u32 384, %s222_s19 }
  0x10   : > { %s3584_s23 = scalar_lea.vmem %s5545_s0, %s3478_s20 }
  0x12   : > { %vm246_vm0 = vcmask 261120   ;;  %v3531_v0 = vmov 0.0  }
  0x13   : > { %247 = vst.msk [vmem:[#allocation2] sm:$0xff] %vm246_vm0, %v3531_v0 }
  0x14   : > { %248 = vst.msk [vmem:[#allocation2 + $0x8] sm:$0xff] %vm246_vm0, %v3531_v0 }
  0x15   : > { %249 = vst.msk [vmem:[#allocation2 + $0x10] sm:$0xff] %vm246_vm0, %v3531_v0 }
  0x16   : > { %250 = vst.msk [vmem:[#allocation2 + $0x18] sm:$0xff] %vm246_vm0, %v3531_v0 }
  0x17   : > { %251 = vst.msk [vmem:[#allocation2 + $0x20] sm:$0xff] %vm246_vm0, %v3531_v0 }
  0x18   : > { %252 = vst.msk [vmem:[#allocation2 + $0x28] sm:$0xff] %vm246_vm0, %v3531_v0 }
  0x19   : > { %253 = vst.msk [vmem:[#allocation2 + $0x30] sm:$0xff] %vm246_vm0, %v3531_v0 }
  0x1a   : > { %254 = vst.msk [vmem:[#allocation2 + $0x38] sm:$0xff] %vm246_vm0, %v3531_v0 }
  0x1b   : > { %255 = vst.msk [vmem:[#allocation2 + $0x40] sm:$0xff] %vm246_vm0, %v3531_v0 }
  0x1c   : > { %256 = vst.msk [vmem:[#allocation2 + $0x48] sm:$0xff] %vm246_vm0, %v3531_v0 }
  0x1d   : > { %257 = vst.msk [vmem:[#allocation2 + $0x50] sm:$0xff] %vm246_vm0, %v3531_v0 }
  0x1e   : > { %258 = vst.msk [vmem:[#allocation2 + $0x58] sm:$0xff] %vm246_vm0, %v3531_v0 }
  0x1f   : > { %259 = vst.msk [vmem:[#allocation2 + $0x60] sm:$0xff] %vm246_vm0, %v3531_v0 }
  0x20   : > { %260 = vst.msk [vmem:[#allocation2 + $0x68] sm:$0xff] %vm246_vm0, %v3531_v0 }
  0x21   : > { %261 = vst.msk [vmem:[#allocation2 + $0x70] sm:$0xff] %vm246_vm0, %v3531_v0 }
  0x22   : > { %262 = vst.msk [vmem:[#allocation2 + $0x78] sm:$0xff] %vm246_vm0, %v3531_v0 }
  0x23   : > { %263 = vst.msk [vmem:[#allocation2 + $0x80] sm:$0xff] %vm246_vm0, %v3531_v0 }
  0x24   : > { %264 = vst.msk [vmem:[#allocation2 + $0x88] sm:$0xff] %vm246_vm0, %v3531_v0 }
  0x25   : > { %265 = vst.msk [vmem:[#allocation2 + $0x90] sm:$0xff] %vm246_vm0, %v3531_v0 }
  0x26   : > { %266 = vst.msk [vmem:[#allocation2 + $0x98] sm:$0xff] %vm246_vm0, %v3531_v0 }
  0x27   : > { %267 = vst.msk [vmem:[#allocation2 + $0xa0] sm:$0xff] %vm246_vm0, %v3531_v0 }
  0x28   : > { %268 = vst.msk [vmem:[#allocation2 + $0xa8] sm:$0xff] %vm246_vm0, %v3531_v0 }
  0x29   : > { %269 = vst.msk [vmem:[#allocation2 + $0xb0] sm:$0xff] %vm246_vm0, %v3531_v0 }
  0x2a   : > { %270 = vst.msk [vmem:[#allocation2 + $0xb8] sm:$0xff] %vm246_vm0, %v3531_v0 }
  0x2b   : > { %271 = vst.msk [vmem:[#allocation2 + $0xc0] sm:$0xff] %vm246_vm0, %v3531_v0 }
  0x2c   : > { %272 = vst.msk [vmem:[#allocation2 + $0xc8] sm:$0xff] %vm246_vm0, %v3531_v0 }
  0x2d   : > { %273 = vst.msk [vmem:[#allocation2 + $0xd0] sm:$0xff] %vm246_vm0, %v3531_v0 }
  0x2e   : > { %274 = vst.msk [vmem:[#allocation2 + $0xd8] sm:$0xff] %vm246_vm0, %v3531_v0 }
  0x2f   : > { %275 = vst.msk [vmem:[#allocation2 + $0xe0] sm:$0xff] %vm246_vm0, %v3531_v0 }
  0x30   : > { %276 = vst.msk [vmem:[#allocation2 + $0xe8] sm:$0xff] %vm246_vm0, %v3531_v0 }
  0x31   : > { %277 = vst.msk [vmem:[#allocation2 + $0xf0] sm:$0xff] %vm246_vm0, %v3531_v0 }
  0x32   : > { %278 = vst.msk [vmem:[#allocation2 + $0xf8] sm:$0xff] %vm246_vm0, %v3531_v0 }
  0x33   : > { %279 = vst.msk [vmem:[#allocation2 + $0x100] sm:$0xff] %vm246_vm0, %v3531_v0 }
  0x34   : > { %280 = vst.msk [vmem:[#allocation2 + $0x108] sm:$0xff] %vm246_vm0, %v3531_v0 }
  0x35   : > { %281 = vst.msk [vmem:[#allocation2 + $0x110] sm:$0xff] %vm246_vm0, %v3531_v0 }
  0x36   : > { %282 = vst.msk [vmem:[#allocation2 + $0x118] sm:$0xff] %vm246_vm0, %v3531_v0 }
  0x37   : > { %283 = vst.msk [vmem:[#allocation2 + $0x120] sm:$0xff] %vm246_vm0, %v3531_v0 }
  0x38   : > { %284 = vst.msk [vmem:[#allocation2 + $0x128] sm:$0xff] %vm246_vm0, %v3531_v0 }
  0x39   : > { %285 = vst.msk [vmem:[#allocation2 + $0x130] sm:$0xff] %vm246_vm0, %v3531_v0 }
  0x3a   : > { %286 = vst.msk [vmem:[#allocation2 + $0x138] sm:$0xff] %vm246_vm0, %v3531_v0 }
  0x3b   : > { %287 = vst.msk [vmem:[#allocation2 + $0x140] sm:$0xff] %vm246_vm0, %v3531_v0 }
  0x3c   : > { %288 = vst.msk [vmem:[#allocation2 + $0x148] sm:$0xff] %vm246_vm0, %v3531_v0 }
  0x3d   : > { %289 = vst.msk [vmem:[#allocation2 + $0x150] sm:$0xff] %vm246_vm0, %v3531_v0 }
  0x3e   : > { %290 = vst.msk [vmem:[#allocation2 + $0x158] sm:$0xff] %vm246_vm0, %v3531_v0 }
  0x3f   : > { %291 = vst.msk [vmem:[#allocation2 + $0x160] sm:$0xff] %vm246_vm0, %v3531_v0 }
  0x40   : > { %292 = vst.msk [vmem:[#allocation2 + $0x168] sm:$0xff] %vm246_vm0, %v3531_v0 }
  0x41   : > { %293 = vst.msk [vmem:[#allocation2 + $0x170] sm:$0xff] %vm246_vm0, %v3531_v0 }
  0x42   : > { %294 = vst.msk [vmem:[#allocation2 + $0x178] sm:$0xff] %vm246_vm0, %v3531_v0 }
  0x43   : > { %295 = vst.msk [vmem:[#allocation2 + $0x180] sm:$0xff] %vm246_vm0, %v3531_v0 }
  0x44   : > { %296 = vst.msk [vmem:[#allocation2 + $0x188] sm:$0xff] %vm246_vm0, %v3531_v0 }
  0x45   : > { %297 = vst.msk [vmem:[#allocation2 + $0x190] sm:$0xff] %vm246_vm0, %v3531_v0 }
  0x46   : > { %298 = vst.msk [vmem:[#allocation2 + $0x198] sm:$0xff] %vm246_vm0, %v3531_v0 }
  0x47   : > { %299 = vst.msk [vmem:[#allocation2 + $0x1a0] sm:$0xff] %vm246_vm0, %v3531_v0 }
  0x48   : > { %300 = vst.msk [vmem:[#allocation2 + $0x1a8] sm:$0xff] %vm246_vm0, %v3531_v0 }
  0x49   : > { %301 = vst.msk [vmem:[#allocation2 + $0x1b0] sm:$0xff] %vm246_vm0, %v3531_v0 }
  0x4a   : > { %302 = vst.msk [vmem:[#allocation2 + $0x1b8] sm:$0xff] %vm246_vm0, %v3531_v0 }
  0x4b   : > { %303 = vst.msk [vmem:[#allocation2 + $0x1c0] sm:$0xff] %vm246_vm0, %v3531_v0 }
  0x4c   : > { %304 = vst.msk [vmem:[#allocation2 + $0x1c8] sm:$0xff] %vm246_vm0, %v3531_v0 }
  0x4d   : > { %305 = vst.msk [vmem:[#allocation2 + $0x1d0] sm:$0xff] %vm246_vm0, %v3531_v0 }
  0x4e   : > { %306 = vst.msk [vmem:[#allocation2 + $0x1d8] sm:$0xff] %vm246_vm0, %v3531_v0 }
  0x4f   : > { %307 = vst.msk [vmem:[#allocation2 + $0x1e0] sm:$0xff] %vm246_vm0, %v3531_v0 }
  0x50   : > { %308 = vst.msk [vmem:[#allocation2 + $0x1e8] sm:$0xff] %vm246_vm0, %v3531_v0 }
  0x51   : > { %309 = vst.msk [vmem:[#allocation2 + $0x1f0] sm:$0xff] %vm246_vm0, %v3531_v0 }
  0x52   : > { %310 = vst.msk [vmem:[#allocation2 + $0x1f8] sm:$0xff] %vm246_vm0, %v3531_v0 }
  0x53 PF: > { %v359_v1 = vld [vmem:[%s3584_s23 + $0xc0] sm:$0xf]  ;;  %v360_v2 = vld [vmem:[%s3584_s23 + $0xc4] sm:$0xf]  ;;  %v361_v3 = vld [vmem:[%s3584_s23 + $0xc8] sm:$0x1] }
  0x54   : > { %vm1274_vm1 = vcmask 1042432   ;;  %vm1275_vm2 = vcmask 1046532   ;;  %v3214_v4 = vrot.slane %v359_v1, 9  ;;  %v1391_v5 = vrot.slane %v360_v2, 5  ;;  %v383_v13 = vld [vmem:[%s3584_s23 + $0x120] sm:$0xf] }
  0x55   : > { %vm3718_vm3 = vmor %vm1274_vm1, %vm1275_vm2  ;;  %v1394_v7 = vrot.slane %v361_v3, 5  ;;  %vm407_vm4 = vsmask.f32 3328  ;;  %vm408_vm5 = vsmask.f32 7440  ;;  %v795_v8 = vshrl.u32 %v359_v1, 16 }
  0x56   : > { %v1392_v9 = vsel %vm3718_vm3, %v3214_v4, %v1391_v5  ;;  %v1393_v10 = vrot.slane %v1391_v5, 4  ;;  %v798_v11 = vshll.u32 %v359_v1, 16  ;;  %v804_v12 = vshll.u32 %v360_v2, 16  ;;  %v384_v18 = vld [vmem:[%s3584_s23 + $0x124] sm:$0xf]  ;;  %vm3731_vm6 = vmor %vm407_vm4, %vm408_vm5  ;;  %s3532_s24 = smov 64  }
  0x57   : > { %v1789_v14 = vunpack.c.l.b16 %v1392_v9  ;;  %v797_v15 = vrot.slane %v795_v8, 4  ;;  %v808_v16 = vshrl.u32 %v360_v2, 16  ;;  %v814_v17 = vshll.u32 %v361_v3, 16  ;;  %v385_v22 = vld [vmem:[%s3584_s23 + $0x128] sm:$0x1]  ;;  %s3533_s25 = smov 32  }
  0x58   : > { %v1395_v19 = vsel %vm3718_vm3, %v1393_v10, %v1394_v7  ;;  %v800_v20 = vrot.slane %v798_v11, 5  ;;  %v806_v21 = vrot.slane %v804_v12, 5  ;;  %v3222_v23 = vrot.slane %v383_v13, 9  ;;  %v3741_v45 = vld [vmem:[%s3584_s23 + $0x60] sm:$0xf]  ;;  %s3453_s26 = smul.u32 48, %s3521_s15 }
  0x59   : > { %v1790_v24 = vunpack.c.l.b16 %v1395_v19  ;;  %v810_v25 = vrot.slane %v808_v16, 4  ;;  %v816_v26 = vrot.slane %v814_v17, 5  ;;  %v1447_v27 = vrot.slane %v384_v18, 5  ;;  %v3746_v50 = vld [vmem:[%s3584_s23 + $0x64] sm:$0xf]  ;;  %p3415_p6 = scmp.ne.s32.totalorder %s3521_s15, 2 }
  0x5a   : > { %v801_v28 = vor.u32 %v800_v20, %v797_v15  ;;  %v1450_v29 = vrot.slane %v385_v22, 5  ;;  %v987_v30 = vshrl.u32 %v383_v13, 16  ;;  %v990_v31 = vshll.u32 %v383_v13, 16  ;;  %v3749_v51 = vld [vmem:[%s3584_s23 + $0x68] sm:$0x1]  ;;  %s4071_s29 = scalar_lea.vmem %s5546_s1, %s3453_s26 }
  0x5b   : > { %v1837_v32 = vpack.c.b16 %v1790_v24, %v1789_v14  ;;  %v811_v34 = vor.u32 %v810_v25, %v806_v21  ;;  %v1448_v35 = vsel %vm3718_vm3, %v3222_v23, %v1447_v27  ;;  %v1449_v36 = vrot.slane %v1447_v27, 4  ;;  %v3754_v56 = vld [vmem:[%s3584_s23] sm:$0xf]  ;;  %v3757_v57 = vld [vmem:[%s3584_s23 + $0x4] sm:$0xf] }
  0x5c   : > { %v802_v37 = vrot.slane %v801_v28, 4  ;;  %v1805_v38 = vunpack.c.l.b16 %v1448_v35  ;;  %v989_v39 = vrot.slane %v987_v30, 4  ;;  %v992_v40 = vrot.slane %v990_v31, 5  ;;  %v3763_v2 = vld [vmem:[%s3584_s23 + $0x8] sm:$0x1] }
  0x5d   : > { %1885 = vrot.lane.b32.xlu1 %v1837_v32, %s3532_s24  ;;  %v812_v41 = vrot.slane %v811_v34, 4  ;;  %v1451_v42 = vsel %vm3718_vm3, %v1449_v36, %v1450_v29  ;;  %v996_v43 = vshll.u32 %v384_v18, 16  ;;  %v1000_v44 = vshrl.u32 %v384_v18, 16  ;;  %v3770_v8 = vld [vmem:[%s3584_s23 + $0xcc] sm:$0xf] }
  0x5e   : > { %v807_v46 = vsel %vm3731_vm6, %v802_v37, %v806_v21  ;;  %v1806_v47 = vunpack.c.l.b16 %v1451_v42  ;;  %v993_v48 = vor.u32 %v992_v40, %v989_v39  ;;  %v1006_v49 = vshll.u32 %v385_v22, 16  ;;  %v3775_v13 = vld [vmem:[%s3584_s23 + $0xd0] sm:$0xf]  ;;  %v3782_v18 = vld [vmem:[%s3584_s23 + $0xd4] sm:$0x1] }
  0x5f   : > { %v817_v52 = vsel %vm3731_vm6, %v812_v41, %v816_v26  ;;  %v1629_v53 = vunpack.c.l.b16 %v807_v46  ;;  %v998_v54 = vrot.slane %v996_v43, 5  ;;  %v1002_v55 = vrot.slane %v1000_v44, 4  ;;  %v3785_v19 = vld [vmem:[%s3584_s23 + $0x12c] sm:$0xf]  ;;  %v3797_v28 = vld [vmem:[%s3584_s23 + $0x130] sm:$0xf] }
  0x60   : > { %v1630_v58 = vunpack.c.l.b16 %v817_v52  ;;  %v1845_v59 = vpack.c.b16 %v1806_v47, %v1805_v38  ;;  %v994_v60 = vrot.slane %v993_v48, 4  ;;  %v1008_v61 = vrot.slane %v1006_v49, 5  ;;  %v3801_v31 = vld [vmem:[%s3584_s23 + $0x134] sm:$0x1] }
  0x61   : > { %v1003_v62 = vor.u32 %v1002_v55, %v998_v54  ;;  %v3206_v63 = vrot.slane %v3741_v45, 9  ;;  %v1335_v0 = vrot.slane %v3746_v50, 5  ;;  %v1338_v1 = vrot.slane %v3749_v51, 5 }
  0x62   : > { %v1677_v3 = vpack.c.b16 %v1630_v58, %v1629_v53  ;;  %v999_v4 = vsel %vm3731_vm6, %v994_v60, %v998_v54  ;;  %v3198_v5 = vrot.slane %v3754_v56, 9  ;;  %v1279_v7 = vrot.slane %v3757_v57, 5  ;;  %v3817_v60 = vld [vmem:[%s3584_s23 + $0x6c] sm:$0xf] }
  0x63   : > { %v1004_v9 = vrot.slane %v1003_v62, 4  ;;  %v1645_v10 = vunpack.c.l.b16 %v999_v4  ;;  %v1336_v11 = vsel %vm3718_vm3, %v3206_v63, %v1335_v0  ;;  %v1337_v12 = vrot.slane %v1335_v0, 4 }
  0x64   : > { %1725 = vrot.lane.b32.xlu0 %v1677_v3, %s3533_s25  ;;  %v1773_v14 = vunpack.c.l.b16 %v1336_v11  ;;  %v1280_v15 = vsel %vm3718_vm3, %v3198_v5, %v1279_v7  ;;  %v1281_v16 = vrot.slane %v1279_v7, 4  ;;  %v1282_v17 = vrot.slane %v3763_v2, 5  ;;  %v3823_v5 = vld [vmem:[%s3584_s23 + $0x70] sm:$0xf] }
  0x65   : > { %1901 = vrot.lane.b32.xlu1 %v1845_v59, %s3532_s24  ;;  %v1009_v20 = vsel %vm3731_vm6, %v1004_v9, %v1008_v61  ;;  %v1339_v21 = vsel %vm3718_vm3, %v1337_v12, %v1338_v1  ;;  %v1757_v22 = vunpack.c.l.b16 %v1280_v15  ;;  %v3215_v23 = vrot.slane %v3770_v8, 9 }
  0x66   : > { %v1646_v24 = vunpack.c.l.b16 %v1009_v20  ;;  %v1774_v25 = vunpack.c.l.b16 %v1339_v21  ;;  %v1283_v26 = vsel %vm3718_vm3, %v1281_v16, %v1282_v17  ;;  %v1398_v27 = vrot.slane %v3775_v13, 5 }
  0x67   : > { %v1758_v29 = vunpack.c.l.b16 %v1283_v26  ;;  %v1401_v30 = vrot.slane %v3782_v18, 5  ;;  %v1011_v32 = vshrl.u32 %v3785_v19, 16  ;;  %v1014_v34 = vshll.u32 %v3785_v19, 16  ;;  %v3838_v26 = vld [vmem:[%s3584_s23 + $0xc] sm:$0xf] }
  0x68   : > { %v1685_v35 = vpack.c.b16 %v1646_v24, %v1645_v10  ;;  %v1829_v36 = vpack.c.b16 %v1774_v25, %v1773_v14  ;;  %v1399_v37 = vsel %vm3718_vm3, %v3215_v23, %v1398_v27  ;;  %v1400_v38 = vrot.slane %v1398_v27, 4  ;;  %v3828_v10 = vld [vmem:[%s3584_s23 + $0x74] sm:$0x1] }
  0x69   : > { %v1821_v39 = vpack.c.b16 %v1758_v29, %v1757_v22  ;;  %v1791_v40 = vunpack.c.l.b16 %v1399_v37  ;;  %v1013_v41 = vrot.slane %v1011_v32, 4  ;;  %v1016_v42 = vrot.slane %v1014_v34, 5  ;;  %v3843_v34 = vld [vmem:[%s3584_s23 + $0x10] sm:$0xf] }
  0x6a   : > { %v1402_v43 = vsel %vm3718_vm3, %v1400_v38, %v1401_v30  ;;  %v1020_v44 = vshll.u32 %v3797_v28, 16  ;;  %v1024_v46 = vshrl.u32 %v3797_v28, 16  ;;  %v1030_v47 = vshll.u32 %v3801_v31, 16 }
  0x6b   : > { %v1792_v48 = vunpack.c.l.b16 %v1402_v43  ;;  %v1017_v49 = vor.u32 %v1016_v42, %v1013_v41  ;;  %v411_v52 = vshrl.u32 %v3754_v56, 16  ;;  %v414_v53 = vshll.u32 %v3754_v56, 16 }
  0x6c   : > { %1741 = vrot.lane.b32.xlu0 %v1685_v35, %s3533_s25  ;;  %v1022_v54 = vrot.slane %v1020_v44, 5  ;;  %v1026_v55 = vrot.slane %v1024_v46, 4  ;;  %v1032_v58 = vrot.slane %v1030_v47, 5  ;;  %v420_v59 = vshll.u32 %v3757_v57, 16  ;;  %v3852_v47 = vld [vmem:[%s3584_s23 + $0x14] sm:$0x1] }
  0x6d   : > { %1869 = vrot.lane.b32.xlu1 %v1829_v36, %s3532_s24  ;;  %v1838_v61 = vpack.c.b16 %v1792_v48, %v1791_v40  ;;  %v1018_v62 = vrot.slane %v1017_v49, 4  ;;  %v413_v63 = vrot.slane %v411_v52, 4  ;;  %v416_v0 = vrot.slane %v414_v53, 5 }
  0x6e   : > { %v1027_v1 = vor.u32 %v1026_v55, %v1022_v54  ;;  %v422_v3 = vrot.slane %v420_v59, 5  ;;  %v424_v56 = vshrl.u32 %v3757_v57, 16  ;;  %v430_v4 = vshll.u32 %v3763_v2, 16 }
  0x6f   : > { %v1023_v7 = vsel %vm3731_vm6, %v1018_v62, %v1022_v54  ;;  %v417_v9 = vor.u32 %v416_v0, %v413_v63  ;;  %v627_v11 = vshrl.u32 %v3817_v60, 16  ;;  %v630_v12 = vshll.u32 %v3817_v60, 16 }
  0x70   : > { %v1028_v14 = vrot.slane %v1027_v1, 4  ;;  %v1647_v15 = vunpack.c.l.b16 %v1023_v7  ;;  %v426_v16 = vrot.slane %v424_v56, 4  ;;  %v432_v57 = vrot.slane %v430_v4, 5 }
  0x71   : > { %v418_v17 = vrot.slane %v417_v9, 4  ;;  %v629_v2 = vrot.slane %v627_v11, 4  ;;  %v632_v20 = vrot.slane %v630_v12, 5  ;;  %v636_v21 = vshll.u32 %v3823_v5, 16  ;;  %v3865_v9 = vld [vmem:[%s3584_s23 + $0xd8] sm:$0xf] }
  0x72   : > { %v1033_v22 = vsel %vm3731_vm6, %v1028_v14, %v1032_v58  ;;  %v427_v23 = vor.u32 %v426_v16, %v422_v3  ;;  %v640_v24 = vshrl.u32 %v3823_v5, 16  ;;  %v646_v25 = vshll.u32 %v3828_v10, 16 }
  0x73   : > { %v1648_v27 = vunpack.c.l.b16 %v1033_v22  ;;  %v423_v29 = vsel %vm3731_vm6, %v418_v17, %v422_v3  ;;  %v633_v30 = vor.u32 %v632_v20, %v629_v2  ;;  %v638_v32 = vrot.slane %v636_v21, 5  ;;  %v3874_v22 = vld [vmem:[%s3584_s23 + $0xdc] sm:$0xf] }
  0x74   : > { %1853 = vrot.lane.b32.xlu0 %v1821_v39, %s3532_s24  ;;  %v428_v35 = vrot.slane %v427_v23, 4  ;;  %v1597_v36 = vunpack.c.l.b16 %v423_v29  ;;  %v642_v37 = vrot.slane %v640_v24, 4  ;;  %v648_v38 = vrot.slane %v646_v25, 5 }
  0x75   : > { %1887 = vrot.lane.b32.xlu1 %v1838_v61, %s3532_s24  ;;  %v1686_v40 = vpack.c.b16 %v1648_v27, %v1647_v15  ;;  %v634_v41 = vrot.slane %v633_v30, 4  ;;  %v435_v42 = vshrl.u32 %v3838_v26, 16  ;;  %v438_v43 = vshll.u32 %v3838_v26, 16  ;;  %v3880_v30 = vld [vmem:[%s3584_s23 + $0xe0] sm:$0x1] }
  0x76   : > { %v433_v44 = vsel %vm3731_vm6, %v428_v35, %v432_v57  ;;  %v643_v46 = vor.u32 %v642_v37, %v638_v32  ;;  %v444_v39 = vshll.u32 %v3843_v34, 16  ;;  %v448_v48 = vshrl.u32 %v3843_v34, 16 }
  0x77   : > { %v1598_v49 = vunpack.c.l.b16 %v433_v44  ;;  %v639_v52 = vsel %vm3731_vm6, %v634_v41, %v638_v32  ;;  %v437_v53 = vrot.slane %v435_v42, 4  ;;  %v440_v54 = vrot.slane %v438_v43, 5 }
  0x78   : > { %v644_v55 = vrot.slane %v643_v46, 4  ;;  %v1615_v58 = vunpack.c.l.b16 %v639_v52  ;;  %v446_v59 = vrot.slane %v444_v39, 5  ;;  %v450_v61 = vrot.slane %v448_v48, 4 }
  0x79   : > { %v1661_v62 = vpack.c.b16 %v1598_v49, %v1597_v36  ;;  %v441_v63 = vor.u32 %v440_v54, %v437_v53  ;;  %v454_v0 = vshll.u32 %v3852_v47, 16  ;;  %v603_v1 = vshrl.u32 %v3741_v45, 16 }
  0x7a   : > { %v649_v3 = vsel %vm3731_vm6, %v644_v55, %v648_v38  ;;  %v451_v56 = vor.u32 %v450_v61, %v446_v59  ;;  %v606_v4 = vshll.u32 %v3741_v45, 16  ;;  %v612_v7 = vshll.u32 %v3746_v50, 16 }
  0x7b   : > { %1693 = vrot.lane.b32.xlu2 %v1661_v62, %s3533_s25  ;;  %v1616_v11 = vunpack.c.l.b16 %v649_v3  ;;  %v442_v12 = vrot.slane %v441_v63, 4  ;;  %v456_v14 = vrot.slane %v454_v0, 5  ;;  %v605_v15 = vrot.slane %v603_v1, 4 }
  0x7c   : > { %1743 = vrot.lane.b32.xlu0 %v1686_v40, %s3533_s25  ;;  %v452_v16 = vrot.slane %v451_v56, 4  ;;  %v608_v57 = vrot.slane %v606_v4, 5  ;;  %v614_v17 = vrot.slane %v612_v7, 5  ;;  %v616_v2 = vshrl.u32 %v3746_v50, 16 }
  0x7d   : > { %v1670_v45 = vpack.c.b16 %v1616_v11, %v1615_v58  ;;  %v447_v20 = vsel %vm3731_vm6, %v442_v12, %v446_v59  ;;  %v622_v21 = vshll.u32 %v3749_v51, 16  ;;  %v843_v23 = vshrl.u32 %v3865_v9, 16 }
  0x7e   : > { %v457_v24 = vsel %vm3731_vm6, %v452_v16, %v456_v14  ;;  %v1599_v25 = vunpack.c.l.b16 %v447_v20  ;;  %v609_v27 = vor.u32 %v608_v57, %v605_v15  ;;  %v618_v29 = vrot.slane %v616_v2, 4  ;;  %v3905_v14 = vld [vmem:[%s3584_s23 + $0x138] sm:$0xf]  ;;  %v3908_v15 = vld [vmem:[%s3584_s23 + $0x13c] sm:$0xf] }
  0x7f   : > { %1711 = vrot.lane.b32.xlu1 %v1670_v45, %s3533_s25  ;;  %v1600_v50 = vunpack.c.l.b16 %v457_v24  ;;  %v624_v32 = vrot.slane %v622_v21, 5  ;;  %v845_v35 = vrot.slane %v843_v23, 4  ;;  %v846_v36 = vshll.u32 %v3865_v9, 16 }
  0x80   : > { %v610_v51 = vrot.slane %v609_v27, 4  ;;  %v619_v37 = vor.u32 %v618_v29, %v614_v17  ;;  %v852_v38 = vshll.u32 %v3874_v22, 16  ;;  %v856_v40 = vshrl.u32 %v3874_v22, 16 }
  0x81   : > { %v1662_v41 = vpack.c.b16 %v1600_v50, %v1599_v25  ;;  %v848_v42 = vrot.slane %v846_v36, 5  ;;  %v862_v43 = vshll.u32 %v3880_v30, 16  ;;  %v3207_v44 = vrot.slane %v3817_v60, 9 }
  0x82   : > { %v615_v46 = vsel %vm3731_vm6, %v610_v51, %v614_v17  ;;  %v620_v39 = vrot.slane %v619_v37, 4  ;;  %v854_v48 = vrot.slane %v852_v38, 5  ;;  %v858_v49 = vrot.slane %v856_v40, 4 }
  0x83   : > { %v1613_v52 = vunpack.c.l.b16 %v615_v46  ;;  %v849_v53 = vor.u32 %v848_v42, %v845_v35  ;;  %v864_v54 = vrot.slane %v862_v43, 5  ;;  %v1342_v55 = vrot.slane %v3823_v5, 5 }
  0x84   : > { %1695 = vrot.lane.b32.xlu0 %v1662_v41, %s3533_s25  ;;  %v625_v58 = vsel %vm3731_vm6, %v620_v39, %v624_v32  ;;  %v859_v59 = vor.u32 %v858_v49, %v854_v48  ;;  %v1345_v60 = vrot.slane %v3828_v10, 5  ;;  %v819_v61 = vshrl.u32 %v3770_v8, 16 }
  0x85   : > { %v1614_v62 = vunpack.c.l.b16 %v625_v58  ;;  %v850_v63 = vrot.slane %v849_v53, 4  ;;  %v1343_v0 = vsel %vm3718_vm3, %v3207_v44, %v1342_v55  ;;  %v1344_v1 = vrot.slane %v1342_v55, 4 }
  0x86   : > { %v860_v5 = vrot.slane %v859_v59, 4  ;;  %v1775_v3 = vunpack.c.l.b16 %v1343_v0  ;;  %v821_v56 = vrot.slane %v819_v61, 4  ;;  %v822_v4 = vshll.u32 %v3770_v8, 16  ;;  %v3913_v8 = vld [vmem:[%s3584_s23 + $0x140] sm:$0x1] }
  0x87   : > { %v1669_v7 = vpack.c.b16 %v1614_v62, %v1613_v52  ;;  %v855_v11 = vsel %vm3731_vm6, %v850_v63, %v854_v48  ;;  %v1346_v10 = vsel %vm3718_vm3, %v1344_v1, %v1345_v60  ;;  %v828_v12 = vshll.u32 %v3775_v13, 16  ;;  %v3937_v52 = vld [vmem:[%s3584_s23 + $0x18] sm:$0xf] }
  0x88   : > { %v865_v16 = vsel %vm3731_vm6, %v860_v5, %v864_v54  ;;  %v1633_v57 = vunpack.c.l.b16 %v855_v11  ;;  %v1776_v17 = vunpack.c.l.b16 %v1346_v10  ;;  %v824_v2 = vrot.slane %v822_v4, 5 }
  0x89   : > { %1709 = vrot.lane.b32.xlu2 %v1669_v7, %s3533_s25  ;;  %v1634_v45 = vunpack.c.l.b16 %v865_v16  ;;  %v830_v20 = vrot.slane %v828_v12, 5  ;;  %v832_v21 = vshrl.u32 %v3775_v13, 16  ;;  %v838_v23 = vshll.u32 %v3782_v18, 16  ;;  %v3961_v7 = vld [vmem:[%s3584_s23 + $0x7c] sm:$0xf] }
  0x8a   : > { %v1830_v24 = vpack.c.b16 %v1776_v17, %v1775_v3  ;;  %v825_v25 = vor.u32 %v824_v2, %v821_v56  ;;  %v3224_v27 = vrot.slane %v3905_v14, 9  ;;  %v1461_v29 = vrot.slane %v3908_v15, 5 }
  0x8b   : > { %v1679_v50 = vpack.c.b16 %v1634_v45, %v1633_v57  ;;  %v834_v32 = vrot.slane %v832_v21, 4  ;;  %v840_v35 = vrot.slane %v838_v23, 5  ;;  %v1464_v36 = vrot.slane %v3913_v8, 5  ;;  %v3967_v57 = vld [vmem:[%s3584_s23 + $0x80] sm:$0x1] }
  0x8c   : > { %1871 = vrot.lane.b32.xlu0 %v1830_v24, %s3532_s24  ;;  %v826_v51 = vrot.slane %v825_v25, 4  ;;  %v1462_v37 = vsel %vm3718_vm3, %v3224_v27, %v1461_v29  ;;  %v1463_v13 = vrot.slane %v1461_v29, 4  ;;  %v3216_v18 = vrot.slane %v3865_v9, 9  ;;  %v3977_v27 = vld [vmem:[%s3584_s23 + $0x144] sm:$0xf] }
  0x8d   : > { %1729 = vrot.lane.b32.xlu1 %v1679_v50, %s3533_s25  ;;  %v835_v38 = vor.u32 %v834_v32, %v830_v20  ;;  %v1809_v40 = vunpack.c.l.b16 %v1462_v37  ;;  %v1405_v41 = vrot.slane %v3874_v22, 5  ;;  %v1408_v42 = vrot.slane %v3880_v30, 5  ;;  %v3940_v30 = vld [vmem:[%s3584_s23 + $0x1c] sm:$0xf] }
  0x8e   : > { %v831_v43 = vsel %vm3731_vm6, %v826_v51, %v830_v20  ;;  %v1465_v44 = vsel %vm3718_vm3, %v1463_v13, %v1464_v36  ;;  %v3223_v46 = vrot.slane %v3785_v19, 9  ;;  %v1454_v9 = vrot.slane %v3797_v28, 5  ;;  %v3945_v19 = vld [vmem:[%s3584_s23 + $0x20] sm:$0x1]  ;;  %v3948_v28 = vld [vmem:[%s3584_s23 + $0x78] sm:$0xf] }
  0x8f   : > { %v836_v39 = vrot.slane %v835_v38, 4  ;;  %v1631_v48 = vunpack.c.l.b16 %v831_v43  ;;  %v1810_v49 = vunpack.c.l.b16 %v1465_v44  ;;  %v1406_v22 = vsel %vm3718_vm3, %v3216_v18, %v1405_v41  ;;  %v3985_v18 = vld [vmem:[%s3584_s23 + $0x148] sm:$0xf] }
  0x90   : > { %v1407_v53 = vrot.slane %v1405_v41, 4  ;;  %v1793_v54 = vunpack.c.l.b16 %v1406_v22  ;;  %v1455_v55 = vsel %vm3718_vm3, %v3223_v46, %v1454_v9  ;;  %v1456_v58 = vrot.slane %v1454_v9, 4 }
  0x91   : > { %v841_v59 = vsel %vm3731_vm6, %v836_v39, %v840_v35  ;;  %v1847_v60 = vpack.c.b16 %v1810_v49, %v1809_v40  ;;  %v1457_v61 = vrot.slane %v3801_v31, 5  ;;  %v1807_v62 = vunpack.c.l.b16 %v1455_v55  ;;  %v3999_v55 = vld [vmem:[%s3584_s23 + $0xe4] sm:$0xf] }
  0x92   : > { %v1632_v63 = vunpack.c.l.b16 %v841_v59  ;;  %v1409_v0 = vsel %vm3718_vm3, %v1407_v53, %v1408_v42  ;;  %v3200_v1 = vrot.slane %v3937_v52, 9  ;;  %v1293_v5 = vrot.slane %v3940_v30, 5 }
  0x93   : > { %v1794_v3 = vunpack.c.l.b16 %v1409_v0  ;;  %v1458_v56 = vsel %vm3718_vm3, %v1456_v58, %v1457_v61  ;;  %v1296_v4 = vrot.slane %v3945_v19, 5  ;;  %v651_v11 = vshrl.u32 %v3948_v28, 16 }
  0x94   : > { %v1678_v31 = vpack.c.b16 %v1632_v63, %v1631_v48  ;;  %v1808_v10 = vunpack.c.l.b16 %v1458_v56  ;;  %v1294_v12 = vsel %vm3718_vm3, %v3200_v1, %v1293_v5  ;;  %v1295_v16 = vrot.slane %v1293_v5, 4 }
  0x95   : > { %1905 = vrot.lane.b32.xlu1 %v1847_v60, %s3532_s24  ;;  %v1839_v17 = vpack.c.b16 %v1794_v3, %v1793_v54  ;;  %v1761_v2 = vunpack.c.l.b16 %v1294_v12  ;;  %v653_v45 = vrot.slane %v651_v11, 4  ;;  %v654_v20 = vshll.u32 %v3948_v28, 16  ;;  %v4012_v3 = vld [vmem:[%s3584_s23 + $0xec] sm:$0x1] }
  0x96   : > { %1727 = vrot.lane.b32.xlu2 %v1678_v31, %s3533_s25  ;;  %v1846_v21 = vpack.c.b16 %v1808_v10, %v1807_v62  ;;  %v1297_v23 = vsel %vm3718_vm3, %v1295_v16, %v1296_v4  ;;  %v660_v24 = vshll.u32 %v3961_v7, 16  ;;  %v664_v25 = vshrl.u32 %v3961_v7, 16  ;;  %v4006_v62 = vld [vmem:[%s3584_s23 + $0xe8] sm:$0xf] }
  0x97   : > { %1889 = vrot.lane.b32.xlu0 %v1839_v17, %s3532_s24  ;;  %v1762_v29 = vunpack.c.l.b16 %v1297_v23  ;;  %v656_v50 = vrot.slane %v654_v20, 5  ;;  %v670_v32 = vshll.u32 %v3967_v57, 16  ;;  %v3199_v35 = vrot.slane %v3838_v26, 9  ;;  %v3991_v26 = vld [vmem:[%s3584_s23 + $0x14c] sm:$0x1] }
  0x98   : > { %v662_v36 = vrot.slane %v660_v24, 5  ;;  %v666_v51 = vrot.slane %v664_v25, 4  ;;  %v1286_v37 = vrot.slane %v3843_v34, 5  ;;  %v1289_v13 = vrot.slane %v3852_v47, 5 }
  0x99   : > { %v1823_v38 = vpack.c.b16 %v1762_v29, %v1761_v2  ;;  %v657_v40 = vor.u32 %v656_v50, %v653_v45  ;;  %v672_v41 = vrot.slane %v670_v32, 5  ;;  %v1059_v42 = vshrl.u32 %v3977_v27, 16 }
  0x9a   : > { %v667_v43 = vor.u32 %v666_v51, %v662_v36  ;;  %v1287_v44 = vsel %vm3718_vm3, %v3199_v35, %v1286_v37  ;;  %v1288_v46 = vrot.slane %v1286_v37, 4  ;;  %v1062_v34 = vshll.u32 %v3977_v27, 16 }
  0x9b   : > { %v658_v9 = vrot.slane %v657_v40, 4  ;;  %v1759_v47 = vunpack.c.l.b16 %v1287_v44  ;;  %v1061_v39 = vrot.slane %v1059_v42, 4  ;;  %v1068_v48 = vshll.u32 %v3985_v18, 16  ;;  %v4028_v40 = vld [vmem:[%s3584_s23 + $0x24] sm:$0xf] }
  0x9c   : > { %v668_v49 = vrot.slane %v667_v43, 4  ;;  %v1290_v22 = vsel %vm3718_vm3, %v1288_v46, %v1289_v13  ;;  %v1064_v53 = vrot.slane %v1062_v34, 5  ;;  %v1072_v54 = vshrl.u32 %v3985_v18, 16 }
  0x9d   : > { %1857 = vrot.lane.b32.xlu1 %v1823_v38, %s3532_s24  ;;  %v663_v58 = vsel %vm3731_vm6, %v658_v9, %v662_v36  ;;  %v1760_v59 = vunpack.c.l.b16 %v1290_v22  ;;  %v1070_v60 = vrot.slane %v1068_v48, 5  ;;  %v1078_v61 = vshll.u32 %v3991_v26, 16 }
  0x9e   : > { %1903 = vrot.lane.b32.xlu2 %v1846_v21, %s3532_s24  ;;  %v673_v63 = vsel %vm3731_vm6, %v668_v49, %v672_v41  ;;  %v1617_v0 = vunpack.c.l.b16 %v663_v58  ;;  %v1065_v1 = vor.u32 %v1064_v53, %v1061_v39  ;;  %v1074_v5 = vrot.slane %v1072_v54, 4  ;;  %v4034_v49 = vld [vmem:[%s3584_s23 + $0x28] sm:$0xf] }
  0x9f   : > { %v1618_v56 = vunpack.c.l.b16 %v673_v63  ;;  %v1822_v4 = vpack.c.b16 %v1760_v59, %v1759_v47  ;;  %v1080_v11 = vrot.slane %v1078_v61, 5  ;;  %v867_v31 = vshrl.u32 %v3999_v55, 16 }
  0xa0   : > { %v1066_v10 = vrot.slane %v1065_v1, 4  ;;  %v1075_v12 = vor.u32 %v1074_v5, %v1070_v60  ;;  %v870_v16 = vshll.u32 %v3999_v55, 16  ;;  %v876_v17 = vshll.u32 %v4006_v62, 16 }
  0xa1   : > { %v1671_v2 = vpack.c.b16 %v1618_v56, %v1617_v0  ;;  %v869_v45 = vrot.slane %v867_v31, 4  ;;  %v880_v20 = vshrl.u32 %v4006_v62, 16  ;;  %v886_v21 = vshll.u32 %v4012_v3, 16 }
  0xa2   : > { %v1071_v23 = vsel %vm3731_vm6, %v1066_v10, %v1070_v60  ;;  %v1076_v24 = vrot.slane %v1075_v12, 4  ;;  %v872_v25 = vrot.slane %v870_v16, 5  ;;  %v878_v29 = vrot.slane %v876_v17, 5 }
  0xa3   : > { %1713 = vrot.lane.b32.xlu0 %v1671_v2, %s3533_s25  ;;  %v1651_v50 = vunpack.c.l.b16 %v1071_v23  ;;  %v882_v32 = vrot.slane %v880_v20, 4  ;;  %v888_v35 = vrot.slane %v886_v21, 5  ;;  %v1035_v36 = vshrl.u32 %v3905_v14, 16 }
  0xa4   : > { %v1081_v51 = vsel %vm3731_vm6, %v1076_v24, %v1080_v11  ;;  %v873_v37 = vor.u32 %v872_v25, %v869_v45  ;;  %v1038_v13 = vshll.u32 %v3905_v14, 16  ;;  %v1044_v38 = vshll.u32 %v3908_v15, 16 }
  0xa5   : > { %v1652_v41 = vunpack.c.l.b16 %v1081_v51  ;;  %v883_v42 = vor.u32 %v882_v32, %v878_v29  ;;  %v1037_v43 = vrot.slane %v1035_v36, 4  ;;  %v1048_v44 = vshrl.u32 %v3908_v15, 16  ;;  %v4040_v15 = vld [vmem:[%s3584_s23 + $0x2c] sm:$0x1] }
  0xa6   : > { %1855 = vrot.lane.b32.xlu2 %v1822_v4, %s3532_s24  ;;  %v874_v46 = vrot.slane %v873_v37, 4  ;;  %v1040_v34 = vrot.slane %v1038_v13, 5  ;;  %v1046_v9 = vrot.slane %v1044_v38, 5  ;;  %v1054_v47 = vshll.u32 %v3913_v8, 16 }
  0xa7   : > { %v1688_v39 = vpack.c.b16 %v1652_v41, %v1651_v50  ;;  %v884_v48 = vrot.slane %v883_v42, 4  ;;  %v1050_v14 = vrot.slane %v1048_v44, 4  ;;  %v483_v22 = vshrl.u32 %v4028_v40, 16 }
  0xa8   : > { %v879_v53 = vsel %vm3731_vm6, %v874_v46, %v878_v29  ;;  %v1041_v54 = vor.u32 %v1040_v34, %v1037_v43  ;;  %v1056_v58 = vrot.slane %v1054_v47, 5  ;;  %v486_v59 = vshll.u32 %v4028_v40, 16  ;;  %v4074_v43 = vld [vmem:[%s3584_s23 + $0x88] sm:$0xf]  ;;  %v4081_v47 = vld [vmem:[%s3584_s23 + $0x8c] sm:$0x1] }
  0xa9   : > { %1747 = vrot.lane.b32.xlu1 %v1688_v39, %s3533_s25  ;;  %v889_v8 = vsel %vm3731_vm6, %v884_v48, %v888_v35  ;;  %v1635_v60 = vunpack.c.l.b16 %v879_v53  ;;  %v1051_v61 = vor.u32 %v1050_v14, %v1046_v9  ;;  %v485_v63 = vrot.slane %v483_v22, 4  ;;  %v3459_v53 = vld [vmem:[%s4071_s29 + $0x28] sm:$0xff] }
  0xaa   : > { %v1636_v0 = vunpack.c.l.b16 %v889_v8  ;;  %v1042_v1 = vrot.slane %v1041_v54, 4  ;;  %v488_v5 = vrot.slane %v486_v59, 5  ;;  %v492_v56 = vshll.u32 %v4034_v49, 16  ;;  %3461 = vmatpush.bf16.msra.mxu2 %v3459_v53  ;;  %3462 = vmatpush.bf16.msra.mxu3 %v3459_v53 }
  0xab   : > { %v1052_v4 = vrot.slane %v1051_v61, 4  ;;  %v496_v11 = vshrl.u32 %v4034_v49, 16  ;;  %v502_v31 = vshll.u32 %v4040_v15, 16  ;;  %v3225_v10 = vrot.slane %v3977_v27, 9  ;;  %3460 = vmatpush.bf16.msra.mxu1 %v3459_v53  ;;  %2261 = vmatpush.bf16.msra.mxu0 %v3459_v53 }
  0xac   : > { %v1680_v12 = vpack.c.b16 %v1636_v0, %v1635_v60  ;;  %v1047_v16 = vsel %vm3731_vm6, %v1042_v1, %v1046_v9  ;;  %v489_v17 = vor.u32 %v488_v5, %v485_v63  ;;  %v494_v2 = vrot.slane %v492_v56, 5 }
  0xad   : > { %v1057_v45 = vsel %vm3731_vm6, %v1052_v4, %v1056_v58  ;;  %v1649_v20 = vunpack.c.l.b16 %v1047_v16  ;;  %v498_v21 = vrot.slane %v496_v11, 4  ;;  %v504_v23 = vrot.slane %v502_v31, 5 }
  0xae   : > { %1731 = vrot.lane.b32.xlu0 %v1680_v12, %s3533_s25  ;;  %v1650_v24 = vunpack.c.l.b16 %v1057_v45  ;;  %v490_v25 = vrot.slane %v489_v17, 4  ;;  %v1468_v27 = vrot.slane %v3985_v18, 5  ;;  %v1471_v29 = vrot.slane %v3991_v26, 5  ;;  %v4066_v18 = vld [vmem:[%s3584_s23 + $0x84] sm:$0xf] }
  0xaf   : > { %v499_v50 = vor.u32 %v498_v21, %v494_v2  ;;  %v459_v32 = vshrl.u32 %v3937_v52, 16  ;;  %v462_v35 = vshll.u32 %v3937_v52, 16  ;;  %v468_v36 = vshll.u32 %v3940_v30, 16  ;;  %v4106_v45 = vld [vmem:[%s3584_s23 + $0xf0] sm:$0xf] }
  0xb0   : > { %v1687_v51 = vpack.c.b16 %v1650_v24, %v1649_v20  ;;  %v495_v37 = vsel %vm3731_vm6, %v490_v25, %v494_v2  ;;  %v1469_v13 = vsel %vm3718_vm3, %v3225_v10, %v1468_v27  ;;  %v1470_v38 = vrot.slane %v1468_v27, 4  ;;  %v4116_v24 = vld [vmem:[%s3584_s23 + $0xf8] sm:$0x1] }
  0xb1   : > { %v500_v52 = vrot.slane %v499_v50, 4  ;;  %v1603_v26 = vunpack.c.l.b16 %v495_v37  ;;  %v1811_v41 = vunpack.c.l.b16 %v1469_v13  ;;  %v461_v42 = vrot.slane %v459_v32, 4  ;;  %v4122_v32 = vld [vmem:[%s3584_s23 + $0x150] sm:$0xf]  ;;  %v4126_v13 = vld [vmem:[%s3584_s23 + $0x154] sm:$0xf] }
  0xb2   : > { %1745 = vrot.lane.b32.xlu2 %v1687_v51, %s3533_s25  ;;  %v1472_v44 = vsel %vm3718_vm3, %v1470_v38, %v1471_v29  ;;  %v464_v46 = vrot.slane %v462_v35, 5  ;;  %v470_v34 = vrot.slane %v468_v36, 5  ;;  %v472_v9 = vshrl.u32 %v3940_v30, 16  ;;  %v3458_v38 = vld [vmem:[%s4071_s29 + $0x20] sm:$0xff] }
  0xb3   : > { %v505_v39 = vsel %vm3731_vm6, %v500_v52, %v504_v23  ;;  %v1812_v48 = vunpack.c.l.b16 %v1472_v44  ;;  %v478_v14 = vshll.u32 %v3945_v19, 16  ;;  %v3209_v22 = vrot.slane %v4066_v18, 9  ;;  %v4113_v23 = vld [vmem:[%s3584_s23 + $0xf4] sm:$0xf]  ;;  %3464 = vmatpush.bf16.msra.mxu2 %v3458_v38  ;;  %3465 = vmatpush.bf16.msra.mxu3 %v3458_v38 }
  0xb4   : > { %v1604_v54 = vunpack.c.l.b16 %v505_v39  ;;  %v465_v58 = vor.u32 %v464_v46, %v461_v42  ;;  %v474_v59 = vrot.slane %v472_v9, 4  ;;  %v1356_v8 = vrot.slane %v4074_v43, 5  ;;  %v4134_v46 = vld [vmem:[%s3584_s23 + $0x158] sm:$0x1]  ;;  %3463 = vmatpush.bf16.msra.mxu1 %v3458_v38  ;;  %2262 = vmatpush.bf16.msra.mxu0 %v3458_v38 }
  0xb5   : > { %v1848_v60 = vpack.c.b16 %v1812_v48, %v1811_v41  ;;  %v480_v61 = vrot.slane %v478_v14, 5  ;;  %v1359_v30 = vrot.slane %v4081_v47, 5  ;;  %v3201_v63 = vrot.slane %v4028_v40, 9 }
  0xb6   : > { %v1664_v0 = vpack.c.b16 %v1604_v54, %v1603_v26  ;;  %v466_v1 = vrot.slane %v465_v58, 4  ;;  %v475_v5 = vor.u32 %v474_v59, %v470_v34  ;;  %v1357_v19 = vsel %vm3718_vm3, %v3209_v22, %v1356_v8 }
  0xb7   : > { %1907 = vrot.lane.b32.xlu0 %v1848_v60, %s3532_s24  ;;  %v1358_v56 = vrot.slane %v1356_v8, 4  ;;  %v1779_v4 = vunpack.c.l.b16 %v1357_v19  ;;  %v1300_v11 = vrot.slane %v4034_v49, 5  ;;  %v1303_v40 = vrot.slane %v4040_v15, 5  ;;  %v4146_v8 = vld [vmem:[%s3584_s23 + $0x90] sm:$0xf] }
  0xb8   : > { %1699 = vrot.lane.b32.xlu1 %v1664_v0, %s3533_s25  ;;  %v471_v31 = vsel %vm3731_vm6, %v466_v1, %v470_v34  ;;  %v476_v10 = vrot.slane %v475_v5, 4  ;;  %v3208_v12 = vrot.slane %v3948_v28, 9  ;;  %v1349_v16 = vrot.slane %v3961_v7, 5 }
  0xb9   : > { %v1601_v17 = vunpack.c.l.b16 %v471_v31  ;;  %v1360_v2 = vsel %vm3718_vm3, %v1358_v56, %v1359_v30  ;;  %v1301_v49 = vsel %vm3718_vm3, %v3201_v63, %v1300_v11  ;;  %v1302_v15 = vrot.slane %v1300_v11, 4  ;;  %v3457_v56 = vld [vmem:[%s4071_s29 + $0x18] sm:$0xff]  ;;  %v4156_v31 = vld [vmem:[%s3584_s23 + $0x94] sm:$0xf] }
  0xba   : > { %v481_v20 = vsel %vm3731_vm6, %v476_v10, %v480_v61  ;;  %v1780_v21 = vunpack.c.l.b16 %v1360_v2  ;;  %v1763_v28 = vunpack.c.l.b16 %v1301_v49  ;;  %v1350_v7 = vsel %vm3718_vm3, %v3208_v12, %v1349_v16  ;;  %3467 = vmatpush.bf16.msra.mxu2 %v3457_v56  ;;  %3468 = vmatpush.bf16.msra.mxu3 %v3457_v56  ;;  %v4162_v49 = vld [vmem:[%s3584_s23 + $0x98] sm:$0x1] }
  0xbb   : > { %v1602_v25 = vunpack.c.l.b16 %v481_v20  ;;  %v1304_v27 = vsel %vm3718_vm3, %v1302_v15, %v1303_v40  ;;  %v1351_v29 = vrot.slane %v1349_v16, 4  ;;  %v1352_v50 = vrot.slane %v3967_v57, 5  ;;  %3466 = vmatpush.bf16.msra.mxu1 %v3457_v56  ;;  %2263 = vmatpush.bf16.msra.mxu0 %v3457_v56  ;;  %v4198_v56 = vld [vmem:[%s3584_s23 + $0xfc] sm:$0xf] }
  0xbc   : > { %v1832_v35 = vpack.c.b16 %v1780_v21, %v1779_v4  ;;  %v1764_v36 = vunpack.c.l.b16 %v1304_v27  ;;  %v1777_v51 = vunpack.c.l.b16 %v1350_v7  ;;  %v3218_v37 = vrot.slane %v4106_v45, 9 }
  0xbd   : > { %v1663_v52 = vpack.c.b16 %v1602_v25, %v1601_v17  ;;  %v1353_v26 = vsel %vm3718_vm3, %v1351_v29, %v1352_v50  ;;  %v1419_v41 = vrot.slane %v4113_v23, 5  ;;  %v1422_v42 = vrot.slane %v4116_v24, 5  ;;  %v4172_v25 = vld [vmem:[%s3584_s23 + $0x30] sm:$0xf] }
  0xbe   : > { %v1824_v44 = vpack.c.b16 %v1764_v36, %v1763_v28  ;;  %v1778_v57 = vunpack.c.l.b16 %v1353_v26  ;;  %v1083_v34 = vshrl.u32 %v4122_v32, 16  ;;  %v1086_v9 = vshll.u32 %v4122_v32, 16  ;;  %v4178_v36 = vld [vmem:[%s3584_s23 + $0x34] sm:$0xf] }
  0xbf   : > { %1697 = vrot.lane.b32.xlu2 %v1663_v52, %s3533_s25  ;;  %v1420_v39 = vsel %vm3718_vm3, %v3218_v37, %v1419_v41  ;;  %v1421_v48 = vrot.slane %v1419_v41, 4  ;;  %v1092_v14 = vshll.u32 %v4126_v13, 16  ;;  %v1096_v22 = vshrl.u32 %v4126_v13, 16  ;;  %v3456_v26 = vld [vmem:[%s4071_s29 + $0x10] sm:$0xff] }
  0xc0   : > { %1875 = vrot.lane.b32.xlu1 %v1832_v35, %s3532_s24  ;;  %1859 = vrot.lane.b32.xlu0 %v1824_v44, %s3532_s24  ;;  %v1831_v53 = vpack.c.b16 %v1778_v57, %v1777_v51  ;;  %v1797_v54 = vunpack.c.l.b16 %v1420_v39  ;;  %v1085_v58 = vrot.slane %v1083_v34, 4  ;;  %v1088_v59 = vrot.slane %v1086_v9, 5  ;;  %v4184_v44 = vld [vmem:[%s3584_s23 + $0x38] sm:$0x1] }
  0xc1   : > { %v1423_v60 = vsel %vm3718_vm3, %v1421_v48, %v1422_v42  ;;  %v1094_v61 = vrot.slane %v1092_v14, 5  ;;  %v1098_v30 = vrot.slane %v1096_v22, 4  ;;  %v1102_v63 = vshll.u32 %v4134_v46, 16  ;;  %3470 = vmatpush.bf16.msra.mxu2 %v3456_v26  ;;  %v3455_v22 = vld [vmem:[%s4071_s29 + $0x8] sm:$0xff]  ;;  %3471 = vmatpush.bf16.msra.mxu3 %v3456_v26 }
  0xc2   : > { %v1798_v0 = vunpack.c.l.b16 %v1423_v60  ;;  %v1089_v1 = vor.u32 %v1088_v59, %v1085_v58  ;;  %v3217_v5 = vrot.slane %v3999_v55, 9  ;;  %v1412_v19 = vrot.slane %v4006_v62, 5  ;;  %3469 = vmatpush.bf16.msra.mxu1 %v3456_v26  ;;  %2264 = vmatpush.bf16.msra.mxu0 %v3456_v26 }
  0xc3   : > { %v1099_v4 = vor.u32 %v1098_v30, %v1094_v61  ;;  %v1104_v11 = vrot.slane %v1102_v63, 5  ;;  %v1415_v40 = vrot.slane %v4012_v3, 5  ;;  %v699_v10 = vshrl.u32 %v4146_v8, 16 }
  0xc4   : > { %v1841_v12 = vpack.c.b16 %v1798_v0, %v1797_v54  ;;  %v1090_v16 = vrot.slane %v1089_v1, 4  ;;  %v1413_v17 = vsel %vm3718_vm3, %v3217_v5, %v1412_v19  ;;  %v1414_v2 = vrot.slane %v1412_v19, 4 }
  0xc5   : > { %v1100_v55 = vrot.slane %v1099_v4, 4  ;;  %v1795_v62 = vunpack.c.l.b16 %v1413_v17  ;;  %v701_v15 = vrot.slane %v699_v10, 4  ;;  %v702_v3 = vshll.u32 %v4146_v8, 16  ;;  %3473 = vmatpush.bf16.msra.mxu2 %v3455_v22  ;;  %3474 = vmatpush.bf16.msra.mxu3 %v3455_v22 }
  0xc6   : > { %v1095_v20 = vsel %vm3731_vm6, %v1090_v16, %v1094_v61  ;;  %v1416_v21 = vsel %vm3718_vm3, %v1414_v2, %v1415_v40  ;;  %v708_v28 = vshll.u32 %v4156_v31, 16  ;;  %v712_v7 = vshrl.u32 %v4156_v31, 16  ;;  %3472 = vmatpush.bf16.msra.mxu1 %v3455_v22  ;;  %2265 = vmatpush.bf16.msra.mxu0 %v3455_v22 }
  0xc7   : > { %1873 = vrot.lane.b32.xlu2 %v1831_v53, %s3532_s24  ;;  %v1105_v27 = vsel %vm3731_vm6, %v1100_v55, %v1104_v11  ;;  %v1653_v29 = vunpack.c.l.b16 %v1095_v20  ;;  %v1796_v50 = vunpack.c.l.b16 %v1416_v21  ;;  %v704_v35 = vrot.slane %v702_v3, 5  ;;  %v3454_v3 = vld [vmem:[%s4071_s29] sm:$0xff] }
  0xc8   : > { %1893 = vrot.lane.b32.xlu1 %v1841_v12, %s3532_s24  ;;  %v1654_v51 = vunpack.c.l.b16 %v1105_v27  ;;  %v710_v37 = vrot.slane %v708_v28, 5  ;;  %v714_v38 = vrot.slane %v712_v7, 4  ;;  %v718_v52 = vshll.u32 %v4162_v49, 16  ;;  %v4211_v27 = vld [vmem:[%s3584_s23 + $0x100] sm:$0xf] }
  0xc9   : > { %v1840_v41 = vpack.c.b16 %v1796_v50, %v1795_v62  ;;  %v705_v42 = vor.u32 %v704_v35, %v701_v15  ;;  %v507_v57 = vshrl.u32 %v4172_v25, 16  ;;  %v510_v34 = vshll.u32 %v4172_v25, 16  ;;  %3476 = vmatpush.bf16.msra.mxu2 %v3454_v3  ;;  %3477 = vmatpush.bf16.msra.mxu3 %v3454_v3 }
  0xca   : > { %v1689_v9 = vpack.c.b16 %v1654_v51, %v1653_v29  ;;  %v715_v39 = vor.u32 %v714_v38, %v710_v37  ;;  %v720_v48 = vrot.slane %v718_v52, 5  ;;  %v516_v14 = vshll.u32 %v4178_v36, 16  ;;  %3475 = vmatpush.bf16.msra.mxu1 %v3454_v3  ;;  %2266 = vmatpush.bf16.msra.mxu0 %v3454_v3 }
  0xcb   : > { %v706_v53 = vrot.slane %v705_v42, 4  ;;  %v509_v54 = vrot.slane %v507_v57, 4  ;;  %v512_v58 = vrot.slane %v510_v34, 5  ;;  %v520_v59 = vshrl.u32 %v4178_v36, 16 }
  0xcc   : > { %1749 = vrot.lane.b32.xlu0 %v1689_v9, %s3533_s25  ;;  %v716_v60 = vrot.slane %v715_v39, 4  ;;  %v518_v61 = vrot.slane %v516_v14, 5  ;;  %v526_v30 = vshll.u32 %v4184_v44, 16  ;;  %v675_v63 = vshrl.u32 %v4066_v18, 16 }
  0xcd   : > { %v711_v0 = vsel %vm3731_vm6, %v706_v53, %v710_v37  ;;  %v513_v1 = vor.u32 %v512_v58, %v509_v54  ;;  %v522_v5 = vrot.slane %v520_v59, 4  ;;  %v678_v19 = vshll.u32 %v4066_v18, 16  ;;  %v4214_v37 = vld [vmem:[%s3584_s23 + $0x104] sm:$0x1] }
  0xce   : > { %v721_v4 = vsel %vm3731_vm6, %v716_v60, %v720_v48  ;;  %v1621_v11 = vunpack.c.l.b16 %v711_v0  ;;  %v528_v40 = vrot.slane %v526_v30, 5  ;;  %v677_v10 = vrot.slane %v675_v63, 4 }
  0xcf   : > { %1891 = vrot.lane.b32.xlu2 %v1840_v41, %s3532_s24  ;;  %v1622_v12 = vunpack.c.l.b16 %v721_v4  ;;  %v514_v16 = vrot.slane %v513_v1, 4  ;;  %v523_v17 = vor.u32 %v522_v5, %v518_v61  ;;  %v680_v2 = vrot.slane %v678_v19, 5  ;;  %v4226_v14 = vpop.permute.xlu1 %1885 }
  0xd0   : > { %v684_v18 = vshll.u32 %v4074_v43, 16  ;;  %v688_v55 = vshrl.u32 %v4074_v43, 16  ;;  %v694_v62 = vshll.u32 %v4081_v47, 16  ;;  %v915_v15 = vshrl.u32 %v4198_v56, 16 }
  0xd1   : > { %v1673_v20 = vpack.c.b16 %v1622_v12, %v1621_v11  ;;  %v519_v21 = vsel %vm3731_vm6, %v514_v16, %v518_v61  ;;  %v524_v28 = vrot.slane %v523_v17, 4  ;;  %v681_v7 = vor.u32 %v680_v2, %v677_v10 }
  0xd2   : > { %v1605_v29 = vunpack.c.l.b16 %v519_v21  ;;  %v686_v50 = vrot.slane %v684_v18, 5  ;;  %v690_v35 = vrot.slane %v688_v55, 4  ;;  %v696_v51 = vrot.slane %v694_v62, 5  ;;  %v4243_v18 = vld [vmem:[%s3584_s23 + $0x15c] sm:$0xf] }
  0xd3   : > { %1717 = vrot.lane.b32.xlu1 %v1673_v20, %s3533_s25  ;;  %v529_v43 = vsel %vm3731_vm6, %v524_v28, %v528_v40  ;;  %v682_v47 = vrot.slane %v681_v7, 4  ;;  %v917_v38 = vrot.slane %v915_v15, 4  ;;  %v918_v52 = vshll.u32 %v4198_v56, 16  ;;  %v4249_v20 = vld [vmem:[%s3584_s23 + $0x160] sm:$0xf] }
  0xd4   : > { %v1606_v26 = vunpack.c.l.b16 %v529_v43  ;;  %v691_v41 = vor.u32 %v690_v35, %v686_v50  ;;  %v924_v42 = vshll.u32 %v4211_v27, 16  ;;  %v928_v57 = vshrl.u32 %v4211_v27, 16  ;;  %v4252_v21 = vld [vmem:[%s3584_s23 + $0x164] sm:$0x1] }
  0xd5   : > { %v687_v34 = vsel %vm3731_vm6, %v682_v47, %v686_v50  ;;  %v920_v9 = vrot.slane %v918_v52, 5  ;;  %v934_v39 = vshll.u32 %v4214_v37, 16  ;;  %v3210_v48 = vrot.slane %v4146_v8, 9 }
  0xd6   : > { %v1665_v22 = vpack.c.b16 %v1606_v26, %v1605_v29  ;;  %v692_v53 = vrot.slane %v691_v41, 4  ;;  %v1619_v54 = vunpack.c.l.b16 %v687_v34  ;;  %v926_v58 = vrot.slane %v924_v42, 5  ;;  %v1694_v41 = vpop.permute.xlu2 %1693 }
  0xd7   : > { %v921_v59 = vor.u32 %v920_v9, %v917_v38  ;;  %v930_v60 = vrot.slane %v928_v57, 4  ;;  %v936_v61 = vrot.slane %v934_v39, 5  ;;  %v1363_v30 = vrot.slane %v4156_v31, 5  ;;  %v4237_v31 = vpop.permute.xlu0 %1725  ;;  %v4261_v42 = vpop.permute.xlu1 %1901 }
  0xd8   : > { %1701 = vrot.lane.b32.xlu0 %v1665_v22, %s3533_s25  ;;  %v697_v63 = vsel %vm3731_vm6, %v692_v53, %v696_v51  ;;  %v1366_v0 = vrot.slane %v4162_v49, 5  ;;  %v891_v8 = vshrl.u32 %v4106_v45, 16  ;;  %v894_v1 = vshll.u32 %v4106_v45, 16 }
  0xd9   : > { %v1620_v5 = vunpack.c.l.b16 %v697_v63  ;;  %v922_v19 = vrot.slane %v921_v59, 4  ;;  %v931_v4 = vor.u32 %v930_v60, %v926_v58  ;;  %v1364_v11 = vsel %vm3718_vm3, %v3210_v48, %v1363_v30 }
  0xda   : > { %v1365_v40 = vrot.slane %v1363_v30, 4  ;;  %v1781_v10 = vunpack.c.l.b16 %v1364_v11  ;;  %v893_v12 = vrot.slane %v891_v8, 4  ;;  %v896_v16 = vrot.slane %v894_v1, 5 }
  0xdb   : > { %v1672_v49 = vpack.c.b16 %v1620_v5, %v1619_v54  ;;  %v927_v17 = vsel %vm3731_vm6, %v922_v19, %v926_v58  ;;  %v932_v2 = vrot.slane %v931_v4, 4  ;;  %v900_v45 = vshll.u32 %v4113_v23, 16 }
  0xdc   : > { %v1639_v55 = vunpack.c.l.b16 %v927_v17  ;;  %v1367_v62 = vsel %vm3718_vm3, %v1365_v40, %v1366_v0  ;;  %v897_v15 = vor.u32 %v896_v16, %v893_v12  ;;  %v904_v3 = vshrl.u32 %v4113_v23, 16  ;;  %v3421_v0 = vld [vmem:[%s3584_s23] sm:$0xff]  ;;  %v4288_v40 = vld [vmem:[%s3584_s23 + $0x3c] sm:$0xf] }
  0xdd   : > { %1715 = vrot.lane.b32.xlu2 %v1672_v49, %s3533_s25  ;;  %v937_v28 = vsel %vm3731_vm6, %v932_v2, %v936_v61  ;;  %v1782_v7 = vunpack.c.l.b16 %v1367_v62  ;;  %v902_v29 = vrot.slane %v900_v45, 5  ;;  %v910_v50 = vshll.u32 %v4116_v24, 16  ;;  %v4294_v17 = vld [vmem:[%s3584_s23 + $0x44] sm:$0x1] }
  0xde   : > { %v1640_v35 = vunpack.c.l.b16 %v937_v28  ;;  %v898_v51 = vrot.slane %v897_v15, 4  ;;  %v906_v43 = vrot.slane %v904_v3, 4  ;;  %v3227_v47 = vrot.slane %v4243_v18, 9 }
  0xdf   : > { %v1833_v38 = vpack.c.b16 %v1782_v7, %v1781_v10  ;;  %v912_v23 = vrot.slane %v910_v50, 5  ;;  %v1482_v52 = vrot.slane %v4249_v20, 5  ;;  %v1485_v26 = vrot.slane %v4252_v21, 5  ;;  %v1742_v8 = vpop.permute.xlu0 %1741  ;;  %v4291_v10 = vld [vmem:[%s3584_s23 + $0x40] sm:$0xf] }
  0xe0   : > { %v1682_v57 = vpack.c.b16 %v1640_v35, %v1639_v55  ;;  %v903_v34 = vsel %vm3731_vm6, %v898_v51, %v902_v29  ;;  %v907_v9 = vor.u32 %v906_v43, %v902_v29  ;;  %v3219_v24 = vrot.slane %v4198_v56, 9  ;;  %v4309_v29 = vld [vmem:[%s3584_s23 + $0xa0] sm:$0xf]  ;;  %v4314_v35 = vld [vmem:[%s3584_s23 + $0xa4] sm:$0x1]  ;;  %v4317_v43 = vpop.permute.xlu1 %1869 }
  0xe1   : > { %1877 = vrot.lane.b32.xlu0 %v1833_v38, %s3532_s24  ;;  %v1637_v39 = vunpack.c.l.b16 %v903_v34  ;;  %v1483_v48 = vsel %vm3718_vm3, %v3227_v47, %v1482_v52  ;;  %v1484_v22 = vrot.slane %v1482_v52, 4  ;;  %v1426_v53 = vrot.slane %v4211_v27, 5  ;;  %v3437_v27 = vld [vmem:[%s3584_s23 + $0xc0] sm:$0xff] }
  0xe2   : > { %1735 = vrot.lane.b32.xlu1 %v1682_v57, %s3533_s25  ;;  %v908_v54 = vrot.slane %v907_v9, 4  ;;  %v1815_v58 = vunpack.c.l.b16 %v1483_v48  ;;  %v1429_v59 = vrot.slane %v4214_v37, 5  ;;  %v3226_v60 = vrot.slane %v4122_v32, 9 }
  0xe3   : > { %v1486_v56 = vsel %vm3718_vm3, %v1484_v22, %v1485_v26  ;;  %v1427_v61 = vsel %vm3718_vm3, %v3219_v24, %v1426_v53  ;;  %v1428_v30 = vrot.slane %v1426_v53, 4  ;;  %v1475_v63 = vrot.slane %v4126_v13, 5  ;;  %v1710_v51 = vpop.permute.xlu2 %1709  ;;  %v3445_v26 = vld [vmem:[%s3584_s23 + $0x120] sm:$0xff] }
  0xe4   : > { %v913_v37 = vsel %vm3731_vm6, %v908_v54, %v912_v23  ;;  %v1816_v32 = vunpack.c.l.b16 %v1486_v56  ;;  %v1799_v1 = vunpack.c.l.b16 %v1427_v61  ;;  %v1478_v5 = vrot.slane %v4134_v46, 5  ;;  %v4297_v46 = vld [vmem:[%s3584_s23 + $0x9c] sm:$0xf]  ;;  %v3429_v22 = vld [vmem:[%s3584_s23 + $0x60] sm:$0xff] }
  0xe5   : > { %v1638_v19 = vunpack.c.l.b16 %v913_v37  ;;  %v1430_v4 = vsel %vm3718_vm3, %v1428_v30, %v1429_v59  ;;  %v1476_v11 = vsel %vm3718_vm3, %v3226_v60, %v1475_v63  ;;  %v1477_v13 = vrot.slane %v1475_v63, 4  ;;  %v4337_v60 = vld [vmem:[%s3584_s23 + $0x168] sm:$0xf] }
  0xe6   : > { %v1850_v12 = vpack.c.b16 %v1816_v32, %v1815_v58  ;;  %v1800_v16 = vunpack.c.l.b16 %v1430_v4  ;;  %v1813_v49 = vunpack.c.l.b16 %v1476_v11  ;;  %vm1917_vm7 = vcmask 261120   ;;  %v4350_v4 = vld [vmem:[%s3584_s23 + $0x170] sm:$0x1] }
  0xe7   : > { %v1681_v2 = vpack.c.b16 %v1638_v19, %v1637_v39  ;;  %v1479_v45 = vsel %vm3718_vm3, %v1477_v13, %v1478_v5  ;;  %v1968_v55 = vsel %vm1917_vm7, %v3437_v27, %v4237_v31  ;;  %v4304_v62 = vsel %vm1917_vm7, %v3421_v0, %v1694_v41  ;;  %v4339_v56 = vpop.permute.xlu0 %1853  ;;  %v4344_v0 = vld [vmem:[%s3584_s23 + $0x16c] sm:$0xf] }
  0xe8   : > { %v1842_v15 = vpack.c.b16 %v1800_v16, %v1799_v1  ;;  %v1814_v3 = vunpack.c.l.b16 %v1479_v45  ;;  %v3203_v28 = vrot.slane %v4288_v40, 9  ;;  %v1314_v7 = vrot.slane %v4291_v10, 5 }
  0xe9   : > { %1733 = vrot.lane.b32.xlu2 %v1681_v2, %s3533_s25  ;;  %v1317_v50 = vrot.slane %v4294_v17, 5  ;;  %vm2014_vm8 = vcmask 523264   ;;  %vm2194_vm9 = vcmask 785408   ;;  %v723_v31 = vshrl.u32 %v4297_v46, 16 }
  0xea   : > { %1911 = vrot.lane.b32.xlu1 %v1850_v12, %s3532_s24  ;;  %1895 = vrot.lane.b32.xlu0 %v1842_v15, %s3532_s24  ;;  %v1849_v47 = vpack.c.b16 %v1814_v3, %v1813_v49  ;;  %v1315_v38 = vsel %vm3718_vm3, %v3203_v28, %v1314_v7  ;;  %v1316_v23 = vrot.slane %v1314_v7, 4  ;;  %v2048_v52 = vsel %vm2014_vm8, %v1968_v55, %v4226_v14  ;;  %v4361_v55 = vld [vmem:[%s3584_s23 + $0x108] sm:$0xf] }
  0xeb   : > { %v1767_v41 = vunpack.c.l.b16 %v1315_v38  ;;  %3399 = vmatmul.msk.bf16.vlgmr.msra.gmra.mxu2 %vm2194_vm9, %v2048_v52  ;;  %v725_v57 = vrot.slane %v723_v31, 4  ;;  %v726_v34 = vshll.u32 %v4297_v46, 16  ;;  %v732_v9 = vshll.u32 %v4309_v29, 16 }
  0xec   : > { %v1318_v24 = vsel %vm3718_vm3, %v1316_v23, %v1317_v50  ;;  %v736_v39 = vshrl.u32 %v4309_v29, 16  ;;  %v742_v48 = vshll.u32 %v4314_v35, 16  ;;  %v3202_v14 = vrot.slane %v4172_v25, 9  ;;  %v4367_v50 = vld [vmem:[%s3584_s23 + $0x10c] sm:$0xf] }
  0xed   : > { %v1768_v53 = vunpack.c.l.b16 %v1318_v24  ;;  %v728_v54 = vrot.slane %v726_v34, 5  ;;  %v734_v58 = vrot.slane %v732_v9, 5  ;;  %v1307_v59 = vrot.slane %v4178_v36, 5 }
  0xee   : > { %v738_v61 = vrot.slane %v736_v39, 4  ;;  %v744_v30 = vrot.slane %v742_v48, 5  ;;  %v1310_v63 = vrot.slane %v4184_v44, 5  ;;  %v1992_v27 = vsel %vm1917_vm7, %v3445_v26, %v1742_v8  ;;  %v4374_v26 = vld [vmem:[%s3584_s23 + $0x110] sm:$0x1] }
  0xef   : > { %v1826_v25 = vpack.c.b16 %v1768_v53, %v1767_v41  ;;  %v729_v37 = vor.u32 %v728_v54, %v725_v57  ;;  %v1308_v32 = vsel %vm3718_vm3, %v3202_v14, %v1307_v59  ;;  %v1309_v1 = vrot.slane %v1307_v59, 4  ;;  %v4384_v59 = vpop.permute.xlu0 %1743 }
  0xf0   : > { %v739_v36 = vor.u32 %v738_v61, %v734_v58  ;;  %v1765_v5 = vunpack.c.l.b16 %v1308_v32  ;;  %v1944_v19 = vsel %vm1917_vm7, %v3429_v22, %v1710_v51  ;;  %v1131_v11 = vshrl.u32 %v4337_v60, 16  ;;  %v1728_v31 = vpop.permute.xlu2 %1727  ;;  %v4369_v51 = vpop.permute.xlu1 %1887 }
  0xf1   : > { %1909 = vrot.lane.b32.xlu2 %v1849_v47, %s3532_s24  ;;  %v730_v44 = vrot.slane %v729_v37, 4  ;;  %v1311_v8 = vsel %vm3718_vm3, %v1309_v1, %v1310_v63  ;;  %v1134_v13 = vshll.u32 %v4337_v60, 16  ;;  %v1140_v12 = vshll.u32 %v4344_v0, 16 }
  0xf2   : > { %1863 = vrot.lane.b32.xlu1 %v1826_v25, %s3532_s24  ;;  %v740_v16 = vrot.slane %v739_v36, 4  ;;  %v1766_v49 = vunpack.c.l.b16 %v1311_v8  ;;  %v1133_v2 = vrot.slane %v1131_v11, 4  ;;  %v1144_v45 = vshrl.u32 %v4344_v0, 16 }
  0xf3   : > { %v735_v15 = vsel %vm3731_vm6, %v730_v44, %v734_v58  ;;  %v1136_v3 = vrot.slane %v1134_v13, 5  ;;  %v1142_v28 = vrot.slane %v1140_v12, 5  ;;  %v1150_v7 = vshll.u32 %v4350_v4, 16  ;;  %v3438_v44 = vld [vmem:[%s3584_s23 + $0xcc] sm:$0xff] }
  0xf4   : > { %v745_v47 = vsel %vm3731_vm6, %v740_v16, %v744_v30  ;;  %v1623_v38 = vunpack.c.l.b16 %v735_v15  ;;  %v1825_v23 = vpack.c.b16 %v1766_v49, %v1765_v5  ;;  %v1146_v52 = vrot.slane %v1144_v45, 4  ;;  %v4402_v45 = vld [vmem:[%s3584_s23 + $0x48] sm:$0xf] }
  0xf5   : > { %v1624_v41 = vunpack.c.l.b16 %v745_v47  ;;  %v1137_v57 = vor.u32 %v1136_v3, %v1133_v2  ;;  %v1152_v34 = vrot.slane %v1150_v7, 5  ;;  %v2064_v9 = vsel %vm2014_vm8, %v1992_v27, %v4261_v42  ;;  %v4405_v47 = vld [vmem:[%s3584_s23 + $0x4c] sm:$0xf] }
  0xf6   : > { %v1147_v24 = vor.u32 %v1146_v52, %v1142_v28  ;;  %3407 = vmatmul.msk.bf16.vlgmr.msra.gmra.mxu3 %vm2194_vm9, %v2064_v9  ;;  %v939_v39 = vshrl.u32 %v4361_v55, 16  ;;  %v942_v48 = vshll.u32 %v4361_v55, 16  ;;  %v948_v14 = vshll.u32 %v4367_v50, 16 }
  0xf7   : > { %v1674_v22 = vpack.c.b16 %v1624_v41, %v1623_v38  ;;  %v1138_v53 = vrot.slane %v1137_v57, 4  ;;  %v952_v54 = vshrl.u32 %v4367_v50, 16  ;;  %v958_v58 = vshll.u32 %v4374_v26, 16 }
  0xf8   : > { %v1148_v61 = vrot.slane %v1147_v24, 4  ;;  %v941_v42 = vrot.slane %v939_v39, 4  ;;  %v944_v30 = vrot.slane %v942_v48, 5  ;;  %v950_v63 = vrot.slane %v948_v14, 5  ;;  %v4407_v38 = vpop.permute.xlu2 %1903 }
  0xf9   : > { %1719 = vrot.lane.b32.xlu0 %v1674_v22, %s3533_s25  ;;  %1861 = vrot.lane.b32.xlu2 %v1825_v23, %s3532_s24  ;;  %v1143_v27 = vsel %vm3731_vm6, %v1138_v53, %v1142_v28  ;;  %v954_v25 = vrot.slane %v952_v54, 4  ;;  %v960_v37 = vrot.slane %v958_v58, 5  ;;  %v2032_v32 = vsel %vm2014_vm8, %v1944_v19, %v4317_v43  ;;  %v4423_v53 = vpop.permute.xlu0 %1695 }
  0xfa   : > { %v1153_v1 = vsel %vm3731_vm6, %v1148_v61, %v1152_v34  ;;  %v1657_v36 = vunpack.c.l.b16 %v1143_v27  ;;  %v945_v5 = vor.u32 %v944_v30, %v941_v42  ;;  %3391 = vmatmul.msk.bf16.vlgmr.msra.gmra.mxu1 %vm2194_vm9, %v2032_v32  ;;  %v1107_v11 = vshrl.u32 %v4243_v18, 16 }
  0xfb   : > { %v1658_v8 = vunpack.c.l.b16 %v1153_v1  ;;  %v955_v13 = vor.u32 %v954_v25, %v950_v63  ;;  %v1110_v12 = vshll.u32 %v4243_v18, 16  ;;  %v1116_v16 = vshll.u32 %v4249_v20, 16  ;;  %v4409_v18 = vpop.permute.xlu1 %1711 }
  0xfc   : > { %v946_v49 = vrot.slane %v945_v5, 4  ;;  %v1109_v43 = vrot.slane %v1107_v11, 4  ;;  %v1120_v19 = vshrl.u32 %v4249_v20, 16  ;;  %v1126_v2 = vshll.u32 %v4252_v21, 16  ;;  %v4415_v21 = vld [vmem:[%s3584_s23 + $0x50] sm:$0x1] }
  0xfd   : > { %v1691_v15 = vpack.c.b16 %v1658_v8, %v1657_v36  ;;  %v956_v3 = vrot.slane %v955_v13, 4  ;;  %v1112_v28 = vrot.slane %v1110_v12, 5  ;;  %v1118_v7 = vrot.slane %v1116_v16, 5 }
  0xfe   : > { %v951_v23 = vsel %vm3731_vm6, %v946_v49, %v950_v63  ;;  %v1122_v52 = vrot.slane %v1120_v19, 4  ;;  %v1128_v41 = vrot.slane %v1126_v2, 5  ;;  %v1971_v20 = vsel %vm1917_vm7, %v3438_v44, %v1728_v31 }
  0xff   : > { %1753 = vrot.lane.b32.xlu1 %v1691_v15, %s3533_s25  ;;  %v961_v57 = vsel %vm3731_vm6, %v956_v3, %v960_v37  ;;  %v1641_v34 = vunpack.c.l.b16 %v951_v23  ;;  %v1113_v9 = vor.u32 %v1112_v28, %v1109_v43  ;;  %v555_v24 = vshrl.u32 %v4402_v45, 16  ;;  %v4454_v23 = vld [vmem:[%s3584_s23 + $0xa8] sm:$0xf] }
 0x100   : > { %v1642_v39 = vunpack.c.l.b16 %v961_v57  ;;  %v1123_v48 = vor.u32 %v1122_v52, %v1118_v7  ;;  %v558_v14 = vshll.u32 %v4402_v45, 16  ;;  %v564_v22 = vshll.u32 %v4405_v47, 16  ;;  %v4447_v3 = vpop.permute.xlu2 %1855 }
 0x101   : > { %v1114_v31 = vrot.slane %v1113_v9, 4  ;;  %v557_v54 = vrot.slane %v555_v24, 4  ;;  %v568_v58 = vshrl.u32 %v4405_v47, 16  ;;  %v574_v61 = vshll.u32 %v4415_v21, 16 }
 0x102   : > { %v1683_v42 = vpack.c.b16 %v1642_v39, %v1641_v34  ;;  %v1124_v30 = vrot.slane %v1123_v48, 4  ;;  %v560_v63 = vrot.slane %v558_v14, 5  ;;  %v566_v27 = vrot.slane %v564_v22, 5  ;;  %v4464_v48 = vld [vmem:[%s3584_s23 + $0xac] sm:$0xf] }
 0x103   : > { %v1119_v25 = vsel %vm3731_vm6, %v1114_v31, %v1118_v7  ;;  %v570_v37 = vrot.slane %v568_v58, 4  ;;  %v576_v32 = vrot.slane %v574_v61, 5  ;;  %v2016_v1 = vsel %vm2014_vm8, %v4304_v62, %v4339_v56  ;;  %v4467_v14 = vld [vmem:[%s3584_s23 + $0xb0] sm:$0x1]  ;;  %v4470_v31 = vpop.permute.xlu0 %1871 }
 0x104   : > { %1737 = vrot.lane.b32.xlu0 %v1683_v42, %s3533_s25  ;;  %v1129_v36 = vsel %vm3731_vm6, %v1124_v30, %v1128_v41  ;;  %v1655_v5 = vunpack.c.l.b16 %v1119_v25  ;;  %v561_v11 = vor.u32 %v560_v63, %v557_v54  ;;  %3383 = vmatmul.msk.bf16.vlgmr.msra.gmra.mxu0 %vm2194_vm9, %v2016_v1  ;;  %v3228_v44 = vrot.slane %v4337_v60, 9  ;;  %v3430_v22 = vld [vmem:[%s3584_s23 + $0x6c] sm:$0xff] }
 0x105   : > { %v1656_v8 = vunpack.c.l.b16 %v1129_v36  ;;  %v571_v13 = vor.u32 %v570_v37, %v566_v27  ;;  %v1489_v12 = vrot.slane %v4344_v0, 5  ;;  %v1492_v16 = vrot.slane %v4350_v4, 5  ;;  %v3446_v0 = vld [vmem:[%s3584_s23 + $0x12c] sm:$0xff]  ;;  %v4449_v4 = vpop.permute.xlu1 %1729 }
 0x106   : > { %v562_v49 = vrot.slane %v561_v11, 4  ;;  %v2050_v62 = vsel %vm2014_vm8, %v1971_v20, %v4369_v51  ;;  %v531_v56 = vshrl.u32 %v4288_v40, 16  ;;  %v534_v43 = vshll.u32 %v4288_v40, 16 }
 0x107   : > { %v1690_v19 = vpack.c.b16 %v1656_v8, %v1655_v5  ;;  %v572_v2 = vrot.slane %v571_v13, 4  ;;  %v1490_v60 = vsel %vm3718_vm3, %v3228_v44, %v1489_v12  ;;  %v1491_v15 = vrot.slane %v1489_v12, 4  ;;  %3400 = vmatmul.msk.bf16.gmra.mxu2 %vm2194_vm9, %v2050_v62 }
 0x108   : > { %v567_v51 = vsel %vm3731_vm6, %v562_v49, %v566_v27  ;;  %v1817_v40 = vunpack.c.l.b16 %v1490_v60  ;;  %v533_v28 = vrot.slane %v531_v56, 4  ;;  %v536_v7 = vrot.slane %v534_v43, 5  ;;  %v3422_v49 = vld [vmem:[%s3584_s23 + $0xc] sm:$0xff] }
 0x109   : > { %1751 = vrot.lane.b32.xlu2 %v1690_v19, %s3533_s25  ;;  %v577_v52 = vsel %vm3731_vm6, %v572_v2, %v576_v32  ;;  %v1609_v41 = vunpack.c.l.b16 %v567_v51  ;;  %v1493_v20 = vsel %vm3718_vm3, %v1491_v15, %v1492_v16  ;;  %v540_v57 = vshll.u32 %v4291_v10, 16  ;;  %v4507_v15 = vld [vmem:[%s3584_s23 + $0x114] sm:$0xf] }
 0x10a   : > { %v1610_v34 = vunpack.c.l.b16 %v577_v52  ;;  %v1818_v9 = vunpack.c.l.b16 %v1493_v20  ;;  %v537_v24 = vor.u32 %v536_v7, %v533_v28  ;;  %v544_v39 = vshrl.u32 %v4291_v10, 16  ;;  %v4517_v7 = vld [vmem:[%s3584_s23 + $0x11c] sm:$0x1] }
 0x10b   : > { %v542_v54 = vrot.slane %v540_v57, 5  ;;  %v550_v58 = vshll.u32 %v4294_v17, 16  ;;  %v1995_v61 = vsel %vm1917_vm7, %v3446_v0, %v4384_v59  ;;  %v3212_v42 = vrot.slane %v4454_v23, 9  ;;  %v4510_v0 = vld [vmem:[%s3584_s23 + $0x118] sm:$0xf] }
 0x10c   : > { %v1667_v30 = vpack.c.b16 %v1610_v34, %v1609_v41  ;;  %v1851_v63 = vpack.c.b16 %v1818_v9, %v1817_v40  ;;  %v538_v27 = vrot.slane %v537_v24, 4  ;;  %v546_v25 = vrot.slane %v544_v39, 4  ;;  %v1746_v43 = vpop.permute.xlu2 %1745  ;;  %v3439_v52 = vld [vmem:[%s3584_s23 + $0xd8] sm:$0xff]  ;;  %v4523_v34 = vld [vmem:[%s3584_s23 + $0x174] sm:$0xf]  ;;  %v4525_v9 = vpop.permute.xlu0 %1889 }
 0x10d   : > { %v552_v10 = vrot.slane %v550_v58, 5  ;;  %v1377_v37 = vrot.slane %v4464_v48, 5  ;;  %v1380_v32 = vrot.slane %v4467_v14, 5  ;;  %v2066_v1 = vsel %vm2014_vm8, %v1995_v61, %v4407_v38  ;;  %v4501_v19 = vpop.permute.xlu1 %1905  ;;  %v4532_v58 = vld [vmem:[%s3584_s23 + $0x178] sm:$0xf] }
 0x10e   : > { %1705 = vrot.lane.b32.xlu1 %v1667_v30, %s3533_s25  ;;  %1913 = vrot.lane.b32.xlu0 %v1851_v63, %s3532_s24  ;;  %v543_v17 = vsel %vm3731_vm6, %v538_v27, %v542_v54  ;;  %v547_v59 = vor.u32 %v546_v25, %v542_v54  ;;  %v4486_v36 = vsel %vm1917_vm7, %v3430_v22, %v4409_v18  ;;  %v3204_v5 = vrot.slane %v4402_v45, 9  ;;  %v4539_v63 = vld [vmem:[%s3584_s23 + $0x17c] sm:$0x1] }
 0x10f   : > { %v1607_v11 = vunpack.c.l.b16 %v543_v17  ;;  %v1378_v44 = vsel %vm3718_vm3, %v3212_v42, %v1377_v37  ;;  %v1379_v38 = vrot.slane %v1377_v37, 4  ;;  %3408 = vmatmul.msk.bf16.gmra.mxu3 %vm2194_vm9, %v2066_v1  ;;  %v1321_v8 = vrot.slane %v4405_v47, 5 }
 0x110   : > { %v548_v13 = vrot.slane %v547_v59, 4  ;;  %v1785_v12 = vunpack.c.l.b16 %v1378_v44  ;;  %v1324_v16 = vrot.slane %v4415_v21, 5  ;;  %v3211_v18 = vrot.slane %v4297_v46, 9  ;;  %v3447_v59 = vld [vmem:[%s3584_s23 + $0x138] sm:$0xff] }
 0x111   : > { %v1381_v45 = vsel %vm3718_vm3, %v1379_v38, %v1380_v32  ;;  %v1322_v62 = vsel %vm3718_vm3, %v3204_v5, %v1321_v8  ;;  %v1323_v56 = vrot.slane %v1321_v8, 4  ;;  %v1370_v47 = vrot.slane %v4309_v29, 5 }
 0x112   : > { %v553_v21 = vsel %vm3731_vm6, %v548_v13, %v552_v10  ;;  %v1786_v46 = vunpack.c.l.b16 %v1381_v45  ;;  %v1769_v2 = vunpack.c.l.b16 %v1322_v62  ;;  %v1373_v60 = vrot.slane %v4314_v35, 5 }
 0x113   : > { %v1608_v51 = vunpack.c.l.b16 %v553_v21  ;;  %v1325_v29 = vsel %vm3718_vm3, %v1323_v56, %v1324_v16  ;;  %v1371_v40 = vsel %vm3718_vm3, %v3211_v18, %v1370_v47  ;;  %v1372_v28 = vrot.slane %v1370_v47, 4  ;;  %v4560_v16 = vld [vmem:[%s3584_s23 + $0x54] sm:$0xf]  ;;  %v4565_v56 = vld [vmem:[%s3584_s23 + $0x58] sm:$0xf] }
 0x114   : > { %v1835_v41 = vpack.c.b16 %v1786_v46, %v1785_v12  ;;  %v1770_v20 = vunpack.c.l.b16 %v1325_v29  ;;  %v1783_v35 = vunpack.c.l.b16 %v1371_v40  ;;  %v1923_v57 = vsel %vm1917_vm7, %v3422_v49, %v4423_v53 }
 0x115   : > { %v1666_v24 = vpack.c.b16 %v1608_v51, %v1607_v11  ;;  %v1374_v39 = vsel %vm3718_vm3, %v1372_v28, %v1373_v60  ;;  %v3221_v22 = vrot.slane %v4507_v15, 9  ;;  %v1440_v54 = vrot.slane %v4510_v0, 5  ;;  %v4567_v21 = vpop.permute.xlu1 %1857 }
 0x116   : > { %1881 = vrot.lane.b32.xlu1 %v1835_v41, %s3532_s24  ;;  %v1827_v61 = vpack.c.b16 %v1770_v20, %v1769_v2  ;;  %v1784_v42 = vunpack.c.l.b16 %v1374_v39  ;;  %v1443_v53 = vrot.slane %v4517_v7, 5  ;;  %v2018_v30 = vsel %vm2014_vm8, %v1923_v57, %v4447_v3 }
 0x117   : > { %1703 = vrot.lane.b32.xlu2 %v1666_v24, %s3533_s25  ;;  %v1441_v27 = vsel %vm3718_vm3, %v3221_v22, %v1440_v54  ;;  %v1442_v25 = vrot.slane %v1440_v54, 4  ;;  %3384 = vmatmul.msk.bf16.gmra.mxu0 %vm2194_vm9, %v2018_v30  ;;  %v4547_v10 = vsel %vm1917_vm7, %v3439_v52, %v4449_v4  ;;  %v1155_v37 = vshrl.u32 %v4523_v34, 16  ;;  %v4579_v52 = vld [vmem:[%s3584_s23 + $0x5c] sm:$0x1] }
 0x118   : > { %1865 = vrot.lane.b32.xlu0 %v1827_v61, %s3532_s24  ;;  %v1834_v3 = vpack.c.b16 %v1784_v42, %v1783_v35  ;;  %v1803_v32 = vunpack.c.l.b16 %v1441_v27  ;;  %v1158_v1 = vshll.u32 %v4523_v34, 16  ;;  %v1164_v17 = vshll.u32 %v4532_v58, 16 }
 0x119   : > { %v1444_v5 = vsel %vm3718_vm3, %v1442_v25, %v1443_v53  ;;  %v1157_v11 = vrot.slane %v1155_v37, 4  ;;  %v1168_v4 = vshrl.u32 %v4532_v58, 16  ;;  %v1174_v44 = vshll.u32 %v4539_v63, 16  ;;  %v1698_v47 = vpop.permute.xlu2 %1697 }
 0x11a   : > { %v1804_v38 = vunpack.c.l.b16 %v1444_v5  ;;  %v1160_v8 = vrot.slane %v1158_v1, 5  ;;  %v1166_v13 = vrot.slane %v1164_v17, 5  ;;  %v3220_v12 = vrot.slane %v4361_v55, 9 }
 0x11b   : > { %v1170_v18 = vrot.slane %v1168_v4, 4  ;;  %v1176_v49 = vrot.slane %v1174_v44, 5  ;;  %v1433_v45 = vrot.slane %v4367_v50, 5  ;;  %v1436_v62 = vrot.slane %v4374_v26, 5 }
 0x11c   : > { %v1844_v46 = vpack.c.b16 %v1804_v38, %v1803_v32  ;;  %v1161_v2 = vor.u32 %v1160_v8, %v1157_v11  ;;  %v1998_v60 = vsel %vm1917_vm7, %v3447_v59, %v1746_v43  ;;  %v2034_v55 = vsel %vm2014_vm8, %v4486_v36, %v4470_v31  ;;  %v4583_v31 = vpop.permute.xlu0 %1713  ;;  %v3423_v32 = vld [vmem:[%s3584_s23 + $0x18] sm:$0xff] }
 0x11d   : > { %v1171_v51 = vor.u32 %v1170_v18, %v1166_v13  ;;  %v1434_v50 = vsel %vm3718_vm3, %v3220_v12, %v1433_v45  ;;  %v1435_v29 = vrot.slane %v1433_v45, 4  ;;  %3392 = vmatmul.msk.bf16.gmra.mxu1 %vm2194_vm9, %v2034_v55  ;;  %v579_v26 = vshrl.u32 %v4560_v16, 16  ;;  %v356_v18 = vld [vmem:[%s3584_s23 + $0xb4] sm:$0xf]  ;;  %v4606_v45 = vpop.permute.xlu1 %1747 }
 0x11e   : > { %1899 = vrot.lane.b32.xlu1 %v1844_v46, %s3532_s24  ;;  %v1162_v40 = vrot.slane %v1161_v2, 4  ;;  %v1801_v28 = vunpack.c.l.b16 %v1434_v50  ;;  %v582_v43 = vshll.u32 %v4560_v16, 16  ;;  %v588_v41 = vshll.u32 %v4565_v56, 16  ;;  %v357_v2 = vld [vmem:[%s3584_s23 + $0xb8] sm:$0xf] }
 0x11f   : > { %1879 = vrot.lane.b32.xlu2 %v1834_v3, %s3532_s24  ;;  %v1172_v36 = vrot.slane %v1171_v51, 4  ;;  %v1437_v20 = vsel %vm3718_vm3, %v1435_v29, %v1436_v62  ;;  %v581_v35 = vrot.slane %v579_v26, 4  ;;  %v592_v57 = vshrl.u32 %v4565_v56, 16  ;;  %v358_v29 = vld [vmem:[%s3584_s23 + $0xbc] sm:$0x1] }
 0x120   : > { %v1167_v24 = vsel %vm3731_vm6, %v1162_v40, %v1166_v13  ;;  %v1802_v39 = vunpack.c.l.b16 %v1437_v20  ;;  %v584_v22 = vrot.slane %v582_v43, 5  ;;  %v590_v54 = vrot.slane %v588_v41, 5 }
 0x121   : > { %v1177_v61 = vsel %vm3731_vm6, %v1172_v36, %v1176_v49  ;;  %v1659_v42 = vunpack.c.l.b16 %v1167_v24  ;;  %v594_v53 = vrot.slane %v592_v57, 4  ;;  %v598_v30 = vshll.u32 %v4579_v52, 16  ;;  %v4604_v49 = vpop.permute.xlu2 %1873 }
 0x122   : > { %v1660_v27 = vunpack.c.l.b16 %v1177_v61  ;;  %v1843_v25 = vpack.c.b16 %v1802_v39, %v1801_v28  ;;  %v585_v37 = vor.u32 %v584_v22, %v581_v35  ;;  %v2068_v3 = vsel %vm2014_vm8, %v1998_v60, %v4501_v19 }
 0x123   : > { %v595_v1 = vor.u32 %v594_v53, %v590_v54  ;;  %v600_v17 = vrot.slane %v598_v30, 5  ;;  %3409 = vmatmul.msk.bf16.gmra.mxu3 %vm2194_vm9, %v2068_v3  ;;  %v747_v59 = vshrl.u32 %v4454_v23, 16  ;;  %v750_v5 = vshll.u32 %v4454_v23, 16 }
 0x124   : > { %v1692_v11 = vpack.c.b16 %v1660_v27, %v1659_v42  ;;  %v586_v4 = vrot.slane %v585_v37, 4  ;;  %v756_v44 = vshll.u32 %v4464_v48, 16  ;;  %v760_v38 = vshrl.u32 %v4464_v48, 16  ;;  %v4613_v60 = vpop.permute.xlu0 %1731 }
 0x125   : > { %v596_v8 = vrot.slane %v595_v1, 4  ;;  %v749_v13 = vrot.slane %v747_v59, 4  ;;  %v752_v12 = vrot.slane %v750_v5, 5  ;;  %v766_v19 = vshll.u32 %v4467_v14, 16 }
 0x126   : > { %1755 = vrot.lane.b32.xlu0 %v1692_v11, %s3533_s25  ;;  %v591_v23 = vsel %vm3731_vm6, %v586_v4, %v590_v54  ;;  %v758_v62 = vrot.slane %v756_v44, 5  ;;  %v762_v46 = vrot.slane %v760_v38, 4  ;;  %v1926_v48 = vsel %vm1917_vm7, %v3423_v32, %v1698_v47 }
 0x127   : > { %1897 = vrot.lane.b32.xlu2 %v1843_v25, %s3532_s24  ;;  %v601_v14 = vsel %vm3731_vm6, %v596_v8, %v600_v17  ;;  %v1611_v55 = vunpack.c.l.b16 %v591_v23  ;;  %v753_v51 = vor.u32 %v752_v12, %v749_v13  ;;  %v768_v50 = vrot.slane %v766_v19, 5  ;;  %v3431_v23 = vld [vmem:[%s3584_s23 + $0x78] sm:$0xff] }
 0x128   : > { %v1612_v26 = vunpack.c.l.b16 %v601_v14  ;;  %v763_v40 = vor.u32 %v762_v46, %v758_v62  ;;  %v2052_v28 = vsel %vm2014_vm8, %v4547_v10, %v4525_v9  ;;  %v771_v43 = vshrl.u32 %v356_v18, 16 }
 0x129   : > { %v754_v47 = vrot.slane %v753_v51, 4  ;;  %3401 = vmatmul.msk.bf16.gmra.mxu2 %vm2194_vm9, %v2052_v28  ;;  %v774_v41 = vshll.u32 %v356_v18, 16  ;;  %v780_v36 = vshll.u32 %v357_v2, 16  ;;  %v784_v20 = vshrl.u32 %v357_v2, 16  ;;  %v1892_v8 = vpop.permute.xlu2 %1891 }
 0x12a   : > { %v1668_v35 = vpack.c.b16 %v1612_v26, %v1611_v55  ;;  %v764_v57 = vrot.slane %v763_v40, 4  ;;  %v773_v24 = vrot.slane %v771_v43, 4  ;;  %v790_v39 = vshll.u32 %v358_v29, 16  ;;  %v1700_v13 = vpop.permute.xlu1 %1699  ;;  %v3440_v43 = vld [vmem:[%s3584_s23 + $0xe4] sm:$0xff] }
 0x12b   : > { %v759_v22 = vsel %vm3731_vm6, %v754_v47, %v758_v62  ;;  %v776_v54 = vrot.slane %v774_v41, 5  ;;  %v782_v61 = vrot.slane %v780_v36, 5  ;;  %v786_v42 = vrot.slane %v784_v20, 4 }
 0x12c   : > { %v769_v9 = vsel %vm3731_vm6, %v764_v57, %v768_v50  ;;  %v1625_v10 = vunpack.c.l.b16 %v759_v22  ;;  %v792_v53 = vrot.slane %v790_v39, 5  ;;  %v3213_v30 = vrot.slane %v356_v18, 9  ;;  %v1908_v5 = vpop.permute.xlu0 %1907  ;;  %v3448_v50 = vld [vmem:[%s3584_s23 + $0x144] sm:$0xff] }
 0x12d   : > { %v1626_v27 = vunpack.c.l.b16 %v769_v9  ;;  %v777_v25 = vor.u32 %v776_v54, %v773_v24  ;;  %v787_v37 = vor.u32 %v786_v42, %v782_v61  ;;  %v1384_v3 = vrot.slane %v357_v2, 5  ;;  %v3424_v24 = vld [vmem:[%s3584_s23 + $0x24] sm:$0xff] }
 0x12e   : > { %1707 = vrot.lane.b32.xlu0 %v1668_v35, %s3533_s25  ;;  %v1387_v32 = vrot.slane %v358_v29, 5  ;;  %v2020_v1 = vsel %vm2014_vm8, %v1926_v48, %v4567_v21  ;;  %v963_v17 = vshrl.u32 %v4507_v15, 16  ;;  %v966_v59 = vshll.u32 %v4507_v15, 16 }
 0x12f   : > { %v1675_v11 = vpack.c.b16 %v1626_v27, %v1625_v10  ;;  %v778_v4 = vrot.slane %v777_v25, 4  ;;  %v788_v44 = vrot.slane %v787_v37, 4  ;;  %v1385_v38 = vsel %vm3718_vm3, %v3213_v30, %v1384_v3  ;;  %3385 = vmatmul.msk.bf16.gmra.mxu0 %vm2194_vm9, %v2020_v1 }
 0x130   : > { %v1386_v12 = vrot.slane %v1384_v3, 4  ;;  %v1787_v19 = vunpack.c.l.b16 %v1385_v38  ;;  %v965_v18 = vrot.slane %v963_v17, 4  ;;  %v968_v21 = vrot.slane %v966_v59, 5  ;;  %v3432_v3 = vld [vmem:[%s3584_s23 + $0x84] sm:$0xff] }
 0x131   : > { %1721 = vrot.lane.b32.xlu2 %v1675_v11, %s3533_s25  ;;  %v783_v15 = vsel %vm3731_vm6, %v778_v4, %v782_v61  ;;  %v793_v62 = vsel %vm3731_vm6, %v788_v44, %v792_v53  ;;  %v972_v46 = vshll.u32 %v4510_v0, 16  ;;  %v976_v48 = vshrl.u32 %v4510_v0, 16  ;;  %v3441_v4 = vld [vmem:[%s3584_s23 + $0xf0] sm:$0xff] }
 0x132   : > { %v1627_v2 = vunpack.c.l.b16 %v783_v15  ;;  %v1628_v14 = vunpack.c.l.b16 %v793_v62  ;;  %v1388_v55 = vsel %vm3718_vm3, %v1386_v12, %v1387_v32  ;;  %v969_v51 = vor.u32 %v968_v21, %v965_v18  ;;  %v1876_v27 = vpop.permute.xlu1 %1875  ;;  %v3449_v18 = vld [vmem:[%s3584_s23 + $0x150] sm:$0xff] }
 0x133   : > { %v1788_v29 = vunpack.c.l.b16 %v1388_v55  ;;  %v974_v26 = vrot.slane %v972_v46, 5  ;;  %v978_v40 = vrot.slane %v976_v48, 4  ;;  %v982_v28 = vshll.u32 %v4517_v7, 16 }
 0x134   : > { %v1676_v47 = vpack.c.b16 %v1628_v14, %v1627_v2  ;;  %v970_v41 = vrot.slane %v969_v51, 4  ;;  %v1950_v36 = vsel %vm1917_vm7, %v3431_v23, %v4583_v31  ;;  %v2001_v7 = vsel %vm1917_vm7, %v3448_v50, %v4606_v45  ;;  %v1860_v31 = vpop.permute.xlu0 %1859  ;;  %v3433_v14 = vld [vmem:[%s3584_s23 + $0x90] sm:$0xff] }
 0x135   : > { %v1836_v0 = vpack.c.b16 %v1788_v29, %v1787_v19  ;;  %v979_v20 = vor.u32 %v978_v40, %v974_v26  ;;  %v984_v35 = vrot.slane %v982_v28, 5  ;;  %v2036_v57 = vsel %vm2014_vm8, %v1950_v36, %v4604_v49  ;;  %v3425_v51 = vld [vmem:[%s3584_s23 + $0x30] sm:$0xff] }
 0x136   : > { %1723 = vrot.lane.b32.xlu1 %v1676_v47, %s3533_s25  ;;  %v975_v39 = vsel %vm3731_vm6, %v970_v41, %v974_v26  ;;  %3393 = vmatmul.msk.bf16.gmra.mxu1 %vm2194_vm9, %v2036_v57  ;;  %v1496_v22 = vrot.slane %v4532_v58, 5  ;;  %v3229_v61 = vrot.slane %v4523_v34, 9  ;;  %v1499_v49 = vrot.slane %v4539_v63, 5  ;;  %v3442_v47 = vld [vmem:[%s3584_s23 + $0xfc] sm:$0xff] }
 0x137   : > { %1883 = vrot.lane.b32.xlu0 %v1836_v0, %s3532_s24  ;;  %v980_v54 = vrot.slane %v979_v20, 4  ;;  %v1977_v42 = vsel %vm1917_vm7, %v3440_v43, %v4613_v60  ;;  %v1643_v9 = vunpack.c.l.b16 %v975_v39  ;;  %v1929_v58 = vsel %vm1917_vm7, %v3424_v24, %v1700_v13  ;;  %v1716_v30 = vpop.permute.xlu2 %1715 }
 0x138   : > { %v1498_v10 = vrot.slane %v1496_v22, 4  ;;  %v2054_v53 = vsel %vm2014_vm8, %v1977_v42, %v1892_v8  ;;  %v2070_v63 = vsel %vm2014_vm8, %v2001_v7, %v1908_v5  ;;  %v1497_v60 = vsel %vm3718_vm3, %v3229_v61, %v1496_v22  ;;  %v3426_v61 = vld [vmem:[%s3584_s23 + $0x3c] sm:$0xff] }
 0x139   : > { %v985_v45 = vsel %vm3731_vm6, %v980_v54, %v984_v35  ;;  %3402 = vmatmul.msk.bf16.gmra.mxu2 %vm2194_vm9, %v2054_v53  ;;  %v1328_v37 = vrot.slane %v4565_v56, 5  ;;  %3410 = vmatmul.msk.bf16.gmra.mxu3 %vm2194_vm9, %v2070_v63  ;;  %v2022_v32 = vsel %vm2014_vm8, %v1929_v58, %v1860_v31  ;;  %v1819_v1 = vunpack.c.l.b16 %v1497_v60  ;;  %v3450_v35 = vld [vmem:[%s3584_s23 + $0x15c] sm:$0xff]  ;;  %v2112_v58 = vld [vmem:[#allocation2 + $0x108] sm:$0xff] }
 0x13a   : > { %v1644_v34 = vunpack.c.l.b16 %v985_v45  ;;  %v1500_v25 = vsel %vm3718_vm3, %v1498_v10, %v1499_v49  ;;  %v3205_v59 = vrot.slane %v4560_v16, 9  ;;  %v1331_v11 = vrot.slane %v4579_v52, 5  ;;  %v1894_v16 = vpop.permute.xlu1 %1893  ;;  %v2111_v54 = vld [vmem:[#allocation2 + $0x100] sm:$0xff] }
 0x13b   : > { %v1820_v17 = vunpack.c.l.b16 %v1500_v25  ;;  %v1330_v5 = vrot.slane %v1328_v37, 4  ;;  %v1953_v56 = vsel %vm1917_vm7, %v3432_v3, %v1716_v30  ;;  %v3434_v45 = vld [vmem:[%s3584_s23 + $0x9c] sm:$0xff] }
 0x13c   : > { %v1684_v33 = vpack.c.b16 %v1644_v34, %v1643_v9  ;;  %v1329_v8 = vsel %vm3718_vm3, %v3205_v59, %v1328_v37  ;;  %v2038_v12 = vsel %vm2014_vm8, %v1953_v56, %v1876_v27  ;;  %v2095_v27 = vld [vmem:[#allocation2 + $0x80] sm:$0xff]  ;;  %v3451_v59 = vld [vmem:[%s3584_s23 + $0x168] sm:$0xff] }
 0x13d   : > { %v1852_v38 = vpack.c.b16 %v1820_v17, %v1819_v1  ;;  %v1332_v13 = vsel %vm3718_vm3, %v1330_v5, %v1331_v11  ;;  %v1771_v21 = vunpack.c.l.b16 %v1329_v8  ;;  %v3443_v11 = vld [vmem:[%s3584_s23 + $0x108] sm:$0xff] }
 0x13e   : > { %1739 = vrot.lane.b32.xlu2 %v1684_v33, %s3533_s25  ;;  %v1750_v44 = vpop.permute.xlu0 %1749  ;;  %v1772_v23 = vunpack.c.l.b16 %v1332_v13  ;;  %v2127_v33 = vld [vmem:[#allocation2 + $0x180] sm:$0xff]  ;;  %v2096_v56 = vld [vmem:[#allocation2 + $0x88] sm:$0xff] }
 0x13f   : > { %3386 = vmatmul.msk.bf16.gmra.mxu0 %vm2194_vm9, %v2022_v32  ;;  %v2004_v6 = vsel %vm1917_vm7, %v3449_v18, %v1750_v44 }
 0x140   : > { %v1828_v62 = vpack.c.b16 %v1772_v23, %v1771_v21 }
 0x143   : > { %v1734_v19 = vpop.permute.xlu2 %1733 }
 0x144   : > { %v1980_v52 = vsel %vm1917_vm7, %v3441_v4, %v1734_v19 }
 0x145   : > { %v2056_v15 = vsel %vm2014_vm8, %v1980_v52, %v1894_v16  ;;  %v1718_v55 = vpop.permute.xlu1 %1717  ;;  %v2128_v16 = vld [vmem:[#allocation2 + $0x188] sm:$0xff] }
 0x146   : > { %1915 = vrot.lane.b32.xlu2 %v1852_v38, %s3532_s24  ;;  %3394 = vmatmul.msk.bf16.gmra.mxu1 %vm2194_vm9, %v2038_v12  ;;  %v1956_v50 = vsel %vm1917_vm7, %v3433_v14, %v1718_v55  ;;  %v2079_v38 = vld [vmem:[#allocation2] sm:$0xff]  ;;  %v3435_v14 = vld [vmem:[%s3584_s23 + $0xa8] sm:$0xff]  ;;  %v2113_v55 = vld [vmem:[#allocation2 + $0x110] sm:$0xff] }
 0x149   : > { %3403 = vmatmul.msk.bf16.gmra.mxu2 %vm2194_vm9, %v2056_v15 }
 0x14a   : > { %v1702_v46 = vpop.permute.xlu0 %1701 }
 0x14b   : > { %v1910_v48 = vpop.permute.xlu2 %1909  ;;  %v1932_v29 = vsel %vm1917_vm7, %v3425_v51, %v1702_v46  ;;  %v3427_v46 = vld [vmem:[%s3584_s23 + $0x48] sm:$0xff] }
 0x14c   : > { %v2072_v2 = vsel %vm2014_vm8, %v2004_v6, %v1910_v48  ;;  %v2080_v48 = vld [vmem:[#allocation2 + $0x8] sm:$0xff] }
 0x14d   : > { %3411 = vmatmul.msk.bf16.gmra.mxu3 %vm2194_vm9, %v2072_v2 }
 0x14e   : > { %1867 = vrot.lane.b32.xlu2 %v1828_v62, %s3532_s24 }
 0x153   : > { %v1862_v26 = vpop.permute.xlu2 %1861  ;;  %v1878_v40 = vpop.permute.xlu0 %1877 }
 0x154   : > { %v2024_v28 = vsel %vm2014_vm8, %v1932_v29, %v1862_v26  ;;  %v2040_v43 = vsel %vm2014_vm8, %v1956_v50, %v1878_v40  ;;  %v1736_v41 = vpop.permute.xlu1 %1735 }
 0x155   : > { %3387 = vmatmul.msk.bf16.gmra.mxu0 %vm2194_vm9, %v2024_v28  ;;  %v1983_v36 = vsel %vm1917_vm7, %v3442_v47, %v1736_v41 }
 0x156   : > { %3395 = vmatmul.msk.bf16.gmra.mxu1 %vm2194_vm9, %v2040_v43 }
 0x15c   : > { %v1896_v0 = vpop.permute.xlu0 %1895  ;;  %v1912_v57 = vpop.permute.xlu1 %1911 }
 0x15d   : > { %v2058_v20 = vsel %vm2014_vm8, %v1983_v36, %v1896_v0  ;;  %v2129_v0 = vld [vmem:[#allocation2 + $0x190] sm:$0xff] }
 0x15e   : > { %3404 = vmatmul.msk.bf16.gmra.mxu2 %vm2194_vm9, %v2058_v20  ;;  %v2114_v20 = vld [vmem:[#allocation2 + $0x118] sm:$0xff] }
 0x163   : > { %v1752_v24 = vpop.permute.xlu2 %1751 }
 0x164   : > { %v2007_v39 = vsel %vm1917_vm7, %v3450_v35, %v1752_v24  ;;  %v1864_v22 = vpop.permute.xlu1 %1863 }
 0x165   : > { %v2074_v7 = vsel %vm2014_vm8, %v2007_v39, %v1912_v57  ;;  %v2081_v57 = vld [vmem:[#allocation2 + $0x10] sm:$0xff] }
 0x166   : > { %3412 = vmatmul.msk.bf16.gmra.mxu3 %vm2194_vm9, %v2074_v7 }
 0x16b   : > { %v1720_v31 = vpop.permute.xlu0 %1719 }
 0x16c   : > { %v1959_v60 = vsel %vm1917_vm7, %v3434_v45, %v1720_v31  ;;  %v3444_v31 = vld [vmem:[%s3584_s23 + $0x114] sm:$0xff] }
 0x16e   : > { %v2348_v49 = vpop.f32.mrf.mxu2 }
 0x16f   : > { %v2460_v42 = vadd.f32 %v2348_v49, %v2111_v54 }
 0x171   : > { %v1704_v9 = vpop.permute.xlu2 %1703  ;;  %2524 = vst.msk [vmem:[#allocation2 + $0x100] sm:$0xff] %vm1917_vm7, %v2460_v42  ;;  %v1754_v30 = vpop.permute.xlu1 %1753 }
 0x172   : > { %v1935_v10 = vsel %vm1917_vm7, %v3426_v61, %v1704_v9  ;;  %v2010_v4 = vsel %vm1917_vm7, %v3451_v59, %v1754_v30  ;;  %v2130_v9 = vld [vmem:[#allocation2 + $0x198] sm:$0xff] }
 0x173   : > { %v2026_v53 = vsel %vm2014_vm8, %v1935_v10, %v1864_v22  ;;  %v2097_v10 = vld [vmem:[#allocation2 + $0x90] sm:$0xff] }
 0x174   : > { %3388 = vmatmul.msk.bf16.gmra.mxu0 %vm2194_vm9, %v2026_v53  ;;  %v3428_v59 = vld [vmem:[%s3584_s23 + $0x54] sm:$0xff] }
 0x176   : > { %v1738_v34 = vpop.permute.xlu0 %1737  ;;  %v2350_v63 = vpop.f32.mrf.mxu2 }
 0x177   : > { %v2308_v25 = vpop.f32.mrf.mxu1  ;;  %v2461_v37 = vadd.f32 %v2350_v63, %v2112_v58  ;;  %v1986_v44 = vsel %vm1917_vm7, %v3443_v11, %v1738_v34  ;;  %v3452_v58 = vld [vmem:[%s3584_s23 + $0x174] sm:$0xff] }
 0x178   : > { %v2444_v3 = vadd.f32 %v2308_v25, %v2095_v27  ;;  %v2082_v34 = vld [vmem:[#allocation2 + $0x18] sm:$0xff] }
 0x179   : > { %v1880_v32 = vpop.permute.xlu2 %1879  ;;  %2525 = vst.msk [vmem:[#allocation2 + $0x108] sm:$0xff] %vm1917_vm7, %v2461_v37  ;;  %v2388_v1 = vpop.f32.mrf.mxu3 }
 0x17a   : > { %v2042_v17 = vsel %vm2014_vm8, %v1959_v60, %v1880_v32  ;;  %2508 = vst.msk [vmem:[#allocation2 + $0x80] sm:$0xff] %vm1917_vm7, %v2444_v3  ;;  %v2476_v5 = vadd.f32 %v2388_v1, %v2127_v33  ;;  %v2098_v1 = vld [vmem:[#allocation2 + $0x98] sm:$0xff] }
 0x17b   : > { %3396 = vmatmul.msk.bf16.gmra.mxu1 %vm2194_vm9, %v2042_v17 }
 0x17c   : > { %2540 = vst.msk [vmem:[#allocation2 + $0x180] sm:$0xff] %vm1917_vm7, %v2476_v5 }
 0x17f   : > { %v2310_v8 = vpop.f32.mrf.mxu1 }
 0x180   : > { %v1706_v13 = vpop.permute.xlu1 %1705  ;;  %v1914_v12 = vpop.permute.xlu0 %1913  ;;  %v2445_v19 = vadd.f32 %v2310_v8, %v2096_v56  ;;  %v2131_v56 = vld [vmem:[#allocation2 + $0x1a0] sm:$0xff] }
 0x181   : > { %v1898_v52 = vpop.permute.xlu2 %1897  ;;  %v2076_v18 = vsel %vm2014_vm8, %v2010_v4, %v1914_v12  ;;  %v2268_v21 = vpop.f32.mrf.mxu0  ;;  %v1938_v2 = vsel %vm1917_vm7, %v3427_v46, %v1706_v13  ;;  %v3436_v4 = vld [vmem:[%s3584_s23 + $0xb4] sm:$0xff] }
 0x182   : > { %v2060_v23 = vsel %vm2014_vm8, %v1986_v44, %v1898_v52  ;;  %3413 = vmatmul.msk.bf16.gmra.mxu3 %vm2194_vm9, %v2076_v18  ;;  %v2428_v15 = vadd.f32 %v2268_v21, %v2079_v38  ;;  %2509 = vst.msk [vmem:[#allocation2 + $0x88] sm:$0xff] %vm1917_vm7, %v2445_v19  ;;  %v2390_v6 = vpop.f32.mrf.mxu3  ;;  %v2083_v21 = vld [vmem:[#allocation2 + $0x20] sm:$0xff] }
 0x183   : > { %3405 = vmatmul.msk.bf16.gmra.mxu2 %vm2194_vm9, %v2060_v23  ;;  %v2477_v62 = vadd.f32 %v2390_v6, %v2128_v16  ;;  %v2115_v23 = vld [vmem:[#allocation2 + $0x120] sm:$0xff] }
 0x184   : > { %2492 = vst.msk [vmem:[#allocation2] sm:$0xff] %vm1917_vm7, %v2428_v15 }
 0x185   : > { %2541 = vst.msk [vmem:[#allocation2 + $0x188] sm:$0xff] %vm1917_vm7, %v2477_v62  ;;  %v2132_v62 = vld [vmem:[#allocation2 + $0x1a8] sm:$0xff] }
 0x188   : > { %v1882_v51 = vpop.permute.xlu1 %1881 }
 0x189   : > { %v2270_v50 = vpop.f32.mrf.mxu0 }
 0x18a   : > { %v1866_v29 = vpop.permute.xlu0 %1865  ;;  %v2429_v26 = vadd.f32 %v2270_v50, %v2080_v48  ;;  %v2353_v40 = vpop.f32.mrf.mxu2  ;;  %v2116_v50 = vld [vmem:[#allocation2 + $0x128] sm:$0xff] }
 0x18b   : > { %v1722_v28 = vpop.permute.xlu2 %1721  ;;  %v2028_v43 = vsel %vm2014_vm8, %v1938_v2, %v1866_v29  ;;  %v2462_v47 = vadd.f32 %v2353_v40, %v2113_v55  ;;  %v2099_v55 = vld [vmem:[#allocation2 + $0xa0] sm:$0xff] }
 0x18c   : > { %v1962_v41 = vsel %vm1917_vm7, %v3435_v14, %v1722_v28  ;;  %3389 = vmatmul.msk.bf16.gmra.mxu0 %vm2194_vm9, %v2028_v43  ;;  %2493 = vst.msk [vmem:[#allocation2 + $0x8] sm:$0xff] %vm1917_vm7, %v2429_v26 }
 0x18d   : > { %v2044_v36 = vsel %vm2014_vm8, %v1962_v41, %v1882_v51  ;;  %2526 = vst.msk [vmem:[#allocation2 + $0x110] sm:$0xff] %vm1917_vm7, %v2462_v47  ;;  %v2084_v51 = vld [vmem:[#allocation2 + $0x28] sm:$0xff] }
 0x18e   : > { %3397 = vmatmul.msk.bf16.gmra.mxu1 %vm2194_vm9, %v2044_v36  ;;  %v2100_v41 = vld [vmem:[#allocation2 + $0xa8] sm:$0xff]  ;;  %v2117_v36 = vld [vmem:[#allocation2 + $0x130] sm:$0xff] }
 0x190   : > { %v1900_v61 = vpop.permute.xlu1 %1899 }
 0x192   : > { %v2393_v35 = vpop.f32.mrf.mxu3  ;;  %v2355_v24 = vpop.f32.mrf.mxu2 }
 0x193   : > { %v2478_v39 = vadd.f32 %v2393_v35, %v2129_v0  ;;  %v2463_v7 = vadd.f32 %v2355_v24, %v2114_v20  ;;  %v2085_v0 = vld [vmem:[#allocation2 + $0x30] sm:$0xff] }
 0x194   : > { %v2273_v22 = vpop.f32.mrf.mxu0  ;;  %v2133_v24 = vld [vmem:[#allocation2 + $0x1b0] sm:$0xff] }
 0x195   : > { %2542 = vst.msk [vmem:[#allocation2 + $0x190] sm:$0xff] %vm1917_vm7, %v2478_v39  ;;  %v2430_v54 = vadd.f32 %v2273_v22, %v2081_v57 }
 0x196   : > { %2527 = vst.msk [vmem:[#allocation2 + $0x118] sm:$0xff] %vm1917_vm7, %v2463_v7 }
 0x197   : > { %2494 = vst.msk [vmem:[#allocation2 + $0x10] sm:$0xff] %vm1917_vm7, %v2430_v54 }
 0x198   : > { %v1740_v49 = vpop.permute.xlu2 %1739  ;;  %v1756_v42 = vpop.permute.xlu0 %1755 }
 0x199   : > { %v1989_v53 = vsel %vm1917_vm7, %v3444_v31, %v1740_v49  ;;  %v2013_v33 = vsel %vm1917_vm7, %v3452_v58, %v1756_v42  ;;  %v2118_v49 = vld [vmem:[#allocation2 + $0x138] sm:$0xff] }
 0x19a   : > { %v2062_v45 = vsel %vm2014_vm8, %v1989_v53, %v1900_v61  ;;  %v2395_v30 = vpop.f32.mrf.mxu3  ;;  %v2313_v27 = vpop.f32.mrf.mxu1  ;;  %v2101_v61 = vld [vmem:[#allocation2 + $0xb0] sm:$0xff]  ;;  %v2086_v42 = vld [vmem:[#allocation2 + $0x38] sm:$0xff] }
 0x19b   : > { %3406 = vmatmul.msk.bf16.gmra.mxu2 %vm2194_vm9, %v2062_v45  ;;  %v2479_v63 = vadd.f32 %v2395_v30, %v2130_v9  ;;  %v2446_v60 = vadd.f32 %v2313_v27, %v2097_v10  ;;  %v2134_v45 = vld [vmem:[#allocation2 + $0x1b8] sm:$0xff] }
 0x19c   : > { %v2275_v25 = vpop.f32.mrf.mxu0 }
 0x19d   : > { %2543 = vst.msk [vmem:[#allocation2 + $0x198] sm:$0xff] %vm1917_vm7, %v2479_v63  ;;  %v2431_v37 = vadd.f32 %v2275_v25, %v2082_v34  ;;  %v2119_v25 = vld [vmem:[#allocation2 + $0x140] sm:$0xff] }
 0x19e   : > { %2510 = vst.msk [vmem:[#allocation2 + $0x90] sm:$0xff] %vm1917_vm7, %v2446_v60  ;;  %v2102_v60 = vld [vmem:[#allocation2 + $0xb8] sm:$0xff] }
 0x19f   : > { %2495 = vst.msk [vmem:[#allocation2 + $0x18] sm:$0xff] %vm1917_vm7, %v2431_v37 }
 0x1a0   : > { %v1916_v3 = vpop.permute.xlu2 %1915  ;;  %v1708_v32 = vpop.permute.xlu0 %1707 }
 0x1a1   : > { %v2078_v17 = vsel %vm2014_vm8, %v2013_v33, %v1916_v3  ;;  %v1941_v44 = vsel %vm1917_vm7, %v3428_v59, %v1708_v32  ;;  %v2087_v59 = vld [vmem:[#allocation2 + $0x40] sm:$0xff] }
 0x1a2   : > { %3414 = vmatmul.msk.bf16.gmra.mxu3 %vm2194_vm9, %v2078_v17  ;;  %v2315_v5 = vpop.f32.mrf.mxu1 }
 0x1a3   : > { %v2447_v11 = vadd.f32 %v2315_v5, %v2098_v1  ;;  %v2135_v1 = vld [vmem:[#allocation2 + $0x1c0] sm:$0xff] }
 0x1a5   : > { %2511 = vst.msk [vmem:[#allocation2 + $0x98] sm:$0xff] %vm1917_vm7, %v2447_v11  ;;  %v2103_v11 = vld [vmem:[#allocation2 + $0xc0] sm:$0xff] }
 0x1a6   : > { %v2398_v38 = vpop.f32.mrf.mxu3 }
 0x1a7   : > { %v2480_v8 = vadd.f32 %v2398_v38, %v2131_v56 }
 0x1a8   : > { %v1868_v13 = vpop.permute.xlu2 %1867  ;;  %v1724_v12 = vpop.permute.xlu1 %1723 }
 0x1a9   : > { %v2030_v19 = vsel %vm2014_vm8, %v1941_v44, %v1868_v13  ;;  %v1965_v16 = vsel %vm1917_vm7, %v3436_v4, %v1724_v12  ;;  %v1884_v52 = vpop.permute.xlu0 %1883  ;;  %2544 = vst.msk [vmem:[#allocation2 + $0x1a0] sm:$0xff] %vm1917_vm7, %v2480_v8  ;;  %v2120_v4 = vld [vmem:[#allocation2 + $0x148] sm:$0xff] }
 0x1aa   : > { %3390 = vmatmul.msk.bf16.gmra.mxu0 %vm2194_vm9, %v2030_v19  ;;  %v2046_v18 = vsel %vm2014_vm8, %v1965_v16, %v1884_v52  ;;  %v2136_v19 = vld [vmem:[#allocation2 + $0x1c8] sm:$0xff] }
 0x1ab   : > { %3398 = vmatmul.msk.bf16.gmra.mxu1 %vm2194_vm9, %v2046_v18  ;;  %v2088_v52 = vld [vmem:[#allocation2 + $0x48] sm:$0xff] }
 0x1ac   : > { %v2278_v15 = vpop.f32.mrf.mxu0  ;;  %v2358_v6 = vpop.f32.mrf.mxu2 }
 0x1ad   : > { %v2432_v46 = vadd.f32 %v2278_v15, %v2083_v21  ;;  %v2464_v48 = vadd.f32 %v2358_v6, %v2115_v23  ;;  %v2104_v21 = vld [vmem:[#allocation2 + $0xc8] sm:$0xff] }
 0x1ae   : > { %v2400_v2 = vpop.f32.mrf.mxu3 }
 0x1af   : > { %2496 = vst.msk [vmem:[#allocation2 + $0x20] sm:$0xff] %vm1917_vm7, %v2432_v46  ;;  %v2481_v14 = vadd.f32 %v2400_v2, %v2132_v62  ;;  %v2121_v46 = vld [vmem:[#allocation2 + $0x150] sm:$0xff] }
 0x1b0   : > { %2528 = vst.msk [vmem:[#allocation2 + $0x120] sm:$0xff] %vm1917_vm7, %v2464_v48 }
 0x1b1   : > { %2545 = vst.msk [vmem:[#allocation2 + $0x1a8] sm:$0xff] %vm1917_vm7, %v2481_v14  ;;  %v2137_v14 = vld [vmem:[#allocation2 + $0x1d0] sm:$0xff] }
 0x1b3   : > { %v2318_v29 = vpop.f32.mrf.mxu1 }
 0x1b4   : > { %v2448_v26 = vadd.f32 %v2318_v29, %v2099_v55  ;;  %v2280_v40 = vpop.f32.mrf.mxu0  ;;  %v2360_v28 = vpop.f32.mrf.mxu2  ;;  %v2122_v55 = vld [vmem:[#allocation2 + $0x158] sm:$0xff] }
 0x1b5   : > { %v2433_v43 = vadd.f32 %v2280_v40, %v2084_v51  ;;  %v2465_v47 = vadd.f32 %v2360_v28, %v2116_v50  ;;  %v2089_v40 = vld [vmem:[#allocation2 + $0x50] sm:$0xff]  ;;  %v2138_v28 = vld [vmem:[#allocation2 + $0x1d8] sm:$0xff] }
 0x1b6   : > { %2512 = vst.msk [vmem:[#allocation2 + $0xa0] sm:$0xff] %vm1917_vm7, %v2448_v26 }
 0x1b7   : > { %2497 = vst.msk [vmem:[#allocation2 + $0x28] sm:$0xff] %vm1917_vm7, %v2433_v43 }
 0x1b8   : > { %2529 = vst.msk [vmem:[#allocation2 + $0x128] sm:$0xff] %vm1917_vm7, %v2465_v47 }
 0x1bb   : > { %v2320_v20 = vpop.f32.mrf.mxu1 }
 0x1bc   : > { %v2449_v35 = vadd.f32 %v2320_v20, %v2100_v41  ;;  %v2363_v57 = vpop.f32.mrf.mxu2  ;;  %v2283_v39 = vpop.f32.mrf.mxu0  ;;  %v2090_v20 = vld [vmem:[#allocation2 + $0x58] sm:$0xff] }
 0x1bd   : > { %v2466_v7 = vadd.f32 %v2363_v57, %v2117_v36  ;;  %v2434_v22 = vadd.f32 %v2283_v39, %v2085_v0  ;;  %v2403_v31 = vpop.f32.mrf.mxu3  ;;  %v2105_v0 = vld [vmem:[#allocation2 + $0xd0] sm:$0xff] }
 0x1be   : > { %2513 = vst.msk [vmem:[#allocation2 + $0xa8] sm:$0xff] %vm1917_vm7, %v2449_v35  ;;  %v2482_v54 = vadd.f32 %v2403_v31, %v2133_v24 }
 0x1bf   : > { %2530 = vst.msk [vmem:[#allocation2 + $0x130] sm:$0xff] %vm1917_vm7, %v2466_v7  ;;  %v2106_v7 = vld [vmem:[#allocation2 + $0xd8] sm:$0xff] }
 0x1c0   : > { %2498 = vst.msk [vmem:[#allocation2 + $0x30] sm:$0xff] %vm1917_vm7, %v2434_v22 }
 0x1c1   : > { %2546 = vst.msk [vmem:[#allocation2 + $0x1b0] sm:$0xff] %vm1917_vm7, %v2482_v54  ;;  %v2139_v54 = vld [vmem:[#allocation2 + $0x1e0] sm:$0xff] }
 0x1c3   : > { %v2323_v9 = vpop.f32.mrf.mxu1 }
 0x1c4   : > { %v2450_v10 = vadd.f32 %v2323_v9, %v2101_v61  ;;  %v2365_v53 = vpop.f32.mrf.mxu2  ;;  %v2285_v58 = vpop.f32.mrf.mxu0  ;;  %v2123_v61 = vld [vmem:[#allocation2 + $0x160] sm:$0xff] }
 0x1c5   : > { %v2467_v30 = vadd.f32 %v2365_v53, %v2118_v49  ;;  %v2435_v27 = vadd.f32 %v2285_v58, %v2086_v42  ;;  %v2405_v34 = vpop.f32.mrf.mxu3  ;;  %v2091_v53 = vld [vmem:[#allocation2 + $0x60] sm:$0xff] }
 0x1c6   : > { %2514 = vst.msk [vmem:[#allocation2 + $0xb0] sm:$0xff] %vm1917_vm7, %v2450_v10  ;;  %v2483_v63 = vadd.f32 %v2405_v34, %v2134_v45  ;;  %v2107_v45 = vld [vmem:[#allocation2 + $0xe0] sm:$0xff]  ;;  %v2140_v34 = vld [vmem:[#allocation2 + $0x1e8] sm:$0xff] }
 0x1c7   : > { %2531 = vst.msk [vmem:[#allocation2 + $0x138] sm:$0xff] %vm1917_vm7, %v2467_v30 }
 0x1c8   : > { %2499 = vst.msk [vmem:[#allocation2 + $0x38] sm:$0xff] %vm1917_vm7, %v2435_v27 }
 0x1c9   : > { %2547 = vst.msk [vmem:[#allocation2 + $0x1b8] sm:$0xff] %vm1917_vm7, %v2483_v63 }
 0x1cb   : > { %v2325_v37 = vpop.f32.mrf.mxu1 }
 0x1cc   : > { %v2451_v33 = vadd.f32 %v2325_v37, %v2102_v60  ;;  %v2368_v3 = vpop.f32.mrf.mxu2  ;;  %v2124_v60 = vld [vmem:[#allocation2 + $0x168] sm:$0xff] }
 0x1cd   : > { %v2468_v32 = vadd.f32 %v2368_v3, %v2119_v25 }
 0x1ce   : > { %2515 = vst.msk [vmem:[#allocation2 + $0xb8] sm:$0xff] %vm1917_vm7, %v2451_v33 }
 0x1cf   : > { %2532 = vst.msk [vmem:[#allocation2 + $0x140] sm:$0xff] %vm1917_vm7, %v2468_v32  ;;  %v2092_v32 = vld [vmem:[#allocation2 + $0x68] sm:$0xff] }
 0x1d0   : > { %v2408_v17 = vpop.f32.mrf.mxu3 }
 0x1d1   : > { %v2484_v5 = vadd.f32 %v2408_v17, %v2135_v1  ;;  %v2108_v1 = vld [vmem:[#allocation2 + $0xe8] sm:$0xff] }
 0x1d2   : > { %v2288_v56 = vpop.f32.mrf.mxu0 }
 0x1d3   : > { %2548 = vst.msk [vmem:[#allocation2 + $0x1c0] sm:$0xff] %vm1917_vm7, %v2484_v5  ;;  %v2436_v44 = vadd.f32 %v2288_v56, %v2087_v59  ;;  %v2328_v38 = vpop.f32.mrf.mxu1  ;;  %v2125_v56 = vld [vmem:[#allocation2 + $0x170] sm:$0xff] }
 0x1d4   : > { %v2370_v8 = vpop.f32.mrf.mxu2  ;;  %v2452_v13 = vadd.f32 %v2328_v38, %v2103_v11  ;;  %v2141_v38 = vld [vmem:[#allocation2 + $0x1f0] sm:$0xff] }
 0x1d5   : > { %2500 = vst.msk [vmem:[#allocation2 + $0x40] sm:$0xff] %vm1917_vm7, %v2436_v44  ;;  %v2469_v12 = vadd.f32 %v2370_v8, %v2120_v4  ;;  %v2126_v8 = vld [vmem:[#allocation2 + $0x178] sm:$0xff] }
 0x1d6   : > { %2516 = vst.msk [vmem:[#allocation2 + $0xc0] sm:$0xff] %vm1917_vm7, %v2452_v13 }
 0x1d7   : > { %2533 = vst.msk [vmem:[#allocation2 + $0x148] sm:$0xff] %vm1917_vm7, %v2469_v12  ;;  %v2093_v12 = vld [vmem:[#allocation2 + $0x70] sm:$0xff] }
 0x1d8   : > { %v2410_v16 = vpop.f32.mrf.mxu3 }
 0x1d9   : > { %v2485_v18 = vadd.f32 %v2410_v16, %v2136_v19 }
 0x1da   : > { %v2290_v23 = vpop.f32.mrf.mxu0 }
 0x1db   : > { %2549 = vst.msk [vmem:[#allocation2 + $0x1c8] sm:$0xff] %vm1917_vm7, %v2485_v18  ;;  %v2437_v15 = vadd.f32 %v2290_v23, %v2088_v52  ;;  %v2330_v6 = vpop.f32.mrf.mxu1  ;;  %v2109_v52 = vld [vmem:[#allocation2 + $0xf0] sm:$0xff] }
 0x1dc   : > { %v2453_v62 = vadd.f32 %v2330_v6, %v2104_v21 }
 0x1dd   : > { %2501 = vst.msk [vmem:[#allocation2 + $0x48] sm:$0xff] %vm1917_vm7, %v2437_v15 }
 0x1de   : > { %2517 = vst.msk [vmem:[#allocation2 + $0xc8] sm:$0xff] %vm1917_vm7, %v2453_v62  ;;  %v2142_v62 = vld [vmem:[#allocation2 + $0x1f8] sm:$0xff] }
 0x1e1   : > { %v2373_v48 = vpop.f32.mrf.mxu2 }
 0x1e2   : > { %v2470_v2 = vadd.f32 %v2373_v48, %v2121_v46  ;;  %v2094_v48 = vld [vmem:[#allocation2 + $0x78] sm:$0xff] }
 0x1e4   : > { %2534 = vst.msk [vmem:[#allocation2 + $0x150] sm:$0xff] %vm1917_vm7, %v2470_v2 }
 0x1e9   : > { %v2413_v51 = vpop.f32.mrf.mxu3  ;;  %v2375_v50 = vpop.f32.mrf.mxu2 }
 0x1ea   : > { %v2486_v29 = vadd.f32 %v2413_v51, %v2137_v14  ;;  %v2471_v26 = vadd.f32 %v2375_v50, %v2122_v55  ;;  %v2110_v14 = vld [vmem:[#allocation2 + $0xf8] sm:$0xff] }
 0x1ec   : > { %2550 = vst.msk [vmem:[#allocation2 + $0x1d0] sm:$0xff] %vm1917_vm7, %v2486_v29 }
 0x1ed   : > { %2535 = vst.msk [vmem:[#allocation2 + $0x158] sm:$0xff] %vm1917_vm7, %v2471_v26 }
 0x1f1   : > { %v2293_v43 = vpop.f32.mrf.mxu0  ;;  %v2415_v47 = vpop.f32.mrf.mxu3 }
 0x1f2   : > { %v2438_v41 = vadd.f32 %v2293_v43, %v2089_v40  ;;  %v2487_v36 = vadd.f32 %v2415_v47, %v2138_v28 }
 0x1f4   : > { %2502 = vst.msk [vmem:[#allocation2 + $0x50] sm:$0xff] %vm1917_vm7, %v2438_v41 }
 0x1f5   : > { %2551 = vst.msk [vmem:[#allocation2 + $0x1d8] sm:$0xff] %vm1917_vm7, %v2487_v36 }
 0x1f8   : > { %v2333_v35 = vpop.f32.mrf.mxu1 }
 0x1f9   : > { %v2454_v57 = vadd.f32 %v2333_v35, %v2105_v0  ;;  %v2295_v24 = vpop.f32.mrf.mxu0 }
 0x1fa   : > { %v2439_v39 = vadd.f32 %v2295_v24, %v2090_v20 }
 0x1fb   : > { %2518 = vst.msk [vmem:[#allocation2 + $0xd0] sm:$0xff] %vm1917_vm7, %v2454_v57 }
 0x1fc   : > { %2503 = vst.msk [vmem:[#allocation2 + $0x58] sm:$0xff] %vm1917_vm7, %v2439_v39 }
 0x200   : > { %v2335_v22 = vpop.f32.mrf.mxu1 }
 0x201   : > { %v2455_v31 = vadd.f32 %v2335_v22, %v2106_v7 }
 0x203   : > { %2519 = vst.msk [vmem:[#allocation2 + $0xd8] sm:$0xff] %vm1917_vm7, %v2455_v31 }
 0x205   : > { %v2418_v49 = vpop.f32.mrf.mxu3 }
 0x206   : > { %v2378_v42 = vpop.f32.mrf.mxu2  ;;  %v2488_v9 = vadd.f32 %v2418_v49, %v2139_v54 }
 0x207   : > { %v2472_v10 = vadd.f32 %v2378_v42, %v2123_v61 }
 0x208   : > { %2552 = vst.msk [vmem:[#allocation2 + $0x1e0] sm:$0xff] %vm1917_vm7, %v2488_v9 }
 0x209   : > { %2536 = vst.msk [vmem:[#allocation2 + $0x160] sm:$0xff] %vm1917_vm7, %v2472_v10  ;;  %v2298_v58 = vpop.f32.mrf.mxu0 }
 0x20a   : > { %v2440_v30 = vadd.f32 %v2298_v58, %v2091_v53 }
 0x20b   : > { %v2338_v27 = vpop.f32.mrf.mxu1 }
 0x20c   : > { %v2456_v63 = vadd.f32 %v2338_v27, %v2107_v45  ;;  %2504 = vst.msk [vmem:[#allocation2 + $0x60] sm:$0xff] %vm1917_vm7, %v2440_v30 }
 0x20d   : > { %v2420_v25 = vpop.f32.mrf.mxu3 }
 0x20e   : > { %2520 = vst.msk [vmem:[#allocation2 + $0xe0] sm:$0xff] %vm1917_vm7, %v2456_v63  ;;  %v2380_v37 = vpop.f32.mrf.mxu2  ;;  %v2489_v33 = vadd.f32 %v2420_v25, %v2140_v34 }
 0x20f   : > { %v2473_v3 = vadd.f32 %v2380_v37, %v2124_v60 }
 0x210   : > { %2553 = vst.msk [vmem:[#allocation2 + $0x1e8] sm:$0xff] %vm1917_vm7, %v2489_v33 }
 0x211   : > { %2537 = vst.msk [vmem:[#allocation2 + $0x168] sm:$0xff] %vm1917_vm7, %v2473_v3  ;;  %v2300_v17 = vpop.f32.mrf.mxu0 }
 0x212   : > { %v2441_v59 = vadd.f32 %v2300_v17, %v2092_v32 }
 0x213   : > { %v2340_v5 = vpop.f32.mrf.mxu1 }
 0x214   : > { %v2457_v11 = vadd.f32 %v2340_v5, %v2108_v1  ;;  %2505 = vst.msk [vmem:[#allocation2 + $0x68] sm:$0xff] %vm1917_vm7, %v2441_v59 }
 0x216   : > { %2521 = vst.msk [vmem:[#allocation2 + $0xe8] sm:$0xff] %vm1917_vm7, %v2457_v11 }
 0x21e   : > { %v2383_v4 = vpop.f32.mrf.mxu2 }
 0x21f   : > { %v2474_v44 = vadd.f32 %v2383_v4, %v2125_v56 }
 0x221   : > { %2538 = vst.msk [vmem:[#allocation2 + $0x170] sm:$0xff] %vm1917_vm7, %v2474_v44 }
 0x225   : > { %v2423_v13 = vpop.f32.mrf.mxu3 }
 0x226   : > { %v2490_v19 = vadd.f32 %v2423_v13, %v2141_v38  ;;  %v2385_v16 = vpop.f32.mrf.mxu2 }
 0x227   : > { %v2303_v18 = vpop.f32.mrf.mxu0  ;;  %v2475_v21 = vadd.f32 %v2385_v16, %v2126_v8 }
 0x228   : > { %2554 = vst.msk [vmem:[#allocation2 + $0x1f0] sm:$0xff] %vm1917_vm7, %v2490_v19  ;;  %v2442_v23 = vadd.f32 %v2303_v18, %v2093_v12  ;;  %v2343_v15 = vpop.f32.mrf.mxu1 }
 0x229   : > { %2539 = vst.msk [vmem:[#allocation2 + $0x178] sm:$0xff] %vm1917_vm7, %v2475_v21  ;;  %v2458_v6 = vadd.f32 %v2343_v15, %v2109_v52 }
 0x22a   : > { %2506 = vst.msk [vmem:[#allocation2 + $0x70] sm:$0xff] %vm1917_vm7, %v2442_v23 }
 0x22b   : > { %2522 = vst.msk [vmem:[#allocation2 + $0xf0] sm:$0xff] %vm1917_vm7, %v2458_v6 }
 0x22d   : > { %v2425_v46 = vpop.f32.mrf.mxu3 }
 0x22e   : > { %v2491_v2 = vadd.f32 %v2425_v46, %v2142_v62 }
 0x22f   : > { %v2305_v55 = vpop.f32.mrf.mxu0  ;;  %2559 = sbr.rel (%p3415_p6) target bundleno = 712 (0x2c8), region = 40 }
 0x230   : > { %2555 = vst.msk [vmem:[#allocation2 + $0x1f8] sm:$0xff] %vm1917_vm7, %v2491_v2  ;;  %v2443_v51 = vadd.f32 %v2305_v55, %v2094_v48  ;;  %v2345_v50 = vpop.f32.mrf.mxu1 }
 0x231   : > { %v2459_v29 = vadd.f32 %v2345_v50, %v2110_v14 }
 0x232   : > { %2507 = vst.msk [vmem:[#allocation2 + $0x78] sm:$0xff] %vm1917_vm7, %v2443_v51 }
 0x233   : > { %2523 = vst.msk [vmem:[#allocation2 + $0xf8] sm:$0xff] %vm1917_vm7, %v2459_v29 }
 0x234   : > { %v2560_v26 = vld [vmem:[#allocation2] sm:$0xff]  ;;  %v2561_v28 = vld [vmem:[#allocation2 + $0x8] sm:$0xff]  ;;  %v2562_v43 = vld [vmem:[#allocation2 + $0x10] sm:$0xff]  ;;  %vm3086_vm10 = vcmask 1040384   ;;  %vm3088_vm11 = vcmask 1041408  }
 0x235   : > { %v4824_v40 = vld [vmem:[%s5547_s2] ss:$0 sm:$0xff]  ;;  %v2563_v47 = vld [vmem:[#allocation2 + $0x18] sm:$0xff]  ;;  %v2565_v57 = vld [vmem:[#allocation2 + $0x28] sm:$0xff] }
 0x236   : > { %v2628_v41 = vadd.f32 %v4824_v40, %v2560_v26  ;;  %v2629_v36 = vadd.f32 %v4824_v40, %v2561_v28  ;;  %v2630_v0 = vadd.f32 %v4824_v40, %v2562_v43  ;;  %v2631_v20 = vadd.f32 %v4824_v40, %v2563_v47  ;;  %v2564_v35 = vld [vmem:[#allocation2 + $0x20] sm:$0xff]  ;;  %v2566_v24 = vld [vmem:[#allocation2 + $0x30] sm:$0xff]  ;;  %v2567_v25 = vld [vmem:[#allocation2 + $0x38] sm:$0xff] }
 0x237   : > { %v2632_v39 = vadd.f32 %v4824_v40, %v2564_v35  ;;  %v2633_v7 = vadd.f32 %v4824_v40, %v2565_v57  ;;  %v2634_v10 = vadd.f32 %v4824_v40, %v2566_v24  ;;  %v2568_v37 = vld [vmem:[#allocation2 + $0x40] sm:$0xff]  ;;  %v2569_v5 = vld [vmem:[#allocation2 + $0x48] sm:$0xff]  ;;  %v2635_v4 = vadd.f32 %v4824_v40, %v2567_v25  ;;  %v2570_v38 = vld [vmem:[#allocation2 + $0x50] sm:$0xff] }
 0x238   : > { %2692 = vst.msk [vmem:[%s5548_s3] sm:$0xff] %vm1917_vm7, %v2628_v41  ;;  %v2756_v22 = vsel %vm1917_vm7, %v2628_v41, 0.0  ;;  %v2889_v31 = vmul.f32 %v2628_v41, %v2628_v41  ;;  %v2757_v54 = vsel %vm1917_vm7, %v2629_v36, 0.0  ;;  %v2890_v61 = vmul.f32 %v2629_v36, %v2629_v36  ;;  %v2571_v18 = vld [vmem:[#allocation2 + $0x58] sm:$0xff]  ;;  %v2572_v6 = vld [vmem:[#allocation2 + $0x60] sm:$0xff]  ;;  %v2573_v2 = vld [vmem:[#allocation2 + $0x68] sm:$0xff] }
 0x239   : > { %2693 = vst.msk [vmem:[%s5548_s3 + $0x8] sm:$0xff] %vm1917_vm7, %v2629_v36  ;;  %v2758_v49 = vadd.f32 %v2757_v54, %v2756_v22  ;;  %v2759_v42 = vsel %vm1917_vm7, %v2630_v0, 0.0  ;;  %v2891_v9 = vmul.f32 %v2630_v0, %v2630_v0  ;;  %v2761_v58 = vsel %vm1917_vm7, %v2631_v20, 0.0  ;;  %v2574_v50 = vld [vmem:[#allocation2 + $0x70] sm:$0xff] }
 0x23a   : > { %v2953_v53 = vsel %vm1917_vm7, %v2889_v31, 0.0  ;;  %v2954_v45 = vsel %vm1917_vm7, %v2890_v61, 0.0  ;;  %2694 = vst.msk [vmem:[%s5548_s3 + $0x10] sm:$0xff] %vm1917_vm7, %v2630_v0  ;;  %v2892_v30 = vmul.f32 %v2631_v20, %v2631_v20  ;;  %v2893_v60 = vmul.f32 %v2632_v39, %v2632_v39  ;;  %v2575_v0 = vld [vmem:[#allocation2 + $0x78] sm:$0xff]  ;;  %v2577_v31 = vld [vmem:[#allocation2 + $0x88] sm:$0xff] }
 0x23b   : > { %v2955_v27 = vadd.f32 %v2954_v45, %v2953_v53  ;;  %v2760_v34 = vadd.f32 %v2759_v42, %v2758_v49  ;;  %v2956_v63 = vsel %vm1917_vm7, %v2891_v9, 0.0  ;;  %2695 = vst.msk [vmem:[%s5548_s3 + $0x18] sm:$0xff] %vm1917_vm7, %v2631_v20  ;;  %v2763_v3 = vsel %vm1917_vm7, %v2632_v39, 0.0  ;;  %v2578_v9 = vld [vmem:[#allocation2 + $0x90] sm:$0xff] }
 0x23c   : > { %v2958_v33 = vsel %vm1917_vm7, %v2892_v30, 0.0  ;;  %2696 = vst.msk [vmem:[%s5548_s3 + $0x20] sm:$0xff] %vm1917_vm7, %v2632_v39  ;;  %v2894_v32 = vmul.f32 %v2633_v7, %v2633_v7  ;;  %v2765_v59 = vsel %vm1917_vm7, %v2633_v7, 0.0  ;;  %v2960_v11 = vsel %vm1917_vm7, %v2893_v60, 0.0  ;;  %v2576_v39 = vld [vmem:[#allocation2 + $0x80] sm:$0xff] }
 0x23d   : > { %v2957_v1 = vadd.f32 %v2956_v63, %v2955_v27  ;;  %v2762_v17 = vadd.f32 %v2761_v58, %v2760_v34  ;;  %2697 = vst.msk [vmem:[%s5548_s3 + $0x28] sm:$0xff] %vm1917_vm7, %v2633_v7  ;;  %v2895_v56 = vmul.f32 %v2634_v10, %v2634_v10  ;;  %v2636_v44 = vadd.f32 %v4824_v40, %v2568_v37  ;;  %v2579_v37 = vld [vmem:[#allocation2 + $0x98] sm:$0xff] }
 0x23e   : > { %2698 = vst.msk [vmem:[%s5548_s3 + $0x30] sm:$0xff] %vm1917_vm7, %v2634_v10  ;;  %v2962_v12 = vsel %vm1917_vm7, %v2894_v32, 0.0  ;;  %v2767_v19 = vsel %vm1917_vm7, %v2634_v10, 0.0  ;;  %v2896_v16 = vmul.f32 %v2635_v4, %v2635_v4  ;;  %v2637_v52 = vadd.f32 %v4824_v40, %v2569_v5  ;;  %v2581_v5 = vld [vmem:[#allocation2 + $0xa8] sm:$0xff] }
 0x23f   : > { %v2959_v8 = vadd.f32 %v2958_v33, %v2957_v1  ;;  %v2764_v13 = vadd.f32 %v2763_v3, %v2762_v17  ;;  %2699 = vst.msk [vmem:[%s5548_s3 + $0x38] sm:$0xff] %vm1917_vm7, %v2635_v4  ;;  %v2638_v15 = vadd.f32 %v4824_v40, %v2570_v38  ;;  %v2964_v62 = vsel %vm1917_vm7, %v2895_v56, 0.0  ;;  %v2580_v1 = vld [vmem:[#allocation2 + $0xa0] sm:$0xff]  ;;  %v2582_v38 = vld [vmem:[#allocation2 + $0xb0] sm:$0xff] }
 0x240   : > { %2700 = vst.msk [vmem:[%s5548_s3 + $0x40] sm:$0xff] %vm1917_vm7, %v2636_v44  ;;  %v2769_v46 = vsel %vm1917_vm7, %v2635_v4, 0.0  ;;  %v2897_v48 = vmul.f32 %v2636_v44, %v2636_v44  ;;  %v2639_v51 = vadd.f32 %v4824_v40, %v2571_v18  ;;  %v2966_v29 = vsel %vm1917_vm7, %v2896_v16, 0.0 }
 0x241   : > { %v2961_v21 = vadd.f32 %v2960_v11, %v2959_v8  ;;  %v2766_v23 = vadd.f32 %v2765_v59, %v2764_v13  ;;  %2701 = vst.msk [vmem:[%s5548_s3 + $0x48] sm:$0xff] %vm1917_vm7, %v2637_v52  ;;  %v2771_v26 = vsel %vm1917_vm7, %v2636_v44, 0.0  ;;  %v2898_v28 = vmul.f32 %v2637_v52, %v2637_v52 }
 0x242   : > { %2702 = vst.msk [vmem:[%s5548_s3 + $0x50] sm:$0xff] %vm1917_vm7, %v2638_v15  ;;  %v2640_v43 = vadd.f32 %v4824_v40, %v2572_v6  ;;  %v2641_v36 = vadd.f32 %v4824_v40, %v2573_v2  ;;  %v2968_v20 = vsel %vm1917_vm7, %v2897_v48, 0.0  ;;  %v2773_v35 = vsel %vm1917_vm7, %v2637_v52, 0.0 }
 0x243   : > { %v2963_v14 = vadd.f32 %v2962_v12, %v2961_v21  ;;  %v2768_v55 = vadd.f32 %v2767_v19, %v2766_v23  ;;  %2703 = vst.msk [vmem:[%s5548_s3 + $0x58] sm:$0xff] %vm1917_vm7, %v2639_v51  ;;  %v2899_v57 = vmul.f32 %v2638_v15, %v2638_v15  ;;  %v2642_v24 = vadd.f32 %v4824_v40, %v2574_v50  ;;  %v2583_v21 = vld [vmem:[#allocation2 + $0xb8] sm:$0xff] }
 0x244   : > { %2704 = vst.msk [vmem:[%s5548_s3 + $0x60] sm:$0xff] %vm1917_vm7, %v2640_v43  ;;  %v2970_v54 = vsel %vm1917_vm7, %v2898_v28, 0.0  ;;  %v2775_v61 = vsel %vm1917_vm7, %v2638_v15, 0.0  ;;  %v2900_v49 = vmul.f32 %v2639_v51, %v2639_v51  ;;  %v2643_v42 = vadd.f32 %v4824_v40, %v2575_v0 }
 0x245   : > { %v2965_v47 = vadd.f32 %v2964_v62, %v2963_v14  ;;  %v2770_v41 = vadd.f32 %v2769_v46, %v2768_v55  ;;  %2705 = vst.msk [vmem:[%s5548_s3 + $0x68] sm:$0xff] %vm1917_vm7, %v2641_v36  ;;  %v2644_v45 = vadd.f32 %v4824_v40, %v2576_v39  ;;  %v2972_v58 = vsel %vm1917_vm7, %v2899_v57, 0.0  ;;  %v2584_v62 = vld [vmem:[#allocation2 + $0xc0] sm:$0xff]  ;;  %v2585_v14 = vld [vmem:[#allocation2 + $0xc8] sm:$0xff] }
 0x246   : > { %2706 = vst.msk [vmem:[%s5548_s3 + $0x70] sm:$0xff] %vm1917_vm7, %v2642_v24  ;;  %v2777_v30 = vsel %vm1917_vm7, %v2639_v51, 0.0  ;;  %v2901_v27 = vmul.f32 %v2640_v43, %v2640_v43  ;;  %v2645_v34 = vadd.f32 %v4824_v40, %v2577_v31  ;;  %v2646_v25 = vadd.f32 %v4824_v40, %v2578_v9 }
 0x247   : > { %v2967_v7 = vadd.f32 %v2966_v29, %v2965_v47  ;;  %v2772_v22 = vadd.f32 %v2771_v26, %v2770_v41  ;;  %2707 = vst.msk [vmem:[%s5548_s3 + $0x78] sm:$0xff] %vm1917_vm7, %v2643_v42  ;;  %v2974_v33 = vsel %vm1917_vm7, %v2900_v49, 0.0  ;;  %v2779_v3 = vsel %vm1917_vm7, %v2640_v43, 0.0  ;;  %v2586_v29 = vld [vmem:[#allocation2 + $0xd0] sm:$0xff] }
 0x248   : > { %2708 = vst.msk [vmem:[%s5548_s3 + $0x80] sm:$0xff] %vm1917_vm7, %v2644_v45  ;;  %v2902_v32 = vmul.f32 %v2641_v36, %v2641_v36  ;;  %v2976_v11 = vsel %vm1917_vm7, %v2901_v27, 0.0  ;;  %v2781_v56 = vsel %vm1917_vm7, %v2641_v36, 0.0  ;;  %v2903_v4 = vmul.f32 %v2642_v24, %v2642_v24 }
 0x249   : > { %v2969_v10 = vadd.f32 %v2968_v20, %v2967_v7  ;;  %v2774_v53 = vadd.f32 %v2773_v35, %v2772_v22  ;;  %2709 = vst.msk [vmem:[%s5548_s3 + $0x88] sm:$0xff] %vm1917_vm7, %v2645_v34  ;;  %v2647_v44 = vadd.f32 %v4824_v40, %v2579_v37  ;;  %v2648_v12 = vadd.f32 %v4824_v40, %v2580_v1  ;;  %v2587_v20 = vld [vmem:[#allocation2 + $0xd8] sm:$0xff]  ;;  %v2588_v7 = vld [vmem:[#allocation2 + $0xe0] sm:$0xff] }
 0x24a   : > { %2710 = vst.msk [vmem:[%s5548_s3 + $0x90] sm:$0xff] %vm1917_vm7, %v2646_v25  ;;  %v2978_v19 = vsel %vm1917_vm7, %v2902_v32, 0.0  ;;  %v2783_v16 = vsel %vm1917_vm7, %v2642_v24, 0.0  ;;  %v2904_v52 = vmul.f32 %v2643_v42, %v2643_v42  ;;  %v4957_v18 = vadd.f32 %v4824_v40, %v2581_v5 }
 0x24b   : > { %v2971_v63 = vadd.f32 %v2970_v54, %v2969_v10  ;;  %v2776_v60 = vadd.f32 %v2775_v61, %v2774_v53  ;;  %2711 = vst.msk [vmem:[%s5548_s3 + $0x98] sm:$0xff] %vm1917_vm7, %v2647_v44  ;;  %v4964_v6 = vadd.f32 %v4824_v40, %v2582_v38  ;;  %v2980_v46 = vsel %vm1917_vm7, %v2903_v4, 0.0  ;;  %v2589_v54 = vld [vmem:[#allocation2 + $0xe8] sm:$0xff]  ;;  %v2590_v10 = vld [vmem:[#allocation2 + $0xf0] sm:$0xff] }
 0x24c   : > { %2712 = vst.msk [vmem:[%s5548_s3 + $0xa0] sm:$0xff] %vm1917_vm7, %v2648_v12  ;;  %v2785_v48 = vsel %vm1917_vm7, %v2643_v42, 0.0  ;;  %v2905_v2 = vmul.f32 %v2644_v45, %v2644_v45  ;;  %v4979_v50 = vadd.f32 %v4824_v40, %v2583_v21  ;;  %v2982_v26 = vsel %vm1917_vm7, %v2904_v52, 0.0 }
 0x24d   : > { %v2973_v17 = vadd.f32 %v2972_v58, %v2971_v63  ;;  %v2778_v59 = vadd.f32 %v2777_v30, %v2776_v60  ;;  %2713 = vst.msk [vmem:[%s5548_s3 + $0xa8] sm:$0xff] %vm1917_vm7, %v4957_v18  ;;  %v2787_v28 = vsel %vm1917_vm7, %v2644_v45, 0.0  ;;  %v2906_v43 = vmul.f32 %v2645_v34, %v2645_v34 }
 0x24e   : > { %2714 = vst.msk [vmem:[%s5548_s3 + $0xb0] sm:$0xff] %vm1917_vm7, %v4964_v6  ;;  %v4984_v47 = vadd.f32 %v4824_v40, %v2584_v62  ;;  %v4992_v0 = vadd.f32 %v4824_v40, %v2585_v14  ;;  %v2984_v35 = vsel %vm1917_vm7, %v2905_v2, 0.0  ;;  %v2789_v57 = vsel %vm1917_vm7, %v2645_v34, 0.0 }
 0x24f   : > { %v2975_v8 = vadd.f32 %v2974_v33, %v2973_v17  ;;  %v2780_v13 = vadd.f32 %v2779_v3, %v2778_v59  ;;  %2715 = vst.msk [vmem:[%s5548_s3 + $0xb8] sm:$0xff] %vm1917_vm7, %v4979_v50  ;;  %v2907_v24 = vmul.f32 %v2646_v25, %v2646_v25  ;;  %v5002_v39 = vadd.f32 %v4824_v40, %v2586_v29  ;;  %v2591_v33 = vld [vmem:[#allocation2 + $0xf8] sm:$0xff]  ;;  %v2592_v17 = vld [vmem:[#allocation2 + $0x100] sm:$0xff] }
 0x250   : > { %2716 = vst.msk [vmem:[%s5548_s3 + $0xc0] sm:$0xff] %vm1917_vm7, %v4984_v47  ;;  %v2986_v61 = vsel %vm1917_vm7, %v2906_v43, 0.0  ;;  %v2791_v49 = vsel %vm1917_vm7, %v2646_v25, 0.0  ;;  %v2908_v42 = vmul.f32 %v2647_v44, %v2647_v44  ;;  %v5017_v9 = vadd.f32 %v4824_v40, %v2587_v20 }
 0x251   : > { %v2977_v23 = vadd.f32 %v2976_v11, %v2975_v8  ;;  %v2782_v15 = vadd.f32 %v2781_v56, %v2780_v13  ;;  %2717 = vst.msk [vmem:[%s5548_s3 + $0xc8] sm:$0xff] %vm1917_vm7, %v4992_v0  ;;  %v5020_v58 = vadd.f32 %v4824_v40, %v2588_v7  ;;  %v2988_v30 = vsel %vm1917_vm7, %v2907_v24, 0.0  ;;  %v2593_v11 = vld [vmem:[#allocation2 + $0x108] sm:$0xff]  ;;  %v2594_v8 = vld [vmem:[#allocation2 + $0x110] sm:$0xff]  ;;  %v2599_v24 = vld [vmem:[#allocation2 + $0x138] sm:$0xff] }
 0x252   : > { %2718 = vst.msk [vmem:[%s5548_s3 + $0xd0] sm:$0xff] %vm1917_vm7, %v5002_v39  ;;  %v2793_v27 = vsel %vm1917_vm7, %v2647_v44, 0.0  ;;  %v2909_v34 = vmul.f32 %v2648_v12, %v2648_v12  ;;  %v5030_v63 = vadd.f32 %v4824_v40, %v2589_v54  ;;  %v5038_v37 = vadd.f32 %v4824_v40, %v2590_v10  ;;  %v2600_v54 = vld [vmem:[#allocation2 + $0x140] sm:$0xff] }
 0x253   : > { %v2979_v55 = vadd.f32 %v2978_v19, %v2977_v23  ;;  %v2784_v51 = vadd.f32 %v2783_v16, %v2782_v15  ;;  %2719 = vst.msk [vmem:[%s5548_s3 + $0xd8] sm:$0xff] %vm1917_vm7, %v5017_v9  ;;  %v2990_v3 = vsel %vm1917_vm7, %v2908_v42, 0.0  ;;  %v2795_v32 = vsel %vm1917_vm7, %v2648_v12, 0.0  ;;  %v2595_v23 = vld [vmem:[#allocation2 + $0x118] sm:$0xff] }
 0x254   : > { %2720 = vst.msk [vmem:[%s5548_s3 + $0xe0] sm:$0xff] %vm1917_vm7, %v5020_v58  ;;  %v2910_v1 = vmul.f32 %v4957_v18, %v4957_v18  ;;  %v2992_v56 = vsel %vm1917_vm7, %v2909_v34, 0.0  ;;  %v2797_v4 = vsel %vm1917_vm7, %v4957_v18, 0.0  ;;  %v2911_v44 = vmul.f32 %v4964_v6, %v4964_v6 }
 0x255   : > { %v2981_v41 = vadd.f32 %v2980_v46, %v2979_v55  ;;  %v2786_v36 = vadd.f32 %v2785_v48, %v2784_v51  ;;  %2721 = vst.msk [vmem:[%s5548_s3 + $0xe8] sm:$0xff] %vm1917_vm7, %v5030_v63  ;;  %v5060_v38 = vadd.f32 %v4824_v40, %v2591_v33  ;;  %v5063_v19 = vadd.f32 %v4824_v40, %v2592_v17  ;;  %v2596_v46 = vld [vmem:[#allocation2 + $0x120] sm:$0xff]  ;;  %v2597_v55 = vld [vmem:[#allocation2 + $0x128] sm:$0xff]  ;;  %v2603_v17 = vld [vmem:[#allocation2 + $0x158] sm:$0xff] }
 0x256   : > { %2722 = vst.msk [vmem:[%s5548_s3 + $0xf0] sm:$0xff] %vm1917_vm7, %v5038_v37  ;;  %v2994_v16 = vsel %vm1917_vm7, %v2910_v1, 0.0  ;;  %v2799_v52 = vsel %vm1917_vm7, %v4964_v6, 0.0  ;;  %v2912_v18 = vmul.f32 %v4979_v50, %v4979_v50  ;;  %v5076_v21 = vadd.f32 %v4824_v40, %v2593_v11 }
 0x257   : > { %v2983_v22 = vadd.f32 %v2982_v26, %v2981_v41  ;;  %v2788_v31 = vadd.f32 %v2787_v28, %v2786_v36  ;;  %2723 = vst.msk [vmem:[%s5548_s3 + $0xf8] sm:$0xff] %vm1917_vm7, %v5060_v38  ;;  %v5084_v6 = vadd.f32 %v4824_v40, %v2594_v8  ;;  %v2996_v48 = vsel %vm1917_vm7, %v2911_v44, 0.0  ;;  %v2598_v26 = vld [vmem:[#allocation2 + $0x130] sm:$0xff]  ;;  %v2605_v8 = vld [vmem:[#allocation2 + $0x168] sm:$0xff] }
 0x258   : > { %2724 = vst.msk [vmem:[%s5548_s3 + $0x100] sm:$0xff] %vm1917_vm7, %v5063_v19  ;;  %v2801_v2 = vsel %vm1917_vm7, %v4979_v50, 0.0  ;;  %v2913_v14 = vmul.f32 %v4984_v47, %v4984_v47  ;;  %v5102_v50 = vadd.f32 %v4824_v40, %v2595_v23  ;;  %v2998_v28 = vsel %vm1917_vm7, %v2912_v18, 0.0 }
 0x259   : > { %v2985_v53 = vadd.f32 %v2984_v35, %v2983_v22  ;;  %v2790_v45 = vadd.f32 %v2789_v57, %v2788_v31  ;;  %2725 = vst.msk [vmem:[%s5548_s3 + $0x108] sm:$0xff] %vm1917_vm7, %v5076_v21  ;;  %v2803_v43 = vsel %vm1917_vm7, %v4984_v47, 0.0  ;;  %v2914_v41 = vmul.f32 %v4992_v0, %v4992_v0 }
 0x25a   : > { %2726 = vst.msk [vmem:[%s5548_s3 + $0x110] sm:$0xff] %vm1917_vm7, %v5084_v6  ;;  %v5110_v36 = vadd.f32 %v4824_v40, %v2596_v46  ;;  %v5118_v57 = vadd.f32 %v4824_v40, %v2597_v55  ;;  %v3000_v47 = vsel %vm1917_vm7, %v2913_v14, 0.0  ;;  %v2805_v7 = vsel %vm1917_vm7, %v4992_v0, 0.0  ;;  %v2601_v0 = vld [vmem:[#allocation2 + $0x148] sm:$0xff] }
 0x25b   : > { %v2987_v60 = vadd.f32 %v2986_v61, %v2985_v53  ;;  %v2792_v25 = vadd.f32 %v2791_v49, %v2790_v45  ;;  %2727 = vst.msk [vmem:[%s5548_s3 + $0x118] sm:$0xff] %vm1917_vm7, %v5102_v50  ;;  %v2915_v22 = vmul.f32 %v5002_v39, %v5002_v39  ;;  %v5131_v31 = vadd.f32 %v4824_v40, %v2598_v26 }
 0x25c   : > { %2728 = vst.msk [vmem:[%s5548_s3 + $0x120] sm:$0xff] %vm1917_vm7, %v5110_v36  ;;  %v3002_v42 = vsel %vm1917_vm7, %v2914_v41, 0.0  ;;  %v2807_v10 = vsel %vm1917_vm7, %v5002_v39, 0.0  ;;  %v2916_v53 = vmul.f32 %v5017_v9, %v5017_v9  ;;  %v5149_v45 = vadd.f32 %v4824_v40, %v2599_v24 }
 0x25d   : > { %v2989_v59 = vadd.f32 %v2988_v30, %v2987_v60  ;;  %v2794_v5 = vadd.f32 %v2793_v27, %v2792_v25  ;;  %2729 = vst.msk [vmem:[%s5548_s3 + $0x128] sm:$0xff] %vm1917_vm7, %v5118_v57  ;;  %v2602_v30 = vld [vmem:[#allocation2 + $0x150] sm:$0xff]  ;;  %v5152_v60 = vadd.f32 %v4824_v40, %v2600_v54  ;;  %v3004_v39 = vsel %vm1917_vm7, %v2915_v22, 0.0 }
 0x25e   : > { %2730 = vst.msk [vmem:[%s5548_s3 + $0x130] sm:$0xff] %vm1917_vm7, %v5131_v31  ;;  %v2809_v25 = vsel %vm1917_vm7, %v5017_v9, 0.0  ;;  %v2917_v33 = vmul.f32 %v5020_v58, %v5020_v58  ;;  %v5173_v9 = vadd.f32 %v4824_v40, %v2602_v30  ;;  %v2918_v11 = vmul.f32 %v5030_v63, %v5030_v63 }
 0x25f   : > { %v2991_v13 = vadd.f32 %v2990_v3, %v2989_v59  ;;  %v2796_v12 = vadd.f32 %v2795_v32, %v2794_v5  ;;  %2731 = vst.msk [vmem:[%s5548_s3 + $0x138] sm:$0xff] %vm1917_vm7, %v5149_v45  ;;  %v5165_v3 = vadd.f32 %v4824_v40, %v2601_v0  ;;  %v3006_v59 = vsel %vm1917_vm7, %v2916_v53, 0.0  ;;  %v2610_v53 = vld [vmem:[#allocation2 + $0x190] sm:$0xff] }
 0x260   : > { %2732 = vst.msk [vmem:[%s5548_s3 + $0x140] sm:$0xff] %vm1917_vm7, %v5152_v60  ;;  %v2811_v5 = vsel %vm1917_vm7, %v5020_v58, 0.0  ;;  %v3008_v58 = vsel %vm1917_vm7, %v2917_v33, 0.0  ;;  %v2815_v46 = vsel %vm1917_vm7, %v5038_v37, 0.0  ;;  %v2922_v24 = vmul.f32 %v5076_v21, %v5076_v21  ;;  %v2611_v33 = vld [vmem:[#allocation2 + $0x198] sm:$0xff] }
 0x261   : > { %v2993_v15 = vadd.f32 %v2992_v56, %v2991_v13  ;;  %v2798_v62 = vadd.f32 %v2797_v4, %v2796_v12  ;;  %2733 = vst.msk [vmem:[%s5548_s3 + $0x148] sm:$0xff] %vm1917_vm7, %v5165_v3  ;;  %v2604_v56 = vld [vmem:[#allocation2 + $0x160] sm:$0xff]  ;;  %v2813_v13 = vsel %vm1917_vm7, %v5030_v63, 0.0  ;;  %v2919_v12 = vmul.f32 %v5038_v37, %v5038_v37  ;;  %v2607_v37 = vld [vmem:[#allocation2 + $0x178] sm:$0xff] }
 0x262   : > { %2734 = vst.msk [vmem:[%s5548_s3 + $0x150] sm:$0xff] %vm1917_vm7, %v5173_v9  ;;  %v5199_v23 = vadd.f32 %v4824_v40, %v2604_v56  ;;  %v2920_v63 = vmul.f32 %v5060_v38, %v5060_v38  ;;  %v5233_v41 = vadd.f32 %v4824_v40, %v2607_v37  ;;  %v3018_v30 = vsel %vm1917_vm7, %v2922_v24, 0.0 }
 0x263   : > { %v2995_v51 = vadd.f32 %v2994_v16, %v2993_v15  ;;  %v2800_v29 = vadd.f32 %v2799_v52, %v2798_v62  ;;  %v5196_v16 = vadd.f32 %v4824_v40, %v2603_v17  ;;  %v2606_v15 = vld [vmem:[#allocation2 + $0x170] sm:$0xff]  ;;  %v3010_v62 = vsel %vm1917_vm7, %v2918_v11, 0.0  ;;  %v2612_v11 = vld [vmem:[#allocation2 + $0x1a0] sm:$0xff] }
 0x264   : > { %2736 = vst.msk [vmem:[%s5548_s3 + $0x160] sm:$0xff] %vm1917_vm7, %v5199_v23  ;;  %v3012_v55 = vsel %vm1917_vm7, %v2919_v12, 0.0  ;;  %v5230_v26 = vadd.f32 %v4824_v40, %v2606_v15  ;;  %v5290_v17 = vadd.f32 %v4824_v40, %v2611_v33 }
 0x265   : > { %v2997_v20 = vadd.f32 %v2996_v48, %v2995_v51  ;;  %v2802_v35 = vadd.f32 %v2801_v2, %v2800_v29  ;;  %2735 = vst.msk [vmem:[%s5548_s3 + $0x158] sm:$0xff] %vm1917_vm7, %v5196_v16  ;;  %v5212_v48 = vadd.f32 %v4824_v40, %v2605_v8  ;;  %v2817_v51 = vsel %vm1917_vm7, %v5060_v38, 0.0 }
 0x266   : > { %v2921_v29 = vmul.f32 %v5063_v19, %v5063_v19  ;;  %v3014_v38 = vsel %vm1917_vm7, %v2920_v63, 0.0  ;;  %2738 = vst.msk [vmem:[%s5548_s3 + $0x170] sm:$0xff] %vm1917_vm7, %v5230_v26 }
 0x267   : > { %v2999_v61 = vadd.f32 %v2998_v28, %v2997_v20  ;;  %v2804_v49 = vadd.f32 %v2803_v43, %v2802_v35  ;;  %2737 = vst.msk [vmem:[%s5548_s3 + $0x168] sm:$0xff] %vm1917_vm7, %v5212_v48  ;;  %v2608_v20 = vld [vmem:[#allocation2 + $0x180] sm:$0xff]  ;;  %v2819_v35 = vsel %vm1917_vm7, %v5063_v19, 0.0  ;;  %v2609_v19 = vld [vmem:[#allocation2 + $0x188] sm:$0xff] }
 0x268   : > { %2739 = vst.msk [vmem:[%s5548_s3 + $0x178] sm:$0xff] %vm1917_vm7, %v5233_v41  ;;  %v3016_v54 = vsel %vm1917_vm7, %v2921_v29, 0.0  ;;  %v5264_v0 = vadd.f32 %v4824_v40, %v2609_v19 }
 0x269   : > { %v3001_v27 = vadd.f32 %v3000_v47, %v2999_v61  ;;  %v2806_v34 = vadd.f32 %v2805_v7, %v2804_v49  ;;  %v5246_v47 = vadd.f32 %v4824_v40, %v2608_v20  ;;  %v2821_v61 = vsel %vm1917_vm7, %v5076_v21, 0.0  ;;  %2743 = vst.msk [vmem:[%s5548_s3 + $0x198] sm:$0xff] %vm1917_vm7, %v5290_v17 }
 0x26a   : > { %v2923_v49 = vmul.f32 %v5084_v6, %v5084_v6  ;;  %v2823_v21 = vsel %vm1917_vm7, %v5084_v6, 0.0  ;;  %2741 = vst.msk [vmem:[%s5548_s3 + $0x188] sm:$0xff] %vm1917_vm7, %v5264_v0  ;;  %v2825_v6 = vsel %vm1917_vm7, %v5102_v50, 0.0 }
 0x26b   : > { %v3003_v32 = vadd.f32 %v3002_v42, %v3001_v27  ;;  %v2808_v1 = vadd.f32 %v2807_v10, %v2806_v34  ;;  %2740 = vst.msk [vmem:[%s5548_s3 + $0x180] sm:$0xff] %vm1917_vm7, %v5246_v47  ;;  %v2924_v27 = vmul.f32 %v5102_v50, %v5102_v50  ;;  %v5277_v34 = vadd.f32 %v4824_v40, %v2610_v53 }
 0x26c   : > { %v2827_v50 = vsel %vm1917_vm7, %v5110_v36, 0.0 }
 0x26d   : > { %v3005_v4 = vadd.f32 %v3004_v39, %v3003_v32  ;;  %v2810_v44 = vadd.f32 %v2809_v25, %v2808_v1  ;;  %v3020_v32 = vsel %vm1917_vm7, %v2923_v49, 0.0  ;;  %v2925_v1 = vmul.f32 %v5110_v36, %v5110_v36  ;;  %2742 = vst.msk [vmem:[%s5548_s3 + $0x190] sm:$0xff] %vm1917_vm7, %v5277_v34 }
 0x26e   : > { %v3022_v56 = vsel %vm1917_vm7, %v2924_v27, 0.0  ;;  %v2829_v36 = vsel %vm1917_vm7, %v5118_v57, 0.0 }
 0x26f   : > { %v3007_v52 = vadd.f32 %v3006_v59, %v3005_v4  ;;  %v2812_v18 = vadd.f32 %v2811_v5, %v2810_v44  ;;  %v2926_v4 = vmul.f32 %v5118_v57, %v5118_v57  ;;  %v5303_v44 = vadd.f32 %v4824_v40, %v2612_v11 }
 0x270   : > { %v3024_v12 = vsel %vm1917_vm7, %v2925_v1, 0.0  ;;  %v2831_v57 = vsel %vm1917_vm7, %v5131_v31, 0.0 }
 0x271   : > { %v3009_v2 = vadd.f32 %v3008_v58, %v3007_v52  ;;  %v2814_v14 = vadd.f32 %v2813_v13, %v2812_v18  ;;  %v2613_v13 = vld [vmem:[#allocation2 + $0x1a8] sm:$0xff]  ;;  %v2927_v52 = vmul.f32 %v5131_v31, %v5131_v31  ;;  %2744 = vst.msk [vmem:[%s5548_s3 + $0x1a0] sm:$0xff] %vm1917_vm7, %v5303_v44  ;;  %v3026_v63 = vsel %vm1917_vm7, %v2926_v4, 0.0 }
 0x272   : > { %v5316_v18 = vadd.f32 %v4824_v40, %v2613_v13  ;;  %v2833_v31 = vsel %vm1917_vm7, %v5149_v45, 0.0 }
 0x273   : > { %v3011_v28 = vadd.f32 %v3010_v62, %v3009_v2  ;;  %v2816_v43 = vadd.f32 %v2815_v46, %v2814_v14  ;;  %v2614_v46 = vld [vmem:[#allocation2 + $0x1b0] sm:$0xff]  ;;  %v2928_v2 = vmul.f32 %v5149_v45, %v5149_v45  ;;  %v3028_v29 = vsel %vm1917_vm7, %v2927_v52, 0.0 }
 0x274   : > { %2745 = vst.msk [vmem:[%s5548_s3 + $0x1a8] sm:$0xff] %vm1917_vm7, %v5316_v18  ;;  %v5329_v14 = vadd.f32 %v4824_v40, %v2614_v46  ;;  %v2835_v45 = vsel %vm1917_vm7, %v5152_v60, 0.0 }
 0x275   : > { %v3013_v7 = vadd.f32 %v3012_v55, %v3011_v28  ;;  %v2818_v22 = vadd.f32 %v2817_v51, %v2816_v43  ;;  %v2615_v51 = vld [vmem:[#allocation2 + $0x1b8] sm:$0xff]  ;;  %v2929_v28 = vmul.f32 %v5152_v60, %v5152_v60  ;;  %v3030_v24 = vsel %vm1917_vm7, %v2928_v2, 0.0 }
 0x276   : > { %2746 = vst.msk [vmem:[%s5548_s3 + $0x1b0] sm:$0xff] %vm1917_vm7, %v5329_v14  ;;  %v5342_v43 = vadd.f32 %v4824_v40, %v2615_v51  ;;  %v2837_v60 = vsel %vm1917_vm7, %v5165_v3, 0.0 }
 0x277   : > { %v3015_v42 = vadd.f32 %v3014_v38, %v3013_v7  ;;  %v2820_v10 = vadd.f32 %v2819_v35, %v2818_v22  ;;  %v2616_v35 = vld [vmem:[#allocation2 + $0x1c0] sm:$0xff]  ;;  %v2930_v7 = vmul.f32 %v5165_v3, %v5165_v3  ;;  %v3032_v49 = vsel %vm1917_vm7, %v2929_v28, 0.0 }
 0x278   : > { %2747 = vst.msk [vmem:[%s5548_s3 + $0x1b8] sm:$0xff] %vm1917_vm7, %v5342_v43  ;;  %v5355_v22 = vadd.f32 %v4824_v40, %v2616_v35  ;;  %v2839_v3 = vsel %vm1917_vm7, %v5173_v9, 0.0 }
 0x279   : > { %v3017_v39 = vadd.f32 %v3016_v54, %v3015_v42  ;;  %v2822_v25 = vadd.f32 %v2821_v61, %v2820_v10  ;;  %v2617_v61 = vld [vmem:[#allocation2 + $0x1c8] sm:$0xff]  ;;  %v2931_v42 = vmul.f32 %v5173_v9, %v5173_v9  ;;  %v3034_v27 = vsel %vm1917_vm7, %v2930_v7, 0.0 }
 0x27a   : > { %2748 = vst.msk [vmem:[%s5548_s3 + $0x1c0] sm:$0xff] %vm1917_vm7, %v5355_v22  ;;  %v5368_v10 = vadd.f32 %v4824_v40, %v2617_v61  ;;  %v2841_v9 = vsel %vm1917_vm7, %v5196_v16, 0.0  ;;  %v2851_v7 = vsel %vm1917_vm7, %v5246_v47, 0.0  ;;  %v2853_v61 = vsel %vm1917_vm7, %v5264_v0, 0.0 }
 0x27b   : > { %v3019_v59 = vadd.f32 %v3018_v30, %v3017_v39  ;;  %v2824_v5 = vadd.f32 %v2823_v21, %v2822_v25  ;;  %v2618_v21 = vld [vmem:[#allocation2 + $0x1d0] sm:$0xff]  ;;  %v2932_v39 = vmul.f32 %v5196_v16, %v5196_v16  ;;  %v3036_v1 = vsel %vm1917_vm7, %v2931_v42, 0.0 }
 0x27c   : > { %2749 = vst.msk [vmem:[%s5548_s3 + $0x1c8] sm:$0xff] %vm1917_vm7, %v5368_v10  ;;  %v5381_v25 = vadd.f32 %v4824_v40, %v2618_v21  ;;  %v2843_v16 = vsel %vm1917_vm7, %v5199_v23, 0.0 }
 0x27d   : > { %v3021_v8 = vadd.f32 %v3020_v32, %v3019_v59  ;;  %v2826_v58 = vadd.f32 %v2825_v6, %v2824_v5  ;;  %v2619_v6 = vld [vmem:[#allocation2 + $0x1d8] sm:$0xff]  ;;  %v2933_v59 = vmul.f32 %v5199_v23, %v5199_v23  ;;  %v3038_v4 = vsel %vm1917_vm7, %v2932_v39, 0.0 }
 0x27e   : > { %2750 = vst.msk [vmem:[%s5548_s3 + $0x1d0] sm:$0xff] %vm1917_vm7, %v5381_v25  ;;  %v5394_v5 = vadd.f32 %v4824_v40, %v2619_v6  ;;  %v2845_v23 = vsel %vm1917_vm7, %v5212_v48, 0.0  ;;  %v2941_v39 = vmul.f32 %v5303_v44, %v5303_v44 }
 0x27f   : > { %v3023_v15 = vadd.f32 %v3022_v56, %v3021_v8  ;;  %v2828_v62 = vadd.f32 %v2827_v50, %v2826_v58  ;;  %v2620_v50 = vld [vmem:[#allocation2 + $0x1e0] sm:$0xff]  ;;  %v2934_v8 = vmul.f32 %v5212_v48, %v5212_v48  ;;  %v3040_v52 = vsel %vm1917_vm7, %v2933_v59, 0.0 }
 0x280   : > { %2751 = vst.msk [vmem:[%s5548_s3 + $0x1d8] sm:$0xff] %vm1917_vm7, %v5394_v5  ;;  %v5407_v58 = vadd.f32 %v4824_v40, %v2620_v50  ;;  %v2847_v48 = vsel %vm1917_vm7, %v5230_v26, 0.0 }
 0x281   : > { %v3025_v37 = vadd.f32 %v3024_v12, %v3023_v15  ;;  %v2830_v55 = vadd.f32 %v2829_v36, %v2828_v62  ;;  %v2621_v36 = vld [vmem:[#allocation2 + $0x1e8] sm:$0xff]  ;;  %v2935_v15 = vmul.f32 %v5230_v26, %v5230_v26  ;;  %v3042_v2 = vsel %vm1917_vm7, %v2934_v8, 0.0 }
 0x282   : > { %2752 = vst.msk [vmem:[%s5548_s3 + $0x1e0] sm:$0xff] %vm1917_vm7, %v5407_v58  ;;  %v5420_v62 = vadd.f32 %v4824_v40, %v2621_v36  ;;  %v2849_v26 = vsel %vm1917_vm7, %v5233_v41, 0.0  ;;  %v2944_v8 = vmul.f32 %v5342_v43, %v5342_v43 }
 0x283   : > { %v3027_v20 = vadd.f32 %v3026_v63, %v3025_v37  ;;  %v2832_v38 = vadd.f32 %v2831_v57, %v2830_v55  ;;  %v2622_v57 = vld [vmem:[#allocation2 + $0x1f0] sm:$0xff]  ;;  %v2936_v37 = vmul.f32 %v5233_v41, %v5233_v41  ;;  %v3044_v28 = vsel %vm1917_vm7, %v2935_v15, 0.0 }
 0x284   : > { %2753 = vst.msk [vmem:[%s5548_s3 + $0x1e8] sm:$0xff] %vm1917_vm7, %v5420_v62  ;;  %v5433_v55 = vadd.f32 %v4824_v40, %v2622_v57  ;;  %v2938_v41 = vmul.f32 %v5264_v0, %v5264_v0  ;;  %v2857_v0 = vsel %vm1917_vm7, %v5290_v17, 0.0 }
 0x285   : > { %v3029_v19 = vadd.f32 %v3028_v29, %v3027_v20  ;;  %v2834_v54 = vadd.f32 %v2833_v31, %v2832_v38  ;;  %v2623_v31 = vld [vmem:[#allocation2 + $0x1f8] sm:$0xff]  ;;  %v2937_v20 = vmul.f32 %v5246_v47, %v5246_v47 }
 0x286   : > { %2754 = vst.msk [vmem:[%s5548_s3 + $0x1f0] sm:$0xff] %vm1917_vm7, %v5433_v55  ;;  %v5446_v38 = vadd.f32 %v4824_v40, %v2623_v31  ;;  %v3050_v42 = vsel %vm1917_vm7, %v2938_v41, 0.0 }
 0x287   : > { %v3031_v53 = vadd.f32 %v3030_v24, %v3029_v19  ;;  %v2836_v30 = vadd.f32 %v2835_v45, %v2834_v54  ;;  %v3046_v45 = vsel %vm1917_vm7, %v2936_v37, 0.0  ;;  %v3048_v40 = vsel %vm1917_vm7, %v2937_v20, 0.0 }
 0x288   : > { %2755 = vst.msk [vmem:[%s5548_s3 + $0x1f8] sm:$0xff] %vm1917_vm7, %v5446_v38  ;;  %v2947_v37 = vmul.f32 %v5381_v25, %v5381_v25 }
 0x289   : > { %v3033_v33 = vadd.f32 %v3032_v49, %v3031_v53  ;;  %v2838_v32 = vadd.f32 %v2837_v60, %v2836_v30  ;;  %v2939_v49 = vmul.f32 %v5277_v34, %v5277_v34  ;;  %v2855_v53 = vsel %vm1917_vm7, %v5277_v34, 0.0 }
 0x28a   : > { %v2940_v30 = vmul.f32 %v5290_v17, %v5290_v17  ;;  %v2859_v34 = vsel %vm1917_vm7, %v5303_v44, 0.0  ;;  %v2861_v17 = vsel %vm1917_vm7, %v5316_v18, 0.0  ;;  %v2863_v44 = vsel %vm1917_vm7, %v5329_v14, 0.0 }
 0x28b   : > { %v3035_v11 = vadd.f32 %v3034_v27, %v3033_v33  ;;  %v2840_v56 = vadd.f32 %v2839_v3, %v2838_v32  ;;  %v3052_v3 = vsel %vm1917_vm7, %v2939_v49, 0.0  ;;  %v2951_v49 = vmul.f32 %v5433_v55, %v5433_v55 }
 0x28c   : > { %v3054_v6 = vsel %vm1917_vm7, %v2940_v30, 0.0 }
 0x28d   : > { %v3037_v13 = vadd.f32 %v3036_v1, %v3035_v11  ;;  %v2842_v12 = vadd.f32 %v2841_v9, %v2840_v56  ;;  %v2942_v1 = vmul.f32 %v5316_v18, %v5316_v18  ;;  %v3056_v11 = vsel %vm1917_vm7, %v2941_v39, 0.0 }
 0x28e   : > { %v2943_v56 = vmul.f32 %v5329_v14, %v5329_v14  ;;  %v2865_v18 = vsel %vm1917_vm7, %v5342_v43, 0.0  ;;  %v2867_v14 = vsel %vm1917_vm7, %v5355_v22, 0.0  ;;  %v2869_v43 = vsel %vm1917_vm7, %v5368_v10, 0.0 }
 0x28f   : > { %v3039_v46 = vadd.f32 %v3038_v4, %v3037_v13  ;;  %v2844_v63 = vadd.f32 %v2843_v16, %v2842_v12  ;;  %v3058_v16 = vsel %vm1917_vm7, %v2942_v1, 0.0 }
 0x290   : > { %v3060_v36 = vsel %vm1917_vm7, %v2943_v56, 0.0 }
 0x291   : > { %v3041_v51 = vadd.f32 %v3040_v52, %v3039_v46  ;;  %v2846_v29 = vadd.f32 %v2845_v23, %v2844_v63  ;;  %v2945_v52 = vmul.f32 %v5355_v22, %v5355_v22  ;;  %v3062_v46 = vsel %vm1917_vm7, %v2944_v8, 0.0 }
 0x292   : > { %v2946_v63 = vmul.f32 %v5368_v10, %v5368_v10  ;;  %v2871_v22 = vsel %vm1917_vm7, %v5381_v25, 0.0  ;;  %v2873_v10 = vsel %vm1917_vm7, %v5394_v5, 0.0  ;;  %v2875_v25 = vsel %vm1917_vm7, %v5407_v58, 0.0 }
 0x293   : > { %v3043_v35 = vadd.f32 %v3042_v2, %v3041_v51  ;;  %v2848_v24 = vadd.f32 %v2847_v48, %v2846_v29  ;;  %v3064_v48 = vsel %vm1917_vm7, %v2945_v52, 0.0 }
 0x294   : > { %v3066_v31 = vsel %vm1917_vm7, %v2946_v63, 0.0 }
 0x295   : > { %v3045_v19 = vadd.f32 %v3044_v28, %v3043_v35  ;;  %v2850_v54 = vadd.f32 %v2849_v26, %v2848_v24  ;;  %v2948_v28 = vmul.f32 %v5394_v5, %v5394_v5  ;;  %v3068_v35 = vsel %vm1917_vm7, %v2947_v37, 0.0 }
 0x296   : > { %v2949_v24 = vmul.f32 %v5407_v58, %v5407_v58  ;;  %v2877_v5 = vsel %vm1917_vm7, %v5420_v62, 0.0  ;;  %v2879_v58 = vsel %vm1917_vm7, %v5433_v55, 0.0 }
 0x297   : > { %v3047_v47 = vadd.f32 %v3046_v45, %v3045_v19  ;;  %v2852_v60 = vadd.f32 %v2851_v7, %v2850_v54  ;;  %v3070_v41 = vsel %vm1917_vm7, %v2948_v28, 0.0  ;;  %v2950_v19 = vmul.f32 %v5420_v62, %v5420_v62 }
 0x298   : > { %v2881_v62 = vsel %vm1917_vm7, %v5446_v38, 0.0 }
 0x299   : > { %v3049_v21 = vadd.f32 %v3048_v40, %v3047_v47  ;;  %v2854_v27 = vadd.f32 %v2853_v61, %v2852_v60  ;;  %v3072_v61 = vsel %vm1917_vm7, %v2949_v24, 0.0 }
 0x29b   : > { %v3051_v33 = vadd.f32 %v3050_v42, %v3049_v21  ;;  %v2856_v32 = vadd.f32 %v2855_v53, %v2854_v27  ;;  %v3074_v42 = vsel %vm1917_vm7, %v2950_v19, 0.0  ;;  %v2952_v53 = vmul.f32 %v5446_v38, %v5446_v38 }
 0x29c   : > { %v3076_v27 = vsel %vm1917_vm7, %v2951_v49, 0.0 }
 0x29d   : > { %v3053_v9 = vadd.f32 %v3052_v3, %v3051_v33  ;;  %v2858_v59 = vadd.f32 %v2857_v0, %v2856_v32  ;;  %v3078_v39 = vsel %vm1917_vm7, %v2952_v53, 0.0 }
 0x29f   : > { %v3055_v50 = vadd.f32 %v3054_v6, %v3053_v9  ;;  %v2860_v4 = vadd.f32 %v2859_v34, %v2858_v59 }
 0x2a1   : > { %v3057_v13 = vadd.f32 %v3056_v11, %v3055_v50  ;;  %v2862_v12 = vadd.f32 %v2861_v17, %v2860_v4 }
 0x2a3   : > { %v3059_v23 = vadd.f32 %v3058_v16, %v3057_v13  ;;  %v2864_v15 = vadd.f32 %v2863_v44, %v2862_v12 }
 0x2a5   : > { %v3061_v57 = vadd.f32 %v3060_v36, %v3059_v23  ;;  %v2866_v2 = vadd.f32 %v2865_v18, %v2864_v15 }
 0x2a7   : > { %v3063_v51 = vadd.f32 %v3062_v46, %v3061_v57  ;;  %v2868_v29 = vadd.f32 %v2867_v14, %v2866_v2 }
 0x2a9   : > { %v3065_v26 = vadd.f32 %v3064_v48, %v3063_v51  ;;  %v2870_v20 = vadd.f32 %v2869_v43, %v2868_v29 }
 0x2ab   : > { %v3067_v45 = vadd.f32 %v3066_v31, %v3065_v26  ;;  %v2872_v7 = vadd.f32 %v2871_v22, %v2870_v20 }
 0x2ad   : > { %v3069_v54 = vadd.f32 %v3068_v35, %v3067_v45  ;;  %v2874_v40 = vadd.f32 %v2873_v10, %v2872_v7 }
 0x2af   : > { %v3071_v47 = vadd.f32 %v3070_v41, %v3069_v54  ;;  %v2876_v60 = vadd.f32 %v2875_v25, %v2874_v40 }
 0x2b1   : > { %v3073_v30 = vadd.f32 %v3072_v61, %v3071_v47  ;;  %v2878_v21 = vadd.f32 %v2877_v5, %v2876_v60 }
 0x2b3   : > { %v3075_v3 = vadd.f32 %v3074_v42, %v3073_v30  ;;  %v2880_v0 = vadd.f32 %v2879_v58, %v2878_v21 }
 0x2b5   : > { %v3077_v33 = vadd.f32 %v3076_v27, %v3075_v3  ;;  %v2882_v32 = vadd.f32 %v2881_v62, %v2880_v0 }
 0x2b7   : > { %v3079_v6 = vadd.f32 %v3078_v39, %v3077_v33  ;;  %v2883_v34 = vrot.slane %v2882_v32, 4 }
 0x2b9   : > { %v2884_v1 = vadd.f32 %v2883_v34, %v2882_v32  ;;  %v3080_v55 = vrot.slane %v3079_v6, 4 }
 0x2bb   : > { %v2885_v9 = vrot.slane %v2884_v1, 2  ;;  %v3081_v59 = vadd.f32 %v3080_v55, %v3079_v6 }
 0x2bd   : > { %v2886_v11 = vadd.f32 %v2885_v9, %v2884_v1  ;;  %v3082_v17 = vrot.slane %v3081_v59, 2 }
 0x2bf   : > { %v2887_v56 = vrot.slane %v2886_v11, 1  ;;  %v3083_v50 = vadd.f32 %v3082_v17, %v3081_v59 }
 0x2c1   : > { %v2888_v4 = vadd.f32 %v2887_v56, %v2886_v11  ;;  %v3084_v16 = vrot.slane %v3083_v50, 1 }
 0x2c3   : > { %v3085_v38 = vadd.f32 %v3084_v16, %v3083_v50 }
 0x2c5   : > { %v3087_v44 = vsel %vm3086_vm10, %v2888_v4, %v3085_v38 }
 0x2c6   : > { %v3089_v8 = vsel %vm3088_vm11, %v3087_v44, 0.0 }
 0x2c7   : > { %3090 = vst.msk [vmem:[%s5549_s4] sm:$0xff] %vm1917_vm7, %v3089_v8 }
 0x2c8 PF: > { %s15_s17 = sadd.s32 1, %s3529_s17   ;;  %s5554_s15 = smov %s3525_s16 }
 0x2c9   : > { %p12_p7 = scmp.ge.s32.totalorder %s15_s17, 5   ;;  %s5555_s16 = smov %s5557_s18 }
 0x2cb   :  { %14 = sbr.rel (!%p12_p7) target bundleno = 2 (0x2), region = 83 }

</bundles_post_ra>
